<compile_context>
chip_gen: v7x
topology: tpu7x:2x2x1
jax: 0.10.0
libtpu: 0.0.40
codegen_flags: <defaults>
</compile_context>

<pallas_src>
import functools
import math

import jax
import jax.numpy as jnp
from jax.experimental import pallas as pl
from jax.experimental.pallas import tpu as pltpu

EPS = 1e-5
NEG_SLOPE = 0.2

# (stride, instance_norm, leaky_relu) per conv layer, matching the PyTorch module.
_LAYER_CFG = [
    (2, False, True),
    (2, True, True),
    (2, True, True),
    (1, True, True),
    (1, False, False),
]


# ----------------------------------------------------------------------------- kernel
def _layer_kernel(x_ref, w_ref, b_ref, o_ref, *, tap_offsets, k_per_tap, m,
                  wrow, out_w, n_valid, do_norm, do_act):
    """One conv layer for one image as a few whole-image MXU dots.

    x_ref: (P, K)        bf16 flattened (padded / space-to-depth) input image
    w_ref: (T*K, Cout)   bf16 per-tap weight matrices stacked along rows
    b_ref: (1, Cout)     f32 bias
    o_ref: (M, Cout)     output; M = Ho*Wrow ("wide" rows incl. don't-care columns)
    """
    cout = o_ref.shape[-1]
    # Hoisted bias broadcast; f32 accumulator lives in vregs/VMEM as a value.
    acc = jnp.broadcast_to(b_ref[...].astype(jnp.float32), (m, cout))

    # One big dot per tap: (M, K) @ (K, Cout), f32 accumulation on the MXU.
    for t, off in enumerate(tap_offsets):
        lhs = x_ref[pl.ds(off, m), :]                        # (M, K) bf16
        rhs = w_ref[pl.ds(t * k_per_tap, k_per_tap), :]      # (K, Cout) bf16
        acc = acc + jnp.dot(lhs, rhs, preferred_element_type=jnp.float32)

    if do_norm:
        # InstanceNorm over the valid columns only (two-pass centered variance).
        col = jax.lax.broadcasted_iota(jnp.int32, (m, 1), 0) % wrow
        valid = col < out_w                                   # (M, 1) mask
        inv_n = 1.0 / float(n_valid)
        mean = jnp.sum(jnp.where(valid, acc, 0.0), axis=0, keepdims=True) * inv_n
        centered = acc - mean
        var = jnp.sum(jnp.where(valid, centered * centered, 0.0),
                      axis=0, keepdims=True) * inv_n
        acc = centered * jax.lax.rsqrt(var + EPS)

    if do_act:
        acc = jnp.where(acc >= 0, acc, NEG_SLOPE * acc)

    o_ref[...] = acc.astype(o_ref.dtype)


# ----------------------------------------------------------------------------- layer
def _conv_layer(x, w, b, *, stride, do_norm, do_act, out_dtype):
    """x: (N, H, W, Cin) bf16 NHWC.  w: (3,3,Cin,Cout) f32 HWIO.  b: (Cout,) f32."""
    n, h, width, cin = x.shape
    cout = w.shape[-1]

    if stride == 1:
        ho, wo = h, width
        wrow = width + 2
        # 1 px zero halo (+1 extra bottom row so every tap's flat slab stays in bounds).
        xp = jnp.pad(x, ((0, 0), (1, 2), (1, 1), (0, 0)))
        xflat = xp.reshape(n, (h + 3) * wrow, cin)
        k_per_tap = cin
        taps = w.reshape(9 * cin, cout)                       # tap (kh,kw) row-major
        offsets = tuple(kh * wrow + kw for kh in range(3) for kw in range(3))
    else:
        assert h % 2 == 0 and width % 2 == 0, "stride-2 layers expect even H, W"
        ho, wo = h // 2, width // 2
        hs, ws = (h + 2) // 2, (width + 2) // 2
        wrow = ws
        xp = jnp.pad(x, ((0, 0), (1, 1), (1, 1), (0, 0)))
        # Space-to-depth: 3x3 stride-2 conv == 2x2 stride-1 conv over (Hs, Ws, 4*Cin).
        xs = xp.reshape(n, hs, 2, ws, 2, cin).transpose(0, 1, 3, 2, 4, 5)
        xs = xs.reshape(n, hs, ws, 4 * cin)
        xs = jnp.pad(xs, ((0, 0), (0, 1), (0, 0), (0, 0)))    # bounds-slack row
        xflat = xs.reshape(n, (hs + 1) * ws, 4 * cin)
        k_per_tap = 4 * cin
        # Build the 4 tap matrices (4*Cin, Cout) from the 3x3 HWIO kernel.
        blocks = []
        for dh in range(2):
            for dw in range(2):
                tap = []
                for p in range(2):
                    for q in range(2):
                        kh, kw = 2 * dh + p, 2 * dw + q
                        if kh < 3 and kw < 3:
                            tap.append(w[kh, kw])
                        else:
                            tap.append(jnp.zeros((cin, cout), w.dtype))
                blocks.append(jnp.concatenate(tap, axis=0))
        taps = jnp.concatenate(blocks, axis=0)                # (4*4*Cin, Cout)
        offsets = tuple(dh * ws + dw for dh in range(2) for dw in range(2))

    m = ho * wrow
    p_len = xflat.shape[1]
    t_rows = taps.shape[0]

    kernel = functools.partial(
        _layer_kernel, tap_offsets=offsets, k_per_tap=k_per_tap, m=m,
        wrow=wrow, out_w=wo, n_valid=ho * wo, do_norm=do_norm, do_act=do_act)

    y = pl.pallas_call(
        kernel,
        out_shape=jax.ShapeDtypeStruct((n, m, cout), out_dtype),
        grid=(n,),
        in_specs=[
            pl.BlockSpec((None, p_len, k_per_tap), lambda i: (i, 0, 0)),
            pl.BlockSpec((t_rows, cout), lambda i: (0, 0)),
            pl.BlockSpec((1, cout), lambda i: (0, 0)),
        ],
        out_specs=pl.BlockSpec((None, m, cout), lambda i: (i, 0, 0)),
        compiler_params=pltpu.CompilerParams(
            dimension_semantics=("parallel",),
            vmem_limit_bytes=32 * 1024 * 1024,
        ),
    )(xflat.astype(jnp.bfloat16), taps.astype(jnp.bfloat16),
      b.reshape(1, cout).astype(jnp.float32))

    # Strip the per-row don't-care columns -> NHWC.
    return y.reshape(n, ho, wrow, cout)[:, :, :wo, :]


# ----------------------------------------------------------------------------- params
def init_params(key, channels=3):
    """Deterministic synthetic parameters; weights stored HWIO (3,3,Cin,Cout) f32."""
    specs = [(channels, 64), (64, 128), (128, 256), (256, 512), (512, 1)]
    params = []
    for cin, cout in specs:
        key, k_w, k_b = jax.random.split(key, 3)
        bound = 1.0 / math.sqrt(9 * cin)              # PyTorch-style uniform bound
        w = jax.random.uniform(k_w, (3, 3, cin, cout), jnp.float32, -bound, bound)
        b = jax.random.uniform(k_b, (cout,), jnp.float32, -bound, bound)
        params.append((w, b))
    return params


# ----------------------------------------------------------------------------- forward
@jax.jit
def ce_discriminator_forward(img_nchw, params):
    """Pallas forward. img_nchw: [N, C, H, W] -> [N, 1, H/8, W/8]."""
    x = jnp.transpose(img_nchw, (0, 2, 3, 1)).astype(jnp.bfloat16)   # NHWC, bf16
    last = len(_LAYER_CFG) - 1
    for idx, ((stride, do_norm, do_act), (w, b)) in enumerate(zip(_LAYER_CFG, params)):
        x = _conv_layer(
            x, w, b, stride=stride, do_norm=do_norm, do_act=do_act,
            out_dtype=jnp.float32 if idx == last else jnp.bfloat16)
    return jnp.transpose(x, (0, 3, 1, 2))                            # back to NCHW


# ----------------------------------------------------------------------------- reference
@jax.jit
def _reference_forward(img_nchw, params):
    x = jnp.transpose(img_nchw, (0, 2, 3, 1)).astype(jnp.float32)
    for (stride, do_norm, do_act), (w, b) in zip(_LAYER_CFG, params):
        y = jax.lax.conv_general_dilated(
            x, w, (stride, stride), ((1, 1), (1, 1)),
            dimension_numbers=("NHWC", "HWIO", "NHWC")) + b
        if do_norm:
            mean = jnp.mean(y, axis=(1, 2), keepdims=True)
            var = jnp.mean((y - mean) ** 2, axis=(1, 2), keepdims=True)
            y = (y - mean) * jax.lax.rsqrt(var + EPS)
        if do_act:
            y = jnp.where(y >= 0, y, NEG_SLOPE * y)
        x = y
    return jnp.transpose(x, (0, 3, 1, 2))


# ----------------------------------------------------------------------------- main
if __name__ == "__main__":
    key = jax.random.PRNGKey(0)
    k_img, k_params = jax.random.split(key)

    N, C, H, W = 2, 3, 16, 16
    img = jax.random.normal(k_img, (N, C, H, W), jnp.float32)
    params = init_params(k_params, channels=C)

    out = jax.block_until_ready(ce_discriminator_forward(img, params))
    assert out.shape == (N, 1, H // 8, W // 8), out.shape

    ref = jax.block_until_ready(_reference_forward(img, params))
    # bf16 matmul operands + bf16 hidden-activation storage (f32 accumulation):
    # check error relative to the reference magnitude instead of a loose abs bound.
    max_err = float(jnp.max(jnp.abs(out.astype(jnp.float32) - ref)))
    ref_scale = float(jnp.max(jnp.abs(ref)))
    assert max_err <= 5e-2 * max(1.0, ref_scale), (max_err, ref_scale)

    print("KERNEL_OK")
</pallas_src>

<mosaic_0001>
module attributes {stable_mosaic.version = 11 : i64} {
  func.func @_layer_kernel(%arg0: i32, %arg1: memref<1x90x12xbf16, #tpu.memory_space<vmem>>, %arg2: memref<48x64xbf16, #tpu.memory_space<vmem>>, %arg3: memref<1x64xf32, #tpu.memory_space<vmem>>, %arg4: memref<1x72x64xbf16, #tpu.memory_space<vmem>>) attributes {dimension_semantics = [#tpu.dimension_semantics<parallel>], iteration_bounds = array<i64: 2>, scalar_prefetch = 0 : i64, scratch_operands = 0 : i64, tpu.core_type = #tpu.core_type<tc>, window_params = [{transform_indices = @transform_0, window_bounds = array<i64: 1, 90, 12>}, {pipeline_mode = #tpu.pipeline_mode<synchronous>, transform_indices = @transform_1, window_bounds = array<i64: 48, 64>}, {pipeline_mode = #tpu.pipeline_mode<synchronous>, transform_indices = @transform_2, window_bounds = array<i64: 1, 64>}, {transform_indices = @transform_3, window_bounds = array<i64: 1, 72, 64>}]} {
    %c0 = arith.constant 0 : index
    %c0_0 = arith.constant 0 : index
    %0 = vector.load %arg3[%c0, %c0_0] : memref<1x64xf32, #tpu.memory_space<vmem>>, vector<1x64xf32>
    %1 = vector.shape_cast %0 : vector<1x64xf32> to vector<1x64xf32>
    %2 = vector.broadcast %1 : vector<1x64xf32> to vector<72x64xf32>
    %c0_1 = arith.constant 0 : index
    %c0_2 = arith.constant 0 : index
    %c0_3 = arith.constant 0 : index
    %3 = vector.load %arg1[%c0_1, %c0_2, %c0_3] : memref<1x90x12xbf16, #tpu.memory_space<vmem>>, vector<1x72x12xbf16>
    %4 = vector.shape_cast %3 : vector<1x72x12xbf16> to vector<72x12xbf16>
    %c0_4 = arith.constant 0 : index
    %c0_5 = arith.constant 0 : index
    %5 = vector.load %arg2[%c0_4, %c0_5] : memref<48x64xbf16, #tpu.memory_space<vmem>>, vector<12x64xbf16>
    %cst = arith.constant dense<0.000000e+00> : vector<72x64xf32>
    %6 = tpu.matmul %4, %5, %cst {dimension_numbers = #tpu.dot_dimension_numbers<[1], [0], [0], [1], [0, 0, 1, 1], [], []>} : vector<72x12xbf16>, vector<12x64xbf16>, vector<72x64xf32> -> vector<72x64xf32>
    %7 = arith.addf %2, %6 : vector<72x64xf32>
    %c0_6 = arith.constant 0 : index
    %c1 = arith.constant 1 : index
    %c0_7 = arith.constant 0 : index
    %8 = vector.load %arg1[%c0_6, %c1, %c0_7] : memref<1x90x12xbf16, #tpu.memory_space<vmem>>, vector<1x72x12xbf16>
    %9 = vector.shape_cast %8 : vector<1x72x12xbf16> to vector<72x12xbf16>
    %c12 = arith.constant 12 : index
    %c0_8 = arith.constant 0 : index
    %10 = vector.load %arg2[%c12, %c0_8] : memref<48x64xbf16, #tpu.memory_space<vmem>>, vector<12x64xbf16>
    %cst_9 = arith.constant dense<0.000000e+00> : vector<72x64xf32>
    %11 = tpu.matmul %9, %10, %cst_9 {dimension_numbers = #tpu.dot_dimension_numbers<[1], [0], [0], [1], [0, 0, 1, 1], [], []>} : vector<72x12xbf16>, vector<12x64xbf16>, vector<72x64xf32> -> vector<72x64xf32>
    %12 = arith.addf %7, %11 : vector<72x64xf32>
    %c0_10 = arith.constant 0 : index
    %c9 = arith.constant 9 : index
    %c0_11 = arith.constant 0 : index
    %13 = vector.load %arg1[%c0_10, %c9, %c0_11] : memref<1x90x12xbf16, #tpu.memory_space<vmem>>, vector<1x72x12xbf16>
    %14 = vector.shape_cast %13 : vector<1x72x12xbf16> to vector<72x12xbf16>
    %c24 = arith.constant 24 : index
    %c0_12 = arith.constant 0 : index
    %15 = vector.load %arg2[%c24, %c0_12] : memref<48x64xbf16, #tpu.memory_space<vmem>>, vector<12x64xbf16>
    %cst_13 = arith.constant dense<0.000000e+00> : vector<72x64xf32>
    %16 = tpu.matmul %14, %15, %cst_13 {dimension_numbers = #tpu.dot_dimension_numbers<[1], [0], [0], [1], [0, 0, 1, 1], [], []>} : vector<72x12xbf16>, vector<12x64xbf16>, vector<72x64xf32> -> vector<72x64xf32>
    %17 = arith.addf %12, %16 : vector<72x64xf32>
    %c0_14 = arith.constant 0 : index
    %c10 = arith.constant 10 : index
    %c0_15 = arith.constant 0 : index
    %18 = vector.load %arg1[%c0_14, %c10, %c0_15] : memref<1x90x12xbf16, #tpu.memory_space<vmem>>, vector<1x72x12xbf16>
    %19 = vector.shape_cast %18 : vector<1x72x12xbf16> to vector<72x12xbf16>
    %c36 = arith.constant 36 : index
    %c0_16 = arith.constant 0 : index
    %20 = vector.load %arg2[%c36, %c0_16] : memref<48x64xbf16, #tpu.memory_space<vmem>>, vector<12x64xbf16>
    %cst_17 = arith.constant dense<0.000000e+00> : vector<72x64xf32>
    %21 = tpu.matmul %19, %20, %cst_17 {dimension_numbers = #tpu.dot_dimension_numbers<[1], [0], [0], [1], [0, 0, 1, 1], [], []>} : vector<72x12xbf16>, vector<12x64xbf16>, vector<72x64xf32> -> vector<72x64xf32>
    %22 = arith.addf %17, %21 : vector<72x64xf32>
    %cst_18 = arith.constant 0.000000e+00 : f32
    %23 = vector.broadcast %cst_18 : f32 to vector<72x64xf32>
    %24 = arith.cmpf oge, %22, %23 : vector<72x64xf32>
    %cst_19 = arith.constant 2.000000e-01 : f32
    %25 = vector.broadcast %cst_19 : f32 to vector<72x64xf32>
    %26 = arith.mulf %25, %22 : vector<72x64xf32>
    %27 = arith.select %24, %22, %26 : vector<72x64xi1>, vector<72x64xf32>
    %28 = arith.truncf %27 : vector<72x64xf32> to vector<72x64xbf16>
    %c0_20 = arith.constant 0 : index
    %c0_21 = arith.constant 0 : index
    %c0_22 = arith.constant 0 : index
    %29 = vector.load %arg4[%c0_20, %c0_21, %c0_22] : memref<1x72x64xbf16, #tpu.memory_space<vmem>>, vector<1x72x64xbf16>
    %30 = vector.shape_cast %29 : vector<1x72x64xbf16> to vector<72x64xbf16>
    %31 = vector.shape_cast %28 : vector<72x64xbf16> to vector<1x72x64xbf16>
    tpu.vector_store %arg4[%c0_20, %c0_21, %c0_22], %31 {strides = array<i32>} : memref<1x72x64xbf16, #tpu.memory_space<vmem>>, vector<1x72x64xbf16>,
    return
  }
  func.func @transform_0(%arg0: i32) -> (i32, i32, i32) {
    %c0_i32 = arith.constant 0 : i32
    %c0_i32_0 = arith.constant 0 : i32
    %c0_i32_1 = arith.constant 0 : i32
    return %arg0, %c0_i32, %c0_i32_0 : i32, i32, i32
  }
  func.func @transform_1(%arg0: i32) -> (i32, i32) {
    %c0_i32 = arith.constant 0 : i32
    %c0_i32_0 = arith.constant 0 : i32
    %c0_i32_1 = arith.constant 0 : i32
    return %c0_i32, %c0_i32_0 : i32, i32
  }
  func.func @transform_2(%arg0: i32) -> (i32, i32) {
    %c0_i32 = arith.constant 0 : i32
    %c0_i32_0 = arith.constant 0 : i32
    %c0_i32_1 = arith.constant 0 : i32
    return %c0_i32, %c0_i32_0 : i32, i32
  }
  func.func @transform_3(%arg0: i32) -> (i32, i32, i32) {
    %c0_i32 = arith.constant 0 : i32
    %c0_i32_0 = arith.constant 0 : i32
    %c0_i32_1 = arith.constant 0 : i32
    return %arg0, %c0_i32, %c0_i32_0 : i32, i32, i32
  }
}

module attributes {stable_mosaic.version = 11 : i64} {
  func.func @_layer_kernel(%arg0: i32, %arg1: memref<1x30x256xbf16, #tpu.memory_space<vmem>>, %arg2: memref<1024x128xbf16, #tpu.memory_space<vmem>>, %arg3: memref<1x128xf32, #tpu.memory_space<vmem>>, %arg4: memref<1x20x128xbf16, #tpu.memory_space<vmem>>) attributes {dimension_semantics = [#tpu.dimension_semantics<parallel>], iteration_bounds = array<i64: 2>, scalar_prefetch = 0 : i64, scratch_operands = 0 : i64, tpu.core_type = #tpu.core_type<tc>, window_params = [{transform_indices = @transform_0, window_bounds = array<i64: 1, 30, 256>}, {pipeline_mode = #tpu.pipeline_mode<synchronous>, transform_indices = @transform_1, window_bounds = array<i64: 1024, 128>}, {pipeline_mode = #tpu.pipeline_mode<synchronous>, transform_indices = @transform_2, window_bounds = array<i64: 1, 128>}, {transform_indices = @transform_3, window_bounds = array<i64: 1, 20, 128>}]} {
    %c0 = arith.constant 0 : index
    %c0_0 = arith.constant 0 : index
    %0 = vector.load %arg3[%c0, %c0_0] : memref<1x128xf32, #tpu.memory_space<vmem>>, vector<1x128xf32>
    %1 = vector.shape_cast %0 : vector<1x128xf32> to vector<1x128xf32>
    %2 = vector.broadcast %1 : vector<1x128xf32> to vector<20x128xf32>
    %c0_1 = arith.constant 0 : index
    %c0_2 = arith.constant 0 : index
    %c0_3 = arith.constant 0 : index
    %3 = vector.load %arg1[%c0_1, %c0_2, %c0_3] : memref<1x30x256xbf16, #tpu.memory_space<vmem>>, vector<1x20x256xbf16>
    %4 = vector.shape_cast %3 : vector<1x20x256xbf16> to vector<20x256xbf16>
    %c0_4 = arith.constant 0 : index
    %c0_5 = arith.constant 0 : index
    %5 = vector.load %arg2[%c0_4, %c0_5] : memref<1024x128xbf16, #tpu.memory_space<vmem>>, vector<256x128xbf16>
    %cst = arith.constant dense<0.000000e+00> : vector<20x128xf32>
    %6 = tpu.matmul %4, %5, %cst {dimension_numbers = #tpu.dot_dimension_numbers<[1], [0], [0], [1], [0, 0, 1, 1], [], []>} : vector<20x256xbf16>, vector<256x128xbf16>, vector<20x128xf32> -> vector<20x128xf32>
    %7 = arith.addf %2, %6 : vector<20x128xf32>
    %c0_6 = arith.constant 0 : index
    %c1 = arith.constant 1 : index
    %c0_7 = arith.constant 0 : index
    %8 = vector.load %arg1[%c0_6, %c1, %c0_7] : memref<1x30x256xbf16, #tpu.memory_space<vmem>>, vector<1x20x256xbf16>
    %9 = vector.shape_cast %8 : vector<1x20x256xbf16> to vector<20x256xbf16>
    %c256 = arith.constant 256 : index
    %c0_8 = arith.constant 0 : index
    %10 = vector.load %arg2[%c256, %c0_8] : memref<1024x128xbf16, #tpu.memory_space<vmem>>, vector<256x128xbf16>
    %cst_9 = arith.constant dense<0.000000e+00> : vector<20x128xf32>
    %11 = tpu.matmul %9, %10, %cst_9 {dimension_numbers = #tpu.dot_dimension_numbers<[1], [0], [0], [1], [0, 0, 1, 1], [], []>} : vector<20x256xbf16>, vector<256x128xbf16>, vector<20x128xf32> -> vector<20x128xf32>
    %12 = arith.addf %7, %11 : vector<20x128xf32>
    %c0_10 = arith.constant 0 : index
    %c5 = arith.constant 5 : index
    %c0_11 = arith.constant 0 : index
    %13 = vector.load %arg1[%c0_10, %c5, %c0_11] : memref<1x30x256xbf16, #tpu.memory_space<vmem>>, vector<1x20x256xbf16>
    %14 = vector.shape_cast %13 : vector<1x20x256xbf16> to vector<20x256xbf16>
    %c512 = arith.constant 512 : index
    %c0_12 = arith.constant 0 : index
    %15 = vector.load %arg2[%c512, %c0_12] : memref<1024x128xbf16, #tpu.memory_space<vmem>>, vector<256x128xbf16>
    %cst_13 = arith.constant dense<0.000000e+00> : vector<20x128xf32>
    %16 = tpu.matmul %14, %15, %cst_13 {dimension_numbers = #tpu.dot_dimension_numbers<[1], [0], [0], [1], [0, 0, 1, 1], [], []>} : vector<20x256xbf16>, vector<256x128xbf16>, vector<20x128xf32> -> vector<20x128xf32>
    %17 = arith.addf %12, %16 : vector<20x128xf32>
    %c0_14 = arith.constant 0 : index
    %c6 = arith.constant 6 : index
    %c0_15 = arith.constant 0 : index
    %18 = vector.load %arg1[%c0_14, %c6, %c0_15] : memref<1x30x256xbf16, #tpu.memory_space<vmem>>, vector<1x20x256xbf16>
    %19 = vector.shape_cast %18 : vector<1x20x256xbf16> to vector<20x256xbf16>
    %c768 = arith.constant 768 : index
    %c0_16 = arith.constant 0 : index
    %20 = vector.load %arg2[%c768, %c0_16] : memref<1024x128xbf16, #tpu.memory_space<vmem>>, vector<256x128xbf16>
    %cst_17 = arith.constant dense<0.000000e+00> : vector<20x128xf32>
    %21 = tpu.matmul %19, %20, %cst_17 {dimension_numbers = #tpu.dot_dimension_numbers<[1], [0], [0], [1], [0, 0, 1, 1], [], []>} : vector<20x256xbf16>, vector<256x128xbf16>, vector<20x128xf32> -> vector<20x128xf32>
    %22 = arith.addf %17, %21 : vector<20x128xf32>
    %23 = tpu.iota {dimensions = array<i32: 0>} : vector<20x1xi32>
    %c5_i32 = arith.constant 5 : i32
    %c0_i32 = arith.constant 0 : i32
    %24 = arith.cmpi eq, %c5_i32, %c0_i32 : i32
    %c1_i32 = arith.constant 1 : i32
    %25 = arith.select %24, %c1_i32, %c5_i32 : i32
    %26 = vector.broadcast %25 : i32 to vector<20x1xi32>
    %27 = arith.remsi %23, %26 : vector<20x1xi32>
    %c0_i32_18 = arith.constant 0 : i32
    %28 = vector.broadcast %c0_i32_18 : i32 to vector<20x1xi32>
    %29 = arith.cmpi ne, %27, %28 : vector<20x1xi32>
    %c0_i32_19 = arith.constant 0 : i32
    %30 = vector.broadcast %c0_i32_19 : i32 to vector<20x1xi32>
    %31 = arith.cmpi slt, %27, %30 : vector<20x1xi32>
    %c0_i32_20 = arith.constant 0 : i32
    %32 = arith.cmpi slt, %25, %c0_i32_20 : i32
    %33 = vector.broadcast %32 : i1 to vector<20x1xi1>
    %34 = vector.broadcast %33 : vector<20x1xi1> to vector<20x1xi1>
    %35 = arith.xori %31, %34 : vector<20x1xi1>
    %36 = arith.andi %35, %29 : vector<20x1xi1>
    %37 = vector.broadcast %25 : i32 to vector<20x1xi32>
    %38 = arith.addi %27, %37 : vector<20x1xi32>
    %39 = arith.select %36, %38, %27 : vector<20x1xi1>, vector<20x1xi32>
    %c4_i32 = arith.constant 4 : i32
    %40 = vector.broadcast %c4_i32 : i32 to vector<20x1xi32>
    %41 = arith.cmpi slt, %39, %40 : vector<20x1xi32>
    %cst_21 = arith.constant 0.000000e+00 : f32
    %42 = vector.shape_cast %41 : vector<20x1xi1> to vector<20x1xi1>
    %43 = vector.broadcast %42 : vector<20x1xi1> to vector<20x128xi1>
    %44 = vector.broadcast %cst_21 : f32 to vector<20x128xf32>
    %45 = arith.select %43, %22, %44 : vector<20x128xi1>, vector<20x128xf32>
    %cst_22 = arith.constant dense<0.000000e+00> : vector<128xf32>
    %46 = vector.multi_reduction <add>, %45, %cst_22 [0] : vector<20x128xf32> to vector<128xf32>
    %47 = vector.shape_cast %46 : vector<128xf32> to vector<1x128xf32>
    %cst_23 = arith.constant 6.250000e-02 : f32
    %48 = vector.broadcast %cst_23 : f32 to vector<1x128xf32>
    %49 = arith.mulf %47, %48 : vector<1x128xf32>
    %50 = vector.broadcast %49 : vector<1x128xf32> to vector<20x128xf32>
    %51 = arith.subf %22, %50 : vector<20x128xf32>
    %52 = arith.mulf %51, %51 : vector<20x128xf32>
    %cst_24 = arith.constant 0.000000e+00 : f32
    %53 = vector.shape_cast %41 : vector<20x1xi1> to vector<20x1xi1>
    %54 = vector.broadcast %53 : vector<20x1xi1> to vector<20x128xi1>
    %55 = vector.broadcast %cst_24 : f32 to vector<20x128xf32>
    %56 = arith.select %54, %52, %55 : vector<20x128xi1>, vector<20x128xf32>
    %cst_25 = arith.constant dense<0.000000e+00> : vector<128xf32>
    %57 = vector.multi_reduction <add>, %56, %cst_25 [0] : vector<20x128xf32> to vector<128xf32>
    %58 = vector.shape_cast %57 : vector<128xf32> to vector<1x128xf32>
    %cst_26 = arith.constant 6.250000e-02 : f32
    %59 = vector.broadcast %cst_26 : f32 to vector<1x128xf32>
    %60 = arith.mulf %58, %59 : vector<1x128xf32>
    %cst_27 = arith.constant 9.99999974E-6 : f32
    %61 = vector.broadcast %cst_27 : f32 to vector<1x128xf32>
    %62 = arith.addf %60, %61 : vector<1x128xf32>
    %63 = math.rsqrt %62 : vector<1x128xf32>
    %64 = vector.broadcast %63 : vector<1x128xf32> to vector<20x128xf32>
    %65 = arith.mulf %51, %64 : vector<20x128xf32>
    %cst_28 = arith.constant 0.000000e+00 : f32
    %66 = vector.broadcast %cst_28 : f32 to vector<20x128xf32>
    %67 = arith.cmpf oge, %65, %66 : vector<20x128xf32>
    %cst_29 = arith.constant 2.000000e-01 : f32
    %68 = vector.broadcast %cst_29 : f32 to vector<20x128xf32>
    %69 = arith.mulf %68, %65 : vector<20x128xf32>
    %70 = arith.select %67, %65, %69 : vector<20x128xi1>, vector<20x128xf32>
    %71 = arith.truncf %70 : vector<20x128xf32> to vector<20x128xbf16>
    %c0_30 = arith.constant 0 : index
    %c0_31 = arith.constant 0 : index
    %c0_32 = arith.constant 0 : index
    %72 = vector.load %arg4[%c0_30, %c0_31, %c0_32] : memref<1x20x128xbf16, #tpu.memory_space<vmem>>, vector<1x20x128xbf16>
    %73 = vector.shape_cast %72 : vector<1x20x128xbf16> to vector<20x128xbf16>
    %74 = vector.shape_cast %71 : vector<20x128xbf16> to vector<1x20x128xbf16>
    tpu.vector_store %arg4[%c0_30, %c0_31, %c0_32], %74 {strides = array<i32>} : memref<1x20x128xbf16, #tpu.memory_space<vmem>>, vector<1x20x128xbf16>,
    return
  }
  func.func @transform_0(%arg0: i32) -> (i32, i32, i32) {
    %c0_i32 = arith.constant 0 : i32
    %c0_i32_0 = arith.constant 0 : i32
    %c0_i32_1 = arith.constant 0 : i32
    return %arg0, %c0_i32, %c0_i32_0 : i32, i32, i32
  }
  func.func @transform_1(%arg0: i32) -> (i32, i32) {
    %c0_i32 = arith.constant 0 : i32
    %c0_i32_0 = arith.constant 0 : i32
    %c0_i32_1 = arith.constant 0 : i32
    return %c0_i32, %c0_i32_0 : i32, i32
  }
  func.func @transform_2(%arg0: i32) -> (i32, i32) {
    %c0_i32 = arith.constant 0 : i32
    %c0_i32_0 = arith.constant 0 : i32
    %c0_i32_1 = arith.constant 0 : i32
    return %c0_i32, %c0_i32_0 : i32, i32
  }
  func.func @transform_3(%arg0: i32) -> (i32, i32, i32) {
    %c0_i32 = arith.constant 0 : i32
    %c0_i32_0 = arith.constant 0 : i32
    %c0_i32_1 = arith.constant 0 : i32
    return %arg0, %c0_i32, %c0_i32_0 : i32, i32, i32
  }
}

module attributes {stable_mosaic.version = 11 : i64} {
  func.func @_layer_kernel(%arg0: i32, %arg1: memref<1x12x512xbf16, #tpu.memory_space<vmem>>, %arg2: memref<2048x256xbf16, #tpu.memory_space<vmem>>, %arg3: memref<1x256xf32, #tpu.memory_space<vmem>>, %arg4: memref<1x6x256xbf16, #tpu.memory_space<vmem>>) attributes {dimension_semantics = [#tpu.dimension_semantics<parallel>], iteration_bounds = array<i64: 2>, scalar_prefetch = 0 : i64, scratch_operands = 0 : i64, tpu.core_type = #tpu.core_type<tc>, window_params = [{transform_indices = @transform_0, window_bounds = array<i64: 1, 12, 512>}, {pipeline_mode = #tpu.pipeline_mode<synchronous>, transform_indices = @transform_1, window_bounds = array<i64: 2048, 256>}, {pipeline_mode = #tpu.pipeline_mode<synchronous>, transform_indices = @transform_2, window_bounds = array<i64: 1, 256>}, {transform_indices = @transform_3, window_bounds = array<i64: 1, 6, 256>}]} {
    %c0 = arith.constant 0 : index
    %c0_0 = arith.constant 0 : index
    %0 = vector.load %arg3[%c0, %c0_0] : memref<1x256xf32, #tpu.memory_space<vmem>>, vector<1x256xf32>
    %1 = vector.shape_cast %0 : vector<1x256xf32> to vector<1x256xf32>
    %2 = vector.broadcast %1 : vector<1x256xf32> to vector<6x256xf32>
    %c0_1 = arith.constant 0 : index
    %c0_2 = arith.constant 0 : index
    %c0_3 = arith.constant 0 : index
    %3 = vector.load %arg1[%c0_1, %c0_2, %c0_3] : memref<1x12x512xbf16, #tpu.memory_space<vmem>>, vector<1x6x512xbf16>
    %4 = vector.shape_cast %3 : vector<1x6x512xbf16> to vector<6x512xbf16>
    %c0_4 = arith.constant 0 : index
    %c0_5 = arith.constant 0 : index
    %5 = vector.load %arg2[%c0_4, %c0_5] : memref<2048x256xbf16, #tpu.memory_space<vmem>>, vector<512x256xbf16>
    %cst = arith.constant dense<0.000000e+00> : vector<6x256xf32>
    %6 = tpu.matmul %4, %5, %cst {dimension_numbers = #tpu.dot_dimension_numbers<[1], [0], [0], [1], [0, 0, 1, 1], [], []>} : vector<6x512xbf16>, vector<512x256xbf16>, vector<6x256xf32> -> vector<6x256xf32>
    %7 = arith.addf %2, %6 : vector<6x256xf32>
    %c0_6 = arith.constant 0 : index
    %c1 = arith.constant 1 : index
    %c0_7 = arith.constant 0 : index
    %8 = vector.load %arg1[%c0_6, %c1, %c0_7] : memref<1x12x512xbf16, #tpu.memory_space<vmem>>, vector<1x6x512xbf16>
    %9 = vector.shape_cast %8 : vector<1x6x512xbf16> to vector<6x512xbf16>
    %c512 = arith.constant 512 : index
    %c0_8 = arith.constant 0 : index
    %10 = vector.load %arg2[%c512, %c0_8] : memref<2048x256xbf16, #tpu.memory_space<vmem>>, vector<512x256xbf16>
    %cst_9 = arith.constant dense<0.000000e+00> : vector<6x256xf32>
    %11 = tpu.matmul %9, %10, %cst_9 {dimension_numbers = #tpu.dot_dimension_numbers<[1], [0], [0], [1], [0, 0, 1, 1], [], []>} : vector<6x512xbf16>, vector<512x256xbf16>, vector<6x256xf32> -> vector<6x256xf32>
    %12 = arith.addf %7, %11 : vector<6x256xf32>
    %c0_10 = arith.constant 0 : index
    %c3 = arith.constant 3 : index
    %c0_11 = arith.constant 0 : index
    %13 = vector.load %arg1[%c0_10, %c3, %c0_11] : memref<1x12x512xbf16, #tpu.memory_space<vmem>>, vector<1x6x512xbf16>
    %14 = vector.shape_cast %13 : vector<1x6x512xbf16> to vector<6x512xbf16>
    %c1024 = arith.constant 1024 : index
    %c0_12 = arith.constant 0 : index
    %15 = vector.load %arg2[%c1024, %c0_12] : memref<2048x256xbf16, #tpu.memory_space<vmem>>, vector<512x256xbf16>
    %cst_13 = arith.constant dense<0.000000e+00> : vector<6x256xf32>
    %16 = tpu.matmul %14, %15, %cst_13 {dimension_numbers = #tpu.dot_dimension_numbers<[1], [0], [0], [1], [0, 0, 1, 1], [], []>} : vector<6x512xbf16>, vector<512x256xbf16>, vector<6x256xf32> -> vector<6x256xf32>
    %17 = arith.addf %12, %16 : vector<6x256xf32>
    %c0_14 = arith.constant 0 : index
    %c4 = arith.constant 4 : index
    %c0_15 = arith.constant 0 : index
    %18 = vector.load %arg1[%c0_14, %c4, %c0_15] : memref<1x12x512xbf16, #tpu.memory_space<vmem>>, vector<1x6x512xbf16>
    %19 = vector.shape_cast %18 : vector<1x6x512xbf16> to vector<6x512xbf16>
    %c1536 = arith.constant 1536 : index
    %c0_16 = arith.constant 0 : index
    %20 = vector.load %arg2[%c1536, %c0_16] : memref<2048x256xbf16, #tpu.memory_space<vmem>>, vector<512x256xbf16>
    %cst_17 = arith.constant dense<0.000000e+00> : vector<6x256xf32>
    %21 = tpu.matmul %19, %20, %cst_17 {dimension_numbers = #tpu.dot_dimension_numbers<[1], [0], [0], [1], [0, 0, 1, 1], [], []>} : vector<6x512xbf16>, vector<512x256xbf16>, vector<6x256xf32> -> vector<6x256xf32>
    %22 = arith.addf %17, %21 : vector<6x256xf32>
    %23 = tpu.iota {dimensions = array<i32: 0>} : vector<6x1xi32>
    %c3_i32 = arith.constant 3 : i32
    %c0_i32 = arith.constant 0 : i32
    %24 = arith.cmpi eq, %c3_i32, %c0_i32 : i32
    %c1_i32 = arith.constant 1 : i32
    %25 = arith.select %24, %c1_i32, %c3_i32 : i32
    %26 = vector.broadcast %25 : i32 to vector<6x1xi32>
    %27 = arith.remsi %23, %26 : vector<6x1xi32>
    %c0_i32_18 = arith.constant 0 : i32
    %28 = vector.broadcast %c0_i32_18 : i32 to vector<6x1xi32>
    %29 = arith.cmpi ne, %27, %28 : vector<6x1xi32>
    %c0_i32_19 = arith.constant 0 : i32
    %30 = vector.broadcast %c0_i32_19 : i32 to vector<6x1xi32>
    %31 = arith.cmpi slt, %27, %30 : vector<6x1xi32>
    %c0_i32_20 = arith.constant 0 : i32
    %32 = arith.cmpi slt, %25, %c0_i32_20 : i32
    %33 = vector.broadcast %32 : i1 to vector<6x1xi1>
    %34 = vector.broadcast %33 : vector<6x1xi1> to vector<6x1xi1>
    %35 = arith.xori %31, %34 : vector<6x1xi1>
    %36 = arith.andi %35, %29 : vector<6x1xi1>
    %37 = vector.broadcast %25 : i32 to vector<6x1xi32>
    %38 = arith.addi %27, %37 : vector<6x1xi32>
    %39 = arith.select %36, %38, %27 : vector<6x1xi1>, vector<6x1xi32>
    %c2_i32 = arith.constant 2 : i32
    %40 = vector.broadcast %c2_i32 : i32 to vector<6x1xi32>
    %41 = arith.cmpi slt, %39, %40 : vector<6x1xi32>
    %cst_21 = arith.constant 0.000000e+00 : f32
    %42 = vector.shape_cast %41 : vector<6x1xi1> to vector<6x1xi1>
    %43 = vector.broadcast %42 : vector<6x1xi1> to vector<6x256xi1>
    %44 = vector.broadcast %cst_21 : f32 to vector<6x256xf32>
    %45 = arith.select %43, %22, %44 : vector<6x256xi1>, vector<6x256xf32>
    %cst_22 = arith.constant dense<0.000000e+00> : vector<256xf32>
    %46 = vector.multi_reduction <add>, %45, %cst_22 [0] : vector<6x256xf32> to vector<256xf32>
    %47 = vector.shape_cast %46 : vector<256xf32> to vector<1x256xf32>
    %cst_23 = arith.constant 2.500000e-01 : f32
    %48 = vector.broadcast %cst_23 : f32 to vector<1x256xf32>
    %49 = arith.mulf %47, %48 : vector<1x256xf32>
    %50 = vector.broadcast %49 : vector<1x256xf32> to vector<6x256xf32>
    %51 = arith.subf %22, %50 : vector<6x256xf32>
    %52 = arith.mulf %51, %51 : vector<6x256xf32>
    %cst_24 = arith.constant 0.000000e+00 : f32
    %53 = vector.shape_cast %41 : vector<6x1xi1> to vector<6x1xi1>
    %54 = vector.broadcast %53 : vector<6x1xi1> to vector<6x256xi1>
    %55 = vector.broadcast %cst_24 : f32 to vector<6x256xf32>
    %56 = arith.select %54, %52, %55 : vector<6x256xi1>, vector<6x256xf32>
    %cst_25 = arith.constant dense<0.000000e+00> : vector<256xf32>
    %57 = vector.multi_reduction <add>, %56, %cst_25 [0] : vector<6x256xf32> to vector<256xf32>
    %58 = vector.shape_cast %57 : vector<256xf32> to vector<1x256xf32>
    %cst_26 = arith.constant 2.500000e-01 : f32
    %59 = vector.broadcast %cst_26 : f32 to vector<1x256xf32>
    %60 = arith.mulf %58, %59 : vector<1x256xf32>
    %cst_27 = arith.constant 9.99999974E-6 : f32
    %61 = vector.broadcast %cst_27 : f32 to vector<1x256xf32>
    %62 = arith.addf %60, %61 : vector<1x256xf32>
    %63 = math.rsqrt %62 : vector<1x256xf32>
    %64 = vector.broadcast %63 : vector<1x256xf32> to vector<6x256xf32>
    %65 = arith.mulf %51, %64 : vector<6x256xf32>
    %cst_28 = arith.constant 0.000000e+00 : f32
    %66 = vector.broadcast %cst_28 : f32 to vector<6x256xf32>
    %67 = arith.cmpf oge, %65, %66 : vector<6x256xf32>
    %cst_29 = arith.constant 2.000000e-01 : f32
    %68 = vector.broadcast %cst_29 : f32 to vector<6x256xf32>
    %69 = arith.mulf %68, %65 : vector<6x256xf32>
    %70 = arith.select %67, %65, %69 : vector<6x256xi1>, vector<6x256xf32>
    %71 = arith.truncf %70 : vector<6x256xf32> to vector<6x256xbf16>
    %c0_30 = arith.constant 0 : index
    %c0_31 = arith.constant 0 : index
    %c0_32 = arith.constant 0 : index
    %72 = vector.load %arg4[%c0_30, %c0_31, %c0_32] : memref<1x6x256xbf16, #tpu.memory_space<vmem>>, vector<1x6x256xbf16>
    %73 = vector.shape_cast %72 : vector<1x6x256xbf16> to vector<6x256xbf16>
    %74 = vector.shape_cast %71 : vector<6x256xbf16> to vector<1x6x256xbf16>
    tpu.vector_store %arg4[%c0_30, %c0_31, %c0_32], %74 {strides = array<i32>} : memref<1x6x256xbf16, #tpu.memory_space<vmem>>, vector<1x6x256xbf16>,
    return
  }
  func.func @transform_0(%arg0: i32) -> (i32, i32, i32) {
    %c0_i32 = arith.constant 0 : i32
    %c0_i32_0 = arith.constant 0 : i32
    %c0_i32_1 = arith.constant 0 : i32
    return %arg0, %c0_i32, %c0_i32_0 : i32, i32, i32
  }
  func.func @transform_1(%arg0: i32) -> (i32, i32) {
    %c0_i32 = arith.constant 0 : i32
    %c0_i32_0 = arith.constant 0 : i32
    %c0_i32_1 = arith.constant 0 : i32
    return %c0_i32, %c0_i32_0 : i32, i32
  }
  func.func @transform_2(%arg0: i32) -> (i32, i32) {
    %c0_i32 = arith.constant 0 : i32
    %c0_i32_0 = arith.constant 0 : i32
    %c0_i32_1 = arith.constant 0 : i32
    return %c0_i32, %c0_i32_0 : i32, i32
  }
  func.func @transform_3(%arg0: i32) -> (i32, i32, i32) {
    %c0_i32 = arith.constant 0 : i32
    %c0_i32_0 = arith.constant 0 : i32
    %c0_i32_1 = arith.constant 0 : i32
    return %arg0, %c0_i32, %c0_i32_0 : i32, i32, i32
  }
}

module attributes {stable_mosaic.version = 11 : i64} {
  func.func @_layer_kernel(%arg0: i32, %arg1: memref<1x20x256xbf16, #tpu.memory_space<vmem>>, %arg2: memref<2304x512xbf16, #tpu.memory_space<vmem>>, %arg3: memref<1x512xf32, #tpu.memory_space<vmem>>, %arg4: memref<1x8x512xbf16, #tpu.memory_space<vmem>>) attributes {dimension_semantics = [#tpu.dimension_semantics<parallel>], iteration_bounds = array<i64: 2>, scalar_prefetch = 0 : i64, scratch_operands = 0 : i64, tpu.core_type = #tpu.core_type<tc>, window_params = [{transform_indices = @transform_0, window_bounds = array<i64: 1, 20, 256>}, {pipeline_mode = #tpu.pipeline_mode<synchronous>, transform_indices = @transform_1, window_bounds = array<i64: 2304, 512>}, {pipeline_mode = #tpu.pipeline_mode<synchronous>, transform_indices = @transform_2, window_bounds = array<i64: 1, 512>}, {transform_indices = @transform_3, window_bounds = array<i64: 1, 8, 512>}]} {
    %c0 = arith.constant 0 : index
    %c0_0 = arith.constant 0 : index
    %0 = vector.load %arg3[%c0, %c0_0] : memref<1x512xf32, #tpu.memory_space<vmem>>, vector<1x512xf32>
    %1 = vector.shape_cast %0 : vector<1x512xf32> to vector<1x512xf32>
    %2 = vector.broadcast %1 : vector<1x512xf32> to vector<8x512xf32>
    %c0_1 = arith.constant 0 : index
    %c0_2 = arith.constant 0 : index
    %c0_3 = arith.constant 0 : index
    %3 = vector.load %arg1[%c0_1, %c0_2, %c0_3] : memref<1x20x256xbf16, #tpu.memory_space<vmem>>, vector<1x8x256xbf16>
    %4 = vector.shape_cast %3 : vector<1x8x256xbf16> to vector<8x256xbf16>
    %c0_4 = arith.constant 0 : index
    %c0_5 = arith.constant 0 : index
    %5 = vector.load %arg2[%c0_4, %c0_5] : memref<2304x512xbf16, #tpu.memory_space<vmem>>, vector<256x512xbf16>
    %cst = arith.constant dense<0.000000e+00> : vector<8x512xf32>
    %6 = tpu.matmul %4, %5, %cst {dimension_numbers = #tpu.dot_dimension_numbers<[1], [0], [0], [1], [0, 0, 1, 1], [], []>} : vector<8x256xbf16>, vector<256x512xbf16>, vector<8x512xf32> -> vector<8x512xf32>
    %7 = arith.addf %2, %6 : vector<8x512xf32>
    %c0_6 = arith.constant 0 : index
    %c1 = arith.constant 1 : index
    %c0_7 = arith.constant 0 : index
    %8 = vector.load %arg1[%c0_6, %c1, %c0_7] : memref<1x20x256xbf16, #tpu.memory_space<vmem>>, vector<1x8x256xbf16>
    %9 = vector.shape_cast %8 : vector<1x8x256xbf16> to vector<8x256xbf16>
    %c256 = arith.constant 256 : index
    %c0_8 = arith.constant 0 : index
    %10 = vector.load %arg2[%c256, %c0_8] : memref<2304x512xbf16, #tpu.memory_space<vmem>>, vector<256x512xbf16>
    %cst_9 = arith.constant dense<0.000000e+00> : vector<8x512xf32>
    %11 = tpu.matmul %9, %10, %cst_9 {dimension_numbers = #tpu.dot_dimension_numbers<[1], [0], [0], [1], [0, 0, 1, 1], [], []>} : vector<8x256xbf16>, vector<256x512xbf16>, vector<8x512xf32> -> vector<8x512xf32>
    %12 = arith.addf %7, %11 : vector<8x512xf32>
    %c0_10 = arith.constant 0 : index
    %c2 = arith.constant 2 : index
    %c0_11 = arith.constant 0 : index
    %13 = vector.load %arg1[%c0_10, %c2, %c0_11] : memref<1x20x256xbf16, #tpu.memory_space<vmem>>, vector<1x8x256xbf16>
    %14 = vector.shape_cast %13 : vector<1x8x256xbf16> to vector<8x256xbf16>
    %c512 = arith.constant 512 : index
    %c0_12 = arith.constant 0 : index
    %15 = vector.load %arg2[%c512, %c0_12] : memref<2304x512xbf16, #tpu.memory_space<vmem>>, vector<256x512xbf16>
    %cst_13 = arith.constant dense<0.000000e+00> : vector<8x512xf32>
    %16 = tpu.matmul %14, %15, %cst_13 {dimension_numbers = #tpu.dot_dimension_numbers<[1], [0], [0], [1], [0, 0, 1, 1], [], []>} : vector<8x256xbf16>, vector<256x512xbf16>, vector<8x512xf32> -> vector<8x512xf32>
    %17 = arith.addf %12, %16 : vector<8x512xf32>
    %c0_14 = arith.constant 0 : index
    %c4 = arith.constant 4 : index
    %c0_15 = arith.constant 0 : index
    %18 = vector.load %arg1[%c0_14, %c4, %c0_15] : memref<1x20x256xbf16, #tpu.memory_space<vmem>>, vector<1x8x256xbf16>
    %19 = vector.shape_cast %18 : vector<1x8x256xbf16> to vector<8x256xbf16>
    %c768 = arith.constant 768 : index
    %c0_16 = arith.constant 0 : index
    %20 = vector.load %arg2[%c768, %c0_16] : memref<2304x512xbf16, #tpu.memory_space<vmem>>, vector<256x512xbf16>
    %cst_17 = arith.constant dense<0.000000e+00> : vector<8x512xf32>
    %21 = tpu.matmul %19, %20, %cst_17 {dimension_numbers = #tpu.dot_dimension_numbers<[1], [0], [0], [1], [0, 0, 1, 1], [], []>} : vector<8x256xbf16>, vector<256x512xbf16>, vector<8x512xf32> -> vector<8x512xf32>
    %22 = arith.addf %17, %21 : vector<8x512xf32>
    %c0_18 = arith.constant 0 : index
    %c5 = arith.constant 5 : index
    %c0_19 = arith.constant 0 : index
    %23 = vector.load %arg1[%c0_18, %c5, %c0_19] : memref<1x20x256xbf16, #tpu.memory_space<vmem>>, vector<1x8x256xbf16>
    %24 = vector.shape_cast %23 : vector<1x8x256xbf16> to vector<8x256xbf16>
    %c1024 = arith.constant 1024 : index
    %c0_20 = arith.constant 0 : index
    %25 = vector.load %arg2[%c1024, %c0_20] : memref<2304x512xbf16, #tpu.memory_space<vmem>>, vector<256x512xbf16>
    %cst_21 = arith.constant dense<0.000000e+00> : vector<8x512xf32>
    %26 = tpu.matmul %24, %25, %cst_21 {dimension_numbers = #tpu.dot_dimension_numbers<[1], [0], [0], [1], [0, 0, 1, 1], [], []>} : vector<8x256xbf16>, vector<256x512xbf16>, vector<8x512xf32> -> vector<8x512xf32>
    %27 = arith.addf %22, %26 : vector<8x512xf32>
    %c0_22 = arith.constant 0 : index
    %c6 = arith.constant 6 : index
    %c0_23 = arith.constant 0 : index
    %28 = vector.load %arg1[%c0_22, %c6, %c0_23] : memref<1x20x256xbf16, #tpu.memory_space<vmem>>, vector<1x8x256xbf16>
    %29 = vector.shape_cast %28 : vector<1x8x256xbf16> to vector<8x256xbf16>
    %c1280 = arith.constant 1280 : index
    %c0_24 = arith.constant 0 : index
    %30 = vector.load %arg2[%c1280, %c0_24] : memref<2304x512xbf16, #tpu.memory_space<vmem>>, vector<256x512xbf16>
    %cst_25 = arith.constant dense<0.000000e+00> : vector<8x512xf32>
    %31 = tpu.matmul %29, %30, %cst_25 {dimension_numbers = #tpu.dot_dimension_numbers<[1], [0], [0], [1], [0, 0, 1, 1], [], []>} : vector<8x256xbf16>, vector<256x512xbf16>, vector<8x512xf32> -> vector<8x512xf32>
    %32 = arith.addf %27, %31 : vector<8x512xf32>
    %c0_26 = arith.constant 0 : index
    %c8 = arith.constant 8 : index
    %c0_27 = arith.constant 0 : index
    %33 = vector.load %arg1[%c0_26, %c8, %c0_27] : memref<1x20x256xbf16, #tpu.memory_space<vmem>>, vector<1x8x256xbf16>
    %34 = vector.shape_cast %33 : vector<1x8x256xbf16> to vector<8x256xbf16>
    %c1536 = arith.constant 1536 : index
    %c0_28 = arith.constant 0 : index
    %35 = vector.load %arg2[%c1536, %c0_28] : memref<2304x512xbf16, #tpu.memory_space<vmem>>, vector<256x512xbf16>
    %cst_29 = arith.constant dense<0.000000e+00> : vector<8x512xf32>
    %36 = tpu.matmul %34, %35, %cst_29 {dimension_numbers = #tpu.dot_dimension_numbers<[1], [0], [0], [1], [0, 0, 1, 1], [], []>} : vector<8x256xbf16>, vector<256x512xbf16>, vector<8x512xf32> -> vector<8x512xf32>
    %37 = arith.addf %32, %36 : vector<8x512xf32>
    %c0_30 = arith.constant 0 : index
    %c9 = arith.constant 9 : index
    %c0_31 = arith.constant 0 : index
    %38 = vector.load %arg1[%c0_30, %c9, %c0_31] : memref<1x20x256xbf16, #tpu.memory_space<vmem>>, vector<1x8x256xbf16>
    %39 = vector.shape_cast %38 : vector<1x8x256xbf16> to vector<8x256xbf16>
    %c1792 = arith.constant 1792 : index
    %c0_32 = arith.constant 0 : index
    %40 = vector.load %arg2[%c1792, %c0_32] : memref<2304x512xbf16, #tpu.memory_space<vmem>>, vector<256x512xbf16>
    %cst_33 = arith.constant dense<0.000000e+00> : vector<8x512xf32>
    %41 = tpu.matmul %39, %40, %cst_33 {dimension_numbers = #tpu.dot_dimension_numbers<[1], [0], [0], [1], [0, 0, 1, 1], [], []>} : vector<8x256xbf16>, vector<256x512xbf16>, vector<8x512xf32> -> vector<8x512xf32>
    %42 = arith.addf %37, %41 : vector<8x512xf32>
    %c0_34 = arith.constant 0 : index
    %c10 = arith.constant 10 : index
    %c0_35 = arith.constant 0 : index
    %43 = vector.load %arg1[%c0_34, %c10, %c0_35] : memref<1x20x256xbf16, #tpu.memory_space<vmem>>, vector<1x8x256xbf16>
    %44 = vector.shape_cast %43 : vector<1x8x256xbf16> to vector<8x256xbf16>
    %c2048 = arith.constant 2048 : index
    %c0_36 = arith.constant 0 : index
    %45 = vector.load %arg2[%c2048, %c0_36] : memref<2304x512xbf16, #tpu.memory_space<vmem>>, vector<256x512xbf16>
    %cst_37 = arith.constant dense<0.000000e+00> : vector<8x512xf32>
    %46 = tpu.matmul %44, %45, %cst_37 {dimension_numbers = #tpu.dot_dimension_numbers<[1], [0], [0], [1], [0, 0, 1, 1], [], []>} : vector<8x256xbf16>, vector<256x512xbf16>, vector<8x512xf32> -> vector<8x512xf32>
    %47 = arith.addf %42, %46 : vector<8x512xf32>
    %48 = tpu.iota {dimensions = array<i32: 0>} : vector<8x1xi32>
    %c4_i32 = arith.constant 4 : i32
    %c0_i32 = arith.constant 0 : i32
    %49 = arith.cmpi eq, %c4_i32, %c0_i32 : i32
    %c1_i32 = arith.constant 1 : i32
    %50 = arith.select %49, %c1_i32, %c4_i32 : i32
    %51 = vector.broadcast %50 : i32 to vector<8x1xi32>
    %52 = arith.remsi %48, %51 : vector<8x1xi32>
    %c0_i32_38 = arith.constant 0 : i32
    %53 = vector.broadcast %c0_i32_38 : i32 to vector<8x1xi32>
    %54 = arith.cmpi ne, %52, %53 : vector<8x1xi32>
    %c0_i32_39 = arith.constant 0 : i32
    %55 = vector.broadcast %c0_i32_39 : i32 to vector<8x1xi32>
    %56 = arith.cmpi slt, %52, %55 : vector<8x1xi32>
    %c0_i32_40 = arith.constant 0 : i32
    %57 = arith.cmpi slt, %50, %c0_i32_40 : i32
    %58 = vector.broadcast %57 : i1 to vector<8x1xi1>
    %59 = vector.broadcast %58 : vector<8x1xi1> to vector<8x1xi1>
    %60 = arith.xori %56, %59 : vector<8x1xi1>
    %61 = arith.andi %60, %54 : vector<8x1xi1>
    %62 = vector.broadcast %50 : i32 to vector<8x1xi32>
    %63 = arith.addi %52, %62 : vector<8x1xi32>
    %64 = arith.select %61, %63, %52 : vector<8x1xi1>, vector<8x1xi32>
    %c2_i32 = arith.constant 2 : i32
    %65 = vector.broadcast %c2_i32 : i32 to vector<8x1xi32>
    %66 = arith.cmpi slt, %64, %65 : vector<8x1xi32>
    %cst_41 = arith.constant 0.000000e+00 : f32
    %67 = vector.shape_cast %66 : vector<8x1xi1> to vector<8x1xi1>
    %68 = vector.broadcast %67 : vector<8x1xi1> to vector<8x512xi1>
    %69 = vector.broadcast %cst_41 : f32 to vector<8x512xf32>
    %70 = arith.select %68, %47, %69 : vector<8x512xi1>, vector<8x512xf32>
    %cst_42 = arith.constant dense<0.000000e+00> : vector<512xf32>
    %71 = vector.multi_reduction <add>, %70, %cst_42 [0] : vector<8x512xf32> to vector<512xf32>
    %72 = vector.shape_cast %71 : vector<512xf32> to vector<1x512xf32>
    %cst_43 = arith.constant 2.500000e-01 : f32
    %73 = vector.broadcast %cst_43 : f32 to vector<1x512xf32>
    %74 = arith.mulf %72, %73 : vector<1x512xf32>
    %75 = vector.broadcast %74 : vector<1x512xf32> to vector<8x512xf32>
    %76 = arith.subf %47, %75 : vector<8x512xf32>
    %77 = arith.mulf %76, %76 : vector<8x512xf32>
    %cst_44 = arith.constant 0.000000e+00 : f32
    %78 = vector.shape_cast %66 : vector<8x1xi1> to vector<8x1xi1>
    %79 = vector.broadcast %78 : vector<8x1xi1> to vector<8x512xi1>
    %80 = vector.broadcast %cst_44 : f32 to vector<8x512xf32>
    %81 = arith.select %79, %77, %80 : vector<8x512xi1>, vector<8x512xf32>
    %cst_45 = arith.constant dense<0.000000e+00> : vector<512xf32>
    %82 = vector.multi_reduction <add>, %81, %cst_45 [0] : vector<8x512xf32> to vector<512xf32>
    %83 = vector.shape_cast %82 : vector<512xf32> to vector<1x512xf32>
    %cst_46 = arith.constant 2.500000e-01 : f32
    %84 = vector.broadcast %cst_46 : f32 to vector<1x512xf32>
    %85 = arith.mulf %83, %84 : vector<1x512xf32>
    %cst_47 = arith.constant 9.99999974E-6 : f32
    %86 = vector.broadcast %cst_47 : f32 to vector<1x512xf32>
    %87 = arith.addf %85, %86 : vector<1x512xf32>
    %88 = math.rsqrt %87 : vector<1x512xf32>
    %89 = vector.broadcast %88 : vector<1x512xf32> to vector<8x512xf32>
    %90 = arith.mulf %76, %89 : vector<8x512xf32>
    %cst_48 = arith.constant 0.000000e+00 : f32
    %91 = vector.broadcast %cst_48 : f32 to vector<8x512xf32>
    %92 = arith.cmpf oge, %90, %91 : vector<8x512xf32>
    %cst_49 = arith.constant 2.000000e-01 : f32
    %93 = vector.broadcast %cst_49 : f32 to vector<8x512xf32>
    %94 = arith.mulf %93, %90 : vector<8x512xf32>
    %95 = arith.select %92, %90, %94 : vector<8x512xi1>, vector<8x512xf32>
    %96 = arith.truncf %95 : vector<8x512xf32> to vector<8x512xbf16>
    %c0_50 = arith.constant 0 : index
    %c0_51 = arith.constant 0 : index
    %c0_52 = arith.constant 0 : index
    %97 = vector.load %arg4[%c0_50, %c0_51, %c0_52] : memref<1x8x512xbf16, #tpu.memory_space<vmem>>, vector<1x8x512xbf16>
    %98 = vector.shape_cast %97 : vector<1x8x512xbf16> to vector<8x512xbf16>
    %99 = vector.shape_cast %96 : vector<8x512xbf16> to vector<1x8x512xbf16>
    tpu.vector_store %arg4[%c0_50, %c0_51, %c0_52], %99 {strides = array<i32>} : memref<1x8x512xbf16, #tpu.memory_space<vmem>>, vector<1x8x512xbf16>,
    return
  }
  func.func @transform_0(%arg0: i32) -> (i32, i32, i32) {
    %c0_i32 = arith.constant 0 : i32
    %c0_i32_0 = arith.constant 0 : i32
    %c0_i32_1 = arith.constant 0 : i32
    return %arg0, %c0_i32, %c0_i32_0 : i32, i32, i32
  }
  func.func @transform_1(%arg0: i32) -> (i32, i32) {
    %c0_i32 = arith.constant 0 : i32
    %c0_i32_0 = arith.constant 0 : i32
    %c0_i32_1 = arith.constant 0 : i32
    return %c0_i32, %c0_i32_0 : i32, i32
  }
  func.func @transform_2(%arg0: i32) -> (i32, i32) {
    %c0_i32 = arith.constant 0 : i32
    %c0_i32_0 = arith.constant 0 : i32
    %c0_i32_1 = arith.constant 0 : i32
    return %c0_i32, %c0_i32_0 : i32, i32
  }
  func.func @transform_3(%arg0: i32) -> (i32, i32, i32) {
    %c0_i32 = arith.constant 0 : i32
    %c0_i32_0 = arith.constant 0 : i32
    %c0_i32_1 = arith.constant 0 : i32
    return %arg0, %c0_i32, %c0_i32_0 : i32, i32, i32
  }
}

module attributes {stable_mosaic.version = 11 : i64} {
  func.func @_layer_kernel(%arg0: i32, %arg1: memref<1x20x512xbf16, #tpu.memory_space<vmem>>, %arg2: memref<4608x1xbf16, #tpu.memory_space<vmem>>, %arg3: memref<1x1xf32, #tpu.memory_space<vmem>>, %arg4: memref<1x8x1xf32, #tpu.memory_space<vmem>>) attributes {dimension_semantics = [#tpu.dimension_semantics<parallel>], iteration_bounds = array<i64: 2>, scalar_prefetch = 0 : i64, scratch_operands = 0 : i64, tpu.core_type = #tpu.core_type<tc>, window_params = [{transform_indices = @transform_0, window_bounds = array<i64: 1, 20, 512>}, {pipeline_mode = #tpu.pipeline_mode<synchronous>, transform_indices = @transform_1, window_bounds = array<i64: 4608, 1>}, {pipeline_mode = #tpu.pipeline_mode<synchronous>, transform_indices = @transform_2, window_bounds = array<i64: 1, 1>}, {transform_indices = @transform_3, window_bounds = array<i64: 1, 8, 1>}]} {
    %c0 = arith.constant 0 : index
    %c0_0 = arith.constant 0 : index
    %0 = vector.load %arg3[%c0, %c0_0] : memref<1x1xf32, #tpu.memory_space<vmem>>, vector<1x1xf32>
    %1 = vector.shape_cast %0 : vector<1x1xf32> to vector<1x1xf32>
    %2 = vector.broadcast %1 : vector<1x1xf32> to vector<8x1xf32>
    %c0_1 = arith.constant 0 : index
    %c0_2 = arith.constant 0 : index
    %c0_3 = arith.constant 0 : index
    %3 = vector.load %arg1[%c0_1, %c0_2, %c0_3] : memref<1x20x512xbf16, #tpu.memory_space<vmem>>, vector<1x8x512xbf16>
    %4 = vector.shape_cast %3 : vector<1x8x512xbf16> to vector<8x512xbf16>
    %c0_4 = arith.constant 0 : index
    %c0_5 = arith.constant 0 : index
    %5 = vector.load %arg2[%c0_4, %c0_5] : memref<4608x1xbf16, #tpu.memory_space<vmem>>, vector<512x1xbf16>
    %cst = arith.constant dense<0.000000e+00> : vector<8x1xf32>
    %6 = tpu.matmul %4, %5, %cst {dimension_numbers = #tpu.dot_dimension_numbers<[1], [0], [0], [1], [0, 0, 1, 1], [], []>} : vector<8x512xbf16>, vector<512x1xbf16>, vector<8x1xf32> -> vector<8x1xf32>
    %7 = arith.addf %2, %6 : vector<8x1xf32>
    %c0_6 = arith.constant 0 : index
    %c1 = arith.constant 1 : index
    %c0_7 = arith.constant 0 : index
    %8 = vector.load %arg1[%c0_6, %c1, %c0_7] : memref<1x20x512xbf16, #tpu.memory_space<vmem>>, vector<1x8x512xbf16>
    %9 = vector.shape_cast %8 : vector<1x8x512xbf16> to vector<8x512xbf16>
    %c512 = arith.constant 512 : index
    %c0_8 = arith.constant 0 : index
    %10 = vector.load %arg2[%c512, %c0_8] : memref<4608x1xbf16, #tpu.memory_space<vmem>>, vector<512x1xbf16>
    %cst_9 = arith.constant dense<0.000000e+00> : vector<8x1xf32>
    %11 = tpu.matmul %9, %10, %cst_9 {dimension_numbers = #tpu.dot_dimension_numbers<[1], [0], [0], [1], [0, 0, 1, 1], [], []>} : vector<8x512xbf16>, vector<512x1xbf16>, vector<8x1xf32> -> vector<8x1xf32>
    %12 = arith.addf %7, %11 : vector<8x1xf32>
    %c0_10 = arith.constant 0 : index
    %c2 = arith.constant 2 : index
    %c0_11 = arith.constant 0 : index
    %13 = vector.load %arg1[%c0_10, %c2, %c0_11] : memref<1x20x512xbf16, #tpu.memory_space<vmem>>, vector<1x8x512xbf16>
    %14 = vector.shape_cast %13 : vector<1x8x512xbf16> to vector<8x512xbf16>
    %c1024 = arith.constant 1024 : index
    %c0_12 = arith.constant 0 : index
    %15 = vector.load %arg2[%c1024, %c0_12] : memref<4608x1xbf16, #tpu.memory_space<vmem>>, vector<512x1xbf16>
    %cst_13 = arith.constant dense<0.000000e+00> : vector<8x1xf32>
    %16 = tpu.matmul %14, %15, %cst_13 {dimension_numbers = #tpu.dot_dimension_numbers<[1], [0], [0], [1], [0, 0, 1, 1], [], []>} : vector<8x512xbf16>, vector<512x1xbf16>, vector<8x1xf32> -> vector<8x1xf32>
    %17 = arith.addf %12, %16 : vector<8x1xf32>
    %c0_14 = arith.constant 0 : index
    %c4 = arith.constant 4 : index
    %c0_15 = arith.constant 0 : index
    %18 = vector.load %arg1[%c0_14, %c4, %c0_15] : memref<1x20x512xbf16, #tpu.memory_space<vmem>>, vector<1x8x512xbf16>
    %19 = vector.shape_cast %18 : vector<1x8x512xbf16> to vector<8x512xbf16>
    %c1536 = arith.constant 1536 : index
    %c0_16 = arith.constant 0 : index
    %20 = vector.load %arg2[%c1536, %c0_16] : memref<4608x1xbf16, #tpu.memory_space<vmem>>, vector<512x1xbf16>
    %cst_17 = arith.constant dense<0.000000e+00> : vector<8x1xf32>
    %21 = tpu.matmul %19, %20, %cst_17 {dimension_numbers = #tpu.dot_dimension_numbers<[1], [0], [0], [1], [0, 0, 1, 1], [], []>} : vector<8x512xbf16>, vector<512x1xbf16>, vector<8x1xf32> -> vector<8x1xf32>
    %22 = arith.addf %17, %21 : vector<8x1xf32>
    %c0_18 = arith.constant 0 : index
    %c5 = arith.constant 5 : index
    %c0_19 = arith.constant 0 : index
    %23 = vector.load %arg1[%c0_18, %c5, %c0_19] : memref<1x20x512xbf16, #tpu.memory_space<vmem>>, vector<1x8x512xbf16>
    %24 = vector.shape_cast %23 : vector<1x8x512xbf16> to vector<8x512xbf16>
    %c2048 = arith.constant 2048 : index
    %c0_20 = arith.constant 0 : index
    %25 = vector.load %arg2[%c2048, %c0_20] : memref<4608x1xbf16, #tpu.memory_space<vmem>>, vector<512x1xbf16>
    %cst_21 = arith.constant dense<0.000000e+00> : vector<8x1xf32>
    %26 = tpu.matmul %24, %25, %cst_21 {dimension_numbers = #tpu.dot_dimension_numbers<[1], [0], [0], [1], [0, 0, 1, 1], [], []>} : vector<8x512xbf16>, vector<512x1xbf16>, vector<8x1xf32> -> vector<8x1xf32>
    %27 = arith.addf %22, %26 : vector<8x1xf32>
    %c0_22 = arith.constant 0 : index
    %c6 = arith.constant 6 : index
    %c0_23 = arith.constant 0 : index
    %28 = vector.load %arg1[%c0_22, %c6, %c0_23] : memref<1x20x512xbf16, #tpu.memory_space<vmem>>, vector<1x8x512xbf16>
    %29 = vector.shape_cast %28 : vector<1x8x512xbf16> to vector<8x512xbf16>
    %c2560 = arith.constant 2560 : index
    %c0_24 = arith.constant 0 : index
    %30 = vector.load %arg2[%c2560, %c0_24] : memref<4608x1xbf16, #tpu.memory_space<vmem>>, vector<512x1xbf16>
    %cst_25 = arith.constant dense<0.000000e+00> : vector<8x1xf32>
    %31 = tpu.matmul %29, %30, %cst_25 {dimension_numbers = #tpu.dot_dimension_numbers<[1], [0], [0], [1], [0, 0, 1, 1], [], []>} : vector<8x512xbf16>, vector<512x1xbf16>, vector<8x1xf32> -> vector<8x1xf32>
    %32 = arith.addf %27, %31 : vector<8x1xf32>
    %c0_26 = arith.constant 0 : index
    %c8 = arith.constant 8 : index
    %c0_27 = arith.constant 0 : index
    %33 = vector.load %arg1[%c0_26, %c8, %c0_27] : memref<1x20x512xbf16, #tpu.memory_space<vmem>>, vector<1x8x512xbf16>
    %34 = vector.shape_cast %33 : vector<1x8x512xbf16> to vector<8x512xbf16>
    %c3072 = arith.constant 3072 : index
    %c0_28 = arith.constant 0 : index
    %35 = vector.load %arg2[%c3072, %c0_28] : memref<4608x1xbf16, #tpu.memory_space<vmem>>, vector<512x1xbf16>
    %cst_29 = arith.constant dense<0.000000e+00> : vector<8x1xf32>
    %36 = tpu.matmul %34, %35, %cst_29 {dimension_numbers = #tpu.dot_dimension_numbers<[1], [0], [0], [1], [0, 0, 1, 1], [], []>} : vector<8x512xbf16>, vector<512x1xbf16>, vector<8x1xf32> -> vector<8x1xf32>
    %37 = arith.addf %32, %36 : vector<8x1xf32>
    %c0_30 = arith.constant 0 : index
    %c9 = arith.constant 9 : index
    %c0_31 = arith.constant 0 : index
    %38 = vector.load %arg1[%c0_30, %c9, %c0_31] : memref<1x20x512xbf16, #tpu.memory_space<vmem>>, vector<1x8x512xbf16>
    %39 = vector.shape_cast %38 : vector<1x8x512xbf16> to vector<8x512xbf16>
    %c3584 = arith.constant 3584 : index
    %c0_32 = arith.constant 0 : index
    %40 = vector.load %arg2[%c3584, %c0_32] : memref<4608x1xbf16, #tpu.memory_space<vmem>>, vector<512x1xbf16>
    %cst_33 = arith.constant dense<0.000000e+00> : vector<8x1xf32>
    %41 = tpu.matmul %39, %40, %cst_33 {dimension_numbers = #tpu.dot_dimension_numbers<[1], [0], [0], [1], [0, 0, 1, 1], [], []>} : vector<8x512xbf16>, vector<512x1xbf16>, vector<8x1xf32> -> vector<8x1xf32>
    %42 = arith.addf %37, %41 : vector<8x1xf32>
    %c0_34 = arith.constant 0 : index
    %c10 = arith.constant 10 : index
    %c0_35 = arith.constant 0 : index
    %43 = vector.load %arg1[%c0_34, %c10, %c0_35] : memref<1x20x512xbf16, #tpu.memory_space<vmem>>, vector<1x8x512xbf16>
    %44 = vector.shape_cast %43 : vector<1x8x512xbf16> to vector<8x512xbf16>
    %c4096 = arith.constant 4096 : index
    %c0_36 = arith.constant 0 : index
    %45 = vector.load %arg2[%c4096, %c0_36] : memref<4608x1xbf16, #tpu.memory_space<vmem>>, vector<512x1xbf16>
    %cst_37 = arith.constant dense<0.000000e+00> : vector<8x1xf32>
    %46 = tpu.matmul %44, %45, %cst_37 {dimension_numbers = #tpu.dot_dimension_numbers<[1], [0], [0], [1], [0, 0, 1, 1], [], []>} : vector<8x512xbf16>, vector<512x1xbf16>, vector<8x1xf32> -> vector<8x1xf32>
    %47 = arith.addf %42, %46 : vector<8x1xf32>
    %c0_38 = arith.constant 0 : index
    %c0_39 = arith.constant 0 : index
    %c0_40 = arith.constant 0 : index
    %48 = vector.load %arg4[%c0_38, %c0_39, %c0_40] : memref<1x8x1xf32, #tpu.memory_space<vmem>>, vector<1x8x1xf32>
    %49 = vector.shape_cast %48 : vector<1x8x1xf32> to vector<8x1xf32>
    %50 = vector.shape_cast %47 : vector<8x1xf32> to vector<1x8x1xf32>
    tpu.vector_store %arg4[%c0_38, %c0_39, %c0_40], %50 {strides = array<i32>} : memref<1x8x1xf32, #tpu.memory_space<vmem>>, vector<1x8x1xf32>,
    return
  }
  func.func @transform_0(%arg0: i32) -> (i32, i32, i32) {
    %c0_i32 = arith.constant 0 : i32
    %c0_i32_0 = arith.constant 0 : i32
    %c0_i32_1 = arith.constant 0 : i32
    return %arg0, %c0_i32, %c0_i32_0 : i32, i32, i32
  }
  func.func @transform_1(%arg0: i32) -> (i32, i32) {
    %c0_i32 = arith.constant 0 : i32
    %c0_i32_0 = arith.constant 0 : i32
    %c0_i32_1 = arith.constant 0 : i32
    return %c0_i32, %c0_i32_0 : i32, i32
  }
  func.func @transform_2(%arg0: i32) -> (i32, i32) {
    %c0_i32 = arith.constant 0 : i32
    %c0_i32_0 = arith.constant 0 : i32
    %c0_i32_1 = arith.constant 0 : i32
    return %c0_i32, %c0_i32_0 : i32, i32
  }
  func.func @transform_3(%arg0: i32) -> (i32, i32, i32) {
    %c0_i32 = arith.constant 0 : i32
    %c0_i32_0 = arith.constant 0 : i32
    %c0_i32_1 = arith.constant 0 : i32
    return %arg0, %c0_i32, %c0_i32_0 : i32, i32, i32
  }
}

</mosaic_0001>

<bundles_post_ra>
// kernel: ce_discriminator_forward.5
= control target key start
LH: loop header
LB: loop body
LE: loop exit
PB: predicated region body
PF: predicated region fallthrough
CT: control target
= control target key end

     0   :  { %8 = vsyncpa [#allocation3], 0  ;;  %s1302_s12 = smov 0   ;;  %s1528_s0 = inlined_call_operand.vmem [shape: bf16[2,90,12], index: 0, kind: input, shape index: {}]   ;;  %s1529_s1 = inlined_call_operand.vmem [shape: bf16[48,64], index: 1, kind: input, shape index: {}]   ;;  %s1530_s2 = inlined_call_operand.hbm [shape: f32[1,64], index: 2, kind: input, shape index: {}]   ;;  %s1531_s3 = inlined_call_operand.vmem [shape: bf16[2,72,64], index: 3, kind: output, shape index: {}]  }
   0x1 LB: > { %s1308_s13 = sadd.s32 4294967295, %s1277_s12   ;;  %p958_p0 = scmp.ge.s32.totalorder %s1277_s12, 1  ;;  %s1277_s12 = sphi %s1302_s12, %s14_s12  }
   0x2   : > { %p113_p1 = scmp.lt.s32.totalorder %s1277_s12, 3  ;;  %p1532_p3 = scmp.eq.s32.totalorder %s1308_s13, 0 }
   0x3   : > { %s1279_s15 = smov [#allocation2]   ;;  %s1239_s20 = scalar_lea.hbm %s1530_s2, 16 }
   0x4   : > { %p1312_p2 = pnand %p958_p0, %p113_p1  ;;  %s129_s16 = sshll.u32 %s1279_s15, 4  ;;  %s130_s16 = int_to_ptr.vmem [resolvable:$true] %s129_s16 }
   0x5   : > { %p1240_p6 = scmp.ne.s32.totalorder %s1530_s2, %s1239_s20  ;;  %p1246_p10 = scmp.lt.u32.totalorder %s1239_s20, %s1530_s2 }
   0x6   : > { %s1534_s14 = scalar_select %p1312_p2, 1, 0 }
   0x7   : > { %p1202_p4 = pneg %p1312_p2 }
   0x9   : > { %p1321_p5 = pnand %p1532_p3, %p1202_p4 }
   0xb   : > { %p1241_p7 = pneg %p1321_p5 }
   0xd   : > { %p1242_p8 = pnand %p1241_p7, %p1240_p6 }
   0xf   : > { %p1243_p9 = pneg %p1242_p8 }
  0x11   : > { %p1248_p11 = pnand %p1246_p10, %p1243_p9 }
  0x13   : > { %1251 = shalt.err (!%p1248_p11)
}
  0x14   : > { %s1252_s25 = scalar_lea.vmem %s130_s16, 16  ;;  %s1259_s26 = scalar_lea.vmem %s130_s16, 32 }
  0x15   : > { %p1253_p12 = scmp.ne.s32.totalorder %s130_s16, %s1252_s25  ;;  %p1260_p1 = scmp.lt.s32.totalorder %s130_s16, %s130_s16 }
  0x16   : > { %p1261_p4 = scmp.lt.s32.totalorder %s1259_s26, %s1252_s25 }
  0x17   : > { %p1255_p13 = pnand %p1253_p12, %p1241_p7 }
  0x18   : > { %p1262_p3 = por %p1261_p4, %p1260_p1 }
  0x19   : > { %p1256_p0 = pneg %p1255_p13 }
  0x1b   : > { %p1263_p2 = pnand %p1262_p3, %p1256_p0 }
  0x1d   : > { %1266 = shalt.err (!%p1263_p2)
}
  0x1e   : > { %1205 = dma.hbm_to_vmem [thread:$0]  (!%p1321_p5), %s1530_s2, 16, %s130_s16, [#allocation3]  }
  0x1f   : > { %p1536_p6 = scmp.ne.s32.totalorder %s1534_s14, 0 }
  0x20   : > { %p1537_p8 = scmp.eq.s32.totalorder (!%p1536_p6), %s1308_s13, 0 }
  0x21   : > { %150 = sbr.rel (%p1536_p6) target bundleno = 350 (0x15e), region = 32 }
  0x28   : > { %1272 = dma.done.wait (%p1537_p8), [#allocation3], 16   ;;  %p1538_p7 = pmov %p1537_p8 }
  0x29   : > { %p174_p9 = scmp.lt.s32.totalorder %s1308_s13, 1  ;;  %v1280_v0 = vmov 0.0   ;;  %vm1281_vm0 = vmmov 0   ;;  %vm247_vm1 = vcmask 1045504   ;;  %vm231_vm2 = vcmask 97280  }
  0x2a   : > { %1274 = vsyncadd (%p1538_p7), [#allocation3], 4294967280  ;;  %1050 = vmatprep.subr.bf16.mxu1 %v1280_v0  ;;  %1094 = vmatprep.subr.bf16.mxu0 %v1280_v0  ;;  %v1219_v1 = vld [vmem:[%s1529_s1] sm:$0x3f]   ;;  %v1220_v2 = vld [vmem:[%s1529_s1 + $0xc] sm:$0x3f]  }
  0x2b   : > { %1052 = vmatprep.mubr.msk.bf16.mxu1 %vm1281_vm0, %v1280_v0  ;;  %s1540_s13 = smov (!%p174_p9, %s1308_s13), 1  ;;  %1096 = vmatprep.mubr.msk.bf16.mxu0 %vm1281_vm0, %v1280_v0  ;;  %v249_v3 = vsel %vm247_vm1, %v1219_v1, 0  ;;  %vm369_vm3 = vsmask.f32 7424  ;;  %v611_v5 = vsel %vm247_vm1, %v1220_v2, 0  ;;  %vm700_vm4 = vcmask 1046528  }
  0x2c   : > { %s1196_s29 = smul.u32 48, %s1540_s13  ;;  %1051 = vmatpush3.bf16.msra.mxu1 %v249_v3  ;;  %1095 = vmatpush3.bf16.msra.mxu0 %v611_v5  ;;  %v1222_v7 = vld [vmem:[%s1529_s1 + $0x4] sm:$0xfc]   ;;  %v1225_v15 = vld [vmem:[%s1529_s1 + $0x10] sm:$0xfc]   ;;  %vm879_vm6 = vcmask 519168  }
  0x2d   : > { %1072 = vmatprep.subr.bf16.mxu1 %v1280_v0  ;;  %1116 = vmatprep.subr.bf16.mxu0 %v1280_v0  ;;  %v414_v12 = vrot.slane %v1222_v7, 2  ;;  %v715_v20 = vrot.slane %v1225_v15, 2  ;;  %s1197_s16 = smul.u32 36, %s1540_s13 }
  0x2e   : > { %s1367_s9 = scalar_lea.vmem %s1528_s0, %s1196_s29 }
  0x2f   : > { %v1221_v4 = vld [vmem:[%s1367_s9] sm:$0xff]   ;;  %v1373_v6 = vld [vmem:[%s1367_s9 + $0xc] sm:$0xff]   ;;  %v1381_v9 = vld [vmem:[%s1367_s9 + $0x8] sm:$0xf]  ;;  %v431_v17 = vsel %vm247_vm1, %v414_v12, 0  ;;  %v732_v25 = vsel %vm247_vm1, %v715_v20, 0  ;;  %s1498_s19 = scalar_lea.vmem %s1531_s3, %s1197_s16 }
  0x30   : > { %v514_v8 = vld [vmem:[%s1367_s9 + $0x4] sm:$0xf]  ;;  %v559_v11 = vshll.u32 %v1373_v6, 16  ;;  %1053 = vmatmul.mubr.msk.bf16.vlgmr.msra.gmra.mrb[0].mxu1 %vm231_vm2, %v1221_v4  ;;  %v1393_v16 = vld [vmem:[%s1367_s9 + $0x14] sm:$0xff]   ;;  %v1226_v21 = vld [vmem:[%s1367_s9 + $0x8] sm:$0xff]   ;;  %v563_v23 = vshrl.u32 %v1373_v6, 16 }
  0x31   : > { %v988_v10 = vcombine.low %v514_v8, %v1381_v9  ;;  %1056 = vmatprep.mubr.msk.bf16.mxu1 %vm1281_vm0, %v1280_v0  ;;  %1073 = vmatpush3.bf16.msra.mxu1 %v431_v17  ;;  %v567_v24 = vshll.u32 %v1393_v16, 16  ;;  %v1406_v29 = vld [vmem:[%s1367_s9 + $0x1c] sm:$0xff]   ;;  %v1228_v30 = vld [vmem:[%s1367_s9 + $0x10] sm:$0xff]   ;;  %v571_v32 = vshrl.u32 %v1393_v16, 16  ;;  %v1421_v36 = vld [vmem:[%s1367_s9 + $0x24] sm:$0x1f]  }
  0x32   : > { %v561_v18 = vrot.slane %v559_v11, 1  ;;  %v575_v33 = vshll.u32 %v1406_v29, 16  ;;  %v1230_v37 = vld [vmem:[%s1367_s9 + $0x18] sm:$0xff]   ;;  %v579_v39 = vshrl.u32 %v1406_v29, 16  ;;  %v583_v40 = vshll.u32 %v1421_v36, 16  ;;  %v1233_v41 = vld [vmem:[%s1367_s9] sm:$0xff]  }
  0x33   : > { %v552_v13 = vshrl.u32 %v988_v10, 16  ;;  %v554_v14 = vshll.u32 %v988_v10, 16  ;;  %v569_v28 = vrot.slane %v567_v24, 1  ;;  %v1234_v44 = vld [vmem:[%s1367_s9 + $0x8] sm:$0xff]   ;;  %v373_v45 = vshll.u32 %v1233_v41, 16  ;;  %v1236_v54 = vld [vmem:[%s1367_s9 + $0x10] sm:$0xff]  }
  0x34   : > { %v565_v27 = vor.u32 %v563_v23, %v561_v18  ;;  %v577_v35 = vrot.slane %v575_v33, 1  ;;  %v585_v43 = vrot.slane %v583_v40, 1  ;;  %v1232_v46 = vld [vmem:[%s1367_s9 + $0x20] ss:$0 sps:$4 sm:$0xff]   ;;  %v371_v48 = vshrl.u32 %v1233_v41, 16  ;;  %v1237_v2 = vld [vmem:[%s1367_s9 + $0x18] sm:$0xff]  }
  0x35   : > { %v556_v19 = vrot.slane %v554_v14, 1  ;;  %v573_v34 = vor.u32 %v571_v32, %v569_v28  ;;  %v375_v49 = vrot.slane %v373_v45, 1  ;;  %v378_v50 = vshll.u32 %v1234_v44, 16  ;;  %v694_v55 = vld [vmem:[%s1367_s9 + $0x4] sm:$0xe] }
  0x36   : > { %v570_v31 = vsel %vm369_vm3, %v565_v27, %v569_v28  ;;  %v581_v42 = vor.u32 %v579_v39, %v577_v35  ;;  %v587_v51 = vshrl.u32 %v1421_v36, 16  ;;  %v999_v58 = vcombine.low %v694_v55, %v1381_v9  ;;  %v1238_v10 = vld [vmem:[%s1367_s9 + $0x20] sm:$0x1f]  }
  0x37   : > { %v557_v22 = vor.u32 %v556_v19, %v552_v13  ;;  %v578_v38 = vsel %vm369_vm3, %v573_v34, %v577_v35  ;;  %v376_v52 = vor.u32 %v375_v49, %v371_v48  ;;  %v380_v53 = vrot.slane %v378_v50, 1  ;;  %v1490_v28 = vld [vmem:[#allocation2] ss:$0 sm:$0xff] }
  0x38   : > { %1057 = vmatmul.mubr.msk.bf16.gmra.mrb[4].mxu1 %vm231_vm2, %v1226_v21  ;;  %v586_v47 = vsel %vm369_vm3, %v581_v42, %v585_v43  ;;  %v589_v56 = vor.u32 %v587_v51, %v585_v43  ;;  %v382_v59 = vshrl.u32 %v1234_v44, 16  ;;  %v386_v60 = vshll.u32 %v1236_v54, 16 }
  0x39   : > { %v562_v26 = vsel %vm369_vm3, %v557_v22, %v561_v18  ;;  %1060 = vmatprep.mubr.msk.bf16.mxu1 %vm1281_vm0, %v1280_v0  ;;  %v381_v57 = vsel %vm369_vm3, %v376_v52, %v380_v53  ;;  %v701_v61 = vrot.slane %v999_v58, 1  ;;  %v702_v62 = vrot.slane %v1373_v6, 1 }
  0x3a   : > { %1097 = vmatmul.mubr.msk.bf16.vlgmr.msra.gmra.mrb[0].mxu0 %vm231_vm2, %v562_v26  ;;  %v384_v63 = vor.u32 %v382_v59, %v380_v53  ;;  %v388_v1 = vrot.slane %v386_v60, 1  ;;  %v390_v5 = vshrl.u32 %v1236_v54, 16  ;;  %v394_v7 = vshll.u32 %v1237_v2, 16 }
  0x3b   : > { %1117 = vmatpush3.bf16.msra.mxu0 %v732_v25  ;;  %1100 = vmatprep.mubr.msk.bf16.mxu0 %vm1281_vm0, %v1280_v0  ;;  %v703_v3 = vsel %vm700_vm4, %v701_v61, %v702_v62  ;;  %v704_v6 = vrot.slane %v1393_v16, 1  ;;  %v398_v13 = vshrl.u32 %v1237_v2, 16  ;;  %v402_v14 = vshll.u32 %v1238_v10, 16 }
  0x3c   : > { %v389_v4 = vsel %vm369_vm3, %v384_v63, %v388_v1  ;;  %v392_v8 = vor.u32 %v390_v5, %v388_v1  ;;  %v396_v9 = vrot.slane %v394_v7, 1  ;;  %v706_v15 = vrot.slane %v1406_v29, 1 }
  0x3d   : > { %v705_v11 = vsel %vm700_vm4, %v702_v62, %v704_v6  ;;  %v404_v17 = vrot.slane %v402_v14, 1  ;;  %v406_v20 = vshrl.u32 %v1238_v10, 16  ;;  %v708_v21 = vrot.slane %v1421_v36, 1 }
  0x3e   : > { %v397_v12 = vsel %vm369_vm3, %v392_v8, %v396_v9  ;;  %v400_v16 = vor.u32 %v398_v13, %v396_v9  ;;  %v707_v18 = vsel %vm700_vm4, %v704_v6, %v706_v15 }
  0x3f   : > { %v408_v22 = vor.u32 %v406_v20, %v404_v17  ;;  %v709_v23 = vsel %vm700_vm4, %v706_v15, %v708_v21 }
  0x40   : > { %1061 = vmatmul.mubr.msk.bf16.gmra.mrb[8].mxu1 %vm231_vm2, %v1228_v30  ;;  %v405_v19 = vsel %vm369_vm3, %v400_v16, %v404_v17 }
  0x41   : > { %1064 = vmatprep.mubr.msk.bf16.mxu1 %vm1281_vm0, %v1280_v0 }
  0x42   : > { %1101 = vmatmul.mubr.msk.bf16.gmra.mrb[4].mxu0 %vm231_vm2, %v570_v31 }
  0x43   : > { %1104 = vmatprep.mubr.msk.bf16.mxu0 %vm1281_vm0, %v1280_v0 }
  0x48   : > { %1065 = vmatmul.mubr.msk.bf16.gmra.mrb[12].mxu1 %vm231_vm2, %v1230_v37 }
  0x49   : > { %1068 = vmatprep.mubr.msk.bf16.mxu1 %vm1281_vm0, %v1280_v0 }
  0x4a   : > { %1105 = vmatmul.mubr.msk.bf16.gmra.mrb[8].mxu0 %vm231_vm2, %v578_v38 }
  0x4b   : > { %1108 = vmatprep.mubr.msk.bf16.mxu0 %vm1281_vm0, %v1280_v0 }
  0x50   : > { %1069 = vmatmul.mubr.msk.bf16.gmra.mrb[16].mxu1 %vm231_vm2, %v1232_v46 }
  0x51   : > { %1074 = vmatprep.mubr.msk.bf16.mxu1 %vm1281_vm0, %v1280_v0 }
  0x52   : > { %1109 = vmatmul.mubr.msk.bf16.gmra.mrb[12].mxu0 %vm231_vm2, %v586_v47 }
  0x53   : > { %1112 = vmatprep.mubr.msk.bf16.mxu0 %vm1281_vm0, %v1280_v0 }
  0x58   : > { %1075 = vmatmul.mubr.msk.bf16.vlgmr.msra.gmra.mrb[0].mxu1 %vm231_vm2, %v381_v57 }
  0x59   : > { %1078 = vmatprep.mubr.msk.bf16.mxu1 %vm1281_vm0, %v1280_v0 }
  0x5a   : > { %1113 = vmatmul.mubr.msk.bf16.gmra.mrb[16].mxu0 %vm231_vm2, %v589_v56 }
  0x5b   : > { %1118 = vmatprep.mubr.msk.bf16.mxu0 %vm1281_vm0, %v1280_v0 }
  0x60   : > { %1079 = vmatmul.mubr.msk.bf16.gmra.mrb[4].mxu1 %vm231_vm2, %v389_v4 }
  0x61   : > { %1082 = vmatprep.mubr.msk.bf16.mxu1 %vm1281_vm0, %v1280_v0 }
  0x62   : > { %1119 = vmatmul.mubr.msk.bf16.vlgmr.msra.gmra.mrb[0].mxu0 %vm231_vm2, %v703_v3 }
  0x63   : > { %1122 = vmatprep.mubr.msk.bf16.mxu0 %vm1281_vm0, %v1280_v0 }
  0x68   : > { %1083 = vmatmul.mubr.msk.bf16.gmra.mrb[8].mxu1 %vm231_vm2, %v397_v12 }
  0x69   : > { %1086 = vmatprep.mubr.msk.bf16.mxu1 %vm1281_vm0, %v1280_v0 }
  0x6a   : > { %1123 = vmatmul.mubr.msk.bf16.gmra.mrb[4].mxu0 %vm231_vm2, %v705_v11 }
  0x6b   : > { %1126 = vmatprep.mubr.msk.bf16.mxu0 %vm1281_vm0, %v1280_v0 }
  0x70   : > { %1087 = vmatmul.mubr.msk.bf16.gmra.mrb[12].mxu1 %vm231_vm2, %v405_v19 }
  0x71   : > { %1090 = vmatprep.mubr.msk.bf16.mxu1 %vm1281_vm0, %v1280_v0 }
  0x72   : > { %1127 = vmatmul.mubr.msk.bf16.gmra.mrb[8].mxu0 %vm231_vm2, %v707_v18 }
  0x73   : > { %1130 = vmatprep.mubr.msk.bf16.mxu0 %vm1281_vm0, %v1280_v0 }
  0x78   : > { %1091 = vmatmul.mubr.msk.bf16.gmra.mrb[16].mxu1 %vm231_vm2, %v408_v22 }
  0x7a   : > { %1131 = vmatmul.mubr.msk.bf16.gmra.mrb[12].mxu0 %vm231_vm2, %v709_v23 }
  0x7b   : > { %1134 = vmatprep.mubr.msk.bf16.mxu0 %vm1281_vm0, %v1280_v0 }
  0x82   : > { %1135 = vmatmul.mubr.msk.bf16.gmra.mrb[16].mxu0 %vm231_vm2, %v708_v21 }
 0x12b   : > { %v467_v24 = vpop.f32.mrb[0].mxu1 }
 0x12c   : > { %v1076_v25 = vpop.f32.mrb[1].mxu1  ;;  %v1138_v29 = vadd.f32 %v1490_v28, %v467_v24 }
 0x12d   : > { %v470_v26 = vpop.f32.mrb[2].mxu1 }
 0x12e   : > { %v1077_v27 = vpop.f32.mrb[3].mxu1  ;;  %v1140_v32 = vadd.f32 %v1490_v28, %v470_v26 }
 0x133   : > { %v475_v31 = vpop.f32.mrb[4].mxu1 }
 0x134   : > { %v1080_v35 = vpop.f32.mrb[5].mxu1  ;;  %v1142_v45 = vadd.f32 %v1490_v28, %v475_v31 }
 0x135   : > { %v768_v30 = vpop.f32.mrb[0].mxu0  ;;  %v478_v0 = vpop.f32.mrb[6].mxu1 }
 0x136   : > { %v1139_v33 = vadd.f32 %v1138_v29, %v768_v30  ;;  %v1120_v34 = vpop.f32.mrb[1].mxu0  ;;  %v1081_v40 = vpop.f32.mrb[7].mxu1  ;;  %v1144_v49 = vadd.f32 %v1490_v28, %v478_v0 }
 0x137   : > { %v771_v36 = vpop.f32.mrb[2].mxu0 }
 0x138   : > { %vm815_vm5 = vcmp.ge.f32.partialorder %v1139_v33, 0.0  ;;  %v824_v37 = vmul.f32 0.2, %v1139_v33  ;;  %v1141_v38 = vadd.f32 %v1140_v32, %v771_v36  ;;  %v1121_v39 = vpop.f32.mrb[3].mxu0 }
 0x13a   : > { %v833_v41 = vsel %vm815_vm5, %v1139_v33, %v824_v37  ;;  %vm816_vm7 = vcmp.ge.f32.partialorder %v1141_v38, 0.0  ;;  %v825_v42 = vmul.f32 0.2, %v1141_v38 }
 0x13b   : > { %v1017_v43 = vpack.c.bf16 %v833_v41, %v833_v41  ;;  %v483_v48 = vpop.f32.mrb[8].mxu1 }
 0x13c   : > { %v834_v44 = vsel %vm816_vm7, %v1141_v38, %v825_v42  ;;  %v1084_v52 = vpop.f32.mrb[9].mxu1  ;;  %v1146_v63 = vadd.f32 %v1490_v28, %v483_v48 }
 0x13d   : > { %880 = vst.msk [vmem:[%s1498_s19] sm:$0xf] %vm879_vm6, %v1017_v43  ;;  %v1018_v46 = vpack.c.bf16 %v834_v44, %v834_v44  ;;  %v776_v47 = vpop.f32.mrb[4].mxu0  ;;  %v486_v54 = vpop.f32.mrb[10].mxu1 }
 0x13e   : > { %v1143_v50 = vadd.f32 %v1142_v45, %v776_v47  ;;  %v1124_v51 = vpop.f32.mrb[5].mxu0  ;;  %v1085_v58 = vpop.f32.mrb[11].mxu1  ;;  %v1148_v4 = vadd.f32 %v1490_v28, %v486_v54 }
 0x13f   : > { %881 = vst.msk [vmem:[%s1498_s19 + $0x4] sm:$0xf] %vm879_vm6, %v1018_v46  ;;  %v779_v53 = vpop.f32.mrb[6].mxu0 }
 0x140   : > { %vm817_vm8 = vcmp.ge.f32.partialorder %v1143_v50, 0.0  ;;  %v826_v55 = vmul.f32 0.2, %v1143_v50  ;;  %v1145_v56 = vadd.f32 %v1144_v49, %v779_v53  ;;  %v1125_v57 = vpop.f32.mrb[7].mxu0 }
 0x142   : > { %v835_v59 = vsel %vm817_vm8, %v1143_v50, %v826_v55  ;;  %vm818_vm9 = vcmp.ge.f32.partialorder %v1145_v56, 0.0  ;;  %v827_v60 = vmul.f32 0.2, %v1145_v56 }
 0x143   : > { %v1019_v61 = vpack.c.bf16 %v835_v59, %v835_v59  ;;  %v491_v3 = vpop.f32.mrb[12].mxu1 }
 0x144   : > { %v836_v62 = vsel %vm818_vm9, %v1145_v56, %v827_v60  ;;  %v1088_v6 = vpop.f32.mrb[13].mxu1  ;;  %v1150_v18 = vadd.f32 %v1490_v28, %v491_v3 }
 0x145   : > { %882 = vst.msk [vmem:[%s1498_s19 + $0x8] sm:$0xf] %vm879_vm6, %v1019_v61  ;;  %v1020_v1 = vpack.c.bf16 %v836_v62, %v836_v62  ;;  %v784_v2 = vpop.f32.mrb[8].mxu0  ;;  %v494_v9 = vpop.f32.mrb[14].mxu1 }
 0x146   : > { %v1147_v5 = vadd.f32 %v1146_v63, %v784_v2  ;;  %v1128_v7 = vpop.f32.mrb[9].mxu0  ;;  %v1089_v13 = vpop.f32.mrb[15].mxu1  ;;  %v1152_v22 = vadd.f32 %v1490_v28, %v494_v9 }
 0x147   : > { %883 = vst.msk [vmem:[%s1498_s19 + $0xc] sm:$0xf] %vm879_vm6, %v1020_v1  ;;  %v787_v8 = vpop.f32.mrb[10].mxu0 }
 0x148   : > { %vm819_vm10 = vcmp.ge.f32.partialorder %v1147_v5, 0.0  ;;  %v828_v10 = vmul.f32 0.2, %v1147_v5  ;;  %v1149_v11 = vadd.f32 %v1148_v4, %v787_v8  ;;  %v1129_v12 = vpop.f32.mrb[11].mxu0 }
 0x14a   : > { %v837_v14 = vsel %vm819_vm10, %v1147_v5, %v828_v10  ;;  %vm820_vm11 = vcmp.ge.f32.partialorder %v1149_v11, 0.0  ;;  %v829_v15 = vmul.f32 0.2, %v1149_v11 }
 0x14b   : > { %v1021_v16 = vpack.c.bf16 %v837_v14, %v837_v14  ;;  %v499_v21 = vpop.f32.mrb[16].mxu1 }
 0x14c   : > { %v838_v17 = vsel %vm820_vm11, %v1149_v11, %v829_v15  ;;  %v1092_v25 = vpop.f32.mrb[17].mxu1  ;;  %v1154_v0 = vadd.f32 %v1490_v28, %v499_v21 }
 0x14d   : > { %884 = vst.msk [vmem:[%s1498_s19 + $0x10] sm:$0xf] %vm879_vm6, %v1021_v16  ;;  %v1022_v19 = vpack.c.bf16 %v838_v17, %v838_v17  ;;  %v792_v20 = vpop.f32.mrb[12].mxu0  ;;  %v502_v27 = vpop.f32.mrb[18].mxu1 }
 0x14e   : > { %v1151_v23 = vadd.f32 %v1150_v18, %v792_v20  ;;  %v1132_v24 = vpop.f32.mrb[13].mxu0  ;;  %v1093_v32 = vpop.f32.mrb[19].mxu1 }
 0x14f   : > { %885 = vst.msk [vmem:[%s1498_s19 + $0x14] sm:$0xf] %vm879_vm6, %v1022_v19  ;;  %v795_v26 = vpop.f32.mrb[14].mxu0 }
 0x150   : > { %vm821_vm12 = vcmp.ge.f32.partialorder %v1151_v23, 0.0  ;;  %v830_v29 = vmul.f32 0.2, %v1151_v23  ;;  %v1153_v30 = vadd.f32 %v1152_v22, %v795_v26  ;;  %v1133_v31 = vpop.f32.mrb[15].mxu0 }
 0x152   : > { %v839_v33 = vsel %vm821_vm12, %v1151_v23, %v830_v29  ;;  %vm822_vm13 = vcmp.ge.f32.partialorder %v1153_v30, 0.0  ;;  %v831_v34 = vmul.f32 0.2, %v1153_v30 }
 0x153   : > { %v1023_v35 = vpack.c.bf16 %v839_v33, %v839_v33 }
 0x154   : > { %v840_v36 = vsel %vm822_vm13, %v1153_v30, %v831_v34 }
 0x155   : > { %886 = vst.msk [vmem:[%s1498_s19 + $0x18] sm:$0xf] %vm879_vm6, %v1023_v35  ;;  %v1024_v37 = vpack.c.bf16 %v840_v36, %v840_v36  ;;  %v800_v38 = vpop.f32.mrb[16].mxu0 }
 0x156   : > { %v1155_v39 = vadd.f32 %v1154_v0, %v800_v38  ;;  %v1136_v40 = vpop.f32.mrb[17].mxu0 }
 0x157   : > { %887 = vst.msk [vmem:[%s1498_s19 + $0x1c] sm:$0xf] %vm879_vm6, %v1024_v37  ;;  %v803_v41 = vpop.f32.mrb[18].mxu0 }
 0x158   : > { %vm823_vm14 = vcmp.ge.f32.partialorder %v1155_v39, 0.0  ;;  %v832_v42 = vmul.f32 0.2, %v1155_v39  ;;  %v1137_v43 = vpop.f32.mrb[19].mxu0 }
 0x15a   : > { %v841_v44 = vsel %vm823_vm14, %v1155_v39, %v832_v42 }
 0x15b   : > { %v1025_v45 = vpack.c.bf16 %v841_v44, %v841_v44 }
 0x15d   : > { %888 = vst.msk [vmem:[%s1498_s19 + $0x20] sm:$0xf] %vm879_vm6, %v1025_v45 }
 0x15e PF: > { %s14_s12 = sadd.s32 1, %s1277_s12  }
 0x15f   : > { %p11_p2 = scmp.ge.s32.totalorder %s14_s12, 4  }
 0x161   :  { %13 = sbr.rel (!%p11_p2) target bundleno = 1 (0x1), region = 67 }
 0x168   :  { %910 = vsyncpa [#allocation3], 1 }
 0x169   :  { %912 = vsyncpa [#allocation3 + $0x1], 1 }

// kernel: ce_discriminator_forward.6
= control target key start
LH: loop header
LB: loop body
LE: loop exit
PB: predicated region body
PF: predicated region fallthrough
CT: control target
= control target key end

     0   :  { %s1544_s12 = smov 0   ;;  %s1838_s0 = inlined_call_operand.vmem [shape: bf16[2,30,256], index: 0, kind: input, shape index: {}]   ;;  %s1839_s1 = inlined_call_operand.vmem [shape: bf16[1024,128], index: 1, kind: input, shape index: {}]   ;;  %s1840_s2 = inlined_call_operand.vmem [shape: f32[1,128], index: 2, kind: input, shape index: {}]   ;;  %s1841_s3 = inlined_call_operand.vmem [shape: bf16[2,20,128], index: 3, kind: output, shape index: {}]  }
   0x1 LB: > { %s1211_s13 = sadd.s32 4294967295, %s1522_s12   ;;  %p1215_p0 = scmp.ge.s32.totalorder %s1522_s12, 1  ;;  %s1522_s12 = sphi %s1544_s12, %s13_s12  }
   0x2   : > { %p137_p1 = scmp.lt.s32.totalorder %s1522_s12, 3 }
   0x4   : > { %p138_p2 = pnand %p1215_p0, %p137_p1 }
   0x5   : > { %v1437_v0 = vld [vmem:[%s1839_s1 + $0x40] sm:$0xff] (!%p138_p2)   ;;  %v1441_v4 = vld [vmem:[%s1839_s1 + $0x48] sm:$0xff] (!%p138_p2)   ;;  %v1445_v8 = vld [vmem:[%s1839_s1 + $0x50] sm:$0xff] (!%p138_p2)   ;;  %p161_p3 = scmp.lt.s32.totalorder (!%p138_p2), %s1211_s13, 1  ;;  %vm416_vm0 = vsmask.f32 (!%p138_p2), 7424 }
   0x6   : > { %141 = sbr.rel (%p138_p2) target bundleno = 361 (0x169), region = 32  ;;  %v1438_v1 = vld [vmem:[%s1839_s1 + $0xc0] sm:$0xff] (!%p138_p2)   ;;  %1310 = vmatprep.subr.bf16.mxu0 (!%p138_p2), %v1437_v0  ;;  %v1442_v5 = vld [vmem:[%s1839_s1 + $0xc8] sm:$0xff] (!%p138_p2)   ;;  %v1446_v9 = vld [vmem:[%s1839_s1 + $0xd0] sm:$0xff] (!%p138_p2)   ;;  %vm650_vm1 = vsmask.f32 (!%p138_p2), 5376 }
   0x7   : > { %v1439_v2 = vld [vmem:[%s1839_s1] sm:$0xff] (!%p138_p2)   ;;  %1338 = vmatprep.subr.bf16.mxu1 (!%p138_p2), %v1438_v1  ;;  %v1443_v6 = vld [vmem:[%s1839_s1 + $0x8] sm:$0xff] (!%p138_p2)   ;;  %v1447_v10 = vld [vmem:[%s1839_s1 + $0x10] sm:$0xff] (!%p138_p2)   ;;  %vm874_vm2 = vcmask (!%p138_p2), 1044480   ;;  %vm1097_vm15 = vcmask (!%p138_p2), 1043456  }
   0x8   : > { %v1440_v3 = vld [vmem:[%s1839_s1 + $0x80] sm:$0xff] (!%p138_p2)   ;;  %1311 = vmatpush3.bf16.msra.mxu0 (!%p138_p2), %v1439_v2  ;;  %v1444_v7 = vld [vmem:[%s1839_s1 + $0x88] sm:$0xff] (!%p138_p2)   ;;  %v1448_v11 = vld [vmem:[%s1839_s1 + $0x90] sm:$0xff] (!%p138_p2)  }
   0x9   : > { %1339 = vmatpush3.bf16.msra.mxu1 (!%p138_p2), %v1440_v3  ;;  %1312 = vmatprep.subr.bf16.mxu0 (!%p138_p2), %v1441_v4  ;;  %v1449_v12 = vld [vmem:[%s1839_s1 + $0x58] sm:$0xff] (!%p138_p2)   ;;  %v1453_v16 = vld [vmem:[%s1839_s1 + $0x60] sm:$0xff] (!%p138_p2)   ;;  %v1457_v20 = vld [vmem:[%s1839_s1 + $0x68] sm:$0xff] (!%p138_p2)  }
   0xa   : > { %1340 = vmatprep.subr.bf16.mxu1 (!%p138_p2), %v1442_v5  ;;  %v1450_v13 = vld [vmem:[%s1839_s1 + $0xd8] sm:$0xff] (!%p138_p2)   ;;  %v1454_v17 = vld [vmem:[%s1839_s1 + $0xe0] sm:$0xff] (!%p138_p2)   ;;  %v1458_v21 = vld [vmem:[%s1839_s1 + $0xe8] sm:$0xff] (!%p138_p2)  }
   0xb   : > { %v1451_v14 = vld [vmem:[%s1839_s1 + $0x18] sm:$0xff] (!%p138_p2)   ;;  %v1455_v18 = vld [vmem:[%s1839_s1 + $0x20] sm:$0xff] (!%p138_p2)   ;;  %v1459_v22 = vld [vmem:[%s1839_s1 + $0x28] sm:$0xff] (!%p138_p2)  }
   0xc   : > { %1313 = vmatpush3.bf16.msra.mxu0 (!%p138_p2), %v1443_v6  ;;  %v1452_v15 = vld [vmem:[%s1839_s1 + $0x98] sm:$0xff] (!%p138_p2)   ;;  %v1456_v19 = vld [vmem:[%s1839_s1 + $0xa0] sm:$0xff] (!%p138_p2)   ;;  %v1460_v23 = vld [vmem:[%s1839_s1 + $0xa8] sm:$0xff] (!%p138_p2)  }
   0xd   : > { %1341 = vmatpush3.bf16.msra.mxu1 %v1444_v7  ;;  %1314 = vmatprep.subr.bf16.mxu0 %v1445_v8  ;;  %s1853_s13 = smov (!%p161_p3, %s1211_s13), 1  ;;  %v1461_v24 = vld [vmem:[%s1839_s1 + $0x70] sm:$0xff]   ;;  %v1465_v28 = vld [vmem:[%s1839_s1 + $0x78] sm:$0xff]   ;;  %v1473_v39 = vld [vmem:[%s1839_s1 + $0x140] sm:$0xff]  }
   0xe   : > { %1342 = vmatprep.subr.bf16.mxu1 %v1446_v9  ;;  %v1462_v25 = vld [vmem:[%s1839_s1 + $0xf0] sm:$0xff]   ;;  %s1301_s18 = sshll.u32 %s1853_s13, 5  ;;  %v1466_v29 = vld [vmem:[%s1839_s1 + $0xf8] sm:$0xff]   ;;  %v1474_v40 = vld [vmem:[%s1839_s1 + $0x1c0] sm:$0xff]   ;;  %s1422_s24 = smul.u32 12, %s1853_s13 }
   0xf   : > { %v1463_v26 = vld [vmem:[%s1839_s1 + $0x30] sm:$0xff]   ;;  %s1652_s27 = scalar_lea.vmem %s1838_s0, %s1301_s18  ;;  %v1467_v30 = vld [vmem:[%s1839_s1 + $0x38] sm:$0xff]   ;;  %v1475_v47 = vld [vmem:[%s1839_s1 + $0x100] sm:$0xff]  }
  0x10   : > { %1315 = vmatpush3.bf16.msra.mxu0 %v1447_v10  ;;  %v1464_v27 = vld [vmem:[%s1839_s1 + $0xb0] sm:$0xff]   ;;  %v1468_v31 = vld [vmem:[%s1839_s1 + $0xb8] sm:$0xff]   ;;  %v179_v32 = vld [vmem:[%s1652_s27] sm:$0xff]  ;;  %s170_s28 = scalar_lea.vmem %s1841_s3, %s1422_s24 }
  0x11   : > { %1343 = vmatpush3.bf16.msra.mxu1 %v1448_v11  ;;  %1316 = vmatprep.subr.bf16.mxu0 %v1449_v12  ;;  %v1662_v33 = vld [vmem:[%s1652_s27 + $0x8] sm:$0xff]  ;;  %v378_v34 = vld [vmem:[%s1652_s27 + $0x10] sm:$0x77]  ;;  %v1476_v53 = vld [vmem:[%s1839_s1 + $0x180] sm:$0xff]  }
  0x12   : > { %1344 = vmatprep.subr.bf16.mxu1 %v1450_v13  ;;  %v1221_v35 = vcombine.high %v179_v32, %v1662_v33  ;;  %v1241_v36 = vcombine.high %v378_v34, %v378_v34  ;;  %v1220_v37 = vcombine.low %v179_v32, %v1662_v33  ;;  %v1240_v38 = vcombine.low %v378_v34, %v378_v34  ;;  %v1477_v51 = vld [vmem:[%s1839_s1 + $0x148] sm:$0xff]   ;;  %v1481_v61 = vld [vmem:[%s1839_s1 + $0x150] sm:$0xff]   ;;  %v1485_v3 = vld [vmem:[%s1839_s1 + $0x158] sm:$0xff]  }
  0x13   : > { %v1479_v56 = vld [vmem:[%s1839_s1 + $0x108] sm:$0xff]   ;;  %v1483_v1 = vld [vmem:[%s1839_s1 + $0x110] sm:$0xff]   ;;  %v1487_v6 = vld [vmem:[%s1839_s1 + $0x118] sm:$0xff]  }
  0x14   : > { %1317 = vmatpush3.bf16.msra.mxu0 %v1451_v14  ;;  %359 = vmatprep.mubr.bf16.mxu0 %v1221_v35  ;;  %v430_v41 = vshrl.u32 %v1221_v35, 16  ;;  %v432_v42 = vshll.u32 %v1221_v35, 16  ;;  %v437_v43 = vshll.u32 %v1241_v36, 16  ;;  %v420_v44 = vshll.u32 %v1220_v37, 16  ;;  %v1478_v60 = vld [vmem:[%s1839_s1 + $0x1c8] sm:$0xff]   ;;  %v1482_v2 = vld [vmem:[%s1839_s1 + $0x1d0] sm:$0xff]  }
  0x15   : > { %1345 = vmatpush3.bf16.msra.mxu1 %v1452_v15  ;;  %1318 = vmatprep.subr.bf16.mxu0 %v1453_v16  ;;  %v418_v45 = vshrl.u32 %v1220_v37, 16  ;;  %v425_v46 = vshll.u32 %v1240_v38, 16  ;;  %v444_v57 = vshrl.u32 %v1241_v36, 16  ;;  %v1480_v63 = vld [vmem:[%s1839_s1 + $0x188] sm:$0xff]   ;;  %v441_v0 = vshrl.u32 %v1240_v38, 16  ;;  %v1484_v4 = vld [vmem:[%s1839_s1 + $0x190] sm:$0xff]  }
  0x16   : > { %1346 = vmatprep.subr.bf16.mxu1 %v1454_v17  ;;  %v434_v48 = vrot.slane %v432_v42, 1  ;;  %v439_v49 = vrot.slane %v437_v43, 1  ;;  %v422_v50 = vrot.slane %v420_v44, 1  ;;  %v1486_v7 = vld [vmem:[%s1839_s1 + $0x1d8] sm:$0xff]   ;;  %v1489_v8 = vld [vmem:[%s1839_s1 + $0x160] sm:$0xff]   ;;  %v1494_v15 = vld [vmem:[%s1839_s1 + $0x168] sm:$0xff]  }
  0x17   : > { %v427_v52 = vrot.slane %v425_v46, 1  ;;  %v1488_v9 = vld [vmem:[%s1839_s1 + $0x198] sm:$0xff]   ;;  %v1491_v10 = vld [vmem:[%s1839_s1 + $0x120] sm:$0xff]   ;;  %v181_v13 = vld [vmem:[%s1652_s27 + $0x10] sm:$0x33] }
  0x18   : > { %1319 = vmatpush3.bf16.msra.mxu0 %v1455_v18  ;;  %v435_v54 = vor.u32 %v434_v48, %v430_v41  ;;  %v423_v55 = vor.u32 %v422_v50, %v418_v45  ;;  %v446_v62 = vor.u32 %v444_v57, %v439_v49  ;;  %v1490_v11 = vld [vmem:[%s1839_s1 + $0x1e0] sm:$0xff]   ;;  %v1223_v14 = vcombine.high %v181_v13, %v181_v13  ;;  %v1495_v17 = vld [vmem:[%s1839_s1 + $0x1e8] sm:$0xff]   ;;  %v1509_v34 = vld [vmem:[%s1652_s27 + $0x10] ss:$8 sps:$4 sm:$0x1f]  }
  0x19   : > { %1347 = vmatpush3.bf16.msra.mxu1 %v1456_v19  ;;  %1320 = vmatprep.subr.bf16.mxu0 %v1457_v20  ;;  %v443_v5 = vor.u32 %v441_v0, %v427_v52  ;;  %v1492_v12 = vld [vmem:[%s1839_s1 + $0x1a0] sm:$0xff]   ;;  %v1222_v16 = vcombine.low %v181_v13, %v181_v13  ;;  %v1497_v18 = vld [vmem:[%s1839_s1 + $0x128] sm:$0xff]   ;;  %v1499_v20 = vld [vmem:[%s1839_s1 + $0x170] sm:$0xff]   ;;  %v1032_v13 = vlaneseq }
  0x1a   : > { %1348 = vmatprep.subr.bf16.mxu1 %v1458_v21  ;;  %v440_v58 = vsel %vm416_vm0, %v435_v54, %v439_v49  ;;  %v428_v59 = vsel %vm416_vm0, %v423_v55, %v427_v52  ;;  %v1498_v19 = vld [vmem:[%s1839_s1 + $0x1a8] sm:$0xff]   ;;  %v1500_v21 = vld [vmem:[%s1839_s1 + $0x1f0] sm:$0xff]   ;;  %v836_v32 = vld [vmem:[%s1652_s27] sm:$0x88]  ;;  %v663_v54 = vshll.u32 %v1509_v34, 16 }
  0x1b   : > { %579 = vmatprep.mubr.bf16.mxu1 %v440_v58  ;;  %v1279_v38 = vcombine.high %v836_v32, %v1662_v33 }
  0x1c   : > { %1321 = vmatpush3.bf16.msra.mxu0 %v1459_v22  ;;  %v1501_v22 = vld [vmem:[%s1839_s1 + $0x130] sm:$0xff]   ;;  %v665_v58 = vrot.slane %v663_v54, 3 }
  0x1d   : > { %1349 = vmatpush3.bf16.msra.mxu1 %v1460_v23  ;;  %1322 = vmatprep.subr.bf16.mxu0 %v1461_v24  ;;  %v1502_v23 = vld [vmem:[%s1839_s1 + $0x1b0] sm:$0xff]   ;;  %v1503_v24 = vld [vmem:[%s1839_s1 + $0x178] sm:$0xff]   ;;  %v878_v46 = vrot.slane %v1279_v38, 3 }
  0x1e   : > { %1350 = vmatprep.subr.bf16.mxu1 %v1462_v25  ;;  %v1504_v25 = vld [vmem:[%s1839_s1 + $0x1f8] sm:$0xff]  }
  0x20   : > { %1323 = vmatpush3.bf16.msra.mxu0 %v1463_v26  ;;  %v1505_v26 = vld [vmem:[%s1839_s1 + $0x138] sm:$0xff]  }
  0x21   : > { %1351 = vmatpush3.bf16.msra.mxu1 %v1464_v27  ;;  %1324 = vmatprep.subr.bf16.mxu0 %v1465_v28  ;;  %v598_v27 = vld [vmem:[%s1652_s27] sm:$0xcc] }
  0x22   : > { %1352 = vmatprep.subr.bf16.mxu1 %v1466_v29  ;;  %v1258_v28 = vcombine.low %v598_v27, %v1662_v33  ;;  %v1259_v29 = vcombine.high %v598_v27, %v1662_v33 }
  0x24   : > { %1325 = vmatpush3.bf16.msra.mxu0 %v1467_v30  ;;  %v1506_v30 = vld [vmem:[%s1839_s1 + $0x1b8] sm:$0xff]   ;;  %v669_v35 = vshrl.u32 %v1259_v29, 16  ;;  %v672_v36 = vshll.u32 %v1259_v29, 16  ;;  %v652_v42 = vshrl.u32 %v1258_v28, 16  ;;  %v655_v50 = vshll.u32 %v1258_v28, 16 }
  0x25   : > { %1353 = vmatpush3.bf16.msra.mxu1 %v1468_v31  ;;  %1366 = vmatprep.subr.bf16.mxu0 %v1473_v39  ;;  %v1511_v31 = vld [vmem:[%s1652_s27 + $0x14] ss:$8 sps:$4 sm:$0x1f]  }
  0x26   : > { %1394 = vmatprep.subr.bf16.mxu1 %v1474_v40  ;;  %v677_v39 = vshrl.u32 %v1511_v31, 16  ;;  %v680_v40 = vshll.u32 %v1511_v31, 16  ;;  %v879_v41 = vrot.slane %v1511_v31, 3  ;;  %v671_v43 = vrot.slane %v669_v35, 2 }
  0x27   : > { %360 = vmatmul.mubr.bf16.vlgmr.msra.gmra.mrb[0].mxu0 %v1220_v37  ;;  %v1278_v37 = vcombine.low %v836_v32, %v1662_v33  ;;  %v674_v44 = vrot.slane %v672_v36, 3  ;;  %v654_v49 = vrot.slane %v652_v42, 2  ;;  %v657_v33 = vrot.slane %v655_v50, 3 }
  0x28   : > { %1367 = vmatpush3.bf16.msra.mxu0 %v1475_v47  ;;  %580 = vmatmul.mubr.bf16.vlgmr.msra.gmra.mrb[0].mxu1 %v428_v59  ;;  %v679_v47 = vrot.slane %v677_v39, 2  ;;  %v682_v48 = vrot.slane %v680_v40, 3  ;;  %v880_v52 = vsel %vm874_vm2, %v878_v46, %v879_v41 }
  0x29   : > { %1368 = vmatprep.subr.bf16.mxu0 %v1477_v51  ;;  %1395 = vmatpush3.bf16.msra.mxu1 %v1476_v53  ;;  %v875_v45 = vrot.slane %v1278_v37, 3  ;;  %v675_v51 = vor.u32 %v674_v44, %v671_v43  ;;  %v660_v53 = vshrl.u32 %v1509_v34, 16 }
  0x2a   : > { %1396 = vmatprep.subr.bf16.mxu1 %v1478_v60  ;;  %587 = vmatprep.mubr.bf16.mxu1 %v446_v62  ;;  %v683_v55 = vor.u32 %v682_v48, %v679_v47  ;;  %v658_v60 = vor.u32 %v657_v33, %v654_v49 }
  0x2b   : > { %367 = vmatprep.mubr.bf16.mxu0 %v1223_v14  ;;  %v662_v57 = vrot.slane %v660_v53, 2 }
  0x2c   : > { %1369 = vmatpush3.bf16.msra.mxu0 %v1479_v56  ;;  %v876_v56 = vrot.slane %v1509_v34, 3  ;;  %v684_v59 = vsel %vm650_vm1, %v675_v51, %v683_v55 }
  0x2d   : > { %1370 = vmatprep.subr.bf16.mxu0 %v1481_v61  ;;  %1397 = vmatpush3.bf16.msra.mxu1 %v1480_v63  ;;  %v666_v62 = vor.u32 %v665_v58, %v662_v57 }
  0x2e   : > { %1398 = vmatprep.subr.bf16.mxu1 %v1482_v2  ;;  %v877_v61 = vsel %vm874_vm2, %v875_v45, %v876_v56 }
  0x2f   : > { %368 = vmatmul.mubr.bf16.gmra.mrb[4].mxu0 %v1222_v16  ;;  %v667_v63 = vsel %vm650_vm1, %v658_v60, %v666_v62 }
  0x30   : > { %1371 = vmatpush3.bf16.msra.mxu0 %v1483_v1  ;;  %588 = vmatmul.mubr.bf16.gmra.mrb[4].mxu1 %v443_v5  ;;  %v1219_v5 = vld [vmem:[%s1840_s2] ss:$0 sm:$0xff] }
  0x31   : > { %1372 = vmatprep.subr.bf16.mxu0 %v1485_v3  ;;  %1399 = vmatpush3.bf16.msra.mxu1 %v1484_v4 }
  0x32   : > { %1400 = vmatprep.subr.bf16.mxu1 %v1486_v7  ;;  %1013 = vmatprep.mubr.bf16.mxu1 %v880_v52 }
  0x33   : > { %817 = vmatprep.mubr.bf16.mxu0 %v684_v59 }
  0x34   : > { %1373 = vmatpush3.bf16.msra.mxu0 %v1487_v6 }
  0x35   : > { %1374 = vmatprep.subr.bf16.mxu0 %v1489_v8  ;;  %1401 = vmatpush3.bf16.msra.mxu1 %v1488_v9 }
  0x36   : > { %1402 = vmatprep.subr.bf16.mxu1 %v1490_v11 }
  0x38   : > { %1375 = vmatpush3.bf16.msra.mxu0 %v1491_v10 }
  0x39   : > { %1376 = vmatprep.subr.bf16.mxu0 %v1494_v15  ;;  %1403 = vmatpush3.bf16.msra.mxu1 %v1492_v12 }
  0x3a   : > { %1404 = vmatprep.subr.bf16.mxu1 %v1495_v17 }
  0x3c   : > { %1377 = vmatpush3.bf16.msra.mxu0 %v1497_v18  ;;  %v1033_v18 = vshrl.u32 %v1032_v13, 7 }
  0x3d   : > { %1378 = vmatprep.subr.bf16.mxu0 %v1499_v20  ;;  %1405 = vmatpush3.bf16.msra.mxu1 %v1498_v19 }
  0x3e   : > { %1406 = vmatprep.subr.bf16.mxu1 %v1500_v21  ;;  %v1035_v34 = vadd.s32 16, %v1033_v18 }
  0x40   : > { %1379 = vmatpush3.bf16.msra.mxu0 %v1501_v22  ;;  %v1788_v39 = vmul.u32.u64.low 3435973837, %v1035_v34  ;;  %v1789_v40 = vmul.u32.u64.high 3435973837, %v1035_v34, %v1788_v39 }
  0x41   : > { %1380 = vmatprep.subr.bf16.mxu0 %v1503_v24  ;;  %1407 = vmatpush3.bf16.msra.mxu1 %v1502_v23  ;;  %v1034_v23 = vadd.s32 8, %v1033_v18 }
  0x42   : > { %1408 = vmatprep.subr.bf16.mxu1 %v1504_v25  ;;  %v1064_v45 = vshrl.u32 %v1789_v40, 2 }
  0x43   : > { %v1784_v27 = vmul.u32.u64.low 3435973837, %v1034_v23  ;;  %v1785_v28 = vmul.u32.u64.high 3435973837, %v1034_v23, %v1784_v27 }
  0x44   : > { %1381 = vmatpush3.bf16.msra.mxu0 %v1505_v26  ;;  %v1781_v25 = vmul.u32.u64.low 3435973837, %v1033_v18  ;;  %v1782_v26 = vmul.u32.u64.high 3435973837, %v1033_v18, %v1781_v25  ;;  %v1065_v47 = vmul.u32 5, %v1064_v45 }
  0x45   : > { %1409 = vmatpush3.bf16.msra.mxu1 %v1506_v30 }
  0x46   : > { %v1042_v38 = vshrl.u32 %v1782_v26, 2  ;;  %v1066_v57 = vsub.s32 %v1035_v34, %v1065_v47 }
  0x47   : > { %818 = vmatmul.mubr.bf16.vlgmr.msra.gmra.mrb[8].mxu0 %v667_v63 }
  0x48   : > { %1014 = vmatmul.mubr.bf16.vlgmr.msra.gmra.mrb[8].mxu1 %v877_v61  ;;  %825 = vmatprep.mubr.bf16.mxu0 %v683_v55  ;;  %v1043_v42 = vmul.u32 5, %v1042_v38  ;;  %vm1071_vm9 = vcmp.ne.s32.totalorder %v1066_v57, 0  ;;  %vm1074_vm10 = vcmp.lt.s32.totalorder %v1066_v57, 0 }
  0x49   : > { %1021 = vmatprep.mubr.bf16.mxu1 %v879_v41  ;;  %v1053_v41 = vshrl.u32 %v1785_v28, 2  ;;  %vm1077_vm13 = vmand %vm1074_vm10, %vm1071_vm9 }
  0x4a   : > { %v1044_v44 = vsub.s32 %v1033_v18, %v1043_v42 }
  0x4b   : > { %v1054_v43 = vmul.u32 5, %v1053_v41 }
  0x4c   : > { %vm1069_vm3 = vcmp.ne.s32.totalorder %v1044_v44, 0  ;;  %vm1072_vm4 = vcmp.lt.s32.totalorder %v1044_v44, 0  ;;  %v1078_v52 = vadd.s32 5, %v1044_v44 }
  0x4d   : > { %v1055_v46 = vsub.s32 %v1034_v23, %v1054_v43  ;;  %vm1793_vm7 = vmand %vm1072_vm4, %vm1069_vm3 }
  0x4f   : > { %826 = vmatmul.mubr.bf16.gmra.mrb[12].mxu0 %v666_v62  ;;  %vm1070_vm5 = vcmp.ne.s32.totalorder %v1055_v46, 0  ;;  %vm1073_vm6 = vcmp.lt.s32.totalorder %v1055_v46, 0  ;;  %v1079_v54 = vadd.s32 5, %v1055_v46  ;;  %v1081_v62 = vsel %vm1793_vm7, %v1078_v52, %v1044_v44 }
  0x50   : > { %1022 = vmatmul.mubr.bf16.gmra.mrb[12].mxu1 %v876_v56  ;;  %vm1797_vm8 = vmand %vm1073_vm6, %vm1070_vm5  ;;  %vm1805_vm11 = vcmp.lt.s32.totalorder %v1081_v62, 4 }
  0xfa   : > { %v1326_v0 = vpop.f32.mrb[0].mxu0 }
  0xfb   : > { %v1327_v1 = vpop.f32.mrb[1].mxu0  ;;  %v1354_v7 = vpop.f32.mrb[0].mxu1 }
  0xfc   : > { %v1328_v2 = vadd.f32 %v1327_v1, %v1326_v0  ;;  %v1329_v3 = vpop.f32.mrb[2].mxu0  ;;  %v1355_v9 = vpop.f32.mrb[1].mxu1  ;;  %v1082_v0 = vsel %vm1797_vm8, %v1079_v54, %v1055_v46 }
  0xfd   : > { %v1330_v4 = vpop.f32.mrb[3].mxu0  ;;  %v1356_v10 = vadd.f32 %v1355_v9, %v1354_v7  ;;  %v1357_v11 = vpop.f32.mrb[2].mxu1  ;;  %v1080_v7 = vadd.s32 5, %v1066_v57  ;;  %vm1809_vm12 = vcmp.lt.s32.totalorder %v1082_v0, 4 }
  0xfe   : > { %v1331_v6 = vadd.f32 %v1330_v4, %v1329_v3  ;;  %v375_v8 = vadd.f32 %v1328_v2, %v1219_v5  ;;  %v1358_v14 = vpop.f32.mrb[3].mxu1 }
  0xff   : > { %v1359_v16 = vadd.f32 %v1358_v14, %v1357_v11 }
 0x100   : > { %v376_v12 = vadd.f32 %v1331_v6, %v1219_v5  ;;  %v595_v15 = vadd.f32 %v1356_v10, %v375_v8 }
 0x102   : > { %v596_v17 = vadd.f32 %v1359_v16, %v376_v12  ;;  %v1332_v29 = vpop.f32.mrb[4].mxu0 }
 0x103   : > { %v1360_v19 = vpop.f32.mrb[4].mxu1  ;;  %v1333_v30 = vpop.f32.mrb[5].mxu0 }
 0x104   : > { %v1361_v20 = vpop.f32.mrb[5].mxu1  ;;  %v1334_v31 = vadd.f32 %v1333_v30, %v1332_v29  ;;  %v1335_v32 = vpop.f32.mrb[6].mxu0 }
 0x105   : > { %v1362_v21 = vadd.f32 %v1361_v20, %v1360_v19  ;;  %v1363_v22 = vpop.f32.mrb[6].mxu1  ;;  %v1336_v35 = vpop.f32.mrb[7].mxu0  ;;  %v1083_v19 = vsel %vm1077_vm13, %v1080_v7, %v1066_v57 }
 0x106   : > { %v1364_v24 = vpop.f32.mrb[7].mxu1  ;;  %v377_v36 = vadd.f32 %v1334_v31, %v1219_v5  ;;  %vm1817_vm14 = vcmp.lt.s32.totalorder %v1083_v19, 4 }
 0x108   : > { %v597_v37 = vadd.f32 %v1362_v21, %v377_v36 }
 0x11a   : > { %v1382_v55 = vpop.f32.mrb[8].mxu0 }
 0x11b   : > { %v1410_v48 = vpop.f32.mrb[8].mxu1  ;;  %v1383_v58 = vpop.f32.mrb[9].mxu0 }
 0x11c   : > { %v1411_v49 = vpop.f32.mrb[9].mxu1  ;;  %v1384_v60 = vadd.f32 %v1383_v58, %v1382_v55  ;;  %v1385_v61 = vpop.f32.mrb[10].mxu0 }
 0x11d   : > { %v1412_v50 = vadd.f32 %v1411_v49, %v1410_v48  ;;  %v1413_v53 = vpop.f32.mrb[10].mxu1  ;;  %v1386_v63 = vpop.f32.mrb[11].mxu0 }
 0x11e   : > { %v1414_v33 = vpop.f32.mrb[11].mxu1  ;;  %v833_v1 = vadd.f32 %v1384_v60, %v595_v15  ;;  %v1387_v2 = vadd.f32 %v1386_v63, %v1385_v61 }
 0x11f   : > { %v1415_v59 = vadd.f32 %v1414_v33, %v1413_v53 }
 0x120   : > { %v1029_v4 = vadd.f32 %v1412_v50, %v833_v1  ;;  %v834_v5 = vadd.f32 %v1387_v2, %v596_v17 }
 0x122   : > { %v1030_v12 = vadd.f32 %v1415_v59, %v834_v5  ;;  %v1388_v13 = vpop.f32.mrb[12].mxu0  ;;  %v1093_v16 = vsel %vm1805_vm11, %v1029_v4, 0.0 }
 0x123   : > { %v1416_v3 = vpop.f32.mrb[12].mxu1  ;;  %v1389_v15 = vpop.f32.mrb[13].mxu0 }
 0x124   : > { %v1417_v6 = vpop.f32.mrb[13].mxu1  ;;  %v1094_v17 = vsel %vm1809_vm12, %v1030_v12, 0.0  ;;  %v1390_v18 = vadd.f32 %v1389_v15, %v1388_v13  ;;  %v1391_v20 = vpop.f32.mrb[14].mxu0 }
 0x125   : > { %v1418_v10 = vadd.f32 %v1417_v6, %v1416_v3  ;;  %v1419_v11 = vpop.f32.mrb[14].mxu1  ;;  %v1096_v21 = vadd.f32 %v1094_v17, %v1093_v16  ;;  %v1392_v22 = vpop.f32.mrb[15].mxu0 }
 0x126   : > { %v1420_v14 = vpop.f32.mrb[15].mxu1  ;;  %v835_v23 = vadd.f32 %v1390_v18, %v597_v37 }
 0x128   : > { %v1031_v25 = vadd.f32 %v1418_v10, %v835_v23 }
 0x12a   : > { %v1095_v26 = vsel %vm1817_vm14, %v1031_v25, 0.0 }
 0x12b   : > { %v1098_v27 = vsel %vm1097_vm15, %v1095_v26, 0.0 }
 0x12c   : > { %v1099_v28 = vadd.f32 %v1098_v27, %v1096_v21 }
 0x12e   : > { %v1100_v29 = vrot.slane %v1099_v28, 4 }
 0x130   : > { %v1101_v30 = vadd.f32 %v1100_v29, %v1099_v28 }
 0x132   : > { %v1102_v31 = vrot.slane %v1101_v30, 2 }
 0x134   : > { %v1103_v32 = vadd.f32 %v1102_v31, %v1101_v30 }
 0x136   : > { %v1104_v34 = vrot.slane %v1103_v32, 1 }
 0x138   : > { %v1105_v35 = vadd.f32 %v1104_v34, %v1103_v32 }
 0x13a   : > { %v1106_v36 = vmul.f32 0.0625, %v1105_v35 }
 0x13c   : > { %v1107_v37 = vsub.f32 %v1029_v4, %v1106_v36  ;;  %v1108_v38 = vsub.f32 %v1030_v12, %v1106_v36  ;;  %v1109_v39 = vsub.f32 %v1031_v25, %v1106_v36 }
 0x13e   : > { %v1110_v40 = vmul.f32 %v1107_v37, %v1107_v37  ;;  %v1111_v41 = vmul.f32 %v1108_v38, %v1108_v38  ;;  %v1112_v42 = vmul.f32 %v1109_v39, %v1109_v39 }
 0x140   : > { %v1113_v43 = vsel %vm1805_vm11, %v1110_v40, 0.0  ;;  %v1114_v44 = vsel %vm1809_vm12, %v1111_v41, 0.0  ;;  %v1115_v45 = vsel %vm1817_vm14, %v1112_v42, 0.0 }
 0x141   : > { %v1116_v46 = vadd.f32 %v1114_v44, %v1113_v43  ;;  %v1117_v47 = vsel %vm1097_vm15, %v1115_v45, 0.0 }
 0x143   : > { %v1118_v48 = vadd.f32 %v1117_v47, %v1116_v46 }
 0x145   : > { %v1119_v49 = vrot.slane %v1118_v48, 4 }
 0x147   : > { %v1120_v50 = vadd.f32 %v1119_v49, %v1118_v48 }
 0x149   : > { %v1121_v51 = vrot.slane %v1120_v50, 2 }
 0x14b   : > { %v1122_v52 = vadd.f32 %v1121_v51, %v1120_v50 }
 0x14d   : > { %v1123_v53 = vrot.slane %v1122_v52, 1 }
 0x14f   : > { %v1124_v54 = vadd.f32 %v1123_v53, %v1122_v52 }
 0x151   : > { %v1125_v55 = vmul.f32 0.0625, %v1124_v54 }
 0x153   : > { %v1126_v33 = vadd.f32 1e-05, %v1125_v55 }
 0x155   : > { %1514 = vrsqrt.f32 %v1126_v33 }
 0x15f   : > { %v1515_v56 = vpop.eup %1514 }
 0x160   : > { %v1128_v57 = vmul.f32 %v1515_v56, %v1107_v37  ;;  %v1129_v58 = vmul.f32 %v1515_v56, %v1108_v38  ;;  %v1130_v59 = vmul.f32 %v1515_v56, %v1109_v39 }
 0x162   : > { %vm1131_vm0 = vcmp.ge.f32.partialorder %v1128_v57, 0.0  ;;  %vm1132_vm1 = vcmp.ge.f32.partialorder %v1129_v58, 0.0  ;;  %vm1133_vm2 = vcmp.ge.f32.partialorder %v1130_v59, 0.0  ;;  %v1134_v60 = vmul.f32 0.2, %v1128_v57 }
 0x163   : > { %v1135_v61 = vmul.f32 0.2, %v1129_v58  ;;  %v1136_v62 = vmul.f32 0.2, %v1130_v59 }
 0x164   : > { %v1137_v63 = vsel %vm1131_vm0, %v1128_v57, %v1134_v60 }
 0x165   : > { %v1138_v0 = vsel %vm1132_vm1, %v1129_v58, %v1135_v61  ;;  %v1139_v1 = vsel %vm1133_vm2, %v1130_v59, %v1136_v62 }
 0x166   : > { %v1304_v2 = vpack.c.bf16 %v1139_v1, %v1139_v1  ;;  %v1308_v3 = vpack.c.bf16 %v1138_v0, %v1137_v63 }
 0x168   : > { %1309 = vst [vmem:[%s170_s28] sm:$0xff] %v1308_v3   ;;  %1155 = vst [vmem:[%s170_s28 + $0x8] sm:$0x3] %v1304_v2 }
 0x169 PF: > { %s13_s12 = sadd.s32 1, %s1522_s12  }
 0x16a   : > { %p10_p4 = scmp.ge.s32.totalorder %s13_s12, 4  }
 0x16c   :  { %12 = sbr.rel (!%p10_p4) target bundleno = 1 (0x1), region = 62 }

// kernel: ce_discriminator_forward.7
= control target key start
LH: loop header
LB: loop body
LE: loop exit
PB: predicated region body
PF: predicated region fallthrough
CT: control target
= control target key end

     0   :  { %s3087_s12 = smov 0   ;;  %s3959_s0 = inlined_call_operand.vmem [shape: bf16[2,12,512], index: 0, kind: input, shape index: {}]   ;;  %s3960_s1 = inlined_call_operand.vmem [shape: bf16[2048,256], index: 1, kind: input, shape index: {}]   ;;  %s3961_s2 = inlined_call_operand.vmem [shape: f32[1,256], index: 2, kind: input, shape index: {}]   ;;  %s3962_s3 = inlined_call_operand.vmem [shape: bf16[2,6,256], index: 3, kind: output, shape index: {}]  }
   0x1 LB: > { %s2329_s13 = sadd.s32 4294967295, %s3065_s12   ;;  %p2333_p0 = scmp.ge.s32.totalorder %s3065_s12, 1  ;;  %s3065_s12 = sphi %s3087_s12, %s13_s12  }
   0x2   : > { %p137_p1 = scmp.lt.s32.totalorder %s3065_s12, 3 }
   0x4   : > { %p138_p2 = pnand %p2333_p0, %p137_p1 }
   0x5   : > { %v2654_v0 = vld [vmem:[%s3960_s1 + $0x4] ss:$8 sps:$4 sm:$0xff] (!%p138_p2)   ;;  %v2658_v2 = vld [vmem:[%s3960_s1] ss:$8 sps:$4 sm:$0xff] (!%p138_p2)   ;;  %v2660_v4 = vld [vmem:[%s3960_s1 + $0x14] ss:$8 sps:$4 sm:$0xff] (!%p138_p2)  }
   0x6   : > { %141 = sbr.rel (%p138_p2) target bundleno = 536 (0x218), region = 32  ;;  %v2656_v1 = vld [vmem:[%s3960_s1 + $0x404] ss:$8 sps:$4 sm:$0xff] (!%p138_p2)   ;;  %583 = vmatprep.subr.bf16.mxu1 (!%p138_p2), %v2654_v0  ;;  %v2659_v3 = vld [vmem:[%s3960_s1 + $0x400] ss:$8 sps:$4 sm:$0xff] (!%p138_p2)   ;;  %p161_p3 = scmp.lt.s32.totalorder (!%p138_p2), %s2329_s13, 1 }
   0x7   : > { %1619 = vmatprep.subr.bf16.mxu0 (!%p138_p2), %v2656_v1  ;;  %584 = vmatpush1.bf16.msra.mxu1 (!%p138_p2), %v2658_v2  ;;  %v2662_v5 = vld [vmem:[%s3960_s1 + $0x414] ss:$8 sps:$4 sm:$0xff] (!%p138_p2)   ;;  %v2664_v6 = vld [vmem:[%s3960_s1 + $0x10] ss:$8 sps:$4 sm:$0xff] (!%p138_p2)   ;;  %v2666_v8 = vld [vmem:[%s3960_s1 + $0x24] ss:$8 sps:$4 sm:$0xff] (!%p138_p2)  }
   0x8   : > { %1620 = vmatpush1.bf16.msra.mxu0 (!%p138_p2), %v2659_v3  ;;  %585 = vmatprep.subr.bf16.mxu1 (!%p138_p2), %v2660_v4  ;;  %v2665_v7 = vld [vmem:[%s3960_s1 + $0x410] ss:$8 sps:$4 sm:$0xff] (!%p138_p2)   ;;  %v2668_v9 = vld [vmem:[%s3960_s1 + $0x424] ss:$8 sps:$4 sm:$0xff] (!%p138_p2)   ;;  %v2670_v10 = vld [vmem:[%s3960_s1 + $0x20] ss:$8 sps:$4 sm:$0xff] (!%p138_p2)  }
   0x9   : > { %1621 = vmatprep.subr.bf16.mxu0 (!%p138_p2), %v2662_v5  ;;  %v2671_v11 = vld [vmem:[%s3960_s1 + $0x420] ss:$8 sps:$4 sm:$0xff] (!%p138_p2)   ;;  %v2672_v12 = vld [vmem:[%s3960_s1 + $0x34] ss:$8 sps:$4 sm:$0xff] (!%p138_p2)   ;;  %v2676_v14 = vld [vmem:[%s3960_s1 + $0x30] ss:$8 sps:$4 sm:$0xff] (!%p138_p2)  }
   0xa   : > { %v2674_v13 = vld [vmem:[%s3960_s1 + $0x434] ss:$8 sps:$4 sm:$0xff] (!%p138_p2)   ;;  %v2677_v15 = vld [vmem:[%s3960_s1 + $0x430] ss:$8 sps:$4 sm:$0xff] (!%p138_p2)   ;;  %v2678_v16 = vld [vmem:[%s3960_s1 + $0x44] ss:$8 sps:$4 sm:$0xff] (!%p138_p2)  }
   0xb   : > { %586 = vmatpush1.bf16.msra.mxu1 (!%p138_p2), %v2664_v6  ;;  %v2680_v17 = vld [vmem:[%s3960_s1 + $0x444] ss:$8 sps:$4 sm:$0xff] (!%p138_p2)   ;;  %v2682_v18 = vld [vmem:[%s3960_s1 + $0x40] ss:$8 sps:$4 sm:$0xff] (!%p138_p2)   ;;  %v2684_v20 = vld [vmem:[%s3960_s1 + $0x54] ss:$8 sps:$4 sm:$0xff] (!%p138_p2)  }
   0xc   : > { %1622 = vmatpush1.bf16.msra.mxu0 (!%p138_p2), %v2665_v7  ;;  %587 = vmatprep.subr.bf16.mxu1 (!%p138_p2), %v2666_v8  ;;  %v2683_v19 = vld [vmem:[%s3960_s1 + $0x440] ss:$8 sps:$4 sm:$0xff] (!%p138_p2)   ;;  %v2686_v21 = vld [vmem:[%s3960_s1 + $0x454] ss:$8 sps:$4 sm:$0xff] (!%p138_p2)   ;;  %v2688_v22 = vld [vmem:[%s3960_s1 + $0x50] ss:$8 sps:$4 sm:$0xff] (!%p138_p2)  }
   0xd   : > { %1623 = vmatprep.subr.bf16.mxu0 %v2668_v9  ;;  %v2689_v23 = vld [vmem:[%s3960_s1 + $0x450] ss:$8 sps:$4 sm:$0xff]   ;;  %v2690_v24 = vld [vmem:[%s3960_s1 + $0x64] ss:$8 sps:$4 sm:$0xff]   ;;  %v2694_v26 = vld [vmem:[%s3960_s1 + $0x60] ss:$8 sps:$4 sm:$0xff]  }
   0xe   : > { %v2692_v25 = vld [vmem:[%s3960_s1 + $0x464] ss:$8 sps:$4 sm:$0xff]   ;;  %v2695_v27 = vld [vmem:[%s3960_s1 + $0x460] ss:$8 sps:$4 sm:$0xff]   ;;  %v2696_v28 = vld [vmem:[%s3960_s1 + $0x74] ss:$8 sps:$4 sm:$0xff]  }
   0xf   : > { %588 = vmatpush1.bf16.msra.mxu1 %v2670_v10  ;;  %v2698_v29 = vld [vmem:[%s3960_s1 + $0x474] ss:$8 sps:$4 sm:$0xff]   ;;  %v2700_v30 = vld [vmem:[%s3960_s1 + $0x70] ss:$8 sps:$4 sm:$0xff]   ;;  %v2702_v32 = vld [vmem:[%s3960_s1 + $0x84] ss:$8 sps:$4 sm:$0xff]  }
  0x10   : > { %1624 = vmatpush1.bf16.msra.mxu0 %v2671_v11  ;;  %589 = vmatprep.subr.bf16.mxu1 %v2672_v12  ;;  %v2701_v31 = vld [vmem:[%s3960_s1 + $0x470] ss:$8 sps:$4 sm:$0xff]   ;;  %v2704_v33 = vld [vmem:[%s3960_s1 + $0x484] ss:$8 sps:$4 sm:$0xff]   ;;  %v2706_v34 = vld [vmem:[%s3960_s1 + $0x80] ss:$8 sps:$4 sm:$0xff]  }
  0x11   : > { %1625 = vmatprep.subr.bf16.mxu0 %v2674_v13  ;;  %v2707_v35 = vld [vmem:[%s3960_s1 + $0x480] ss:$8 sps:$4 sm:$0xff]   ;;  %v2708_v36 = vld [vmem:[%s3960_s1 + $0x94] ss:$8 sps:$4 sm:$0xff]   ;;  %s3966_s13 = smov (!%p161_p3, %s2329_s13), 1  ;;  %vm2214_vm4 = vcmask 1045504  }
  0x12   : > { %v2710_v37 = vld [vmem:[%s3960_s1 + $0x494] ss:$8 sps:$4 sm:$0xff]   ;;  %v2712_v38 = vld [vmem:[%s3960_s1 + $0x90] ss:$8 sps:$4 sm:$0xff]   ;;  %v2714_v40 = vld [vmem:[%s3960_s1 + $0xa4] ss:$8 sps:$4 sm:$0xff]  }
  0x13   : > { %590 = vmatpush1.bf16.msra.mxu1 %v2676_v14  ;;  %v2713_v39 = vld [vmem:[%s3960_s1 + $0x490] ss:$8 sps:$4 sm:$0xff]   ;;  %v2716_v41 = vld [vmem:[%s3960_s1 + $0x4a4] ss:$8 sps:$4 sm:$0xff]   ;;  %s2613_s23 = sshll.u32 %s3966_s13, 5  ;;  %s2614_s18 = sshll.u32 %s3966_s13, 3 }
  0x14   : > { %1626 = vmatpush1.bf16.msra.mxu0 %v2677_v15  ;;  %591 = vmatprep.subr.bf16.mxu1 %v2678_v16  ;;  %v2718_v42 = vld [vmem:[%s3960_s1 + $0xa0] ss:$8 sps:$4 sm:$0xff]   ;;  %v2720_v44 = vld [vmem:[%s3960_s1 + $0xb4] ss:$8 sps:$4 sm:$0xff]   ;;  %s3243_s7 = scalar_lea.vmem %s3959_s0, %s2613_s23  ;;  %v2724_v46 = vld [vmem:[%s3960_s1 + $0xb0] ss:$8 sps:$4 sm:$0xff]   ;;  %s170_s21 = scalar_lea.vmem %s3962_s3, %s2614_s18 }
  0x15   : > { %1627 = vmatprep.subr.bf16.mxu0 %v2680_v17  ;;  %v2719_v43 = vld [vmem:[%s3960_s1 + $0x4a0] ss:$8 sps:$4 sm:$0xff]   ;;  %v2722_v45 = vld [vmem:[%s3960_s1 + $0x4b4] ss:$8 sps:$4 sm:$0xff]   ;;  %v2725_v48 = vld [vmem:[%s3960_s1 + $0x4b0] ss:$8 sps:$4 sm:$0xff]  }
  0x16   : > { %v3249_v47 = vld [vmem:[%s3243_s7] sm:$0x77]  ;;  %v3261_v52 = vld [vmem:[%s3243_s7 + $0x10] sm:$0x11] }
  0x17   : > { %592 = vmatpush1.bf16.msra.mxu1 %v2682_v18  ;;  %v2339_v49 = vcombine.high %v3249_v47, %v3249_v47  ;;  %v2726_v50 = vld [vmem:[%s3960_s1 + $0xc4] ss:$8 sps:$4 sm:$0xff]   ;;  %v2730_v55 = vld [vmem:[%s3960_s1 + $0xc0] ss:$8 sps:$4 sm:$0xff]   ;;  %v2732_v59 = vld [vmem:[%s3960_s1 + $0xd4] ss:$8 sps:$4 sm:$0xff]   ;;  %v2338_v17 = vcombine.low %v3249_v47, %v3249_v47 }
  0x18   : > { %1628 = vmatpush1.bf16.msra.mxu0 %v2683_v19  ;;  %593 = vmatprep.subr.bf16.mxu1 %v2684_v20  ;;  %v1179_v51 = vld [vmem:[%s3243_s7] sm:$0xee]  ;;  %v2734_v60 = vld [vmem:[%s3960_s1 + $0x4d4] ss:$8 sps:$4 sm:$0xff]   ;;  %v2736_v63 = vld [vmem:[%s3960_s1 + $0xd0] ss:$8 sps:$4 sm:$0xff]  }
  0x19   : > { %1629 = vmatprep.subr.bf16.mxu0 %v2686_v21  ;;  %v2728_v53 = vld [vmem:[%s3960_s1 + $0x4c4] ss:$8 sps:$4 sm:$0xff]   ;;  %v2475_v54 = vcombine.high %v1179_v51, %v3261_v52  ;;  %615 = vmatprep.mubr.bf16.mxu1 %v2339_v49  ;;  %v2731_v58 = vld [vmem:[%s3960_s1 + $0x4c0] ss:$8 sps:$4 sm:$0xff]   ;;  %v2474_v0 = vcombine.low %v1179_v51, %v3261_v52  ;;  %v2737_v2 = vld [vmem:[%s3960_s1 + $0x4d0] ss:$8 sps:$4 sm:$0xff]  }
  0x1a   : > { %v2738_v3 = vld [vmem:[%s3960_s1 + $0xe4] ss:$8 sps:$4 sm:$0xff]   ;;  %v2742_v5 = vld [vmem:[%s3960_s1 + $0xe0] ss:$8 sps:$4 sm:$0xff]   ;;  %v2744_v9 = vld [vmem:[%s3960_s1 + $0xf4] ss:$8 sps:$4 sm:$0xff]  }
  0x1b   : > { %594 = vmatpush1.bf16.msra.mxu1 %v2688_v22  ;;  %v1272_v56 = vshrl.u32 %v2475_v54, 16  ;;  %v1275_v57 = vshll.u32 %v2475_v54, 16  ;;  %v2740_v4 = vld [vmem:[%s3960_s1 + $0x4e4] ss:$8 sps:$4 sm:$0xff]   ;;  %v1264_v6 = vshrl.u32 %v2474_v0, 16  ;;  %v1267_v7 = vshll.u32 %v2474_v0, 16 }
  0x1c   : > { %1630 = vmatpush1.bf16.msra.mxu0 %v2689_v23  ;;  %595 = vmatprep.subr.bf16.mxu1 %v2690_v24  ;;  %v2743_v8 = vld [vmem:[%s3960_s1 + $0x4e0] ss:$8 sps:$4 sm:$0xff]   ;;  %v2746_v10 = vld [vmem:[%s3960_s1 + $0x4f4] ss:$8 sps:$4 sm:$0xff]   ;;  %v2748_v11 = vld [vmem:[%s3960_s1 + $0xf0] ss:$8 sps:$4 sm:$0xff]  }
  0x1d   : > { %1631 = vmatprep.subr.bf16.mxu0 %v2692_v25  ;;  %v1274_v61 = vrot.slane %v1272_v56, 1  ;;  %v1277_v62 = vrot.slane %v1275_v57, 2  ;;  %v1266_v12 = vrot.slane %v1264_v6, 1  ;;  %v1269_v13 = vrot.slane %v1267_v7, 2  ;;  %v2749_v14 = vld [vmem:[%s3960_s1 + $0x4f0] ss:$8 sps:$4 sm:$0xff]  }
  0x1e   : > { %v2754_v15 = vld [vmem:[%s3960_s1 + $0x104] ss:$8 sps:$4 sm:$0xff]   ;;  %v2752_v18 = vld [vmem:[%s3960_s1 + $0x100] ss:$8 sps:$4 sm:$0xff]   ;;  %v2762_v21 = vld [vmem:[%s3960_s1 + $0x114] ss:$8 sps:$4 sm:$0xff]  }
  0x1f   : > { %596 = vmatpush1.bf16.msra.mxu1 %v2694_v26  ;;  %v1278_v1 = vor.u32 %v1277_v62, %v1274_v61  ;;  %v2759_v16 = vld [vmem:[%s3960_s1 + $0x504] ss:$8 sps:$4 sm:$0xff]   ;;  %v1270_v19 = vor.u32 %v1269_v13, %v1266_v12  ;;  %v2757_v20 = vld [vmem:[%s3960_s1 + $0x500] ss:$8 sps:$4 sm:$0xff]   ;;  %v2765_v22 = vld [vmem:[%s3960_s1 + $0x514] ss:$8 sps:$4 sm:$0xff]  }
  0x20   : > { %1632 = vmatpush1.bf16.msra.mxu0 %v2695_v27  ;;  %597 = vmatprep.subr.bf16.mxu1 %v2696_v28  ;;  %v2760_v23 = vld [vmem:[%s3960_s1 + $0x110] ss:$8 sps:$4 sm:$0xff]   ;;  %v2768_v25 = vld [vmem:[%s3960_s1 + $0x124] ss:$8 sps:$4 sm:$0xff]   ;;  %v2766_v27 = vld [vmem:[%s3960_s1 + $0x120] ss:$8 sps:$4 sm:$0xff]  }
  0x21   : > { %1633 = vmatprep.subr.bf16.mxu0 %v2698_v29  ;;  %1651 = vmatprep.mubr.bf16.mxu0 %v1278_v1  ;;  %v2763_v24 = vld [vmem:[%s3960_s1 + $0x510] ss:$8 sps:$4 sm:$0xff]   ;;  %v2771_v26 = vld [vmem:[%s3960_s1 + $0x524] ss:$8 sps:$4 sm:$0xff]   ;;  %v2769_v28 = vld [vmem:[%s3960_s1 + $0x520] ss:$8 sps:$4 sm:$0xff]  }
  0x22   : > { %v2774_v29 = vld [vmem:[%s3960_s1 + $0x134] ss:$8 sps:$4 sm:$0xff]   ;;  %v1180_v49 = vld [vmem:[%s3243_s7 + $0x8] sm:$0xee]  ;;  %v2799_v54 = vld [vmem:[%s3960_s1 + $0x570] ss:$8 sps:$4 sm:$0xff]  }
  0x23   : > { %598 = vmatpush1.bf16.msra.mxu1 %v2700_v30  ;;  %v2777_v30 = vld [vmem:[%s3960_s1 + $0x534] ss:$8 sps:$4 sm:$0xff]   ;;  %v2802_v61 = vld [vmem:[%s3960_s1 + $0x180] ss:$8 sps:$4 sm:$0xff]   ;;  %v2828_v12 = vld [vmem:[%s3960_s1 + $0x1c4] ss:$8 sps:$4 sm:$0xff]  }
  0x24   : > { %1634 = vmatpush1.bf16.msra.mxu0 %v2701_v31  ;;  %599 = vmatprep.subr.bf16.mxu1 %v2702_v32  ;;  %v2772_v31 = vld [vmem:[%s3960_s1 + $0x130] ss:$8 sps:$4 sm:$0xff]   ;;  %v2805_v62 = vld [vmem:[%s3960_s1 + $0x580] ss:$8 sps:$4 sm:$0xff]   ;;  %v2810_v0 = vld [vmem:[%s3960_s1 + $0x194] ss:$8 sps:$4 sm:$0xff]  }
  0x25   : > { %1635 = vmatprep.subr.bf16.mxu0 %v2704_v33  ;;  %v2775_v32 = vld [vmem:[%s3960_s1 + $0x530] ss:$8 sps:$4 sm:$0xff]   ;;  %v2780_v33 = vld [vmem:[%s3960_s1 + $0x144] ss:$8 sps:$4 sm:$0xff]   ;;  %v2813_v1 = vld [vmem:[%s3960_s1 + $0x594] ss:$8 sps:$4 sm:$0xff]  }
  0x26   : > { %v2814_v6 = vld [vmem:[%s3960_s1 + $0x1a0] ss:$8 sps:$4 sm:$0xff]   ;;  %v2831_v13 = vld [vmem:[%s3960_s1 + $0x5c4] ss:$8 sps:$4 sm:$0xff]  }
  0x27   : > { %600 = vmatpush1.bf16.msra.mxu1 %v2706_v34  ;;  %v2783_v34 = vld [vmem:[%s3960_s1 + $0x544] ss:$8 sps:$4 sm:$0xff]   ;;  %v2817_v7 = vld [vmem:[%s3960_s1 + $0x5a0] ss:$8 sps:$4 sm:$0xff]  }
  0x28   : > { %1636 = vmatpush1.bf16.msra.mxu0 %v2707_v35  ;;  %601 = vmatprep.subr.bf16.mxu1 %v2708_v36  ;;  %v2778_v35 = vld [vmem:[%s3960_s1 + $0x140] ss:$8 sps:$4 sm:$0xff]  }
  0x29   : > { %1637 = vmatprep.subr.bf16.mxu0 %v2710_v37  ;;  %v2781_v36 = vld [vmem:[%s3960_s1 + $0x540] ss:$8 sps:$4 sm:$0xff]   ;;  %v2786_v37 = vld [vmem:[%s3960_s1 + $0x154] ss:$8 sps:$4 sm:$0xff]  }
  0x2b   : > { %602 = vmatpush1.bf16.msra.mxu1 %v2712_v38  ;;  %v2789_v38 = vld [vmem:[%s3960_s1 + $0x554] ss:$8 sps:$4 sm:$0xff]  }
  0x2c   : > { %1638 = vmatpush1.bf16.msra.mxu0 %v2713_v39  ;;  %603 = vmatprep.subr.bf16.mxu1 %v2714_v40  ;;  %v2784_v39 = vld [vmem:[%s3960_s1 + $0x150] ss:$8 sps:$4 sm:$0xff]  }
  0x2d   : > { %1639 = vmatprep.subr.bf16.mxu0 %v2716_v41  ;;  %v2787_v40 = vld [vmem:[%s3960_s1 + $0x550] ss:$8 sps:$4 sm:$0xff]   ;;  %v2792_v41 = vld [vmem:[%s3960_s1 + $0x164] ss:$8 sps:$4 sm:$0xff]  }
  0x2f   : > { %604 = vmatpush1.bf16.msra.mxu1 %v2718_v42  ;;  %v2795_v42 = vld [vmem:[%s3960_s1 + $0x564] ss:$8 sps:$4 sm:$0xff]  }
  0x30   : > { %1640 = vmatpush1.bf16.msra.mxu0 %v2719_v43  ;;  %605 = vmatprep.subr.bf16.mxu1 %v2720_v44  ;;  %v2790_v43 = vld [vmem:[%s3960_s1 + $0x160] ss:$8 sps:$4 sm:$0xff]  }
  0x31   : > { %1641 = vmatprep.subr.bf16.mxu0 %v2722_v45  ;;  %v2793_v44 = vld [vmem:[%s3960_s1 + $0x560] ss:$8 sps:$4 sm:$0xff]  }
  0x32   : > { %v3397_v45 = vld [vmem:[%s3243_s7 + $0x8] sm:$0x77] }
  0x33   : > { %606 = vmatpush1.bf16.msra.mxu1 %v2724_v46  ;;  %v2798_v46 = vld [vmem:[%s3960_s1 + $0x174] ss:$8 sps:$4 sm:$0xff]   ;;  %v2341_v47 = vcombine.high %v3397_v45, %v3397_v45 }
  0x34   : > { %1642 = vmatpush1.bf16.msra.mxu0 %v2725_v48  ;;  %607 = vmatprep.subr.bf16.mxu1 %v2726_v50  ;;  %v2801_v48 = vld [vmem:[%s3960_s1 + $0x574] ss:$8 sps:$4 sm:$0xff]  }
  0x35   : > { %1643 = vmatprep.subr.bf16.mxu0 %v2728_v53  ;;  %v3409_v50 = vld [vmem:[%s3243_s7 + $0x18] sm:$0x11] }
  0x36   : > { %v2477_v51 = vcombine.high %v1180_v49, %v3409_v50  ;;  %v2796_v53 = vld [vmem:[%s3960_s1 + $0x170] ss:$8 sps:$4 sm:$0xff]  }
  0x37   : > { %608 = vmatpush1.bf16.msra.mxu1 %v2730_v55  ;;  %v2804_v55 = vld [vmem:[%s3960_s1 + $0x184] ss:$8 sps:$4 sm:$0xff]  }
  0x38   : > { %1644 = vmatpush1.bf16.msra.mxu0 %v2731_v58  ;;  %609 = vmatprep.subr.bf16.mxu1 %v2732_v59  ;;  %v1288_v56 = vshrl.u32 %v2477_v51, 16  ;;  %v1291_v57 = vshll.u32 %v2477_v51, 16  ;;  %v2807_v58 = vld [vmem:[%s3960_s1 + $0x584] ss:$8 sps:$4 sm:$0xff]  }
  0x39   : > { %1645 = vmatprep.subr.bf16.mxu0 %v2734_v60 }
  0x3a   : > { %v1290_v59 = vrot.slane %v1288_v56, 1  ;;  %v1293_v60 = vrot.slane %v1291_v57, 2  ;;  %v2877_v56 = vld [vmem:[%s3960_s1 + $0x634] ss:$8 sps:$4 sm:$0xff]  }
  0x3b   : > { %610 = vmatpush1.bf16.msra.mxu1 %v2736_v63 }
  0x3c   : > { %1646 = vmatpush1.bf16.msra.mxu0 %v2737_v2  ;;  %611 = vmatprep.subr.bf16.mxu1 %v2738_v3  ;;  %v1294_v63 = vor.u32 %v1293_v60, %v1290_v59  ;;  %v2808_v2 = vld [vmem:[%s3960_s1 + $0x190] ss:$8 sps:$4 sm:$0xff]  }
  0x3d   : > { %1647 = vmatprep.subr.bf16.mxu0 %v2740_v4  ;;  %v2811_v3 = vld [vmem:[%s3960_s1 + $0x590] ss:$8 sps:$4 sm:$0xff]   ;;  %v2816_v4 = vld [vmem:[%s3960_s1 + $0x1a4] ss:$8 sps:$4 sm:$0xff]  }
  0x3e   : > { %v2872_v59 = vld [vmem:[%s3960_s1 + $0x230] ss:$8 sps:$4 sm:$0xff]  }
  0x3f   : > { %612 = vmatpush1.bf16.msra.mxu1 %v2742_v5  ;;  %v2819_v5 = vld [vmem:[%s3960_s1 + $0x5a4] ss:$8 sps:$4 sm:$0xff]  }
  0x40   : > { %1648 = vmatpush1.bf16.msra.mxu0 %v2743_v8  ;;  %613 = vmatprep.subr.bf16.mxu1 %v2744_v9  ;;  %v2822_v8 = vld [vmem:[%s3960_s1 + $0x1b4] ss:$8 sps:$4 sm:$0xff]  }
  0x41   : > { %1649 = vmatprep.subr.bf16.mxu0 %v2746_v10  ;;  %v2825_v9 = vld [vmem:[%s3960_s1 + $0x5b4] ss:$8 sps:$4 sm:$0xff]   ;;  %v2820_v10 = vld [vmem:[%s3960_s1 + $0x1b0] ss:$8 sps:$4 sm:$0xff]  }
  0x43   : > { %614 = vmatpush1.bf16.msra.mxu1 %v2748_v11  ;;  %v2823_v11 = vld [vmem:[%s3960_s1 + $0x5b0] ss:$8 sps:$4 sm:$0xff]  }
  0x44   : > { %1650 = vmatpush1.bf16.msra.mxu0 %v2749_v14  ;;  %624 = vmatprep.subr.bf16.mxu1 %v2754_v15  ;;  %v2826_v14 = vld [vmem:[%s3960_s1 + $0x1c0] ss:$8 sps:$4 sm:$0xff]  }
  0x45   : > { %1660 = vmatprep.subr.bf16.mxu0 %v2759_v16  ;;  %v2829_v15 = vld [vmem:[%s3960_s1 + $0x5c0] ss:$8 sps:$4 sm:$0xff]   ;;  %v2834_v16 = vld [vmem:[%s3960_s1 + $0x1d4] ss:$8 sps:$4 sm:$0xff]  }
  0x46   : > { %616 = vmatmul.mubr.bf16.vlgmr.msra.gmra.mrb[0].mxu1 %v2338_v17  ;;  %v2837_v17 = vld [vmem:[%s3960_s1 + $0x5d4] ss:$8 sps:$4 sm:$0xff]  }
  0x47   : > { %1652 = vmatmul.mubr.bf16.vlgmr.msra.gmra.mrb[0].mxu0 %v1270_v19  ;;  %625 = vmatpush1.bf16.msra.mxu1 %v2752_v18  ;;  %v2476_v18 = vcombine.low %v1180_v49, %v3409_v50  ;;  %v2832_v19 = vld [vmem:[%s3960_s1 + $0x1d0] ss:$8 sps:$4 sm:$0xff]   ;;  %v2869_v49 = vld [vmem:[%s3960_s1 + $0x620] ss:$8 sps:$4 sm:$0xff]  }
  0x48   : > { %1661 = vmatpush1.bf16.msra.mxu0 %v2757_v20  ;;  %626 = vmatprep.subr.bf16.mxu1 %v2762_v21  ;;  %v2835_v20 = vld [vmem:[%s3960_s1 + $0x5d0] ss:$8 sps:$4 sm:$0xff]   ;;  %v2840_v21 = vld [vmem:[%s3960_s1 + $0x1e4] ss:$8 sps:$4 sm:$0xff]  }
  0x49   : > { %1662 = vmatprep.subr.bf16.mxu0 %v2765_v22  ;;  %656 = vmatprep.mubr.bf16.mxu1 %v2341_v47  ;;  %v2843_v22 = vld [vmem:[%s3960_s1 + $0x5e4] ss:$8 sps:$4 sm:$0xff]   ;;  %v2866_v47 = vld [vmem:[%s3960_s1 + $0x220] ss:$8 sps:$4 sm:$0xff]  }
  0x4a   : > { %1692 = vmatprep.mubr.bf16.mxu0 %v1294_v63  ;;  %v2878_v63 = vld [vmem:[%s3960_s1 + $0x240] ss:$8 sps:$4 sm:$0xff]  }
  0x4b   : > { %627 = vmatpush1.bf16.msra.mxu1 %v2760_v23  ;;  %v1280_v23 = vshrl.u32 %v2476_v18, 16 }
  0x4c   : > { %1663 = vmatpush1.bf16.msra.mxu0 %v2763_v24  ;;  %628 = vmatprep.subr.bf16.mxu1 %v2768_v25  ;;  %v1283_v24 = vshll.u32 %v2476_v18, 16  ;;  %v2838_v25 = vld [vmem:[%s3960_s1 + $0x1e0] ss:$8 sps:$4 sm:$0xff]   ;;  %v2913_v18 = vld [vmem:[%s3960_s1 + $0x694] ss:$8 sps:$4 sm:$0xff]  }
  0x4d   : > { %1664 = vmatprep.subr.bf16.mxu0 %v2771_v26  ;;  %v2841_v26 = vld [vmem:[%s3960_s1 + $0x5e0] ss:$8 sps:$4 sm:$0xff]  }
  0x4f   : > { %629 = vmatpush1.bf16.msra.mxu1 %v2766_v27  ;;  %v2846_v27 = vld [vmem:[%s3960_s1 + $0x1f4] ss:$8 sps:$4 sm:$0xff]  }
  0x50   : > { %1665 = vmatpush1.bf16.msra.mxu0 %v2769_v28  ;;  %630 = vmatprep.subr.bf16.mxu1 %v2774_v29  ;;  %v2849_v28 = vld [vmem:[%s3960_s1 + $0x5f4] ss:$8 sps:$4 sm:$0xff]   ;;  %v1282_v29 = vrot.slane %v1280_v23, 1  ;;  %v2914_v23 = vld [vmem:[%s3960_s1 + $0x2a0] ss:$8 sps:$4 sm:$0xff]  }
  0x51   : > { %1666 = vmatprep.subr.bf16.mxu0 %v2777_v30  ;;  %v1285_v30 = vrot.slane %v1283_v24, 2  ;;  %v2917_v24 = vld [vmem:[%s3960_s1 + $0x6a0] ss:$8 sps:$4 sm:$0xff]  }
  0x53   : > { %631 = vmatpush1.bf16.msra.mxu1 %v2772_v31  ;;  %v2844_v31 = vld [vmem:[%s3960_s1 + $0x1f0] ss:$8 sps:$4 sm:$0xff]  }
  0x54   : > { %1667 = vmatpush1.bf16.msra.mxu0 %v2775_v32  ;;  %632 = vmatprep.subr.bf16.mxu1 %v2780_v33  ;;  %v2847_v32 = vld [vmem:[%s3960_s1 + $0x5f0] ss:$8 sps:$4 sm:$0xff]   ;;  %v2854_v33 = vld [vmem:[%s3960_s1 + $0x204] ss:$8 sps:$4 sm:$0xff]  }
  0x55   : > { %1668 = vmatprep.subr.bf16.mxu0 %v2783_v34  ;;  %v2859_v34 = vld [vmem:[%s3960_s1 + $0x604] ss:$8 sps:$4 sm:$0xff]  }
  0x57   : > { %633 = vmatpush1.bf16.msra.mxu1 %v2778_v35  ;;  %v2340_v35 = vcombine.low %v3397_v45, %v3397_v45  ;;  %v2871_v45 = vld [vmem:[%s3960_s1 + $0x624] ss:$8 sps:$4 sm:$0xff]  }
  0x58   : > { %1669 = vmatpush1.bf16.msra.mxu0 %v2781_v36  ;;  %634 = vmatprep.subr.bf16.mxu1 %v2786_v37  ;;  %v1286_v36 = vor.u32 %v1285_v30, %v1282_v29  ;;  %v2852_v37 = vld [vmem:[%s3960_s1 + $0x200] ss:$8 sps:$4 sm:$0xff]   ;;  %v2928_v29 = vld [vmem:[%s3960_s1 + $0x2c4] ss:$8 sps:$4 sm:$0xff]  }
  0x59   : > { %1670 = vmatprep.subr.bf16.mxu0 %v2789_v38  ;;  %v2857_v38 = vld [vmem:[%s3960_s1 + $0x600] ss:$8 sps:$4 sm:$0xff]   ;;  %v2931_v30 = vld [vmem:[%s3960_s1 + $0x6c4] ss:$8 sps:$4 sm:$0xff]  }
  0x5b   : > { %635 = vmatpush1.bf16.msra.mxu1 %v2784_v39  ;;  %v2862_v39 = vld [vmem:[%s3960_s1 + $0x214] ss:$8 sps:$4 sm:$0xff]  }
  0x5c   : > { %1671 = vmatpush1.bf16.msra.mxu0 %v2787_v40  ;;  %636 = vmatprep.subr.bf16.mxu1 %v2792_v41  ;;  %v2865_v40 = vld [vmem:[%s3960_s1 + $0x614] ss:$8 sps:$4 sm:$0xff]   ;;  %v2860_v41 = vld [vmem:[%s3960_s1 + $0x210] ss:$8 sps:$4 sm:$0xff]  }
  0x5d   : > { %1672 = vmatprep.subr.bf16.mxu0 %v2795_v42  ;;  %v2863_v42 = vld [vmem:[%s3960_s1 + $0x610] ss:$8 sps:$4 sm:$0xff]  }
  0x5f   : > { %637 = vmatpush1.bf16.msra.mxu1 %v2790_v43  ;;  %v2868_v43 = vld [vmem:[%s3960_s1 + $0x224] ss:$8 sps:$4 sm:$0xff]  }
  0x60   : > { %1673 = vmatpush1.bf16.msra.mxu0 %v2793_v44  ;;  %638 = vmatprep.subr.bf16.mxu1 %v2798_v46  ;;  %v3545_v44 = vld [vmem:[%s3243_s7] sm:$0xff] }
  0x61   : > { %1674 = vmatprep.subr.bf16.mxu0 %v2801_v48  ;;  %v2407_v46 = vcombine.high %v3545_v44, %v3545_v44  ;;  %v3556_v48 = vld [vmem:[%s3243_s7] sm:$0xcc] }
  0x63   : > { %639 = vmatpush1.bf16.msra.mxu1 %v2796_v53  ;;  %v751_v51 = vshrl.u32 %v2407_v46, 16  ;;  %v753_v53 = vshll.u32 %v2407_v46, 16  ;;  %v2949_v46 = vld [vmem:[%s3960_s1 + $0x6f4] ss:$8 sps:$4 sm:$0xff]  }
  0x64   : > { %1675 = vmatpush1.bf16.msra.mxu0 %v2799_v54  ;;  %640 = vmatprep.subr.bf16.mxu1 %v2804_v55  ;;  %v2543_v54 = vcombine.high %v3556_v48, %v3261_v52  ;;  %v2874_v55 = vld [vmem:[%s3960_s1 + $0x234] ss:$8 sps:$4 sm:$0xff]   ;;  %v2875_v52 = vld [vmem:[%s3960_s1 + $0x630] ss:$8 sps:$4 sm:$0xff]  }
  0x65   : > { %1676 = vmatprep.subr.bf16.mxu0 %v2807_v58  ;;  %v755_v57 = vrot.slane %v753_v53, 1 }
  0x66   : > { %v1780_v58 = vrot.slane %v2543_v54, 2 }
  0x67   : > { %641 = vmatpush1.bf16.msra.mxu1 %v2802_v61  ;;  %v756_v60 = vor.u32 %v755_v57, %v751_v51  ;;  %v2880_v61 = vld [vmem:[%s3960_s1 + $0x244] ss:$8 sps:$4 sm:$0xff]   ;;  %v2947_v57 = vld [vmem:[%s3960_s1 + $0x6f0] ss:$8 sps:$4 sm:$0xff]  }
  0x68   : > { %1677 = vmatpush1.bf16.msra.mxu0 %v2805_v62  ;;  %642 = vmatprep.subr.bf16.mxu1 %v2810_v0  ;;  %v2883_v62 = vld [vmem:[%s3960_s1 + $0x644] ss:$8 sps:$4 sm:$0xff]   ;;  %v2881_v0 = vld [vmem:[%s3960_s1 + $0x640] ss:$8 sps:$4 sm:$0xff]  }
  0x69   : > { %1678 = vmatprep.subr.bf16.mxu0 %v2813_v1  ;;  %v2886_v1 = vld [vmem:[%s3960_s1 + $0x254] ss:$8 sps:$4 sm:$0xff]  }
  0x6b   : > { %643 = vmatpush1.bf16.msra.mxu1 %v2808_v2  ;;  %v2889_v2 = vld [vmem:[%s3960_s1 + $0x654] ss:$8 sps:$4 sm:$0xff]  }
  0x6c   : > { %1679 = vmatpush1.bf16.msra.mxu0 %v2811_v3  ;;  %644 = vmatprep.subr.bf16.mxu1 %v2816_v4  ;;  %v2884_v3 = vld [vmem:[%s3960_s1 + $0x250] ss:$8 sps:$4 sm:$0xff]  }
  0x6d   : > { %1680 = vmatprep.subr.bf16.mxu0 %v2819_v5  ;;  %v2887_v4 = vld [vmem:[%s3960_s1 + $0x650] ss:$8 sps:$4 sm:$0xff]   ;;  %v2892_v5 = vld [vmem:[%s3960_s1 + $0x264] ss:$8 sps:$4 sm:$0xff]  }
  0x6f   : > { %645 = vmatpush1.bf16.msra.mxu1 %v2814_v6  ;;  %v2895_v6 = vld [vmem:[%s3960_s1 + $0x664] ss:$8 sps:$4 sm:$0xff]  }
  0x70   : > { %1681 = vmatpush1.bf16.msra.mxu0 %v2817_v7  ;;  %646 = vmatprep.subr.bf16.mxu1 %v2822_v8  ;;  %v2890_v7 = vld [vmem:[%s3960_s1 + $0x260] ss:$8 sps:$4 sm:$0xff]  }
  0x71   : > { %1682 = vmatprep.subr.bf16.mxu0 %v2825_v9  ;;  %v2893_v8 = vld [vmem:[%s3960_s1 + $0x660] ss:$8 sps:$4 sm:$0xff]   ;;  %v2898_v9 = vld [vmem:[%s3960_s1 + $0x274] ss:$8 sps:$4 sm:$0xff]  }
  0x73   : > { %647 = vmatpush1.bf16.msra.mxu1 %v2820_v10  ;;  %v2901_v10 = vld [vmem:[%s3960_s1 + $0x674] ss:$8 sps:$4 sm:$0xff]  }
  0x74   : > { %1683 = vmatpush1.bf16.msra.mxu0 %v2823_v11  ;;  %648 = vmatprep.subr.bf16.mxu1 %v2828_v12  ;;  %v2896_v11 = vld [vmem:[%s3960_s1 + $0x270] ss:$8 sps:$4 sm:$0xff]  }
  0x75   : > { %1684 = vmatprep.subr.bf16.mxu0 %v2831_v13  ;;  %v2899_v12 = vld [vmem:[%s3960_s1 + $0x670] ss:$8 sps:$4 sm:$0xff]   ;;  %v2904_v13 = vld [vmem:[%s3960_s1 + $0x284] ss:$8 sps:$4 sm:$0xff]  }
  0x77   : > { %649 = vmatpush1.bf16.msra.mxu1 %v2826_v14  ;;  %v2907_v14 = vld [vmem:[%s3960_s1 + $0x684] ss:$8 sps:$4 sm:$0xff]  }
  0x78   : > { %1685 = vmatpush1.bf16.msra.mxu0 %v2829_v15  ;;  %650 = vmatprep.subr.bf16.mxu1 %v2834_v16  ;;  %v2902_v15 = vld [vmem:[%s3960_s1 + $0x280] ss:$8 sps:$4 sm:$0xff]  }
  0x79   : > { %1686 = vmatprep.subr.bf16.mxu0 %v2837_v17  ;;  %v2905_v16 = vld [vmem:[%s3960_s1 + $0x680] ss:$8 sps:$4 sm:$0xff]   ;;  %v2910_v17 = vld [vmem:[%s3960_s1 + $0x294] ss:$8 sps:$4 sm:$0xff]  }
  0x7b   : > { %651 = vmatpush1.bf16.msra.mxu1 %v2832_v19  ;;  %v2908_v19 = vld [vmem:[%s3960_s1 + $0x290] ss:$8 sps:$4 sm:$0xff]  }
  0x7c   : > { %1687 = vmatpush1.bf16.msra.mxu0 %v2835_v20  ;;  %652 = vmatprep.subr.bf16.mxu1 %v2840_v21  ;;  %v2911_v20 = vld [vmem:[%s3960_s1 + $0x690] ss:$8 sps:$4 sm:$0xff]   ;;  %v2916_v21 = vld [vmem:[%s3960_s1 + $0x2a4] ss:$8 sps:$4 sm:$0xff]  }
  0x7d   : > { %1688 = vmatprep.subr.bf16.mxu0 %v2843_v22  ;;  %v2919_v22 = vld [vmem:[%s3960_s1 + $0x6a4] ss:$8 sps:$4 sm:$0xff]  }
  0x7f   : > { %653 = vmatpush1.bf16.msra.mxu1 %v2838_v25  ;;  %v2922_v25 = vld [vmem:[%s3960_s1 + $0x2b4] ss:$8 sps:$4 sm:$0xff]  }
  0x80   : > { %1689 = vmatpush1.bf16.msra.mxu0 %v2841_v26  ;;  %654 = vmatprep.subr.bf16.mxu1 %v2846_v27  ;;  %v2925_v26 = vld [vmem:[%s3960_s1 + $0x6b4] ss:$8 sps:$4 sm:$0xff]   ;;  %v2920_v27 = vld [vmem:[%s3960_s1 + $0x2b0] ss:$8 sps:$4 sm:$0xff]  }
  0x81   : > { %1690 = vmatprep.subr.bf16.mxu0 %v2849_v28  ;;  %v2923_v28 = vld [vmem:[%s3960_s1 + $0x6b0] ss:$8 sps:$4 sm:$0xff]  }
  0x83   : > { %655 = vmatpush1.bf16.msra.mxu1 %v2844_v31  ;;  %v2926_v31 = vld [vmem:[%s3960_s1 + $0x2c0] ss:$8 sps:$4 sm:$0xff]  }
  0x84   : > { %1691 = vmatpush1.bf16.msra.mxu0 %v2847_v32  ;;  %1095 = vmatprep.subr.bf16.mxu1 %v2854_v33  ;;  %v2929_v32 = vld [vmem:[%s3960_s1 + $0x6c0] ss:$8 sps:$4 sm:$0xff]   ;;  %v2934_v33 = vld [vmem:[%s3960_s1 + $0x2d4] ss:$8 sps:$4 sm:$0xff]  }
  0x85   : > { %2107 = vmatprep.subr.bf16.mxu0 %v2859_v34  ;;  %v2937_v34 = vld [vmem:[%s3960_s1 + $0x6d4] ss:$8 sps:$4 sm:$0xff]  }
  0x86   : > { %657 = vmatmul.mubr.bf16.vlgmr.msra.gmra.mrb[0].mxu1 %v2340_v35  ;;  %v2406_v35 = vcombine.low %v3545_v44, %v3545_v44  ;;  %v2941_v44 = vld [vmem:[%s3960_s1 + $0x6e0] ss:$8 sps:$4 sm:$0xff]  }
  0x87   : > { %1693 = vmatmul.mubr.bf16.vlgmr.msra.gmra.mrb[0].mxu0 %v1286_v36  ;;  %1096 = vmatpush1.bf16.msra.mxu1 %v2852_v37  ;;  %v3692_v36 = vld [vmem:[%s3243_s7 + $0x8] sm:$0xff]  ;;  %v2932_v37 = vld [vmem:[%s3960_s1 + $0x2d0] ss:$8 sps:$4 sm:$0xff]  }
  0x88   : > { %2108 = vmatpush1.bf16.msra.mxu0 %v2857_v38  ;;  %1097 = vmatprep.subr.bf16.mxu1 %v2862_v39  ;;  %v2935_v38 = vld [vmem:[%s3960_s1 + $0x6d0] ss:$8 sps:$4 sm:$0xff]   ;;  %v2940_v39 = vld [vmem:[%s3960_s1 + $0x2e4] ss:$8 sps:$4 sm:$0xff]   ;;  %v744_v53 = vshrl.u32 %v2406_v35, 16 }
  0x89   : > { %2109 = vmatprep.subr.bf16.mxu0 %v2865_v40  ;;  %2139 = vmatprep.mubr.bf16.mxu0 %v1780_v58  ;;  %v2943_v40 = vld [vmem:[%s3960_s1 + $0x6e4] ss:$8 sps:$4 sm:$0xff]  }
  0x8a   : > { %1127 = vmatprep.mubr.bf16.mxu1 %v756_v60  ;;  %v2959_v58 = vld [vmem:[%s3960_s1 + $0x704] ss:$8 sps:$4 sm:$0xff]  }
  0x8b   : > { %1098 = vmatpush1.bf16.msra.mxu1 %v2860_v41  ;;  %v2409_v41 = vcombine.high %v3692_v36, %v3692_v36 }
  0x8c   : > { %2110 = vmatpush1.bf16.msra.mxu0 %v2863_v42  ;;  %1099 = vmatprep.subr.bf16.mxu1 %v2868_v43  ;;  %v746_v42 = vshll.u32 %v2406_v35, 16  ;;  %v2938_v43 = vld [vmem:[%s3960_s1 + $0x2e0] ss:$8 sps:$4 sm:$0xff]   ;;  %v3010_v35 = vld [vmem:[%s3960_s1 + $0x394] ss:$8 sps:$4 sm:$0xff]  }
  0x8d   : > { %2111 = vmatprep.subr.bf16.mxu0 %v2871_v45  ;;  %v2946_v45 = vld [vmem:[%s3960_s1 + $0x2f4] ss:$8 sps:$4 sm:$0xff]  }
  0x8e   : > { %v748_v54 = vrot.slane %v746_v42, 1  ;;  %v3014_v42 = vld [vmem:[%s3960_s1 + $0x3a0] ss:$8 sps:$4 sm:$0xff]  }
  0x8f   : > { %1100 = vmatpush1.bf16.msra.mxu1 %v2866_v47  ;;  %v767_v47 = vshll.u32 %v2409_v41, 16 }
  0x90   : > { %2112 = vmatpush1.bf16.msra.mxu0 %v2869_v49  ;;  %1101 = vmatprep.subr.bf16.mxu1 %v2874_v55  ;;  %v3058_v49 = vld [vmem:[%s3243_s7 + $0x10] sm:$0x11]  ;;  %v3723_v55 = vld [vmem:[%s3243_s7 + $0x8] sm:$0xcc] }
  0x91   : > { %2113 = vmatprep.subr.bf16.mxu0 %v2877_v56  ;;  %v2542_v51 = vcombine.low %v3556_v48, %v3058_v49  ;;  %v2944_v56 = vld [vmem:[%s3960_s1 + $0x2f0] ss:$8 sps:$4 sm:$0xff]   ;;  %v2954_v48 = vld [vmem:[%s3960_s1 + $0x304] ss:$8 sps:$4 sm:$0xff]   ;;  %v769_v60 = vrot.slane %v767_v47, 1 }
  0x92   : > { %v3023_v47 = vld [vmem:[%s3960_s1 + $0x7b0] ss:$8 sps:$4 sm:$0xff]   ;;  %v3028_v49 = vld [vmem:[%s3960_s1 + $0x3c4] ss:$8 sps:$4 sm:$0xff]  }
  0x93   : > { %1102 = vmatpush1.bf16.msra.mxu1 %v2872_v59  ;;  %v765_v59 = vshrl.u32 %v2409_v41, 16  ;;  %v3019_v41 = vld [vmem:[%s3960_s1 + $0x7a4] ss:$8 sps:$4 sm:$0xff]  }
  0x94   : > { %2114 = vmatpush1.bf16.msra.mxu0 %v2875_v52  ;;  %1103 = vmatprep.subr.bf16.mxu1 %v2880_v61  ;;  %v2545_v52 = vcombine.high %v3723_v55, %v3409_v50  ;;  %v1779_v61 = vrot.slane %v2542_v51, 2  ;;  %v3031_v51 = vld [vmem:[%s3960_s1 + $0x7c4] ss:$8 sps:$4 sm:$0xff]  }
  0x95   : > { %2115 = vmatprep.subr.bf16.mxu0 %v2883_v62  ;;  %v749_v62 = vor.u32 %v748_v54, %v744_v53  ;;  %v3026_v53 = vld [vmem:[%s3960_s1 + $0x3c0] ss:$8 sps:$4 sm:$0xff]  }
  0x96   : > { %v3029_v54 = vld [vmem:[%s3960_s1 + $0x7c0] ss:$8 sps:$4 sm:$0xff]  }
  0x97   : > { %1104 = vmatpush1.bf16.msra.mxu1 %v2878_v63  ;;  %v2952_v63 = vld [vmem:[%s3960_s1 + $0x300] ss:$8 sps:$4 sm:$0xff]  }
  0x98   : > { %2116 = vmatpush1.bf16.msra.mxu0 %v2881_v0  ;;  %1105 = vmatprep.subr.bf16.mxu1 %v2886_v1  ;;  %v2957_v0 = vld [vmem:[%s3960_s1 + $0x700] ss:$8 sps:$4 sm:$0xff]   ;;  %v2962_v1 = vld [vmem:[%s3960_s1 + $0x314] ss:$8 sps:$4 sm:$0xff]  }
  0x99   : > { %2117 = vmatprep.subr.bf16.mxu0 %v2889_v2  ;;  %v2965_v2 = vld [vmem:[%s3960_s1 + $0x714] ss:$8 sps:$4 sm:$0xff]  }
  0x9b   : > { %1106 = vmatpush1.bf16.msra.mxu1 %v2884_v3  ;;  %v770_v3 = vor.u32 %v769_v60, %v765_v59  ;;  %v3035_v59 = vld [vmem:[%s3960_s1 + $0x7d0] ss:$8 sps:$4 sm:$0xff]   ;;  %v3040_v60 = vld [vmem:[%s3960_s1 + $0x3e4] ss:$8 sps:$4 sm:$0xff]  }
  0x9c   : > { %2118 = vmatpush1.bf16.msra.mxu0 %v2887_v4  ;;  %1107 = vmatprep.subr.bf16.mxu1 %v2892_v5  ;;  %v1782_v4 = vrot.slane %v2545_v52, 2  ;;  %v2960_v5 = vld [vmem:[%s3960_s1 + $0x310] ss:$8 sps:$4 sm:$0xff]  }
  0x9d   : > { %2119 = vmatprep.subr.bf16.mxu0 %v2895_v6  ;;  %v2963_v6 = vld [vmem:[%s3960_s1 + $0x710] ss:$8 sps:$4 sm:$0xff]  }
  0x9f   : > { %1108 = vmatpush1.bf16.msra.mxu1 %v2890_v7  ;;  %v2968_v7 = vld [vmem:[%s3960_s1 + $0x324] ss:$8 sps:$4 sm:$0xff]  }
  0xa0   : > { %2120 = vmatpush1.bf16.msra.mxu0 %v2893_v8  ;;  %1109 = vmatprep.subr.bf16.mxu1 %v2898_v9  ;;  %v2971_v8 = vld [vmem:[%s3960_s1 + $0x724] ss:$8 sps:$4 sm:$0xff]   ;;  %v2966_v9 = vld [vmem:[%s3960_s1 + $0x320] ss:$8 sps:$4 sm:$0xff]  }
  0xa1   : > { %2121 = vmatprep.subr.bf16.mxu0 %v2901_v10  ;;  %v2969_v10 = vld [vmem:[%s3960_s1 + $0x720] ss:$8 sps:$4 sm:$0xff]  }
  0xa3   : > { %1110 = vmatpush1.bf16.msra.mxu1 %v2896_v11  ;;  %v2974_v11 = vld [vmem:[%s3960_s1 + $0x334] ss:$8 sps:$4 sm:$0xff]  }
  0xa4   : > { %2122 = vmatpush1.bf16.msra.mxu0 %v2899_v12  ;;  %1111 = vmatprep.subr.bf16.mxu1 %v2904_v13  ;;  %v2977_v12 = vld [vmem:[%s3960_s1 + $0x734] ss:$8 sps:$4 sm:$0xff]   ;;  %v2972_v13 = vld [vmem:[%s3960_s1 + $0x330] ss:$8 sps:$4 sm:$0xff]  }
  0xa5   : > { %2123 = vmatprep.subr.bf16.mxu0 %v2907_v14  ;;  %v2975_v14 = vld [vmem:[%s3960_s1 + $0x730] ss:$8 sps:$4 sm:$0xff]  }
  0xa7   : > { %1112 = vmatpush1.bf16.msra.mxu1 %v2902_v15  ;;  %v2980_v15 = vld [vmem:[%s3960_s1 + $0x344] ss:$8 sps:$4 sm:$0xff]  }
  0xa8   : > { %2124 = vmatpush1.bf16.msra.mxu0 %v2905_v16  ;;  %1113 = vmatprep.subr.bf16.mxu1 %v2910_v17  ;;  %v2983_v16 = vld [vmem:[%s3960_s1 + $0x744] ss:$8 sps:$4 sm:$0xff]   ;;  %v2978_v17 = vld [vmem:[%s3960_s1 + $0x340] ss:$8 sps:$4 sm:$0xff]  }
  0xa9   : > { %2125 = vmatprep.subr.bf16.mxu0 %v2913_v18  ;;  %v2981_v18 = vld [vmem:[%s3960_s1 + $0x740] ss:$8 sps:$4 sm:$0xff]  }
  0xab   : > { %1114 = vmatpush1.bf16.msra.mxu1 %v2908_v19  ;;  %v2986_v19 = vld [vmem:[%s3960_s1 + $0x354] ss:$8 sps:$4 sm:$0xff]  }
  0xac   : > { %2126 = vmatpush1.bf16.msra.mxu0 %v2911_v20  ;;  %1115 = vmatprep.subr.bf16.mxu1 %v2916_v21  ;;  %v2989_v20 = vld [vmem:[%s3960_s1 + $0x754] ss:$8 sps:$4 sm:$0xff]   ;;  %v2984_v21 = vld [vmem:[%s3960_s1 + $0x350] ss:$8 sps:$4 sm:$0xff]  }
  0xad   : > { %2127 = vmatprep.subr.bf16.mxu0 %v2919_v22  ;;  %v2987_v22 = vld [vmem:[%s3960_s1 + $0x750] ss:$8 sps:$4 sm:$0xff]  }
  0xaf   : > { %1116 = vmatpush1.bf16.msra.mxu1 %v2914_v23  ;;  %v2992_v23 = vld [vmem:[%s3960_s1 + $0x364] ss:$8 sps:$4 sm:$0xff]  }
  0xb0   : > { %2128 = vmatpush1.bf16.msra.mxu0 %v2917_v24  ;;  %1117 = vmatprep.subr.bf16.mxu1 %v2922_v25  ;;  %v2995_v24 = vld [vmem:[%s3960_s1 + $0x764] ss:$8 sps:$4 sm:$0xff]   ;;  %v2990_v25 = vld [vmem:[%s3960_s1 + $0x360] ss:$8 sps:$4 sm:$0xff]  }
  0xb1   : > { %2129 = vmatprep.subr.bf16.mxu0 %v2925_v26  ;;  %v2993_v26 = vld [vmem:[%s3960_s1 + $0x760] ss:$8 sps:$4 sm:$0xff]  }
  0xb3   : > { %1118 = vmatpush1.bf16.msra.mxu1 %v2920_v27  ;;  %v2998_v27 = vld [vmem:[%s3960_s1 + $0x374] ss:$8 sps:$4 sm:$0xff]  }
  0xb4   : > { %2130 = vmatpush1.bf16.msra.mxu0 %v2923_v28  ;;  %1119 = vmatprep.subr.bf16.mxu1 %v2928_v29  ;;  %v3001_v28 = vld [vmem:[%s3960_s1 + $0x774] ss:$8 sps:$4 sm:$0xff]   ;;  %v2996_v29 = vld [vmem:[%s3960_s1 + $0x370] ss:$8 sps:$4 sm:$0xff]  }
  0xb5   : > { %2131 = vmatprep.subr.bf16.mxu0 %v2931_v30  ;;  %v2999_v30 = vld [vmem:[%s3960_s1 + $0x770] ss:$8 sps:$4 sm:$0xff]  }
  0xb7   : > { %1120 = vmatpush1.bf16.msra.mxu1 %v2926_v31  ;;  %v3004_v31 = vld [vmem:[%s3960_s1 + $0x384] ss:$8 sps:$4 sm:$0xff]  }
  0xb8   : > { %2132 = vmatpush1.bf16.msra.mxu0 %v2929_v32  ;;  %1121 = vmatprep.subr.bf16.mxu1 %v2934_v33  ;;  %v3007_v32 = vld [vmem:[%s3960_s1 + $0x784] ss:$8 sps:$4 sm:$0xff]   ;;  %v3002_v33 = vld [vmem:[%s3960_s1 + $0x380] ss:$8 sps:$4 sm:$0xff]  }
  0xb9   : > { %2133 = vmatprep.subr.bf16.mxu0 %v2937_v34  ;;  %v3005_v34 = vld [vmem:[%s3960_s1 + $0x780] ss:$8 sps:$4 sm:$0xff]  }
  0xbb   : > { %1122 = vmatpush1.bf16.msra.mxu1 %v2932_v37  ;;  %v3013_v37 = vld [vmem:[%s3960_s1 + $0x794] ss:$8 sps:$4 sm:$0xff]  }
  0xbc   : > { %2134 = vmatpush1.bf16.msra.mxu0 %v2935_v38  ;;  %1123 = vmatprep.subr.bf16.mxu1 %v2940_v39  ;;  %v3008_v38 = vld [vmem:[%s3960_s1 + $0x390] ss:$8 sps:$4 sm:$0xff]  }
  0xbd   : > { %2135 = vmatprep.subr.bf16.mxu0 %v2943_v40  ;;  %v3011_v39 = vld [vmem:[%s3960_s1 + $0x790] ss:$8 sps:$4 sm:$0xff]   ;;  %v3016_v40 = vld [vmem:[%s3960_s1 + $0x3a4] ss:$8 sps:$4 sm:$0xff]  }
  0xbf   : > { %1124 = vmatpush1.bf16.msra.mxu1 %v2938_v43  ;;  %v3017_v43 = vld [vmem:[%s3960_s1 + $0x7a0] ss:$8 sps:$4 sm:$0xff]  }
  0xc0   : > { %2136 = vmatpush1.bf16.msra.mxu0 %v2941_v44  ;;  %1125 = vmatprep.subr.bf16.mxu1 %v2946_v45  ;;  %v3022_v44 = vld [vmem:[%s3960_s1 + $0x3b4] ss:$8 sps:$4 sm:$0xff]  }
  0xc1   : > { %2137 = vmatprep.subr.bf16.mxu0 %v2949_v46  ;;  %v3025_v45 = vld [vmem:[%s3960_s1 + $0x7b4] ss:$8 sps:$4 sm:$0xff]   ;;  %v3020_v46 = vld [vmem:[%s3960_s1 + $0x3b0] ss:$8 sps:$4 sm:$0xff]  }
  0xc3   : > { %1126 = vmatpush1.bf16.msra.mxu1 %v2944_v56  ;;  %v3034_v56 = vld [vmem:[%s3960_s1 + $0x3d4] ss:$8 sps:$4 sm:$0xff]  }
  0xc4   : > { %2138 = vmatpush1.bf16.msra.mxu0 %v2947_v57  ;;  %1136 = vmatprep.subr.bf16.mxu1 %v2954_v48  ;;  %v3037_v57 = vld [vmem:[%s3960_s1 + $0x7d4] ss:$8 sps:$4 sm:$0xff]   ;;  %v2408_v48 = vcombine.low %v3692_v36, %v3692_v36  ;;  %v3043_v36 = vld [vmem:[%s3960_s1 + $0x7e4] ss:$8 sps:$4 sm:$0xff]  }
  0xc5   : > { %2148 = vmatprep.subr.bf16.mxu0 %v2959_v58  ;;  %v3032_v58 = vld [vmem:[%s3960_s1 + $0x3d0] ss:$8 sps:$4 sm:$0xff]  }
  0xc6   : > { %1128 = vmatmul.mubr.bf16.vlgmr.msra.gmra.mrb[0].mxu1 %v749_v62  ;;  %v760_v52 = vshll.u32 %v2408_v48, 16  ;;  %v3041_v62 = vld [vmem:[%s3960_s1 + $0x7e0] ss:$8 sps:$4 sm:$0xff]  }
  0xc7   : > { %2140 = vmatmul.mubr.bf16.vlgmr.msra.gmra.mrb[0].mxu0 %v1779_v61  ;;  %1137 = vmatpush1.bf16.msra.mxu1 %v2952_v63  ;;  %v3038_v61 = vld [vmem:[%s3960_s1 + $0x3e0] ss:$8 sps:$4 sm:$0xff]   ;;  %v3046_v63 = vld [vmem:[%s3960_s1 + $0x3f4] ss:$8 sps:$4 sm:$0xff]  }
  0xc8   : > { %2149 = vmatpush1.bf16.msra.mxu0 %v2957_v0  ;;  %1138 = vmatprep.subr.bf16.mxu1 %v2962_v1  ;;  %v3049_v0 = vld [vmem:[%s3960_s1 + $0x7f4] ss:$8 sps:$4 sm:$0xff]   ;;  %v2544_v1 = vcombine.low %v3723_v55, %v3409_v50  ;;  %v173_v50 = vlaneseq }
  0xc9   : > { %2150 = vmatprep.subr.bf16.mxu0 %v2965_v2  ;;  %1168 = vmatprep.mubr.bf16.mxu1 %v770_v3  ;;  %v758_v2 = vshrl.u32 %v2408_v48, 16  ;;  %v762_v3 = vrot.slane %v760_v52, 1 }
  0xca   : > { %2180 = vmatprep.mubr.bf16.mxu0 %v1782_v4  ;;  %v3044_v4 = vld [vmem:[%s3960_s1 + $0x3f0] ss:$8 sps:$4 sm:$0xff]   ;;  %v174_v55 = vshrl.u32 %v173_v50, 7 }
  0xcb   : > { %1139 = vmatpush1.bf16.msra.mxu1 %v2960_v5  ;;  %v3047_v5 = vld [vmem:[%s3960_s1 + $0x7f0] ss:$8 sps:$4 sm:$0xff]  }
  0xcc   : > { %2151 = vmatpush1.bf16.msra.mxu0 %v2963_v6  ;;  %1140 = vmatprep.subr.bf16.mxu1 %v2968_v7  ;;  %v1781_v6 = vrot.slane %v2544_v1, 2  ;;  %v763_v7 = vor.u32 %v762_v3, %v758_v2 }
  0xcd   : > { %2152 = vmatprep.subr.bf16.mxu0 %v2971_v8 }
  0xcf   : > { %1141 = vmatpush1.bf16.msra.mxu1 %v2966_v9  ;;  %v3929_v8 = vmul.u32.u64.low 2863311531, %v174_v55  ;;  %v3930_v9 = vmul.u32.u64.high 2863311531, %v174_v55, %v3929_v8 }
  0xd0   : > { %2153 = vmatpush1.bf16.msra.mxu0 %v2969_v10  ;;  %1142 = vmatprep.subr.bf16.mxu1 %v2974_v11 }
  0xd1   : > { %2154 = vmatprep.subr.bf16.mxu0 %v2977_v12  ;;  %v2199_v10 = vshrl.u32 %v3930_v9, 1 }
  0xd3   : > { %1143 = vmatpush1.bf16.msra.mxu1 %v2972_v13  ;;  %v2200_v11 = vmul.u32 3, %v2199_v10  ;;  %v175_v13 = vsub.s32 0, %v174_v55 }
  0xd4   : > { %2155 = vmatpush1.bf16.msra.mxu0 %v2975_v14  ;;  %1144 = vmatprep.subr.bf16.mxu1 %v2980_v15  ;;  %v171_v14 = vld [vmem:[%s3961_s2] sm:$0x3]  ;;  %v179_v15 = vsub.s32 1, %v174_v55 }
  0xd5   : > { %2156 = vmatprep.subr.bf16.mxu0 %v2983_v16  ;;  %v2201_v12 = vsub.s32 %v174_v55, %v2200_v11 }
  0xd7   : > { %1145 = vmatpush1.bf16.msra.mxu1 %v2978_v17  ;;  %vm2204_vm0 = vcmp.ne.s32.totalorder %v2201_v12, 0  ;;  %vm2205_vm1 = vcmp.lt.s32.totalorder %v2201_v12, 0  ;;  %v2207_v16 = vadd.s32 3, %v2201_v12  ;;  %v176_v17 = vrot.slane %v171_v14, %v175_v13 }
  0xd8   : > { %2157 = vmatpush1.bf16.msra.mxu0 %v2981_v18  ;;  %1146 = vmatprep.subr.bf16.mxu1 %v2986_v19  ;;  %vm2206_vm2 = vmand %vm2205_vm1, %vm2204_vm0  ;;  %v180_v18 = vrot.slane %v171_v14, %v179_v15 }
  0xd9   : > { %2158 = vmatprep.subr.bf16.mxu0 %v2989_v20  ;;  %v2208_v19 = vsel %vm2206_vm2, %v2207_v16, %v2201_v12 }
  0xda   : > { %vm3936_vm3 = vcmp.lt.s32.totalorder %v2208_v19, 2 }
  0xdb   : > { %1147 = vmatpush1.bf16.msra.mxu1 %v2984_v21 }
  0xdc   : > { %2159 = vmatpush1.bf16.msra.mxu0 %v2987_v22  ;;  %1148 = vmatprep.subr.bf16.mxu1 %v2992_v23 }
  0xdd   : > { %2160 = vmatprep.subr.bf16.mxu0 %v2995_v24 }
  0xdf   : > { %1149 = vmatpush1.bf16.msra.mxu1 %v2990_v25 }
  0xe0   : > { %2161 = vmatpush1.bf16.msra.mxu0 %v2993_v26  ;;  %1150 = vmatprep.subr.bf16.mxu1 %v2998_v27 }
  0xe1   : > { %2162 = vmatprep.subr.bf16.mxu0 %v3001_v28 }
  0xe3   : > { %1151 = vmatpush1.bf16.msra.mxu1 %v2996_v29 }
  0xe4   : > { %2163 = vmatpush1.bf16.msra.mxu0 %v2999_v30  ;;  %1152 = vmatprep.subr.bf16.mxu1 %v3004_v31 }
  0xe5   : > { %2164 = vmatprep.subr.bf16.mxu0 %v3007_v32 }
  0xe7   : > { %1153 = vmatpush1.bf16.msra.mxu1 %v3002_v33 }
  0xe8   : > { %2165 = vmatpush1.bf16.msra.mxu0 %v3005_v34  ;;  %1154 = vmatprep.subr.bf16.mxu1 %v3010_v35 }
  0xe9   : > { %2166 = vmatprep.subr.bf16.mxu0 %v3013_v37 }
  0xeb   : > { %1155 = vmatpush1.bf16.msra.mxu1 %v3008_v38 }
  0xec   : > { %2167 = vmatpush1.bf16.msra.mxu0 %v3011_v39  ;;  %1156 = vmatprep.subr.bf16.mxu1 %v3016_v40 }
  0xed   : > { %2168 = vmatprep.subr.bf16.mxu0 %v3019_v41 }
  0xef   : > { %1157 = vmatpush1.bf16.msra.mxu1 %v3014_v42 }
  0xf0   : > { %2169 = vmatpush1.bf16.msra.mxu0 %v3017_v43  ;;  %1158 = vmatprep.subr.bf16.mxu1 %v3022_v44 }
  0xf1   : > { %2170 = vmatprep.subr.bf16.mxu0 %v3025_v45 }
  0xf3   : > { %1159 = vmatpush1.bf16.msra.mxu1 %v3020_v46 }
  0xf4   : > { %2171 = vmatpush1.bf16.msra.mxu0 %v3023_v47  ;;  %1160 = vmatprep.subr.bf16.mxu1 %v3028_v49 }
  0xf5   : > { %2172 = vmatprep.subr.bf16.mxu0 %v3031_v51 }
  0xf7   : > { %1161 = vmatpush1.bf16.msra.mxu1 %v3026_v53 }
  0xf8   : > { %2173 = vmatpush1.bf16.msra.mxu0 %v3029_v54  ;;  %1162 = vmatprep.subr.bf16.mxu1 %v3034_v56 }
  0xf9   : > { %2174 = vmatprep.subr.bf16.mxu0 %v3037_v57 }
  0xfb   : > { %1163 = vmatpush1.bf16.msra.mxu1 %v3032_v58 }
  0xfc   : > { %2175 = vmatpush1.bf16.msra.mxu0 %v3035_v59  ;;  %1164 = vmatprep.subr.bf16.mxu1 %v3040_v60 }
  0xfd   : > { %2176 = vmatprep.subr.bf16.mxu0 %v3043_v36 }
  0xff   : > { %1165 = vmatpush1.bf16.msra.mxu1 %v3038_v61 }
 0x100   : > { %2177 = vmatpush1.bf16.msra.mxu0 %v3041_v62  ;;  %1166 = vmatprep.subr.bf16.mxu1 %v3046_v63 }
 0x101   : > { %2178 = vmatprep.subr.bf16.mxu0 %v3049_v0 }
 0x103   : > { %1167 = vmatpush1.bf16.msra.mxu1 %v3044_v4 }
 0x104   : > { %2179 = vmatpush1.bf16.msra.mxu0 %v3047_v5 }
 0x106   : > { %1169 = vmatmul.mubr.bf16.vlgmr.msra.gmra.mrb[0].mxu1 %v763_v7 }
 0x107   : > { %2181 = vmatmul.mubr.bf16.vlgmr.msra.gmra.mrb[0].mxu0 %v1781_v6 }
 0x1d9   : > { %v1170_v20 = vpop.f32.mrb[0].mxu1 }
 0x1da   : > { %v2182_v21 = vpop.f32.mrb[0].mxu0  ;;  %v2616_v22 = vadd.f32 %v1170_v20, %v176_v17  ;;  %v1172_v23 = vpop.f32.mrb[1].mxu1 }
 0x1db   : > { %v2184_v24 = vpop.f32.mrb[1].mxu0  ;;  %v2618_v26 = vadd.f32 %v1172_v23, %v180_v18  ;;  %v1174_v27 = vpop.f32.mrb[2].mxu1 }
 0x1dc   : > { %v2186_v28 = vpop.f32.mrb[2].mxu0  ;;  %v2617_v29 = vadd.f32 %v2616_v22, %v2182_v21  ;;  %v1175_v30 = vpop.f32.mrb[3].mxu1 }
 0x1dd   : > { %v2187_v31 = vpop.f32.mrb[3].mxu0  ;;  %v2619_v32 = vadd.f32 %v2618_v26, %v2184_v24 }
 0x1de   : > { %v2212_v33 = vsel %vm3936_vm3, %v2617_v29, 0.0 }
 0x1df   : > { %v2215_v34 = vsel %vm2214_vm4, %v2212_v33, 0.0  ;;  %v2213_v35 = vsel %vm3936_vm3, %v2619_v32, 0.0 }
 0x1e0   : > { %v2216_v37 = vrot.slane %v2215_v34, 4  ;;  %v2222_v38 = vsel %vm2214_vm4, %v2213_v35, 0.0 }
 0x1e1   : > { %v2223_v39 = vrot.slane %v2222_v38, 4 }
 0x1e2   : > { %v2217_v40 = vadd.f32 %v2216_v37, %v2215_v34 }
 0x1e3   : > { %v2224_v41 = vadd.f32 %v2223_v39, %v2222_v38 }
 0x1e4   : > { %v2218_v42 = vrot.slane %v2217_v40, 2 }
 0x1e5   : > { %v2225_v43 = vrot.slane %v2224_v41, 2 }
 0x1e6   : > { %v2219_v44 = vadd.f32 %v2218_v42, %v2217_v40 }
 0x1e7   : > { %v2226_v45 = vadd.f32 %v2225_v43, %v2224_v41 }
 0x1e8   : > { %v2220_v46 = vrot.slane %v2219_v44, 1 }
 0x1e9   : > { %v2227_v47 = vrot.slane %v2226_v45, 1 }
 0x1ea   : > { %v2221_v49 = vadd.f32 %v2220_v46, %v2219_v44 }
 0x1eb   : > { %v2228_v51 = vadd.f32 %v2227_v47, %v2226_v45 }
 0x1ec   : > { %v2229_v53 = vmul.f32 0.25, %v2221_v49 }
 0x1ed   : > { %v2230_v54 = vmul.f32 0.25, %v2228_v51 }
 0x1ee   : > { %v2231_v56 = vsub.f32 %v2617_v29, %v2229_v53 }
 0x1ef   : > { %v2232_v57 = vsub.f32 %v2619_v32, %v2230_v54 }
 0x1f0   : > { %v2233_v48 = vmul.f32 %v2231_v56, %v2231_v56 }
 0x1f1   : > { %v2234_v58 = vmul.f32 %v2232_v57, %v2232_v57 }
 0x1f2   : > { %v2235_v59 = vsel %vm3936_vm3, %v2233_v48, 0.0 }
 0x1f3   : > { %v2237_v60 = vsel %vm2214_vm4, %v2235_v59, 0.0  ;;  %v2236_v36 = vsel %vm3936_vm3, %v2234_v58, 0.0 }
 0x1f4   : > { %v2238_v52 = vrot.slane %v2237_v60, 4  ;;  %v2244_v61 = vsel %vm2214_vm4, %v2236_v36, 0.0 }
 0x1f5   : > { %v2245_v62 = vrot.slane %v2244_v61, 4 }
 0x1f6   : > { %v2239_v63 = vadd.f32 %v2238_v52, %v2237_v60 }
 0x1f7   : > { %v2246_v0 = vadd.f32 %v2245_v62, %v2244_v61 }
 0x1f8   : > { %v2240_v1 = vrot.slane %v2239_v63, 2 }
 0x1f9   : > { %v2247_v2 = vrot.slane %v2246_v0, 2 }
 0x1fa   : > { %v2241_v3 = vadd.f32 %v2240_v1, %v2239_v63 }
 0x1fb   : > { %v2248_v4 = vadd.f32 %v2247_v2, %v2246_v0 }
 0x1fc   : > { %v2242_v5 = vrot.slane %v2241_v3, 1 }
 0x1fd   : > { %v2249_v6 = vrot.slane %v2248_v4, 1 }
 0x1fe   : > { %v2243_v7 = vadd.f32 %v2242_v5, %v2241_v3 }
 0x1ff   : > { %v2250_v50 = vadd.f32 %v2249_v6, %v2248_v4 }
 0x200   : > { %v2251_v55 = vmul.f32 0.25, %v2243_v7 }
 0x201   : > { %v2252_v8 = vmul.f32 0.25, %v2250_v50 }
 0x202   : > { %v2253_v9 = vadd.f32 1e-05, %v2251_v55 }
 0x203   : > { %v2254_v10 = vadd.f32 1e-05, %v2252_v8 }
 0x204   : > { %3054 = vrsqrt.f32 %v2253_v9 }
 0x205   : > { %3056 = vrsqrt.f32 %v2254_v10 }
 0x20e   : > { %v3055_v11 = vpop.eup %3054 }
 0x20f   : > { %v3057_v12 = vpop.eup %3056  ;;  %v2257_v13 = vmul.f32 %v3055_v11, %v2231_v56 }
 0x210   : > { %v2258_v14 = vmul.f32 %v3057_v12, %v2232_v57 }
 0x211   : > { %vm2259_vm5 = vcmp.ge.f32.partialorder %v2257_v13, 0.0  ;;  %v2261_v15 = vmul.f32 0.2, %v2257_v13 }
 0x212   : > { %vm2260_vm6 = vcmp.ge.f32.partialorder %v2258_v14, 0.0  ;;  %v2262_v16 = vmul.f32 0.2, %v2258_v14 }
 0x213   : > { %v2263_v17 = vsel %vm2259_vm5, %v2257_v13, %v2261_v15 }
 0x214   : > { %v2264_v18 = vsel %vm2260_vm6, %v2258_v14, %v2262_v16 }
 0x215   : > { %v2615_v19 = vpack.c.bf16 %v2264_v18, %v2263_v17 }
 0x217   : > { %2273 = vst [vmem:[%s170_s21] sm:$0x77] %v2615_v19 }
 0x218 PF: > { %s13_s12 = sadd.s32 1, %s3065_s12  }
 0x219   : > { %p10_p4 = scmp.ge.s32.totalorder %s13_s12, 4  }
 0x21b   :  { %12 = sbr.rel (!%p10_p4) target bundleno = 1 (0x1), region = 62 }

// kernel: ce_discriminator_forward.8
= control target key start
LH: loop header
LB: loop body
LE: loop exit
PB: predicated region body
PF: predicated region fallthrough
CT: control target
= control target key end

     0   :  { %s6350_s12 = smov 0   ;;  %s8194_s0 = inlined_call_operand.vmem [shape: bf16[2,20,256], index: 0, kind: input, shape index: {}]   ;;  %s8195_s1 = inlined_call_operand.vmem [shape: bf16[2304,512], index: 1, kind: input, shape index: {}]   ;;  %s8196_s2 = inlined_call_operand.vmem [shape: f32[1,512], index: 2, kind: input, shape index: {}]   ;;  %s8197_s3 = inlined_call_operand.vmem [shape: bf16[2,8,512], index: 3, kind: output, shape index: {}]  }
   0x1 LB: > { %s4745_s13 = sadd.s32 4294967295, %s6328_s12   ;;  %p4749_p0 = scmp.ge.s32.totalorder %s6328_s12, 1  ;;  %s6328_s12 = sphi %s6350_s12, %s13_s12  }
   0x2   : > { %p137_p1 = scmp.lt.s32.totalorder %s6328_s12, 3 }
   0x4   : > { %p138_p2 = pnand %p4749_p0, %p137_p1 }
   0x5   : > { %v5431_v0 = vld [vmem:[%s8195_s1 + $0x4] ss:$16 sps:$4 sm:$0xff] (!%p138_p2)   ;;  %v5433_v1 = vld [vmem:[%s8195_s1 + $0xc] ss:$16 sps:$4 sm:$0xff] (!%p138_p2)   ;;  %v5435_v2 = vld [vmem:[%s8195_s1] ss:$16 sps:$4 sm:$0xff] (!%p138_p2)  }
   0x6   : > { %141 = sbr.rel (%p138_p2) target bundleno = 854 (0x356), region = 32  ;;  %585 = vmatprep.subr.bf16.mxu0 (!%p138_p2), %v5431_v0  ;;  %v5436_v3 = vld [vmem:[%s8195_s1 + $0x8] ss:$16 sps:$4 sm:$0xff] (!%p138_p2)   ;;  %626 = vmatprep.subr.bf16.mxu1 (!%p138_p2), %v5433_v1  ;;  %v5437_v4 = vld [vmem:[%s8195_s1 + $0x24] ss:$16 sps:$4 sm:$0xff] (!%p138_p2)   ;;  %p161_p3 = scmp.lt.s32.totalorder (!%p138_p2), %s4745_s13, 1 }
   0x7   : > { %586 = vmatpush1.bf16.msra.mxu0 (!%p138_p2), %v5435_v2  ;;  %627 = vmatpush1.bf16.msra.mxu1 (!%p138_p2), %v5436_v3  ;;  %v5439_v5 = vld [vmem:[%s8195_s1 + $0x2c] ss:$16 sps:$4 sm:$0xff] (!%p138_p2)   ;;  %v5441_v6 = vld [vmem:[%s8195_s1 + $0x20] ss:$16 sps:$4 sm:$0xff] (!%p138_p2)   ;;  %v5442_v7 = vld [vmem:[%s8195_s1 + $0x28] ss:$16 sps:$4 sm:$0xff] (!%p138_p2)  }
   0x8   : > { %587 = vmatprep.subr.bf16.mxu0 (!%p138_p2), %v5437_v4  ;;  %628 = vmatprep.subr.bf16.mxu1 (!%p138_p2), %v5439_v5  ;;  %v5443_v8 = vld [vmem:[%s8195_s1 + $0x44] ss:$16 sps:$4 sm:$0xff] (!%p138_p2)   ;;  %v5445_v9 = vld [vmem:[%s8195_s1 + $0x4c] ss:$16 sps:$4 sm:$0xff] (!%p138_p2)   ;;  %v5447_v10 = vld [vmem:[%s8195_s1 + $0x40] ss:$16 sps:$4 sm:$0xff] (!%p138_p2)  }
   0x9   : > { %v5448_v11 = vld [vmem:[%s8195_s1 + $0x48] ss:$16 sps:$4 sm:$0xff] (!%p138_p2)   ;;  %v5449_v12 = vld [vmem:[%s8195_s1 + $0x64] ss:$16 sps:$4 sm:$0xff] (!%p138_p2)   ;;  %v5451_v13 = vld [vmem:[%s8195_s1 + $0x6c] ss:$16 sps:$4 sm:$0xff] (!%p138_p2)  }
   0xa   : > { %v5453_v14 = vld [vmem:[%s8195_s1 + $0x60] ss:$16 sps:$4 sm:$0xff] (!%p138_p2)   ;;  %v5454_v15 = vld [vmem:[%s8195_s1 + $0x68] ss:$16 sps:$4 sm:$0xff] (!%p138_p2)   ;;  %v5455_v16 = vld [vmem:[%s8195_s1 + $0x84] ss:$16 sps:$4 sm:$0xff] (!%p138_p2)  }
   0xb   : > { %588 = vmatpush1.bf16.msra.mxu0 (!%p138_p2), %v5441_v6  ;;  %629 = vmatpush1.bf16.msra.mxu1 (!%p138_p2), %v5442_v7  ;;  %v5457_v17 = vld [vmem:[%s8195_s1 + $0x8c] ss:$16 sps:$4 sm:$0xff] (!%p138_p2)   ;;  %v5459_v18 = vld [vmem:[%s8195_s1 + $0x80] ss:$16 sps:$4 sm:$0xff] (!%p138_p2)   ;;  %v5460_v19 = vld [vmem:[%s8195_s1 + $0x88] ss:$16 sps:$4 sm:$0xff] (!%p138_p2)  }
   0xc   : > { %589 = vmatprep.subr.bf16.mxu0 (!%p138_p2), %v5443_v8  ;;  %630 = vmatprep.subr.bf16.mxu1 (!%p138_p2), %v5445_v9  ;;  %v5461_v20 = vld [vmem:[%s8195_s1 + $0xa4] ss:$16 sps:$4 sm:$0xff] (!%p138_p2)   ;;  %v5463_v21 = vld [vmem:[%s8195_s1 + $0xac] ss:$16 sps:$4 sm:$0xff] (!%p138_p2)   ;;  %v5465_v22 = vld [vmem:[%s8195_s1 + $0xa0] ss:$16 sps:$4 sm:$0xff] (!%p138_p2)  }
   0xd   : > { %v5466_v23 = vld [vmem:[%s8195_s1 + $0xa8] ss:$16 sps:$4 sm:$0xff]   ;;  %v5467_v24 = vld [vmem:[%s8195_s1 + $0xc4] ss:$16 sps:$4 sm:$0xff]   ;;  %v5469_v25 = vld [vmem:[%s8195_s1 + $0xcc] ss:$16 sps:$4 sm:$0xff]  }
   0xe   : > { %v5471_v26 = vld [vmem:[%s8195_s1 + $0xc0] ss:$16 sps:$4 sm:$0xff]   ;;  %v5472_v27 = vld [vmem:[%s8195_s1 + $0xc8] ss:$16 sps:$4 sm:$0xff]   ;;  %v5473_v28 = vld [vmem:[%s8195_s1 + $0xe4] ss:$16 sps:$4 sm:$0xff]  }
   0xf   : > { %590 = vmatpush1.bf16.msra.mxu0 %v5447_v10  ;;  %631 = vmatpush1.bf16.msra.mxu1 %v5448_v11  ;;  %v5475_v29 = vld [vmem:[%s8195_s1 + $0xec] ss:$16 sps:$4 sm:$0xff]   ;;  %v5477_v30 = vld [vmem:[%s8195_s1 + $0xe0] ss:$16 sps:$4 sm:$0xff]   ;;  %v5478_v31 = vld [vmem:[%s8195_s1 + $0xe8] ss:$16 sps:$4 sm:$0xff]  }
  0x10   : > { %591 = vmatprep.subr.bf16.mxu0 %v5449_v12  ;;  %632 = vmatprep.subr.bf16.mxu1 %v5451_v13  ;;  %v5479_v32 = vld [vmem:[%s8195_s1 + $0x104] ss:$16 sps:$4 sm:$0xff]   ;;  %v5481_v33 = vld [vmem:[%s8195_s1 + $0x10c] ss:$16 sps:$4 sm:$0xff]   ;;  %v5483_v34 = vld [vmem:[%s8195_s1 + $0x100] ss:$16 sps:$4 sm:$0xff]  }
  0x11   : > { %v5484_v35 = vld [vmem:[%s8195_s1 + $0x108] ss:$16 sps:$4 sm:$0xff]   ;;  %s8201_s13 = smov (!%p161_p3, %s4745_s13), 1  ;;  %v5485_v36 = vld [vmem:[%s8195_s1 + $0x124] ss:$16 sps:$4 sm:$0xff]  }
  0x12   : > { %v5487_v37 = vld [vmem:[%s8195_s1 + $0x12c] ss:$16 sps:$4 sm:$0xff]   ;;  %v5489_v38 = vld [vmem:[%s8195_s1 + $0x120] ss:$16 sps:$4 sm:$0xff]   ;;  %s5422_s17 = smul.u32 24, %s8201_s13  ;;  %s5351_s8 = sshll.u32 %s8201_s13, 4 }
  0x13   : > { %592 = vmatpush1.bf16.msra.mxu0 %v5453_v14  ;;  %633 = vmatpush1.bf16.msra.mxu1 %v5454_v15  ;;  %v5490_v39 = vld [vmem:[%s8195_s1 + $0x128] ss:$16 sps:$4 sm:$0xff]   ;;  %v5491_v40 = vld [vmem:[%s8195_s1 + $0x144] ss:$16 sps:$4 sm:$0xff]   ;;  %v5493_v41 = vld [vmem:[%s8195_s1 + $0x14c] ss:$16 sps:$4 sm:$0xff]   ;;  %s170_s11 = scalar_lea.vmem %s8197_s3, %s5351_s8 }
  0x14   : > { %593 = vmatprep.subr.bf16.mxu0 %v5455_v16  ;;  %634 = vmatprep.subr.bf16.mxu1 %v5457_v17  ;;  %v5495_v42 = vld [vmem:[%s8195_s1 + $0x140] ss:$16 sps:$4 sm:$0xff]   ;;  %v5496_v43 = vld [vmem:[%s8195_s1 + $0x148] ss:$16 sps:$4 sm:$0xff]   ;;  %s6500_s30 = scalar_lea.vmem %s8194_s0, %s5422_s17  ;;  %v5497_v44 = vld [vmem:[%s8195_s1 + $0x164] ss:$16 sps:$4 sm:$0xff]  }
  0x15   : > { %v5499_v45 = vld [vmem:[%s8195_s1 + $0x16c] ss:$16 sps:$4 sm:$0xff]   ;;  %v6509_v46 = vld [vmem:[%s6500_s30] sm:$0xff]  ;;  %v5502_v49 = vld [vmem:[%s8195_s1 + $0x168] ss:$16 sps:$4 sm:$0xff]  }
  0x16   : > { %v5501_v47 = vld [vmem:[%s8195_s1 + $0x160] ss:$16 sps:$4 sm:$0xff]   ;;  %v4754_v48 = vcombine.high %v6509_v46, %v6509_v46  ;;  %v5503_v50 = vld [vmem:[%s8195_s1 + $0x184] ss:$16 sps:$4 sm:$0xff]   ;;  %v5505_v51 = vld [vmem:[%s8195_s1 + $0x18c] ss:$16 sps:$4 sm:$0xff]   ;;  %v4753_v4 = vcombine.low %v6509_v46, %v6509_v46 }
  0x17   : > { %594 = vmatpush1.bf16.msra.mxu0 %v5459_v18  ;;  %635 = vmatpush1.bf16.msra.mxu1 %v5460_v19  ;;  %v5507_v52 = vld [vmem:[%s8195_s1 + $0x180] ss:$16 sps:$4 sm:$0xff]   ;;  %v5508_v53 = vld [vmem:[%s8195_s1 + $0x188] ss:$16 sps:$4 sm:$0xff]   ;;  %v5509_v54 = vld [vmem:[%s8195_s1 + $0x1a4] ss:$16 sps:$4 sm:$0xff]  }
  0x18   : > { %595 = vmatprep.subr.bf16.mxu0 %v5461_v20  ;;  %636 = vmatprep.subr.bf16.mxu1 %v5463_v21  ;;  %v5511_v55 = vld [vmem:[%s8195_s1 + $0x1ac] ss:$16 sps:$4 sm:$0xff]   ;;  %v5513_v56 = vld [vmem:[%s8195_s1 + $0x1a0] ss:$16 sps:$4 sm:$0xff]   ;;  %v5514_v57 = vld [vmem:[%s8195_s1 + $0x1a8] ss:$16 sps:$4 sm:$0xff]  }
  0x19   : > { %617 = vmatprep.mubr.bf16.mxu0 %v4754_v48  ;;  %658 = vmatprep.mubr.bf16.mxu1 %v4754_v48  ;;  %v5515_v58 = vld [vmem:[%s8195_s1 + $0x1c4] ss:$16 sps:$4 sm:$0xff]   ;;  %v5517_v59 = vld [vmem:[%s8195_s1 + $0x1cc] ss:$16 sps:$4 sm:$0xff]   ;;  %v5519_v60 = vld [vmem:[%s8195_s1 + $0x1c0] ss:$16 sps:$4 sm:$0xff]  }
  0x1a   : > { %v5520_v61 = vld [vmem:[%s8195_s1 + $0x1c8] ss:$16 sps:$4 sm:$0xff]   ;;  %v5521_v62 = vld [vmem:[%s8195_s1 + $0x1e4] ss:$16 sps:$4 sm:$0xff]   ;;  %v5523_v63 = vld [vmem:[%s8195_s1 + $0x1ec] ss:$16 sps:$4 sm:$0xff]  }
  0x1b   : > { %596 = vmatpush1.bf16.msra.mxu0 %v5465_v22  ;;  %637 = vmatpush1.bf16.msra.mxu1 %v5466_v23  ;;  %v5525_v0 = vld [vmem:[%s8195_s1 + $0x1e0] ss:$16 sps:$4 sm:$0xff]   ;;  %v5526_v1 = vld [vmem:[%s8195_s1 + $0x1e8] ss:$16 sps:$4 sm:$0xff]   ;;  %v5531_v2 = vld [vmem:[%s8195_s1 + $0x204] ss:$16 sps:$4 sm:$0xff]  }
  0x1c   : > { %597 = vmatprep.subr.bf16.mxu0 %v5467_v24  ;;  %638 = vmatprep.subr.bf16.mxu1 %v5469_v25  ;;  %v5534_v3 = vld [vmem:[%s8195_s1 + $0x20c] ss:$16 sps:$4 sm:$0xff]   ;;  %v5529_v5 = vld [vmem:[%s8195_s1 + $0x200] ss:$16 sps:$4 sm:$0xff]   ;;  %v5532_v6 = vld [vmem:[%s8195_s1 + $0x208] ss:$16 sps:$4 sm:$0xff]  }
  0x1d   : > { %v5537_v7 = vld [vmem:[%s8195_s1 + $0x224] ss:$16 sps:$4 sm:$0xff]   ;;  %v5540_v8 = vld [vmem:[%s8195_s1 + $0x22c] ss:$16 sps:$4 sm:$0xff]   ;;  %v5535_v9 = vld [vmem:[%s8195_s1 + $0x220] ss:$16 sps:$4 sm:$0xff]  }
  0x1e   : > { %v5538_v10 = vld [vmem:[%s8195_s1 + $0x228] ss:$16 sps:$4 sm:$0xff]   ;;  %v5543_v11 = vld [vmem:[%s8195_s1 + $0x244] ss:$16 sps:$4 sm:$0xff]   ;;  %v5546_v12 = vld [vmem:[%s8195_s1 + $0x24c] ss:$16 sps:$4 sm:$0xff]  }
  0x1f   : > { %598 = vmatpush1.bf16.msra.mxu0 %v5471_v26  ;;  %639 = vmatpush1.bf16.msra.mxu1 %v5472_v27  ;;  %v5541_v13 = vld [vmem:[%s8195_s1 + $0x240] ss:$16 sps:$4 sm:$0xff]   ;;  %v5544_v14 = vld [vmem:[%s8195_s1 + $0x248] ss:$16 sps:$4 sm:$0xff]   ;;  %v5549_v15 = vld [vmem:[%s8195_s1 + $0x264] ss:$16 sps:$4 sm:$0xff]  }
  0x20   : > { %599 = vmatprep.subr.bf16.mxu0 %v5473_v28  ;;  %640 = vmatprep.subr.bf16.mxu1 %v5475_v29  ;;  %v5552_v16 = vld [vmem:[%s8195_s1 + $0x26c] ss:$16 sps:$4 sm:$0xff]   ;;  %v5547_v17 = vld [vmem:[%s8195_s1 + $0x260] ss:$16 sps:$4 sm:$0xff]   ;;  %v5550_v18 = vld [vmem:[%s8195_s1 + $0x268] ss:$16 sps:$4 sm:$0xff]  }
  0x21   : > { %v5555_v19 = vld [vmem:[%s8195_s1 + $0x284] ss:$16 sps:$4 sm:$0xff]   ;;  %v5558_v20 = vld [vmem:[%s8195_s1 + $0x28c] ss:$16 sps:$4 sm:$0xff]   ;;  %v5553_v21 = vld [vmem:[%s8195_s1 + $0x280] ss:$16 sps:$4 sm:$0xff]  }
  0x22   : > { %v5556_v22 = vld [vmem:[%s8195_s1 + $0x288] ss:$16 sps:$4 sm:$0xff]   ;;  %v5561_v23 = vld [vmem:[%s8195_s1 + $0x2a4] ss:$16 sps:$4 sm:$0xff]   ;;  %v5564_v24 = vld [vmem:[%s8195_s1 + $0x2ac] ss:$16 sps:$4 sm:$0xff]  }
  0x23   : > { %600 = vmatpush1.bf16.msra.mxu0 %v5477_v30  ;;  %641 = vmatpush1.bf16.msra.mxu1 %v5478_v31  ;;  %v5559_v25 = vld [vmem:[%s8195_s1 + $0x2a0] ss:$16 sps:$4 sm:$0xff]   ;;  %v5562_v26 = vld [vmem:[%s8195_s1 + $0x2a8] ss:$16 sps:$4 sm:$0xff]   ;;  %v5567_v27 = vld [vmem:[%s8195_s1 + $0x2c4] ss:$16 sps:$4 sm:$0xff]  }
  0x24   : > { %601 = vmatprep.subr.bf16.mxu0 %v5479_v32  ;;  %642 = vmatprep.subr.bf16.mxu1 %v5481_v33  ;;  %v5570_v28 = vld [vmem:[%s8195_s1 + $0x2cc] ss:$16 sps:$4 sm:$0xff]   ;;  %v5565_v31 = vld [vmem:[%s8195_s1 + $0x2c0] ss:$16 sps:$4 sm:$0xff]   ;;  %v5568_v32 = vld [vmem:[%s8195_s1 + $0x2c8] ss:$16 sps:$4 sm:$0xff]  }
  0x25   : > { %v6648_v29 = vld [vmem:[%s6500_s30 + $0x8] sm:$0x11]  ;;  %v5573_v33 = vld [vmem:[%s8195_s1 + $0x2e4] ss:$16 sps:$4 sm:$0xff]   ;;  %v5583_v48 = vld [vmem:[%s8195_s1 + $0x320] ss:$16 sps:$4 sm:$0xff]  }
  0x26   : > { %v4820_v30 = vcombine.high %v6509_v46, %v6648_v29 }
  0x27   : > { %602 = vmatpush1.bf16.msra.mxu0 %v5483_v34  ;;  %643 = vmatpush1.bf16.msra.mxu1 %v5484_v35 }
  0x28   : > { %603 = vmatprep.subr.bf16.mxu0 %v5485_v36  ;;  %644 = vmatprep.subr.bf16.mxu1 %v5487_v37  ;;  %v753_v34 = vshrl.u32 %v4820_v30, 16  ;;  %v755_v35 = vshll.u32 %v4820_v30, 16  ;;  %v5576_v36 = vld [vmem:[%s8195_s1 + $0x2ec] ss:$16 sps:$4 sm:$0xff]   ;;  %v5647_v30 = vld [vmem:[%s8195_s1 + $0x464] ss:$16 sps:$4 sm:$0xff]  }
  0x2a   : > { %v757_v37 = vrot.slane %v755_v35, 1  ;;  %v5656_v35 = vld [vmem:[%s8195_s1 + $0x48c] ss:$16 sps:$4 sm:$0xff]  }
  0x2b   : > { %604 = vmatpush1.bf16.msra.mxu0 %v5489_v38  ;;  %645 = vmatpush1.bf16.msra.mxu1 %v5490_v39  ;;  %v5571_v38 = vld [vmem:[%s8195_s1 + $0x2e0] ss:$16 sps:$4 sm:$0xff]   ;;  %v5574_v39 = vld [vmem:[%s8195_s1 + $0x2e8] ss:$16 sps:$4 sm:$0xff]  }
  0x2c   : > { %605 = vmatprep.subr.bf16.mxu0 %v5491_v40  ;;  %646 = vmatprep.subr.bf16.mxu1 %v5493_v41  ;;  %v5579_v40 = vld [vmem:[%s8195_s1 + $0x304] ss:$16 sps:$4 sm:$0xff]   ;;  %v758_v41 = vor.u32 %v757_v37, %v753_v34  ;;  %v5654_v37 = vld [vmem:[%s8195_s1 + $0x488] ss:$16 sps:$4 sm:$0xff]  }
  0x2d   : > { %v5653_v34 = vld [vmem:[%s8195_s1 + $0x484] ss:$16 sps:$4 sm:$0xff]  }
  0x2f   : > { %606 = vmatpush1.bf16.msra.mxu0 %v5495_v42  ;;  %647 = vmatpush1.bf16.msra.mxu1 %v5496_v43  ;;  %v5582_v42 = vld [vmem:[%s8195_s1 + $0x30c] ss:$16 sps:$4 sm:$0xff]   ;;  %v5577_v43 = vld [vmem:[%s8195_s1 + $0x300] ss:$16 sps:$4 sm:$0xff]  }
  0x30   : > { %607 = vmatprep.subr.bf16.mxu0 %v5497_v44  ;;  %648 = vmatprep.subr.bf16.mxu1 %v5499_v45  ;;  %v5580_v44 = vld [vmem:[%s8195_s1 + $0x308] ss:$16 sps:$4 sm:$0xff]   ;;  %v5585_v45 = vld [vmem:[%s8195_s1 + $0x324] ss:$16 sps:$4 sm:$0xff]  }
  0x33   : > { %608 = vmatpush1.bf16.msra.mxu0 %v5501_v47  ;;  %649 = vmatpush1.bf16.msra.mxu1 %v5502_v49  ;;  %v5588_v47 = vld [vmem:[%s8195_s1 + $0x32c] ss:$16 sps:$4 sm:$0xff]   ;;  %v5586_v49 = vld [vmem:[%s8195_s1 + $0x328] ss:$16 sps:$4 sm:$0xff]  }
  0x34   : > { %609 = vmatprep.subr.bf16.mxu0 %v5503_v50  ;;  %650 = vmatprep.subr.bf16.mxu1 %v5505_v51  ;;  %v5591_v50 = vld [vmem:[%s8195_s1 + $0x344] ss:$16 sps:$4 sm:$0xff]   ;;  %v5594_v51 = vld [vmem:[%s8195_s1 + $0x34c] ss:$16 sps:$4 sm:$0xff]  }
  0x37   : > { %610 = vmatpush1.bf16.msra.mxu0 %v5507_v52  ;;  %651 = vmatpush1.bf16.msra.mxu1 %v5508_v53  ;;  %v5589_v52 = vld [vmem:[%s8195_s1 + $0x340] ss:$16 sps:$4 sm:$0xff]   ;;  %v5592_v53 = vld [vmem:[%s8195_s1 + $0x348] ss:$16 sps:$4 sm:$0xff]  }
  0x38   : > { %611 = vmatprep.subr.bf16.mxu0 %v5509_v54  ;;  %652 = vmatprep.subr.bf16.mxu1 %v5511_v55  ;;  %v5597_v54 = vld [vmem:[%s8195_s1 + $0x364] ss:$16 sps:$4 sm:$0xff]   ;;  %v5600_v55 = vld [vmem:[%s8195_s1 + $0x36c] ss:$16 sps:$4 sm:$0xff]  }
  0x3b   : > { %612 = vmatpush1.bf16.msra.mxu0 %v5513_v56  ;;  %653 = vmatpush1.bf16.msra.mxu1 %v5514_v57  ;;  %v5595_v56 = vld [vmem:[%s8195_s1 + $0x360] ss:$16 sps:$4 sm:$0xff]   ;;  %v5598_v57 = vld [vmem:[%s8195_s1 + $0x368] ss:$16 sps:$4 sm:$0xff]  }
  0x3c   : > { %613 = vmatprep.subr.bf16.mxu0 %v5515_v58  ;;  %654 = vmatprep.subr.bf16.mxu1 %v5517_v59  ;;  %v5603_v58 = vld [vmem:[%s8195_s1 + $0x384] ss:$16 sps:$4 sm:$0xff]   ;;  %v5606_v59 = vld [vmem:[%s8195_s1 + $0x38c] ss:$16 sps:$4 sm:$0xff]  }
  0x3f   : > { %614 = vmatpush1.bf16.msra.mxu0 %v5519_v60  ;;  %655 = vmatpush1.bf16.msra.mxu1 %v5520_v61  ;;  %v5601_v60 = vld [vmem:[%s8195_s1 + $0x380] ss:$16 sps:$4 sm:$0xff]   ;;  %v5604_v61 = vld [vmem:[%s8195_s1 + $0x388] ss:$16 sps:$4 sm:$0xff]  }
  0x40   : > { %615 = vmatprep.subr.bf16.mxu0 %v5521_v62  ;;  %656 = vmatprep.subr.bf16.mxu1 %v5523_v63  ;;  %v5609_v62 = vld [vmem:[%s8195_s1 + $0x3a4] ss:$16 sps:$4 sm:$0xff]   ;;  %v5612_v63 = vld [vmem:[%s8195_s1 + $0x3ac] ss:$16 sps:$4 sm:$0xff]  }
  0x43   : > { %616 = vmatpush1.bf16.msra.mxu0 %v5525_v0  ;;  %657 = vmatpush1.bf16.msra.mxu1 %v5526_v1  ;;  %v5607_v0 = vld [vmem:[%s8195_s1 + $0x3a0] ss:$16 sps:$4 sm:$0xff]   ;;  %v4819_v1 = vcombine.low %v6509_v46, %v6648_v29 }
  0x44   : > { %1081 = vmatprep.subr.bf16.mxu0 %v5531_v2  ;;  %1122 = vmatprep.subr.bf16.mxu1 %v5534_v3  ;;  %v5610_v2 = vld [vmem:[%s8195_s1 + $0x3a8] ss:$16 sps:$4 sm:$0xff]   ;;  %v5615_v3 = vld [vmem:[%s8195_s1 + $0x3c4] ss:$16 sps:$4 sm:$0xff]   ;;  %v5613_v46 = vld [vmem:[%s8195_s1 + $0x3c0] ss:$16 sps:$4 sm:$0xff]  }
  0x46   : > { %618 = vmatmul.mubr.bf16.vlgmr.msra.gmra.mrb[0].mxu0 %v4753_v4  ;;  %659 = vmatmul.mubr.bf16.vlgmr.msra.gmra.mrb[0].mxu1 %v4753_v4  ;;  %v5618_v4 = vld [vmem:[%s8195_s1 + $0x3cc] ss:$16 sps:$4 sm:$0xff]  }
  0x47   : > { %1082 = vmatpush1.bf16.msra.mxu0 %v5529_v5  ;;  %1123 = vmatpush1.bf16.msra.mxu1 %v5532_v6  ;;  %v748_v5 = vshll.u32 %v4819_v1, 16  ;;  %v5616_v6 = vld [vmem:[%s8195_s1 + $0x3c8] ss:$16 sps:$4 sm:$0xff]  }
  0x48   : > { %1083 = vmatprep.subr.bf16.mxu0 %v5537_v7  ;;  %1124 = vmatprep.subr.bf16.mxu1 %v5540_v8  ;;  %v5621_v7 = vld [vmem:[%s8195_s1 + $0x3e4] ss:$16 sps:$4 sm:$0xff]   ;;  %v5624_v8 = vld [vmem:[%s8195_s1 + $0x3ec] ss:$16 sps:$4 sm:$0xff]  }
  0x49   : > { %1113 = vmatprep.mubr.bf16.mxu0 %v758_v41  ;;  %1154 = vmatprep.mubr.bf16.mxu1 %v758_v41  ;;  %v5660_v41 = vld [vmem:[%s8195_s1 + $0x4a8] ss:$16 sps:$4 sm:$0xff]  }
  0x4b   : > { %1084 = vmatpush1.bf16.msra.mxu0 %v5535_v9  ;;  %1125 = vmatpush1.bf16.msra.mxu1 %v5538_v10  ;;  %v5619_v9 = vld [vmem:[%s8195_s1 + $0x3e0] ss:$16 sps:$4 sm:$0xff]   ;;  %v746_v10 = vshrl.u32 %v4819_v1, 16 }
  0x4c   : > { %1085 = vmatprep.subr.bf16.mxu0 %v5543_v11  ;;  %1126 = vmatprep.subr.bf16.mxu1 %v5546_v12  ;;  %v750_v11 = vrot.slane %v748_v5, 1  ;;  %v5622_v12 = vld [vmem:[%s8195_s1 + $0x3e8] ss:$16 sps:$4 sm:$0xff]   ;;  %v5693_v1 = vld [vmem:[%s8195_s1 + $0x560] ss:$16 sps:$4 sm:$0xff]  }
  0x4d   : > { %v5702_v5 = vld [vmem:[%s8195_s1 + $0x588] ss:$16 sps:$4 sm:$0xff]  }
  0x4f   : > { %1086 = vmatpush1.bf16.msra.mxu0 %v5541_v13  ;;  %1127 = vmatpush1.bf16.msra.mxu1 %v5544_v14  ;;  %v5629_v13 = vld [vmem:[%s8195_s1 + $0x404] ss:$16 sps:$4 sm:$0xff]   ;;  %v5632_v14 = vld [vmem:[%s8195_s1 + $0x40c] ss:$16 sps:$4 sm:$0xff]  }
  0x50   : > { %1087 = vmatprep.subr.bf16.mxu0 %v5549_v15  ;;  %1128 = vmatprep.subr.bf16.mxu1 %v5552_v16  ;;  %v5627_v15 = vld [vmem:[%s8195_s1 + $0x400] ss:$16 sps:$4 sm:$0xff]   ;;  %v5630_v16 = vld [vmem:[%s8195_s1 + $0x408] ss:$16 sps:$4 sm:$0xff]  }
  0x53   : > { %1088 = vmatpush1.bf16.msra.mxu0 %v5547_v17  ;;  %1129 = vmatpush1.bf16.msra.mxu1 %v5550_v18  ;;  %v751_v17 = vor.u32 %v750_v11, %v746_v10  ;;  %v5635_v18 = vld [vmem:[%s8195_s1 + $0x424] ss:$16 sps:$4 sm:$0xff]   ;;  %v5716_v11 = vld [vmem:[%s8195_s1 + $0x5cc] ss:$16 sps:$4 sm:$0xff]  }
  0x54   : > { %1089 = vmatprep.subr.bf16.mxu0 %v5555_v19  ;;  %1130 = vmatprep.subr.bf16.mxu1 %v5558_v20  ;;  %v5638_v19 = vld [vmem:[%s8195_s1 + $0x42c] ss:$16 sps:$4 sm:$0xff]   ;;  %v6787_v20 = vld [vmem:[%s6500_s30] sm:$0xee] }
  0x55   : > { %v5713_v10 = vld [vmem:[%s8195_s1 + $0x5c4] ss:$16 sps:$4 sm:$0xff]  }
  0x57   : > { %1090 = vmatpush1.bf16.msra.mxu0 %v5553_v21  ;;  %1131 = vmatpush1.bf16.msra.mxu1 %v5556_v22  ;;  %v4886_v21 = vcombine.high %v6787_v20, %v6648_v29  ;;  %v5633_v22 = vld [vmem:[%s8195_s1 + $0x420] ss:$16 sps:$4 sm:$0xff]  }
  0x58   : > { %1091 = vmatprep.subr.bf16.mxu0 %v5561_v23  ;;  %1132 = vmatprep.subr.bf16.mxu1 %v5564_v24  ;;  %v5636_v23 = vld [vmem:[%s8195_s1 + $0x428] ss:$16 sps:$4 sm:$0xff]   ;;  %v5641_v24 = vld [vmem:[%s8195_s1 + $0x444] ss:$16 sps:$4 sm:$0xff]  }
  0x5b   : > { %1092 = vmatpush1.bf16.msra.mxu0 %v5559_v25  ;;  %1133 = vmatpush1.bf16.msra.mxu1 %v5562_v26  ;;  %v1238_v25 = vrot.slane %v4886_v21, 1  ;;  %v5644_v26 = vld [vmem:[%s8195_s1 + $0x44c] ss:$16 sps:$4 sm:$0xff]   ;;  %v5720_v21 = vld [vmem:[%s8195_s1 + $0x5e8] ss:$16 sps:$4 sm:$0xff]  }
  0x5c   : > { %1093 = vmatprep.subr.bf16.mxu0 %v5567_v27  ;;  %1134 = vmatprep.subr.bf16.mxu1 %v5570_v28  ;;  %v5639_v27 = vld [vmem:[%s8195_s1 + $0x440] ss:$16 sps:$4 sm:$0xff]   ;;  %v5642_v28 = vld [vmem:[%s8195_s1 + $0x448] ss:$16 sps:$4 sm:$0xff]  }
  0x5f   : > { %1094 = vmatpush1.bf16.msra.mxu0 %v5565_v31  ;;  %1135 = vmatpush1.bf16.msra.mxu1 %v5568_v32  ;;  %v5650_v31 = vld [vmem:[%s8195_s1 + $0x46c] ss:$16 sps:$4 sm:$0xff]   ;;  %v5645_v32 = vld [vmem:[%s8195_s1 + $0x460] ss:$16 sps:$4 sm:$0xff]  }
  0x60   : > { %1095 = vmatprep.subr.bf16.mxu0 %v5573_v33  ;;  %1136 = vmatprep.subr.bf16.mxu1 %v5576_v36  ;;  %v5648_v33 = vld [vmem:[%s8195_s1 + $0x468] ss:$16 sps:$4 sm:$0xff]   ;;  %v5651_v36 = vld [vmem:[%s8195_s1 + $0x480] ss:$16 sps:$4 sm:$0xff]  }
  0x63   : > { %1096 = vmatpush1.bf16.msra.mxu0 %v5571_v38  ;;  %1137 = vmatpush1.bf16.msra.mxu1 %v5574_v39  ;;  %v5659_v38 = vld [vmem:[%s8195_s1 + $0x4a4] ss:$16 sps:$4 sm:$0xff]   ;;  %v5662_v39 = vld [vmem:[%s8195_s1 + $0x4ac] ss:$16 sps:$4 sm:$0xff]  }
  0x64   : > { %1097 = vmatprep.subr.bf16.mxu0 %v5579_v40  ;;  %1138 = vmatprep.subr.bf16.mxu1 %v5582_v42  ;;  %v5657_v40 = vld [vmem:[%s8195_s1 + $0x4a0] ss:$16 sps:$4 sm:$0xff]   ;;  %v5665_v42 = vld [vmem:[%s8195_s1 + $0x4c4] ss:$16 sps:$4 sm:$0xff]  }
  0x67   : > { %1098 = vmatpush1.bf16.msra.mxu0 %v5577_v43  ;;  %1139 = vmatpush1.bf16.msra.mxu1 %v5580_v44  ;;  %v5668_v43 = vld [vmem:[%s8195_s1 + $0x4cc] ss:$16 sps:$4 sm:$0xff]   ;;  %v5663_v44 = vld [vmem:[%s8195_s1 + $0x4c0] ss:$16 sps:$4 sm:$0xff]  }
  0x68   : > { %1099 = vmatprep.subr.bf16.mxu0 %v5585_v45  ;;  %1140 = vmatprep.subr.bf16.mxu1 %v5588_v47  ;;  %v5666_v45 = vld [vmem:[%s8195_s1 + $0x4c8] ss:$16 sps:$4 sm:$0xff]   ;;  %v5671_v47 = vld [vmem:[%s8195_s1 + $0x4e4] ss:$16 sps:$4 sm:$0xff]  }
  0x6b   : > { %1100 = vmatpush1.bf16.msra.mxu0 %v5583_v48  ;;  %1141 = vmatpush1.bf16.msra.mxu1 %v5586_v49  ;;  %v5674_v48 = vld [vmem:[%s8195_s1 + $0x4ec] ss:$16 sps:$4 sm:$0xff]   ;;  %v5669_v49 = vld [vmem:[%s8195_s1 + $0x4e0] ss:$16 sps:$4 sm:$0xff]  }
  0x6c   : > { %1101 = vmatprep.subr.bf16.mxu0 %v5591_v50  ;;  %1142 = vmatprep.subr.bf16.mxu1 %v5594_v51  ;;  %v5672_v50 = vld [vmem:[%s8195_s1 + $0x4e8] ss:$16 sps:$4 sm:$0xff]   ;;  %v5677_v51 = vld [vmem:[%s8195_s1 + $0x504] ss:$16 sps:$4 sm:$0xff]  }
  0x6f   : > { %1102 = vmatpush1.bf16.msra.mxu0 %v5589_v52  ;;  %1143 = vmatpush1.bf16.msra.mxu1 %v5592_v53  ;;  %v5680_v52 = vld [vmem:[%s8195_s1 + $0x50c] ss:$16 sps:$4 sm:$0xff]   ;;  %v5675_v53 = vld [vmem:[%s8195_s1 + $0x500] ss:$16 sps:$4 sm:$0xff]  }
  0x70   : > { %1103 = vmatprep.subr.bf16.mxu0 %v5597_v54  ;;  %1144 = vmatprep.subr.bf16.mxu1 %v5600_v55  ;;  %v5678_v54 = vld [vmem:[%s8195_s1 + $0x508] ss:$16 sps:$4 sm:$0xff]   ;;  %v5683_v55 = vld [vmem:[%s8195_s1 + $0x524] ss:$16 sps:$4 sm:$0xff]  }
  0x73   : > { %1104 = vmatpush1.bf16.msra.mxu0 %v5595_v56  ;;  %1145 = vmatpush1.bf16.msra.mxu1 %v5598_v57  ;;  %v5686_v56 = vld [vmem:[%s8195_s1 + $0x52c] ss:$16 sps:$4 sm:$0xff]   ;;  %v5681_v57 = vld [vmem:[%s8195_s1 + $0x520] ss:$16 sps:$4 sm:$0xff]  }
  0x74   : > { %1105 = vmatprep.subr.bf16.mxu0 %v5603_v58  ;;  %1146 = vmatprep.subr.bf16.mxu1 %v5606_v59  ;;  %v5684_v58 = vld [vmem:[%s8195_s1 + $0x528] ss:$16 sps:$4 sm:$0xff]   ;;  %v5689_v59 = vld [vmem:[%s8195_s1 + $0x544] ss:$16 sps:$4 sm:$0xff]  }
  0x77   : > { %1106 = vmatpush1.bf16.msra.mxu0 %v5601_v60  ;;  %1147 = vmatpush1.bf16.msra.mxu1 %v5604_v61  ;;  %v5692_v60 = vld [vmem:[%s8195_s1 + $0x54c] ss:$16 sps:$4 sm:$0xff]   ;;  %v5687_v61 = vld [vmem:[%s8195_s1 + $0x540] ss:$16 sps:$4 sm:$0xff]  }
  0x78   : > { %1107 = vmatprep.subr.bf16.mxu0 %v5609_v62  ;;  %1148 = vmatprep.subr.bf16.mxu1 %v5612_v63  ;;  %v5690_v62 = vld [vmem:[%s8195_s1 + $0x548] ss:$16 sps:$4 sm:$0xff]   ;;  %v5695_v63 = vld [vmem:[%s8195_s1 + $0x564] ss:$16 sps:$4 sm:$0xff]  }
  0x7b   : > { %1108 = vmatpush1.bf16.msra.mxu0 %v5607_v0  ;;  %1149 = vmatpush1.bf16.msra.mxu1 %v5610_v2  ;;  %v5698_v0 = vld [vmem:[%s8195_s1 + $0x56c] ss:$16 sps:$4 sm:$0xff]   ;;  %v5696_v2 = vld [vmem:[%s8195_s1 + $0x568] ss:$16 sps:$4 sm:$0xff]  }
  0x7c   : > { %1109 = vmatprep.subr.bf16.mxu0 %v5615_v3  ;;  %1150 = vmatprep.subr.bf16.mxu1 %v5618_v4  ;;  %v5701_v3 = vld [vmem:[%s8195_s1 + $0x584] ss:$16 sps:$4 sm:$0xff]   ;;  %v5704_v4 = vld [vmem:[%s8195_s1 + $0x58c] ss:$16 sps:$4 sm:$0xff]  }
  0x7f   : > { %1110 = vmatpush1.bf16.msra.mxu0 %v5613_v46  ;;  %1151 = vmatpush1.bf16.msra.mxu1 %v5616_v6  ;;  %v5699_v46 = vld [vmem:[%s8195_s1 + $0x580] ss:$16 sps:$4 sm:$0xff]   ;;  %v5707_v6 = vld [vmem:[%s8195_s1 + $0x5a4] ss:$16 sps:$4 sm:$0xff]  }
  0x80   : > { %1111 = vmatprep.subr.bf16.mxu0 %v5621_v7  ;;  %1152 = vmatprep.subr.bf16.mxu1 %v5624_v8  ;;  %v5710_v7 = vld [vmem:[%s8195_s1 + $0x5ac] ss:$16 sps:$4 sm:$0xff]   ;;  %v5705_v8 = vld [vmem:[%s8195_s1 + $0x5a0] ss:$16 sps:$4 sm:$0xff]  }
  0x83   : > { %1112 = vmatpush1.bf16.msra.mxu0 %v5619_v9  ;;  %1153 = vmatpush1.bf16.msra.mxu1 %v5622_v12  ;;  %v5708_v9 = vld [vmem:[%s8195_s1 + $0x5a8] ss:$16 sps:$4 sm:$0xff]   ;;  %v5711_v12 = vld [vmem:[%s8195_s1 + $0x5c0] ss:$16 sps:$4 sm:$0xff]  }
  0x84   : > { %1561 = vmatprep.subr.bf16.mxu0 %v5629_v13  ;;  %1602 = vmatprep.subr.bf16.mxu1 %v5632_v14  ;;  %v5714_v13 = vld [vmem:[%s8195_s1 + $0x5c8] ss:$16 sps:$4 sm:$0xff]   ;;  %v5719_v14 = vld [vmem:[%s8195_s1 + $0x5e4] ss:$16 sps:$4 sm:$0xff]  }
  0x86   : > { %1114 = vmatmul.mubr.bf16.vlgmr.msra.gmra.mrb[0].mxu0 %v751_v17  ;;  %1155 = vmatmul.mubr.bf16.vlgmr.msra.gmra.mrb[0].mxu1 %v751_v17  ;;  %v4885_v17 = vcombine.low %v6787_v20, %v6648_v29  ;;  %v5730_v29 = vld [vmem:[%s8195_s1 + $0x60c] ss:$16 sps:$4 sm:$0xff]  }
  0x87   : > { %1562 = vmatpush1.bf16.msra.mxu0 %v5627_v15  ;;  %1603 = vmatpush1.bf16.msra.mxu1 %v5630_v16  ;;  %v5722_v15 = vld [vmem:[%s8195_s1 + $0x5ec] ss:$16 sps:$4 sm:$0xff]   ;;  %v6960_v16 = vld [vmem:[%s6500_s30] sm:$0xcc] }
  0x88   : > { %1563 = vmatprep.subr.bf16.mxu0 %v5635_v18  ;;  %1604 = vmatprep.subr.bf16.mxu1 %v5638_v19  ;;  %v6965_v18 = vld [vmem:[%s6500_s30 + $0x8] sm:$0x33]  ;;  %v5717_v19 = vld [vmem:[%s8195_s1 + $0x5e0] ss:$16 sps:$4 sm:$0xff]  }
  0x89   : > { %1593 = vmatprep.mubr.bf16.mxu0 %v1238_v25  ;;  %1634 = vmatprep.mubr.bf16.mxu1 %v1238_v25  ;;  %v4952_v20 = vcombine.high %v6960_v16, %v6965_v18  ;;  %v5728_v25 = vld [vmem:[%s8195_s1 + $0x608] ss:$16 sps:$4 sm:$0xff]  }
  0x8b   : > { %1564 = vmatpush1.bf16.msra.mxu0 %v5633_v22  ;;  %1605 = vmatpush1.bf16.msra.mxu1 %v5636_v23  ;;  %v5727_v22 = vld [vmem:[%s8195_s1 + $0x604] ss:$16 sps:$4 sm:$0xff]   ;;  %v1237_v23 = vrot.slane %v4885_v17, 1  ;;  %v5806_v17 = vld [vmem:[%s8195_s1 + $0x7a8] ss:$16 sps:$4 sm:$0xff]  }
  0x8c   : > { %1565 = vmatprep.subr.bf16.mxu0 %v5641_v24  ;;  %1606 = vmatprep.subr.bf16.mxu1 %v5644_v26  ;;  %v5725_v24 = vld [vmem:[%s8195_s1 + $0x600] ss:$16 sps:$4 sm:$0xff]   ;;  %v5733_v26 = vld [vmem:[%s8195_s1 + $0x624] ss:$16 sps:$4 sm:$0xff]  }
  0x8f   : > { %1566 = vmatpush1.bf16.msra.mxu0 %v5639_v27  ;;  %1607 = vmatpush1.bf16.msra.mxu1 %v5642_v28  ;;  %v5736_v27 = vld [vmem:[%s8195_s1 + $0x62c] ss:$16 sps:$4 sm:$0xff]   ;;  %v1722_v28 = vrot.slane %v4952_v20, 2  ;;  %v5812_v20 = vld [vmem:[%s8195_s1 + $0x7c8] ss:$16 sps:$4 sm:$0xff]  }
  0x90   : > { %1567 = vmatprep.subr.bf16.mxu0 %v5647_v30  ;;  %1608 = vmatprep.subr.bf16.mxu1 %v5650_v31  ;;  %v5731_v30 = vld [vmem:[%s8195_s1 + $0x620] ss:$16 sps:$4 sm:$0xff]   ;;  %v5734_v31 = vld [vmem:[%s8195_s1 + $0x628] ss:$16 sps:$4 sm:$0xff]  }
  0x93   : > { %1568 = vmatpush1.bf16.msra.mxu0 %v5645_v32  ;;  %1609 = vmatpush1.bf16.msra.mxu1 %v5648_v33  ;;  %v5739_v32 = vld [vmem:[%s8195_s1 + $0x644] ss:$16 sps:$4 sm:$0xff]   ;;  %v5742_v33 = vld [vmem:[%s8195_s1 + $0x64c] ss:$16 sps:$4 sm:$0xff]  }
  0x94   : > { %1569 = vmatprep.subr.bf16.mxu0 %v5653_v34  ;;  %1610 = vmatprep.subr.bf16.mxu1 %v5656_v35  ;;  %v5737_v34 = vld [vmem:[%s8195_s1 + $0x640] ss:$16 sps:$4 sm:$0xff]   ;;  %v5740_v35 = vld [vmem:[%s8195_s1 + $0x648] ss:$16 sps:$4 sm:$0xff]  }
  0x97   : > { %1570 = vmatpush1.bf16.msra.mxu0 %v5651_v36  ;;  %1611 = vmatpush1.bf16.msra.mxu1 %v5654_v37  ;;  %v5745_v36 = vld [vmem:[%s8195_s1 + $0x664] ss:$16 sps:$4 sm:$0xff]   ;;  %v5748_v37 = vld [vmem:[%s8195_s1 + $0x66c] ss:$16 sps:$4 sm:$0xff]  }
  0x98   : > { %1571 = vmatprep.subr.bf16.mxu0 %v5659_v38  ;;  %1612 = vmatprep.subr.bf16.mxu1 %v5662_v39  ;;  %v5743_v38 = vld [vmem:[%s8195_s1 + $0x660] ss:$16 sps:$4 sm:$0xff]   ;;  %v5746_v39 = vld [vmem:[%s8195_s1 + $0x668] ss:$16 sps:$4 sm:$0xff]  }
  0x9b   : > { %1572 = vmatpush1.bf16.msra.mxu0 %v5657_v40  ;;  %1613 = vmatpush1.bf16.msra.mxu1 %v5660_v41  ;;  %v5751_v40 = vld [vmem:[%s8195_s1 + $0x684] ss:$16 sps:$4 sm:$0xff]   ;;  %v5754_v41 = vld [vmem:[%s8195_s1 + $0x68c] ss:$16 sps:$4 sm:$0xff]  }
  0x9c   : > { %1573 = vmatprep.subr.bf16.mxu0 %v5665_v42  ;;  %1614 = vmatprep.subr.bf16.mxu1 %v5668_v43  ;;  %v5749_v42 = vld [vmem:[%s8195_s1 + $0x680] ss:$16 sps:$4 sm:$0xff]   ;;  %v5752_v43 = vld [vmem:[%s8195_s1 + $0x688] ss:$16 sps:$4 sm:$0xff]  }
  0x9f   : > { %1574 = vmatpush1.bf16.msra.mxu0 %v5663_v44  ;;  %1615 = vmatpush1.bf16.msra.mxu1 %v5666_v45  ;;  %v5757_v44 = vld [vmem:[%s8195_s1 + $0x6a4] ss:$16 sps:$4 sm:$0xff]   ;;  %v5760_v45 = vld [vmem:[%s8195_s1 + $0x6ac] ss:$16 sps:$4 sm:$0xff]  }
  0xa0   : > { %1575 = vmatprep.subr.bf16.mxu0 %v5671_v47  ;;  %1616 = vmatprep.subr.bf16.mxu1 %v5674_v48  ;;  %v5755_v47 = vld [vmem:[%s8195_s1 + $0x6a0] ss:$16 sps:$4 sm:$0xff]   ;;  %v5758_v48 = vld [vmem:[%s8195_s1 + $0x6a8] ss:$16 sps:$4 sm:$0xff]  }
  0xa3   : > { %1576 = vmatpush1.bf16.msra.mxu0 %v5669_v49  ;;  %1617 = vmatpush1.bf16.msra.mxu1 %v5672_v50  ;;  %v5763_v49 = vld [vmem:[%s8195_s1 + $0x6c4] ss:$16 sps:$4 sm:$0xff]   ;;  %v5766_v50 = vld [vmem:[%s8195_s1 + $0x6cc] ss:$16 sps:$4 sm:$0xff]  }
  0xa4   : > { %1577 = vmatprep.subr.bf16.mxu0 %v5677_v51  ;;  %1618 = vmatprep.subr.bf16.mxu1 %v5680_v52  ;;  %v5761_v51 = vld [vmem:[%s8195_s1 + $0x6c0] ss:$16 sps:$4 sm:$0xff]   ;;  %v5764_v52 = vld [vmem:[%s8195_s1 + $0x6c8] ss:$16 sps:$4 sm:$0xff]  }
  0xa7   : > { %1578 = vmatpush1.bf16.msra.mxu0 %v5675_v53  ;;  %1619 = vmatpush1.bf16.msra.mxu1 %v5678_v54  ;;  %v5769_v53 = vld [vmem:[%s8195_s1 + $0x6e4] ss:$16 sps:$4 sm:$0xff]   ;;  %v5772_v54 = vld [vmem:[%s8195_s1 + $0x6ec] ss:$16 sps:$4 sm:$0xff]  }
  0xa8   : > { %1579 = vmatprep.subr.bf16.mxu0 %v5683_v55  ;;  %1620 = vmatprep.subr.bf16.mxu1 %v5686_v56  ;;  %v5767_v55 = vld [vmem:[%s8195_s1 + $0x6e0] ss:$16 sps:$4 sm:$0xff]   ;;  %v5770_v56 = vld [vmem:[%s8195_s1 + $0x6e8] ss:$16 sps:$4 sm:$0xff]  }
  0xab   : > { %1580 = vmatpush1.bf16.msra.mxu0 %v5681_v57  ;;  %1621 = vmatpush1.bf16.msra.mxu1 %v5684_v58  ;;  %v5775_v57 = vld [vmem:[%s8195_s1 + $0x704] ss:$16 sps:$4 sm:$0xff]   ;;  %v5778_v58 = vld [vmem:[%s8195_s1 + $0x70c] ss:$16 sps:$4 sm:$0xff]  }
  0xac   : > { %1581 = vmatprep.subr.bf16.mxu0 %v5689_v59  ;;  %1622 = vmatprep.subr.bf16.mxu1 %v5692_v60  ;;  %v5773_v59 = vld [vmem:[%s8195_s1 + $0x700] ss:$16 sps:$4 sm:$0xff]   ;;  %v5776_v60 = vld [vmem:[%s8195_s1 + $0x708] ss:$16 sps:$4 sm:$0xff]  }
  0xaf   : > { %1582 = vmatpush1.bf16.msra.mxu0 %v5687_v61  ;;  %1623 = vmatpush1.bf16.msra.mxu1 %v5690_v62  ;;  %v5781_v61 = vld [vmem:[%s8195_s1 + $0x724] ss:$16 sps:$4 sm:$0xff]   ;;  %v5784_v62 = vld [vmem:[%s8195_s1 + $0x72c] ss:$16 sps:$4 sm:$0xff]  }
  0xb0   : > { %1583 = vmatprep.subr.bf16.mxu0 %v5695_v63  ;;  %1624 = vmatprep.subr.bf16.mxu1 %v5698_v0  ;;  %v5779_v63 = vld [vmem:[%s8195_s1 + $0x720] ss:$16 sps:$4 sm:$0xff]   ;;  %v5782_v0 = vld [vmem:[%s8195_s1 + $0x728] ss:$16 sps:$4 sm:$0xff]  }
  0xb3   : > { %1584 = vmatpush1.bf16.msra.mxu0 %v5693_v1  ;;  %1625 = vmatpush1.bf16.msra.mxu1 %v5696_v2  ;;  %v5787_v1 = vld [vmem:[%s8195_s1 + $0x744] ss:$16 sps:$4 sm:$0xff]   ;;  %v5790_v2 = vld [vmem:[%s8195_s1 + $0x74c] ss:$16 sps:$4 sm:$0xff]  }
  0xb4   : > { %1585 = vmatprep.subr.bf16.mxu0 %v5701_v3  ;;  %1626 = vmatprep.subr.bf16.mxu1 %v5704_v4  ;;  %v5785_v3 = vld [vmem:[%s8195_s1 + $0x740] ss:$16 sps:$4 sm:$0xff]   ;;  %v5788_v4 = vld [vmem:[%s8195_s1 + $0x748] ss:$16 sps:$4 sm:$0xff]  }
  0xb7   : > { %1586 = vmatpush1.bf16.msra.mxu0 %v5699_v46  ;;  %1627 = vmatpush1.bf16.msra.mxu1 %v5702_v5  ;;  %v5793_v46 = vld [vmem:[%s8195_s1 + $0x764] ss:$16 sps:$4 sm:$0xff]   ;;  %v5796_v5 = vld [vmem:[%s8195_s1 + $0x76c] ss:$16 sps:$4 sm:$0xff]  }
  0xb8   : > { %1587 = vmatprep.subr.bf16.mxu0 %v5707_v6  ;;  %1628 = vmatprep.subr.bf16.mxu1 %v5710_v7  ;;  %v5791_v6 = vld [vmem:[%s8195_s1 + $0x760] ss:$16 sps:$4 sm:$0xff]   ;;  %v5794_v7 = vld [vmem:[%s8195_s1 + $0x768] ss:$16 sps:$4 sm:$0xff]  }
  0xbb   : > { %1588 = vmatpush1.bf16.msra.mxu0 %v5705_v8  ;;  %1629 = vmatpush1.bf16.msra.mxu1 %v5708_v9  ;;  %v5799_v8 = vld [vmem:[%s8195_s1 + $0x784] ss:$16 sps:$4 sm:$0xff]   ;;  %v5802_v9 = vld [vmem:[%s8195_s1 + $0x78c] ss:$16 sps:$4 sm:$0xff]  }
  0xbc   : > { %1589 = vmatprep.subr.bf16.mxu0 %v5713_v10  ;;  %1630 = vmatprep.subr.bf16.mxu1 %v5716_v11  ;;  %v5797_v10 = vld [vmem:[%s8195_s1 + $0x780] ss:$16 sps:$4 sm:$0xff]   ;;  %v5800_v11 = vld [vmem:[%s8195_s1 + $0x788] ss:$16 sps:$4 sm:$0xff]  }
  0xbf   : > { %1590 = vmatpush1.bf16.msra.mxu0 %v5711_v12  ;;  %1631 = vmatpush1.bf16.msra.mxu1 %v5714_v13  ;;  %v5805_v12 = vld [vmem:[%s8195_s1 + $0x7a4] ss:$16 sps:$4 sm:$0xff]   ;;  %v5808_v13 = vld [vmem:[%s8195_s1 + $0x7ac] ss:$16 sps:$4 sm:$0xff]  }
  0xc0   : > { %1591 = vmatprep.subr.bf16.mxu0 %v5719_v14  ;;  %1632 = vmatprep.subr.bf16.mxu1 %v5722_v15  ;;  %v5803_v14 = vld [vmem:[%s8195_s1 + $0x7a0] ss:$16 sps:$4 sm:$0xff]   ;;  %v7141_v15 = vld [vmem:[%s6500_s30 + $0x8] sm:$0x77] }
  0xc3   : > { %1592 = vmatpush1.bf16.msra.mxu0 %v5717_v19  ;;  %1633 = vmatpush1.bf16.msra.mxu1 %v5720_v21  ;;  %v5811_v19 = vld [vmem:[%s8195_s1 + $0x7c4] ss:$16 sps:$4 sm:$0xff]   ;;  %v5814_v21 = vld [vmem:[%s8195_s1 + $0x7cc] ss:$16 sps:$4 sm:$0xff]  }
  0xc4   : > { %2045 = vmatprep.subr.bf16.mxu0 %v5727_v22  ;;  %2086 = vmatprep.subr.bf16.mxu1 %v5730_v29  ;;  %v5018_v22 = vcombine.high %v6960_v16, %v7141_v15  ;;  %v5809_v29 = vld [vmem:[%s8195_s1 + $0x7c0] ss:$16 sps:$4 sm:$0xff]  }
  0xc6   : > { %1594 = vmatmul.mubr.bf16.vlgmr.msra.gmra.mrb[0].mxu0 %v1237_v23  ;;  %1635 = vmatmul.mubr.bf16.vlgmr.msra.gmra.mrb[0].mxu1 %v1237_v23  ;;  %v5817_v23 = vld [vmem:[%s8195_s1 + $0x7e4] ss:$16 sps:$4 sm:$0xff]  }
  0xc7   : > { %2046 = vmatpush1.bf16.msra.mxu0 %v5725_v24  ;;  %2087 = vmatpush1.bf16.msra.mxu1 %v5728_v25  ;;  %v5820_v24 = vld [vmem:[%s8195_s1 + $0x7ec] ss:$16 sps:$4 sm:$0xff]   ;;  %v2210_v25 = vshrl.u32 %v5018_v22, 16 }
  0xc8   : > { %2047 = vmatprep.subr.bf16.mxu0 %v5733_v26  ;;  %2088 = vmatprep.subr.bf16.mxu1 %v5736_v27  ;;  %v2213_v26 = vshll.u32 %v5018_v22, 16  ;;  %v5815_v27 = vld [vmem:[%s8195_s1 + $0x7e0] ss:$16 sps:$4 sm:$0xff]   ;;  %v5897_v22 = vld [vmem:[%s8195_s1 + $0x984] ss:$16 sps:$4 sm:$0xff]  }
  0xc9   : > { %2077 = vmatprep.mubr.bf16.mxu0 %v1722_v28  ;;  %2118 = vmatprep.mubr.bf16.mxu1 %v1722_v28  ;;  %v4951_v28 = vcombine.low %v6960_v16, %v6965_v18  ;;  %v5823_v18 = vld [vmem:[%s8195_s1 + $0x800] ss:$16 sps:$4 sm:$0xff]  }
  0xcb   : > { %2048 = vmatpush1.bf16.msra.mxu0 %v5731_v30  ;;  %2089 = vmatpush1.bf16.msra.mxu1 %v5734_v31  ;;  %v5818_v30 = vld [vmem:[%s8195_s1 + $0x7e8] ss:$16 sps:$4 sm:$0xff]   ;;  %v5825_v31 = vld [vmem:[%s8195_s1 + $0x804] ss:$16 sps:$4 sm:$0xff]  }
  0xcc   : > { %2049 = vmatprep.subr.bf16.mxu0 %v5739_v32  ;;  %2090 = vmatprep.subr.bf16.mxu1 %v5742_v33  ;;  %v5828_v32 = vld [vmem:[%s8195_s1 + $0x80c] ss:$16 sps:$4 sm:$0xff]   ;;  %v2212_v33 = vrot.slane %v2210_v25, 2 }
  0xcd   : > { %v5906_v25 = vld [vmem:[%s8195_s1 + $0x9ac] ss:$16 sps:$4 sm:$0xff]  }
  0xcf   : > { %2050 = vmatpush1.bf16.msra.mxu0 %v5737_v34  ;;  %2091 = vmatpush1.bf16.msra.mxu1 %v5740_v35  ;;  %v2215_v34 = vrot.slane %v2213_v26, 3  ;;  %v1721_v35 = vrot.slane %v4951_v28, 2  ;;  %v5017_v26 = vcombine.low %v6960_v16, %v7141_v15  ;;  %v5904_v28 = vld [vmem:[%s8195_s1 + $0x9a8] ss:$16 sps:$4 sm:$0xff]   ;;  %v5912_v16 = vld [vmem:[%s8195_s1 + $0x9cc] ss:$16 sps:$4 sm:$0xff]  }
  0xd0   : > { %2051 = vmatprep.subr.bf16.mxu0 %v5745_v36  ;;  %2092 = vmatprep.subr.bf16.mxu1 %v5748_v37  ;;  %v5826_v36 = vld [vmem:[%s8195_s1 + $0x808] ss:$16 sps:$4 sm:$0xff]   ;;  %v5831_v37 = vld [vmem:[%s8195_s1 + $0x824] ss:$16 sps:$4 sm:$0xff]  }
  0xd3   : > { %2052 = vmatpush1.bf16.msra.mxu0 %v5743_v38  ;;  %2093 = vmatpush1.bf16.msra.mxu1 %v5746_v39  ;;  %v5834_v38 = vld [vmem:[%s8195_s1 + $0x82c] ss:$16 sps:$4 sm:$0xff]   ;;  %v2216_v39 = vor.u32 %v2215_v34, %v2212_v33  ;;  %v2205_v33 = vshll.u32 %v5017_v26, 16  ;;  %v5910_v34 = vld [vmem:[%s8195_s1 + $0x9c8] ss:$16 sps:$4 sm:$0xff]  }
  0xd4   : > { %2053 = vmatprep.subr.bf16.mxu0 %v5751_v40  ;;  %2094 = vmatprep.subr.bf16.mxu1 %v5754_v41  ;;  %v5829_v40 = vld [vmem:[%s8195_s1 + $0x820] ss:$16 sps:$4 sm:$0xff]   ;;  %v5832_v41 = vld [vmem:[%s8195_s1 + $0x828] ss:$16 sps:$4 sm:$0xff]  }
  0xd7   : > { %2054 = vmatpush1.bf16.msra.mxu0 %v5749_v42  ;;  %2095 = vmatpush1.bf16.msra.mxu1 %v5752_v43  ;;  %v5837_v42 = vld [vmem:[%s8195_s1 + $0x844] ss:$16 sps:$4 sm:$0xff]   ;;  %v5840_v43 = vld [vmem:[%s8195_s1 + $0x84c] ss:$16 sps:$4 sm:$0xff]  }
  0xd8   : > { %2055 = vmatprep.subr.bf16.mxu0 %v5757_v44  ;;  %2096 = vmatprep.subr.bf16.mxu1 %v5760_v45  ;;  %v5835_v44 = vld [vmem:[%s8195_s1 + $0x840] ss:$16 sps:$4 sm:$0xff]   ;;  %v5838_v45 = vld [vmem:[%s8195_s1 + $0x848] ss:$16 sps:$4 sm:$0xff]  }
  0xdb   : > { %2056 = vmatpush1.bf16.msra.mxu0 %v5755_v47  ;;  %2097 = vmatpush1.bf16.msra.mxu1 %v5758_v48  ;;  %v5843_v47 = vld [vmem:[%s8195_s1 + $0x864] ss:$16 sps:$4 sm:$0xff]   ;;  %v5846_v48 = vld [vmem:[%s8195_s1 + $0x86c] ss:$16 sps:$4 sm:$0xff]  }
  0xdc   : > { %2057 = vmatprep.subr.bf16.mxu0 %v5763_v49  ;;  %2098 = vmatprep.subr.bf16.mxu1 %v5766_v50  ;;  %v5841_v49 = vld [vmem:[%s8195_s1 + $0x860] ss:$16 sps:$4 sm:$0xff]   ;;  %v5844_v50 = vld [vmem:[%s8195_s1 + $0x868] ss:$16 sps:$4 sm:$0xff]  }
  0xdf   : > { %2058 = vmatpush1.bf16.msra.mxu0 %v5761_v51  ;;  %2099 = vmatpush1.bf16.msra.mxu1 %v5764_v52  ;;  %v5849_v51 = vld [vmem:[%s8195_s1 + $0x884] ss:$16 sps:$4 sm:$0xff]   ;;  %v5852_v52 = vld [vmem:[%s8195_s1 + $0x88c] ss:$16 sps:$4 sm:$0xff]  }
  0xe0   : > { %2059 = vmatprep.subr.bf16.mxu0 %v5769_v53  ;;  %2100 = vmatprep.subr.bf16.mxu1 %v5772_v54  ;;  %v5847_v53 = vld [vmem:[%s8195_s1 + $0x880] ss:$16 sps:$4 sm:$0xff]   ;;  %v5850_v54 = vld [vmem:[%s8195_s1 + $0x888] ss:$16 sps:$4 sm:$0xff]  }
  0xe3   : > { %2060 = vmatpush1.bf16.msra.mxu0 %v5767_v55  ;;  %2101 = vmatpush1.bf16.msra.mxu1 %v5770_v56  ;;  %v5855_v55 = vld [vmem:[%s8195_s1 + $0x8a4] ss:$16 sps:$4 sm:$0xff]   ;;  %v5858_v56 = vld [vmem:[%s8195_s1 + $0x8ac] ss:$16 sps:$4 sm:$0xff]  }
  0xe4   : > { %2061 = vmatprep.subr.bf16.mxu0 %v5775_v57  ;;  %2102 = vmatprep.subr.bf16.mxu1 %v5778_v58  ;;  %v5853_v57 = vld [vmem:[%s8195_s1 + $0x8a0] ss:$16 sps:$4 sm:$0xff]   ;;  %v5856_v58 = vld [vmem:[%s8195_s1 + $0x8a8] ss:$16 sps:$4 sm:$0xff]  }
  0xe7   : > { %2062 = vmatpush1.bf16.msra.mxu0 %v5773_v59  ;;  %2103 = vmatpush1.bf16.msra.mxu1 %v5776_v60  ;;  %v5861_v59 = vld [vmem:[%s8195_s1 + $0x8c4] ss:$16 sps:$4 sm:$0xff]   ;;  %v5864_v60 = vld [vmem:[%s8195_s1 + $0x8cc] ss:$16 sps:$4 sm:$0xff]  }
  0xe8   : > { %2063 = vmatprep.subr.bf16.mxu0 %v5781_v61  ;;  %2104 = vmatprep.subr.bf16.mxu1 %v5784_v62  ;;  %v5859_v61 = vld [vmem:[%s8195_s1 + $0x8c0] ss:$16 sps:$4 sm:$0xff]   ;;  %v5862_v62 = vld [vmem:[%s8195_s1 + $0x8c8] ss:$16 sps:$4 sm:$0xff]  }
  0xeb   : > { %2064 = vmatpush1.bf16.msra.mxu0 %v5779_v63  ;;  %2105 = vmatpush1.bf16.msra.mxu1 %v5782_v0  ;;  %v5867_v63 = vld [vmem:[%s8195_s1 + $0x8e4] ss:$16 sps:$4 sm:$0xff]   ;;  %v5870_v0 = vld [vmem:[%s8195_s1 + $0x8ec] ss:$16 sps:$4 sm:$0xff]  }
  0xec   : > { %2065 = vmatprep.subr.bf16.mxu0 %v5787_v1  ;;  %2106 = vmatprep.subr.bf16.mxu1 %v5790_v2  ;;  %v5865_v1 = vld [vmem:[%s8195_s1 + $0x8e0] ss:$16 sps:$4 sm:$0xff]   ;;  %v5868_v2 = vld [vmem:[%s8195_s1 + $0x8e8] ss:$16 sps:$4 sm:$0xff]  }
  0xef   : > { %2066 = vmatpush1.bf16.msra.mxu0 %v5785_v3  ;;  %2107 = vmatpush1.bf16.msra.mxu1 %v5788_v4  ;;  %v5873_v3 = vld [vmem:[%s8195_s1 + $0x904] ss:$16 sps:$4 sm:$0xff]   ;;  %v5876_v4 = vld [vmem:[%s8195_s1 + $0x90c] ss:$16 sps:$4 sm:$0xff]  }
  0xf0   : > { %2067 = vmatprep.subr.bf16.mxu0 %v5793_v46  ;;  %2108 = vmatprep.subr.bf16.mxu1 %v5796_v5  ;;  %v5871_v46 = vld [vmem:[%s8195_s1 + $0x900] ss:$16 sps:$4 sm:$0xff]   ;;  %v5874_v5 = vld [vmem:[%s8195_s1 + $0x908] ss:$16 sps:$4 sm:$0xff]  }
  0xf3   : > { %2068 = vmatpush1.bf16.msra.mxu0 %v5791_v6  ;;  %2109 = vmatpush1.bf16.msra.mxu1 %v5794_v7  ;;  %v5879_v6 = vld [vmem:[%s8195_s1 + $0x924] ss:$16 sps:$4 sm:$0xff]   ;;  %v5882_v7 = vld [vmem:[%s8195_s1 + $0x92c] ss:$16 sps:$4 sm:$0xff]  }
  0xf4   : > { %2069 = vmatprep.subr.bf16.mxu0 %v5799_v8  ;;  %2110 = vmatprep.subr.bf16.mxu1 %v5802_v9  ;;  %v5877_v8 = vld [vmem:[%s8195_s1 + $0x920] ss:$16 sps:$4 sm:$0xff]   ;;  %v5880_v9 = vld [vmem:[%s8195_s1 + $0x928] ss:$16 sps:$4 sm:$0xff]  }
  0xf7   : > { %2070 = vmatpush1.bf16.msra.mxu0 %v5797_v10  ;;  %2111 = vmatpush1.bf16.msra.mxu1 %v5800_v11  ;;  %v5885_v10 = vld [vmem:[%s8195_s1 + $0x944] ss:$16 sps:$4 sm:$0xff]   ;;  %v5888_v11 = vld [vmem:[%s8195_s1 + $0x94c] ss:$16 sps:$4 sm:$0xff]  }
  0xf8   : > { %2071 = vmatprep.subr.bf16.mxu0 %v5805_v12  ;;  %2112 = vmatprep.subr.bf16.mxu1 %v5808_v13  ;;  %v5883_v12 = vld [vmem:[%s8195_s1 + $0x940] ss:$16 sps:$4 sm:$0xff]   ;;  %v5886_v13 = vld [vmem:[%s8195_s1 + $0x948] ss:$16 sps:$4 sm:$0xff]  }
  0xfb   : > { %2072 = vmatpush1.bf16.msra.mxu0 %v5803_v14  ;;  %2113 = vmatpush1.bf16.msra.mxu1 %v5806_v17  ;;  %v5891_v14 = vld [vmem:[%s8195_s1 + $0x964] ss:$16 sps:$4 sm:$0xff]   ;;  %v5894_v17 = vld [vmem:[%s8195_s1 + $0x96c] ss:$16 sps:$4 sm:$0xff]  }
  0xfc   : > { %2073 = vmatprep.subr.bf16.mxu0 %v5811_v19  ;;  %2114 = vmatprep.subr.bf16.mxu1 %v5814_v21  ;;  %v5889_v19 = vld [vmem:[%s8195_s1 + $0x960] ss:$16 sps:$4 sm:$0xff]   ;;  %v5892_v21 = vld [vmem:[%s8195_s1 + $0x968] ss:$16 sps:$4 sm:$0xff]  }
  0xff   : > { %2074 = vmatpush1.bf16.msra.mxu0 %v5809_v29  ;;  %2115 = vmatpush1.bf16.msra.mxu1 %v5812_v20  ;;  %v5900_v29 = vld [vmem:[%s8195_s1 + $0x98c] ss:$16 sps:$4 sm:$0xff]   ;;  %v5895_v20 = vld [vmem:[%s8195_s1 + $0x980] ss:$16 sps:$4 sm:$0xff]  }
 0x100   : > { %2075 = vmatprep.subr.bf16.mxu0 %v5817_v23  ;;  %2116 = vmatprep.subr.bf16.mxu1 %v5820_v24  ;;  %v5898_v23 = vld [vmem:[%s8195_s1 + $0x988] ss:$16 sps:$4 sm:$0xff]   ;;  %v5903_v24 = vld [vmem:[%s8195_s1 + $0x9a4] ss:$16 sps:$4 sm:$0xff]  }
 0x103   : > { %2076 = vmatpush1.bf16.msra.mxu0 %v5815_v27  ;;  %2117 = vmatpush1.bf16.msra.mxu1 %v5818_v30  ;;  %v5901_v27 = vld [vmem:[%s8195_s1 + $0x9a0] ss:$16 sps:$4 sm:$0xff]   ;;  %v5909_v30 = vld [vmem:[%s8195_s1 + $0x9c4] ss:$16 sps:$4 sm:$0xff]  }
 0x104   : > { %2539 = vmatprep.subr.bf16.mxu0 %v5825_v31  ;;  %2580 = vmatprep.subr.bf16.mxu1 %v5828_v32  ;;  %v5907_v31 = vld [vmem:[%s8195_s1 + $0x9c0] ss:$16 sps:$4 sm:$0xff]   ;;  %v2202_v32 = vshrl.u32 %v5017_v26, 16  ;;  %v5992_v26 = vld [vmem:[%s8195_s1 + $0xb6c] ss:$16 sps:$4 sm:$0xff]  }
 0x106   : > { %2078 = vmatmul.mubr.bf16.vlgmr.msra.gmra.mrb[0].mxu0 %v1721_v35  ;;  %2119 = vmatmul.mubr.bf16.vlgmr.msra.gmra.mrb[0].mxu1 %v1721_v35  ;;  %v5915_v35 = vld [vmem:[%s8195_s1 + $0x9e4] ss:$16 sps:$4 sm:$0xff]  }
 0x107   : > { %2540 = vmatpush1.bf16.msra.mxu0 %v5823_v18  ;;  %2581 = vmatpush1.bf16.msra.mxu1 %v5826_v36  ;;  %v5918_v18 = vld [vmem:[%s8195_s1 + $0x9ec] ss:$16 sps:$4 sm:$0xff]   ;;  %v7363_v36 = vld [vmem:[%s6500_s30] sm:$0x88] }
 0x108   : > { %2541 = vmatprep.subr.bf16.mxu0 %v5831_v37  ;;  %2582 = vmatprep.subr.bf16.mxu1 %v5834_v38  ;;  %v2204_v37 = vrot.slane %v2202_v32, 2  ;;  %v2207_v38 = vrot.slane %v2205_v33, 3  ;;  %v5996_v32 = vld [vmem:[%s8195_s1 + $0xb88] ss:$16 sps:$4 sm:$0xff]   ;;  %v6001_v33 = vld [vmem:[%s8195_s1 + $0xba4] ss:$16 sps:$4 sm:$0xff]  }
 0x109   : > { %2571 = vmatprep.mubr.bf16.mxu0 %v2216_v39  ;;  %2612 = vmatprep.mubr.bf16.mxu1 %v2216_v39  ;;  %v5913_v39 = vld [vmem:[%s8195_s1 + $0x9e0] ss:$16 sps:$4 sm:$0xff]  }
 0x10b   : > { %2542 = vmatpush1.bf16.msra.mxu0 %v5829_v40  ;;  %2583 = vmatpush1.bf16.msra.mxu1 %v5832_v41  ;;  %v5916_v40 = vld [vmem:[%s8195_s1 + $0x9e8] ss:$16 sps:$4 sm:$0xff]   ;;  %v5922_v41 = vld [vmem:[%s8195_s1 + $0xa04] ss:$16 sps:$4 sm:$0xff]  }
 0x10c   : > { %2543 = vmatprep.subr.bf16.mxu0 %v5837_v42  ;;  %2584 = vmatprep.subr.bf16.mxu1 %v5840_v43  ;;  %v5925_v42 = vld [vmem:[%s8195_s1 + $0xa0c] ss:$16 sps:$4 sm:$0xff]   ;;  %v5084_v43 = vcombine.high %v7363_v36, %v7141_v15 }
 0x10d   : > { %v5932_v15 = vld [vmem:[%s8195_s1 + $0xa2c] ss:$16 sps:$4 sm:$0xff]  }
 0x10f   : > { %2544 = vmatpush1.bf16.msra.mxu0 %v5835_v44  ;;  %2585 = vmatpush1.bf16.msra.mxu1 %v5838_v45  ;;  %v2208_v44 = vor.u32 %v2207_v38, %v2204_v37  ;;  %v5920_v45 = vld [vmem:[%s8195_s1 + $0xa00] ss:$16 sps:$4 sm:$0xff]   ;;  %v6007_v37 = vld [vmem:[%s8195_s1 + $0xbc4] ss:$16 sps:$4 sm:$0xff]   ;;  %v6010_v38 = vld [vmem:[%s8195_s1 + $0xbcc] ss:$16 sps:$4 sm:$0xff]  }
 0x110   : > { %2545 = vmatprep.subr.bf16.mxu0 %v5843_v47  ;;  %2586 = vmatprep.subr.bf16.mxu1 %v5846_v48  ;;  %v5923_v47 = vld [vmem:[%s8195_s1 + $0xa08] ss:$16 sps:$4 sm:$0xff]   ;;  %v5929_v48 = vld [vmem:[%s8195_s1 + $0xa24] ss:$16 sps:$4 sm:$0xff]  }
 0x113   : > { %2546 = vmatpush1.bf16.msra.mxu0 %v5841_v49  ;;  %2587 = vmatpush1.bf16.msra.mxu1 %v5844_v50  ;;  %v2696_v49 = vrot.slane %v5084_v43, 3  ;;  %v5927_v50 = vld [vmem:[%s8195_s1 + $0xa20] ss:$16 sps:$4 sm:$0xff]   ;;  %v6321_v43 = vld [vmem:[%s6500_s30 + $0x8] sm:$0x77] }
 0x114   : > { %2547 = vmatprep.subr.bf16.mxu0 %v5849_v51  ;;  %2588 = vmatprep.subr.bf16.mxu1 %v5852_v52  ;;  %v5930_v51 = vld [vmem:[%s8195_s1 + $0xa28] ss:$16 sps:$4 sm:$0xff]   ;;  %v5935_v52 = vld [vmem:[%s8195_s1 + $0xa44] ss:$16 sps:$4 sm:$0xff]  }
 0x117   : > { %2548 = vmatpush1.bf16.msra.mxu0 %v5847_v53  ;;  %2589 = vmatpush1.bf16.msra.mxu1 %v5850_v54  ;;  %v5938_v53 = vld [vmem:[%s8195_s1 + $0xa4c] ss:$16 sps:$4 sm:$0xff]   ;;  %v5933_v54 = vld [vmem:[%s8195_s1 + $0xa40] ss:$16 sps:$4 sm:$0xff]  }
 0x118   : > { %2549 = vmatprep.subr.bf16.mxu0 %v5855_v55  ;;  %2590 = vmatprep.subr.bf16.mxu1 %v5858_v56  ;;  %v5936_v55 = vld [vmem:[%s8195_s1 + $0xa48] ss:$16 sps:$4 sm:$0xff]   ;;  %v5941_v56 = vld [vmem:[%s8195_s1 + $0xa64] ss:$16 sps:$4 sm:$0xff]  }
 0x11b   : > { %2550 = vmatpush1.bf16.msra.mxu0 %v5853_v57  ;;  %2591 = vmatpush1.bf16.msra.mxu1 %v5856_v58  ;;  %v5944_v57 = vld [vmem:[%s8195_s1 + $0xa6c] ss:$16 sps:$4 sm:$0xff]   ;;  %v5939_v58 = vld [vmem:[%s8195_s1 + $0xa60] ss:$16 sps:$4 sm:$0xff]  }
 0x11c   : > { %2551 = vmatprep.subr.bf16.mxu0 %v5861_v59  ;;  %2592 = vmatprep.subr.bf16.mxu1 %v5864_v60  ;;  %v5942_v59 = vld [vmem:[%s8195_s1 + $0xa68] ss:$16 sps:$4 sm:$0xff]   ;;  %v5947_v60 = vld [vmem:[%s8195_s1 + $0xa84] ss:$16 sps:$4 sm:$0xff]  }
 0x11f   : > { %2552 = vmatpush1.bf16.msra.mxu0 %v5859_v61  ;;  %2593 = vmatpush1.bf16.msra.mxu1 %v5862_v62  ;;  %v5950_v61 = vld [vmem:[%s8195_s1 + $0xa8c] ss:$16 sps:$4 sm:$0xff]   ;;  %v5945_v62 = vld [vmem:[%s8195_s1 + $0xa80] ss:$16 sps:$4 sm:$0xff]  }
 0x120   : > { %2553 = vmatprep.subr.bf16.mxu0 %v5867_v63  ;;  %2594 = vmatprep.subr.bf16.mxu1 %v5870_v0  ;;  %v5948_v63 = vld [vmem:[%s8195_s1 + $0xa88] ss:$16 sps:$4 sm:$0xff]   ;;  %v5953_v0 = vld [vmem:[%s8195_s1 + $0xaa4] ss:$16 sps:$4 sm:$0xff]  }
 0x123   : > { %2554 = vmatpush1.bf16.msra.mxu0 %v5865_v1  ;;  %2595 = vmatpush1.bf16.msra.mxu1 %v5868_v2  ;;  %v5956_v1 = vld [vmem:[%s8195_s1 + $0xaac] ss:$16 sps:$4 sm:$0xff]   ;;  %v5951_v2 = vld [vmem:[%s8195_s1 + $0xaa0] ss:$16 sps:$4 sm:$0xff]  }
 0x124   : > { %2555 = vmatprep.subr.bf16.mxu0 %v5873_v3  ;;  %2596 = vmatprep.subr.bf16.mxu1 %v5876_v4  ;;  %v5954_v3 = vld [vmem:[%s8195_s1 + $0xaa8] ss:$16 sps:$4 sm:$0xff]   ;;  %v5959_v4 = vld [vmem:[%s8195_s1 + $0xac4] ss:$16 sps:$4 sm:$0xff]  }
 0x127   : > { %2556 = vmatpush1.bf16.msra.mxu0 %v5871_v46  ;;  %2597 = vmatpush1.bf16.msra.mxu1 %v5874_v5  ;;  %v5962_v46 = vld [vmem:[%s8195_s1 + $0xacc] ss:$16 sps:$4 sm:$0xff]   ;;  %v5957_v5 = vld [vmem:[%s8195_s1 + $0xac0] ss:$16 sps:$4 sm:$0xff]  }
 0x128   : > { %2557 = vmatprep.subr.bf16.mxu0 %v5879_v6  ;;  %2598 = vmatprep.subr.bf16.mxu1 %v5882_v7  ;;  %v5960_v6 = vld [vmem:[%s8195_s1 + $0xac8] ss:$16 sps:$4 sm:$0xff]   ;;  %v5965_v7 = vld [vmem:[%s8195_s1 + $0xae4] ss:$16 sps:$4 sm:$0xff]  }
 0x12b   : > { %2558 = vmatpush1.bf16.msra.mxu0 %v5877_v8  ;;  %2599 = vmatpush1.bf16.msra.mxu1 %v5880_v9  ;;  %v5968_v8 = vld [vmem:[%s8195_s1 + $0xaec] ss:$16 sps:$4 sm:$0xff]   ;;  %v5963_v9 = vld [vmem:[%s8195_s1 + $0xae0] ss:$16 sps:$4 sm:$0xff]  }
 0x12c   : > { %2559 = vmatprep.subr.bf16.mxu0 %v5885_v10  ;;  %2600 = vmatprep.subr.bf16.mxu1 %v5888_v11  ;;  %v5966_v10 = vld [vmem:[%s8195_s1 + $0xae8] ss:$16 sps:$4 sm:$0xff]   ;;  %v5971_v11 = vld [vmem:[%s8195_s1 + $0xb04] ss:$16 sps:$4 sm:$0xff]  }
 0x12f   : > { %2560 = vmatpush1.bf16.msra.mxu0 %v5883_v12  ;;  %2601 = vmatpush1.bf16.msra.mxu1 %v5886_v13  ;;  %v5974_v12 = vld [vmem:[%s8195_s1 + $0xb0c] ss:$16 sps:$4 sm:$0xff]   ;;  %v5969_v13 = vld [vmem:[%s8195_s1 + $0xb00] ss:$16 sps:$4 sm:$0xff]  }
 0x130   : > { %2561 = vmatprep.subr.bf16.mxu0 %v5891_v14  ;;  %2602 = vmatprep.subr.bf16.mxu1 %v5894_v17  ;;  %v5972_v14 = vld [vmem:[%s8195_s1 + $0xb08] ss:$16 sps:$4 sm:$0xff]   ;;  %v5977_v17 = vld [vmem:[%s8195_s1 + $0xb24] ss:$16 sps:$4 sm:$0xff]  }
 0x133   : > { %2562 = vmatpush1.bf16.msra.mxu0 %v5889_v19  ;;  %2603 = vmatpush1.bf16.msra.mxu1 %v5892_v21  ;;  %v5980_v19 = vld [vmem:[%s8195_s1 + $0xb2c] ss:$16 sps:$4 sm:$0xff]   ;;  %v5975_v21 = vld [vmem:[%s8195_s1 + $0xb20] ss:$16 sps:$4 sm:$0xff]  }
 0x134   : > { %2563 = vmatprep.subr.bf16.mxu0 %v5897_v22  ;;  %2604 = vmatprep.subr.bf16.mxu1 %v5900_v29  ;;  %v5978_v22 = vld [vmem:[%s8195_s1 + $0xb28] ss:$16 sps:$4 sm:$0xff]   ;;  %v5983_v29 = vld [vmem:[%s8195_s1 + $0xb44] ss:$16 sps:$4 sm:$0xff]  }
 0x137   : > { %2564 = vmatpush1.bf16.msra.mxu0 %v5895_v20  ;;  %2605 = vmatpush1.bf16.msra.mxu1 %v5898_v23  ;;  %v5986_v20 = vld [vmem:[%s8195_s1 + $0xb4c] ss:$16 sps:$4 sm:$0xff]   ;;  %v5981_v23 = vld [vmem:[%s8195_s1 + $0xb40] ss:$16 sps:$4 sm:$0xff]  }
 0x138   : > { %2565 = vmatprep.subr.bf16.mxu0 %v5903_v24  ;;  %2606 = vmatprep.subr.bf16.mxu1 %v5906_v25  ;;  %v5984_v24 = vld [vmem:[%s8195_s1 + $0xb48] ss:$16 sps:$4 sm:$0xff]   ;;  %v5989_v25 = vld [vmem:[%s8195_s1 + $0xb64] ss:$16 sps:$4 sm:$0xff]  }
 0x13b   : > { %2566 = vmatpush1.bf16.msra.mxu0 %v5901_v27  ;;  %2607 = vmatpush1.bf16.msra.mxu1 %v5904_v28  ;;  %v5987_v27 = vld [vmem:[%s8195_s1 + $0xb60] ss:$16 sps:$4 sm:$0xff]   ;;  %v5990_v28 = vld [vmem:[%s8195_s1 + $0xb68] ss:$16 sps:$4 sm:$0xff]  }
 0x13c   : > { %2567 = vmatprep.subr.bf16.mxu0 %v5909_v30  ;;  %2608 = vmatprep.subr.bf16.mxu1 %v5912_v16  ;;  %v5995_v30 = vld [vmem:[%s8195_s1 + $0xb84] ss:$16 sps:$4 sm:$0xff]   ;;  %v5998_v16 = vld [vmem:[%s8195_s1 + $0xb8c] ss:$16 sps:$4 sm:$0xff]  }
 0x13f   : > { %2568 = vmatpush1.bf16.msra.mxu0 %v5907_v31  ;;  %2609 = vmatpush1.bf16.msra.mxu1 %v5910_v34  ;;  %v5993_v31 = vld [vmem:[%s8195_s1 + $0xb80] ss:$16 sps:$4 sm:$0xff]   ;;  %v6004_v34 = vld [vmem:[%s8195_s1 + $0xbac] ss:$16 sps:$4 sm:$0xff]  }
 0x140   : > { %2569 = vmatprep.subr.bf16.mxu0 %v5915_v35  ;;  %2610 = vmatprep.subr.bf16.mxu1 %v5918_v18  ;;  %v5999_v35 = vld [vmem:[%s8195_s1 + $0xba0] ss:$16 sps:$4 sm:$0xff]   ;;  %v6002_v18 = vld [vmem:[%s8195_s1 + $0xba8] ss:$16 sps:$4 sm:$0xff]  }
 0x143   : > { %2570 = vmatpush1.bf16.msra.mxu0 %v5913_v39  ;;  %2611 = vmatpush1.bf16.msra.mxu1 %v5916_v40  ;;  %v6005_v39 = vld [vmem:[%s8195_s1 + $0xbc0] ss:$16 sps:$4 sm:$0xff]   ;;  %v6008_v40 = vld [vmem:[%s8195_s1 + $0xbc8] ss:$16 sps:$4 sm:$0xff]  }
 0x144   : > { %3019 = vmatprep.subr.bf16.mxu0 %v5922_v41  ;;  %3060 = vmatprep.subr.bf16.mxu1 %v5925_v42  ;;  %v6013_v41 = vld [vmem:[%s8195_s1 + $0xbe4] ss:$16 sps:$4 sm:$0xff]   ;;  %v6016_v42 = vld [vmem:[%s8195_s1 + $0xbec] ss:$16 sps:$4 sm:$0xff]  }
 0x146   : > { %2572 = vmatmul.mubr.bf16.vlgmr.msra.gmra.mrb[0].mxu0 %v2208_v44  ;;  %2613 = vmatmul.mubr.bf16.vlgmr.msra.gmra.mrb[0].mxu1 %v2208_v44  ;;  %v5083_v44 = vcombine.low %v7363_v36, %v6321_v43  ;;  %v6024_v36 = vld [vmem:[%s8195_s1 + $0xc0c] ss:$16 sps:$4 sm:$0xff]   ;;  %v6105_v43 = vld [vmem:[%s8195_s1 + $0xdc4] ss:$16 sps:$4 sm:$0xff]  }
 0x147   : > { %3020 = vmatpush1.bf16.msra.mxu0 %v5920_v45  ;;  %3061 = vmatpush1.bf16.msra.mxu1 %v5923_v47  ;;  %v6011_v45 = vld [vmem:[%s8195_s1 + $0xbe0] ss:$16 sps:$4 sm:$0xff]   ;;  %v6014_v47 = vld [vmem:[%s8195_s1 + $0xbe8] ss:$16 sps:$4 sm:$0xff]  }
 0x148   : > { %3021 = vmatprep.subr.bf16.mxu0 %v5929_v48  ;;  %3062 = vmatprep.subr.bf16.mxu1 %v5932_v15  ;;  %v6021_v48 = vld [vmem:[%s8195_s1 + $0xc04] ss:$16 sps:$4 sm:$0xff]   ;;  %v2695_v15 = vrot.slane %v5083_v44, 3  ;;  %v6108_v44 = vld [vmem:[%s8195_s1 + $0xdcc] ss:$16 sps:$4 sm:$0xff]  }
 0x149   : > { %3051 = vmatprep.mubr.bf16.mxu0 %v2696_v49  ;;  %3092 = vmatprep.mubr.bf16.mxu1 %v2696_v49  ;;  %v7574_v49 = vld [vmem:[%s6500_s30 + $0x8] sm:$0xff] }
 0x14b   : > { %3022 = vmatpush1.bf16.msra.mxu0 %v5927_v50  ;;  %3063 = vmatpush1.bf16.msra.mxu1 %v5930_v51  ;;  %v6019_v50 = vld [vmem:[%s8195_s1 + $0xc00] ss:$16 sps:$4 sm:$0xff]   ;;  %v6022_v51 = vld [vmem:[%s8195_s1 + $0xc08] ss:$16 sps:$4 sm:$0xff]  }
 0x14c   : > { %3023 = vmatprep.subr.bf16.mxu0 %v5935_v52  ;;  %3064 = vmatprep.subr.bf16.mxu1 %v5938_v53  ;;  %v6027_v52 = vld [vmem:[%s8195_s1 + $0xc24] ss:$16 sps:$4 sm:$0xff]   ;;  %v6030_v53 = vld [vmem:[%s8195_s1 + $0xc2c] ss:$16 sps:$4 sm:$0xff]  }
 0x14f   : > { %3024 = vmatpush1.bf16.msra.mxu0 %v5933_v54  ;;  %3065 = vmatpush1.bf16.msra.mxu1 %v5936_v55  ;;  %v5150_v54 = vcombine.high %v7574_v49, %v7574_v49  ;;  %v6025_v55 = vld [vmem:[%s8195_s1 + $0xc20] ss:$16 sps:$4 sm:$0xff]  }
 0x150   : > { %3025 = vmatprep.subr.bf16.mxu0 %v5941_v56  ;;  %3066 = vmatprep.subr.bf16.mxu1 %v5944_v57  ;;  %v6028_v56 = vld [vmem:[%s8195_s1 + $0xc28] ss:$16 sps:$4 sm:$0xff]   ;;  %v6033_v57 = vld [vmem:[%s8195_s1 + $0xc44] ss:$16 sps:$4 sm:$0xff]  }
 0x153   : > { %3026 = vmatpush1.bf16.msra.mxu0 %v5939_v58  ;;  %3067 = vmatpush1.bf16.msra.mxu1 %v5942_v59  ;;  %v6036_v58 = vld [vmem:[%s8195_s1 + $0xc4c] ss:$16 sps:$4 sm:$0xff]   ;;  %v6031_v59 = vld [vmem:[%s8195_s1 + $0xc40] ss:$16 sps:$4 sm:$0xff]  }
 0x154   : > { %3027 = vmatprep.subr.bf16.mxu0 %v5947_v60  ;;  %3068 = vmatprep.subr.bf16.mxu1 %v5950_v61  ;;  %v6034_v60 = vld [vmem:[%s8195_s1 + $0xc48] ss:$16 sps:$4 sm:$0xff]   ;;  %v6039_v61 = vld [vmem:[%s8195_s1 + $0xc64] ss:$16 sps:$4 sm:$0xff]  }
 0x157   : > { %3028 = vmatpush1.bf16.msra.mxu0 %v5945_v62  ;;  %3069 = vmatpush1.bf16.msra.mxu1 %v5948_v63  ;;  %v6042_v62 = vld [vmem:[%s8195_s1 + $0xc6c] ss:$16 sps:$4 sm:$0xff]   ;;  %v6037_v63 = vld [vmem:[%s8195_s1 + $0xc60] ss:$16 sps:$4 sm:$0xff]  }
 0x158   : > { %3029 = vmatprep.subr.bf16.mxu0 %v5953_v0  ;;  %3070 = vmatprep.subr.bf16.mxu1 %v5956_v1  ;;  %v6040_v0 = vld [vmem:[%s8195_s1 + $0xc68] ss:$16 sps:$4 sm:$0xff]   ;;  %v6045_v1 = vld [vmem:[%s8195_s1 + $0xc84] ss:$16 sps:$4 sm:$0xff]  }
 0x15b   : > { %3030 = vmatpush1.bf16.msra.mxu0 %v5951_v2  ;;  %3071 = vmatpush1.bf16.msra.mxu1 %v5954_v3  ;;  %v6048_v2 = vld [vmem:[%s8195_s1 + $0xc8c] ss:$16 sps:$4 sm:$0xff]   ;;  %v6043_v3 = vld [vmem:[%s8195_s1 + $0xc80] ss:$16 sps:$4 sm:$0xff]  }
 0x15c   : > { %3031 = vmatprep.subr.bf16.mxu0 %v5959_v4  ;;  %3072 = vmatprep.subr.bf16.mxu1 %v5962_v46  ;;  %v6046_v4 = vld [vmem:[%s8195_s1 + $0xc88] ss:$16 sps:$4 sm:$0xff]   ;;  %v6051_v46 = vld [vmem:[%s8195_s1 + $0xca4] ss:$16 sps:$4 sm:$0xff]  }
 0x15f   : > { %3032 = vmatpush1.bf16.msra.mxu0 %v5957_v5  ;;  %3073 = vmatpush1.bf16.msra.mxu1 %v5960_v6  ;;  %v6054_v5 = vld [vmem:[%s8195_s1 + $0xcac] ss:$16 sps:$4 sm:$0xff]   ;;  %v6049_v6 = vld [vmem:[%s8195_s1 + $0xca0] ss:$16 sps:$4 sm:$0xff]  }
 0x160   : > { %3033 = vmatprep.subr.bf16.mxu0 %v5965_v7  ;;  %3074 = vmatprep.subr.bf16.mxu1 %v5968_v8  ;;  %v6052_v7 = vld [vmem:[%s8195_s1 + $0xca8] ss:$16 sps:$4 sm:$0xff]   ;;  %v6057_v8 = vld [vmem:[%s8195_s1 + $0xcc4] ss:$16 sps:$4 sm:$0xff]  }
 0x163   : > { %3034 = vmatpush1.bf16.msra.mxu0 %v5963_v9  ;;  %3075 = vmatpush1.bf16.msra.mxu1 %v5966_v10  ;;  %v6060_v9 = vld [vmem:[%s8195_s1 + $0xccc] ss:$16 sps:$4 sm:$0xff]   ;;  %v6055_v10 = vld [vmem:[%s8195_s1 + $0xcc0] ss:$16 sps:$4 sm:$0xff]  }
 0x164   : > { %3035 = vmatprep.subr.bf16.mxu0 %v5971_v11  ;;  %3076 = vmatprep.subr.bf16.mxu1 %v5974_v12  ;;  %v6058_v11 = vld [vmem:[%s8195_s1 + $0xcc8] ss:$16 sps:$4 sm:$0xff]   ;;  %v6063_v12 = vld [vmem:[%s8195_s1 + $0xce4] ss:$16 sps:$4 sm:$0xff]  }
 0x167   : > { %3036 = vmatpush1.bf16.msra.mxu0 %v5969_v13  ;;  %3077 = vmatpush1.bf16.msra.mxu1 %v5972_v14  ;;  %v6066_v13 = vld [vmem:[%s8195_s1 + $0xcec] ss:$16 sps:$4 sm:$0xff]   ;;  %v6061_v14 = vld [vmem:[%s8195_s1 + $0xce0] ss:$16 sps:$4 sm:$0xff]  }
 0x168   : > { %3037 = vmatprep.subr.bf16.mxu0 %v5977_v17  ;;  %3078 = vmatprep.subr.bf16.mxu1 %v5980_v19  ;;  %v6064_v17 = vld [vmem:[%s8195_s1 + $0xce8] ss:$16 sps:$4 sm:$0xff]   ;;  %v6069_v19 = vld [vmem:[%s8195_s1 + $0xd04] ss:$16 sps:$4 sm:$0xff]  }
 0x16b   : > { %3038 = vmatpush1.bf16.msra.mxu0 %v5975_v21  ;;  %3079 = vmatpush1.bf16.msra.mxu1 %v5978_v22  ;;  %v6072_v21 = vld [vmem:[%s8195_s1 + $0xd0c] ss:$16 sps:$4 sm:$0xff]   ;;  %v6067_v22 = vld [vmem:[%s8195_s1 + $0xd00] ss:$16 sps:$4 sm:$0xff]  }
 0x16c   : > { %3039 = vmatprep.subr.bf16.mxu0 %v5983_v29  ;;  %3080 = vmatprep.subr.bf16.mxu1 %v5986_v20  ;;  %v6070_v29 = vld [vmem:[%s8195_s1 + $0xd08] ss:$16 sps:$4 sm:$0xff]   ;;  %v6075_v20 = vld [vmem:[%s8195_s1 + $0xd24] ss:$16 sps:$4 sm:$0xff]  }
 0x16f   : > { %3040 = vmatpush1.bf16.msra.mxu0 %v5981_v23  ;;  %3081 = vmatpush1.bf16.msra.mxu1 %v5984_v24  ;;  %v6078_v23 = vld [vmem:[%s8195_s1 + $0xd2c] ss:$16 sps:$4 sm:$0xff]   ;;  %v6073_v24 = vld [vmem:[%s8195_s1 + $0xd20] ss:$16 sps:$4 sm:$0xff]  }
 0x170   : > { %3041 = vmatprep.subr.bf16.mxu0 %v5989_v25  ;;  %3082 = vmatprep.subr.bf16.mxu1 %v5992_v26  ;;  %v6076_v25 = vld [vmem:[%s8195_s1 + $0xd28] ss:$16 sps:$4 sm:$0xff]   ;;  %v6081_v26 = vld [vmem:[%s8195_s1 + $0xd44] ss:$16 sps:$4 sm:$0xff]  }
 0x173   : > { %3042 = vmatpush1.bf16.msra.mxu0 %v5987_v27  ;;  %3083 = vmatpush1.bf16.msra.mxu1 %v5990_v28  ;;  %v6084_v27 = vld [vmem:[%s8195_s1 + $0xd4c] ss:$16 sps:$4 sm:$0xff]   ;;  %v6079_v28 = vld [vmem:[%s8195_s1 + $0xd40] ss:$16 sps:$4 sm:$0xff]  }
 0x174   : > { %3043 = vmatprep.subr.bf16.mxu0 %v5995_v30  ;;  %3084 = vmatprep.subr.bf16.mxu1 %v5998_v16  ;;  %v6082_v30 = vld [vmem:[%s8195_s1 + $0xd48] ss:$16 sps:$4 sm:$0xff]   ;;  %v6087_v16 = vld [vmem:[%s8195_s1 + $0xd64] ss:$16 sps:$4 sm:$0xff]  }
 0x177   : > { %3044 = vmatpush1.bf16.msra.mxu0 %v5993_v31  ;;  %3085 = vmatpush1.bf16.msra.mxu1 %v5996_v32  ;;  %v6090_v31 = vld [vmem:[%s8195_s1 + $0xd6c] ss:$16 sps:$4 sm:$0xff]   ;;  %v6085_v32 = vld [vmem:[%s8195_s1 + $0xd60] ss:$16 sps:$4 sm:$0xff]  }
 0x178   : > { %3045 = vmatprep.subr.bf16.mxu0 %v6001_v33  ;;  %3086 = vmatprep.subr.bf16.mxu1 %v6004_v34  ;;  %v6088_v33 = vld [vmem:[%s8195_s1 + $0xd68] ss:$16 sps:$4 sm:$0xff]   ;;  %v6093_v34 = vld [vmem:[%s8195_s1 + $0xd84] ss:$16 sps:$4 sm:$0xff]  }
 0x17b   : > { %3046 = vmatpush1.bf16.msra.mxu0 %v5999_v35  ;;  %3087 = vmatpush1.bf16.msra.mxu1 %v6002_v18  ;;  %v6096_v35 = vld [vmem:[%s8195_s1 + $0xd8c] ss:$16 sps:$4 sm:$0xff]   ;;  %v6091_v18 = vld [vmem:[%s8195_s1 + $0xd80] ss:$16 sps:$4 sm:$0xff]  }
 0x17c   : > { %3047 = vmatprep.subr.bf16.mxu0 %v6007_v37  ;;  %3088 = vmatprep.subr.bf16.mxu1 %v6010_v38  ;;  %v6094_v37 = vld [vmem:[%s8195_s1 + $0xd88] ss:$16 sps:$4 sm:$0xff]   ;;  %v6099_v38 = vld [vmem:[%s8195_s1 + $0xda4] ss:$16 sps:$4 sm:$0xff]  }
 0x17f   : > { %3048 = vmatpush1.bf16.msra.mxu0 %v6005_v39  ;;  %3089 = vmatpush1.bf16.msra.mxu1 %v6008_v40  ;;  %v6102_v39 = vld [vmem:[%s8195_s1 + $0xdac] ss:$16 sps:$4 sm:$0xff]   ;;  %v7735_v40 = vld [vmem:[%s6500_s30 + $0x10] sm:$0x11] }
 0x180   : > { %3049 = vmatprep.subr.bf16.mxu0 %v6013_v41  ;;  %3090 = vmatprep.subr.bf16.mxu1 %v6016_v42  ;;  %v6097_v41 = vld [vmem:[%s8195_s1 + $0xda0] ss:$16 sps:$4 sm:$0xff]   ;;  %v6100_v42 = vld [vmem:[%s8195_s1 + $0xda8] ss:$16 sps:$4 sm:$0xff]  }
 0x183   : > { %3050 = vmatpush1.bf16.msra.mxu0 %v6011_v45  ;;  %3091 = vmatpush1.bf16.msra.mxu1 %v6014_v47  ;;  %v5216_v45 = vcombine.high %v7574_v49, %v7735_v40  ;;  %v6103_v47 = vld [vmem:[%s8195_s1 + $0xdc0] ss:$16 sps:$4 sm:$0xff]  }
 0x184   : > { %3497 = vmatprep.subr.bf16.mxu0 %v6021_v48  ;;  %3538 = vmatprep.subr.bf16.mxu1 %v6024_v36  ;;  %v6106_v48 = vld [vmem:[%s8195_s1 + $0xdc8] ss:$16 sps:$4 sm:$0xff]   ;;  %v6111_v36 = vld [vmem:[%s8195_s1 + $0xde4] ss:$16 sps:$4 sm:$0xff]  }
 0x186   : > { %3052 = vmatmul.mubr.bf16.vlgmr.msra.gmra.mrb[0].mxu0 %v2695_v15  ;;  %3093 = vmatmul.mubr.bf16.vlgmr.msra.gmra.mrb[0].mxu1 %v2695_v15  ;;  %v6114_v15 = vld [vmem:[%s8195_s1 + $0xdec] ss:$16 sps:$4 sm:$0xff]  }
 0x187   : > { %3498 = vmatpush1.bf16.msra.mxu0 %v6019_v50  ;;  %3539 = vmatpush1.bf16.msra.mxu1 %v6022_v51  ;;  %v3667_v50 = vshll.u32 %v5216_v45, 16  ;;  %v6109_v51 = vld [vmem:[%s8195_s1 + $0xde0] ss:$16 sps:$4 sm:$0xff]  }
 0x188   : > { %3499 = vmatprep.subr.bf16.mxu0 %v6027_v52  ;;  %3540 = vmatprep.subr.bf16.mxu1 %v6030_v53  ;;  %v6112_v52 = vld [vmem:[%s8195_s1 + $0xde8] ss:$16 sps:$4 sm:$0xff]   ;;  %v6119_v53 = vld [vmem:[%s8195_s1 + $0xe04] ss:$16 sps:$4 sm:$0xff]  }
 0x189   : > { %3529 = vmatprep.mubr.bf16.mxu0 %v5150_v54  ;;  %3570 = vmatprep.mubr.bf16.mxu1 %v5150_v54  ;;  %v6122_v54 = vld [vmem:[%s8195_s1 + $0xe0c] ss:$16 sps:$4 sm:$0xff]  }
 0x18b   : > { %3500 = vmatpush1.bf16.msra.mxu0 %v6025_v55  ;;  %3541 = vmatpush1.bf16.msra.mxu1 %v6028_v56  ;;  %v3665_v55 = vshrl.u32 %v5216_v45, 16  ;;  %v3669_v56 = vrot.slane %v3667_v50, 1  ;;  %v6189_v45 = vld [vmem:[%s8195_s1 + $0xf80] ss:$16 sps:$4 sm:$0xff]  }
 0x18c   : > { %3501 = vmatprep.subr.bf16.mxu0 %v6033_v57  ;;  %3542 = vmatprep.subr.bf16.mxu1 %v6036_v58  ;;  %v5149_v57 = vcombine.low %v7574_v49, %v7574_v49  ;;  %v6117_v58 = vld [vmem:[%s8195_s1 + $0xe00] ss:$16 sps:$4 sm:$0xff]  }
 0x18d   : > { %v6195_v50 = vld [vmem:[%s8195_s1 + $0xfa0] ss:$16 sps:$4 sm:$0xff]  }
 0x18f   : > { %3502 = vmatpush1.bf16.msra.mxu0 %v6031_v59  ;;  %3543 = vmatpush1.bf16.msra.mxu1 %v6034_v60  ;;  %v6120_v59 = vld [vmem:[%s8195_s1 + $0xe08] ss:$16 sps:$4 sm:$0xff]   ;;  %v6125_v60 = vld [vmem:[%s8195_s1 + $0xe24] ss:$16 sps:$4 sm:$0xff]  }
 0x190   : > { %3503 = vmatprep.subr.bf16.mxu0 %v6039_v61  ;;  %3544 = vmatprep.subr.bf16.mxu1 %v6042_v62  ;;  %v6128_v61 = vld [vmem:[%s8195_s1 + $0xe2c] ss:$16 sps:$4 sm:$0xff]   ;;  %v3670_v62 = vor.u32 %v3669_v56, %v3665_v55  ;;  %v6204_v55 = vld [vmem:[%s8195_s1 + $0xfc8] ss:$16 sps:$4 sm:$0xff]   ;;  %v6209_v56 = vld [vmem:[%s8195_s1 + $0xfe4] ss:$16 sps:$4 sm:$0xff]  }
 0x193   : > { %3504 = vmatpush1.bf16.msra.mxu0 %v6037_v63  ;;  %3545 = vmatpush1.bf16.msra.mxu1 %v6040_v0  ;;  %v6123_v63 = vld [vmem:[%s8195_s1 + $0xe20] ss:$16 sps:$4 sm:$0xff]   ;;  %v6126_v0 = vld [vmem:[%s8195_s1 + $0xe28] ss:$16 sps:$4 sm:$0xff]  }
 0x194   : > { %3505 = vmatprep.subr.bf16.mxu0 %v6045_v1  ;;  %3546 = vmatprep.subr.bf16.mxu1 %v6048_v2  ;;  %v6131_v1 = vld [vmem:[%s8195_s1 + $0xe44] ss:$16 sps:$4 sm:$0xff]   ;;  %v6134_v2 = vld [vmem:[%s8195_s1 + $0xe4c] ss:$16 sps:$4 sm:$0xff]  }
 0x197   : > { %3506 = vmatpush1.bf16.msra.mxu0 %v6043_v3  ;;  %3547 = vmatpush1.bf16.msra.mxu1 %v6046_v4  ;;  %v6129_v3 = vld [vmem:[%s8195_s1 + $0xe40] ss:$16 sps:$4 sm:$0xff]   ;;  %v6132_v4 = vld [vmem:[%s8195_s1 + $0xe48] ss:$16 sps:$4 sm:$0xff]  }
 0x198   : > { %3507 = vmatprep.subr.bf16.mxu0 %v6051_v46  ;;  %3548 = vmatprep.subr.bf16.mxu1 %v6054_v5  ;;  %v6137_v46 = vld [vmem:[%s8195_s1 + $0xe64] ss:$16 sps:$4 sm:$0xff]   ;;  %v6140_v5 = vld [vmem:[%s8195_s1 + $0xe6c] ss:$16 sps:$4 sm:$0xff]  }
 0x19b   : > { %3508 = vmatpush1.bf16.msra.mxu0 %v6049_v6  ;;  %3549 = vmatpush1.bf16.msra.mxu1 %v6052_v7  ;;  %v6135_v6 = vld [vmem:[%s8195_s1 + $0xe60] ss:$16 sps:$4 sm:$0xff]   ;;  %v6138_v7 = vld [vmem:[%s8195_s1 + $0xe68] ss:$16 sps:$4 sm:$0xff]  }
 0x19c   : > { %3509 = vmatprep.subr.bf16.mxu0 %v6057_v8  ;;  %3550 = vmatprep.subr.bf16.mxu1 %v6060_v9  ;;  %v6143_v8 = vld [vmem:[%s8195_s1 + $0xe84] ss:$16 sps:$4 sm:$0xff]   ;;  %v6146_v9 = vld [vmem:[%s8195_s1 + $0xe8c] ss:$16 sps:$4 sm:$0xff]  }
 0x19f   : > { %3510 = vmatpush1.bf16.msra.mxu0 %v6055_v10  ;;  %3551 = vmatpush1.bf16.msra.mxu1 %v6058_v11  ;;  %v6141_v10 = vld [vmem:[%s8195_s1 + $0xe80] ss:$16 sps:$4 sm:$0xff]   ;;  %v6144_v11 = vld [vmem:[%s8195_s1 + $0xe88] ss:$16 sps:$4 sm:$0xff]  }
 0x1a0   : > { %3511 = vmatprep.subr.bf16.mxu0 %v6063_v12  ;;  %3552 = vmatprep.subr.bf16.mxu1 %v6066_v13  ;;  %v6149_v12 = vld [vmem:[%s8195_s1 + $0xea4] ss:$16 sps:$4 sm:$0xff]   ;;  %v6152_v13 = vld [vmem:[%s8195_s1 + $0xeac] ss:$16 sps:$4 sm:$0xff]  }
 0x1a3   : > { %3512 = vmatpush1.bf16.msra.mxu0 %v6061_v14  ;;  %3553 = vmatpush1.bf16.msra.mxu1 %v6064_v17  ;;  %v6147_v14 = vld [vmem:[%s8195_s1 + $0xea0] ss:$16 sps:$4 sm:$0xff]   ;;  %v6150_v17 = vld [vmem:[%s8195_s1 + $0xea8] ss:$16 sps:$4 sm:$0xff]  }
 0x1a4   : > { %3513 = vmatprep.subr.bf16.mxu0 %v6069_v19  ;;  %3554 = vmatprep.subr.bf16.mxu1 %v6072_v21  ;;  %v6155_v19 = vld [vmem:[%s8195_s1 + $0xec4] ss:$16 sps:$4 sm:$0xff]   ;;  %v6158_v21 = vld [vmem:[%s8195_s1 + $0xecc] ss:$16 sps:$4 sm:$0xff]  }
 0x1a7   : > { %3514 = vmatpush1.bf16.msra.mxu0 %v6067_v22  ;;  %3555 = vmatpush1.bf16.msra.mxu1 %v6070_v29  ;;  %v6153_v22 = vld [vmem:[%s8195_s1 + $0xec0] ss:$16 sps:$4 sm:$0xff]   ;;  %v6156_v29 = vld [vmem:[%s8195_s1 + $0xec8] ss:$16 sps:$4 sm:$0xff]  }
 0x1a8   : > { %3515 = vmatprep.subr.bf16.mxu0 %v6075_v20  ;;  %3556 = vmatprep.subr.bf16.mxu1 %v6078_v23  ;;  %v6161_v20 = vld [vmem:[%s8195_s1 + $0xee4] ss:$16 sps:$4 sm:$0xff]   ;;  %v6164_v23 = vld [vmem:[%s8195_s1 + $0xeec] ss:$16 sps:$4 sm:$0xff]  }
 0x1ab   : > { %3516 = vmatpush1.bf16.msra.mxu0 %v6073_v24  ;;  %3557 = vmatpush1.bf16.msra.mxu1 %v6076_v25  ;;  %v6159_v24 = vld [vmem:[%s8195_s1 + $0xee0] ss:$16 sps:$4 sm:$0xff]   ;;  %v6162_v25 = vld [vmem:[%s8195_s1 + $0xee8] ss:$16 sps:$4 sm:$0xff]  }
 0x1ac   : > { %3517 = vmatprep.subr.bf16.mxu0 %v6081_v26  ;;  %3558 = vmatprep.subr.bf16.mxu1 %v6084_v27  ;;  %v6167_v26 = vld [vmem:[%s8195_s1 + $0xf04] ss:$16 sps:$4 sm:$0xff]   ;;  %v6170_v27 = vld [vmem:[%s8195_s1 + $0xf0c] ss:$16 sps:$4 sm:$0xff]  }
 0x1af   : > { %3518 = vmatpush1.bf16.msra.mxu0 %v6079_v28  ;;  %3559 = vmatpush1.bf16.msra.mxu1 %v6082_v30  ;;  %v6165_v28 = vld [vmem:[%s8195_s1 + $0xf00] ss:$16 sps:$4 sm:$0xff]   ;;  %v6168_v30 = vld [vmem:[%s8195_s1 + $0xf08] ss:$16 sps:$4 sm:$0xff]  }
 0x1b0   : > { %3519 = vmatprep.subr.bf16.mxu0 %v6087_v16  ;;  %3560 = vmatprep.subr.bf16.mxu1 %v6090_v31  ;;  %v6173_v16 = vld [vmem:[%s8195_s1 + $0xf24] ss:$16 sps:$4 sm:$0xff]   ;;  %v6176_v31 = vld [vmem:[%s8195_s1 + $0xf2c] ss:$16 sps:$4 sm:$0xff]  }
 0x1b3   : > { %3520 = vmatpush1.bf16.msra.mxu0 %v6085_v32  ;;  %3561 = vmatpush1.bf16.msra.mxu1 %v6088_v33  ;;  %v6171_v32 = vld [vmem:[%s8195_s1 + $0xf20] ss:$16 sps:$4 sm:$0xff]   ;;  %v6174_v33 = vld [vmem:[%s8195_s1 + $0xf28] ss:$16 sps:$4 sm:$0xff]  }
 0x1b4   : > { %3521 = vmatprep.subr.bf16.mxu0 %v6093_v34  ;;  %3562 = vmatprep.subr.bf16.mxu1 %v6096_v35  ;;  %v6179_v34 = vld [vmem:[%s8195_s1 + $0xf44] ss:$16 sps:$4 sm:$0xff]   ;;  %v6182_v35 = vld [vmem:[%s8195_s1 + $0xf4c] ss:$16 sps:$4 sm:$0xff]  }
 0x1b7   : > { %3522 = vmatpush1.bf16.msra.mxu0 %v6091_v18  ;;  %3563 = vmatpush1.bf16.msra.mxu1 %v6094_v37  ;;  %v6177_v18 = vld [vmem:[%s8195_s1 + $0xf40] ss:$16 sps:$4 sm:$0xff]   ;;  %v6180_v37 = vld [vmem:[%s8195_s1 + $0xf48] ss:$16 sps:$4 sm:$0xff]  }
 0x1b8   : > { %3523 = vmatprep.subr.bf16.mxu0 %v6099_v38  ;;  %3564 = vmatprep.subr.bf16.mxu1 %v6102_v39  ;;  %v6185_v38 = vld [vmem:[%s8195_s1 + $0xf64] ss:$16 sps:$4 sm:$0xff]   ;;  %v6188_v39 = vld [vmem:[%s8195_s1 + $0xf6c] ss:$16 sps:$4 sm:$0xff]  }
 0x1bb   : > { %3524 = vmatpush1.bf16.msra.mxu0 %v6097_v41  ;;  %3565 = vmatpush1.bf16.msra.mxu1 %v6100_v42  ;;  %v6183_v41 = vld [vmem:[%s8195_s1 + $0xf60] ss:$16 sps:$4 sm:$0xff]   ;;  %v6186_v42 = vld [vmem:[%s8195_s1 + $0xf68] ss:$16 sps:$4 sm:$0xff]  }
 0x1bc   : > { %3525 = vmatprep.subr.bf16.mxu0 %v6105_v43  ;;  %3566 = vmatprep.subr.bf16.mxu1 %v6108_v44  ;;  %v6191_v43 = vld [vmem:[%s8195_s1 + $0xf84] ss:$16 sps:$4 sm:$0xff]   ;;  %v6194_v44 = vld [vmem:[%s8195_s1 + $0xf8c] ss:$16 sps:$4 sm:$0xff]  }
 0x1bf   : > { %3526 = vmatpush1.bf16.msra.mxu0 %v6103_v47  ;;  %3567 = vmatpush1.bf16.msra.mxu1 %v6106_v48  ;;  %v6192_v47 = vld [vmem:[%s8195_s1 + $0xf88] ss:$16 sps:$4 sm:$0xff]   ;;  %v6197_v48 = vld [vmem:[%s8195_s1 + $0xfa4] ss:$16 sps:$4 sm:$0xff]  }
 0x1c0   : > { %3527 = vmatprep.subr.bf16.mxu0 %v6111_v36  ;;  %3568 = vmatprep.subr.bf16.mxu1 %v6114_v15  ;;  %v6200_v36 = vld [vmem:[%s8195_s1 + $0xfac] ss:$16 sps:$4 sm:$0xff]   ;;  %v5215_v15 = vcombine.low %v7574_v49, %v7735_v40 }
 0x1c1   : > { %v6206_v49 = vld [vmem:[%s8195_s1 + $0xfcc] ss:$16 sps:$4 sm:$0xff]  }
 0x1c3   : > { %3528 = vmatpush1.bf16.msra.mxu0 %v6109_v51  ;;  %3569 = vmatpush1.bf16.msra.mxu1 %v6112_v52  ;;  %v6198_v51 = vld [vmem:[%s8195_s1 + $0xfa8] ss:$16 sps:$4 sm:$0xff]   ;;  %v6203_v52 = vld [vmem:[%s8195_s1 + $0xfc4] ss:$16 sps:$4 sm:$0xff]  }
 0x1c4   : > { %3993 = vmatprep.subr.bf16.mxu0 %v6119_v53  ;;  %4034 = vmatprep.subr.bf16.mxu1 %v6122_v54  ;;  %v3660_v53 = vshll.u32 %v5215_v15, 16  ;;  %v6201_v54 = vld [vmem:[%s8195_s1 + $0xfc0] ss:$16 sps:$4 sm:$0xff]  }
 0x1c6   : > { %3530 = vmatmul.mubr.bf16.vlgmr.msra.gmra.mrb[0].mxu0 %v5149_v57  ;;  %3571 = vmatmul.mubr.bf16.vlgmr.msra.gmra.mrb[0].mxu1 %v5149_v57  ;;  %v6212_v57 = vld [vmem:[%s8195_s1 + $0xfec] ss:$16 sps:$4 sm:$0xff]  }
 0x1c7   : > { %3994 = vmatpush1.bf16.msra.mxu0 %v6117_v58  ;;  %4035 = vmatpush1.bf16.msra.mxu1 %v6120_v59  ;;  %v3658_v58 = vshrl.u32 %v5215_v15, 16  ;;  %v3662_v59 = vrot.slane %v3660_v53, 1  ;;  %v6286_v15 = vld [vmem:[%s8195_s1 + $0x116c] ss:$16 sps:$4 sm:$0xff]   ;;  %v6287_v53 = vld [vmem:[%s8195_s1 + $0x1180] ss:$16 sps:$4 sm:$0xff]  }
 0x1c8   : > { %3995 = vmatprep.subr.bf16.mxu0 %v6125_v60  ;;  %4036 = vmatprep.subr.bf16.mxu1 %v6128_v61  ;;  %v7960_v60 = vld [vmem:[%s6500_s30 + $0x8] sm:$0xee]  ;;  %v6207_v61 = vld [vmem:[%s8195_s1 + $0xfe0] ss:$16 sps:$4 sm:$0xff]  }
 0x1c9   : > { %4025 = vmatprep.mubr.bf16.mxu0 %v3670_v62  ;;  %4066 = vmatprep.mubr.bf16.mxu1 %v3670_v62  ;;  %v6210_v62 = vld [vmem:[%s8195_s1 + $0xfe8] ss:$16 sps:$4 sm:$0xff]  }
 0x1cb   : > { %3996 = vmatpush1.bf16.msra.mxu0 %v6123_v63  ;;  %4037 = vmatpush1.bf16.msra.mxu1 %v6126_v0  ;;  %v6217_v63 = vld [vmem:[%s8195_s1 + $0x1004] ss:$16 sps:$4 sm:$0xff]   ;;  %v6220_v0 = vld [vmem:[%s8195_s1 + $0x100c] ss:$16 sps:$4 sm:$0xff]  }
 0x1cc   : > { %3997 = vmatprep.subr.bf16.mxu0 %v6131_v1  ;;  %4038 = vmatprep.subr.bf16.mxu1 %v6134_v2  ;;  %v5282_v1 = vcombine.high %v7960_v60, %v7735_v40  ;;  %v3663_v2 = vor.u32 %v3662_v59, %v3658_v58  ;;  %v6296_v58 = vld [vmem:[%s8195_s1 + $0x11a8] ss:$16 sps:$4 sm:$0xff]   ;;  %v6301_v59 = vld [vmem:[%s8195_s1 + $0x11c4] ss:$16 sps:$4 sm:$0xff]  }
 0x1cf   : > { %3998 = vmatpush1.bf16.msra.mxu0 %v6129_v3  ;;  %4039 = vmatpush1.bf16.msra.mxu1 %v6132_v4  ;;  %v6215_v3 = vld [vmem:[%s8195_s1 + $0x1000] ss:$16 sps:$4 sm:$0xff]   ;;  %v6218_v4 = vld [vmem:[%s8195_s1 + $0x1008] ss:$16 sps:$4 sm:$0xff]  }
 0x1d0   : > { %3999 = vmatprep.subr.bf16.mxu0 %v6137_v46  ;;  %4040 = vmatprep.subr.bf16.mxu1 %v6140_v5  ;;  %v6223_v46 = vld [vmem:[%s8195_s1 + $0x1024] ss:$16 sps:$4 sm:$0xff]   ;;  %v6226_v5 = vld [vmem:[%s8195_s1 + $0x102c] ss:$16 sps:$4 sm:$0xff]  }
 0x1d3   : > { %4000 = vmatpush1.bf16.msra.mxu0 %v6135_v6  ;;  %4041 = vmatpush1.bf16.msra.mxu1 %v6138_v7  ;;  %v4150_v6 = vrot.slane %v5282_v1, 1  ;;  %v6221_v7 = vld [vmem:[%s8195_s1 + $0x1020] ss:$16 sps:$4 sm:$0xff]   ;;  %v6310_v1 = vld [vmem:[%s8195_s1 + $0x11ec] ss:$16 sps:$4 sm:$0xff]  }
 0x1d4   : > { %4001 = vmatprep.subr.bf16.mxu0 %v6143_v8  ;;  %4042 = vmatprep.subr.bf16.mxu1 %v6146_v9  ;;  %v6224_v8 = vld [vmem:[%s8195_s1 + $0x1028] ss:$16 sps:$4 sm:$0xff]   ;;  %v6229_v9 = vld [vmem:[%s8195_s1 + $0x1044] ss:$16 sps:$4 sm:$0xff]  }
 0x1d7   : > { %4002 = vmatpush1.bf16.msra.mxu0 %v6141_v10  ;;  %4043 = vmatpush1.bf16.msra.mxu1 %v6144_v11  ;;  %v6232_v10 = vld [vmem:[%s8195_s1 + $0x104c] ss:$16 sps:$4 sm:$0xff]   ;;  %v6227_v11 = vld [vmem:[%s8195_s1 + $0x1040] ss:$16 sps:$4 sm:$0xff]  }
 0x1d8   : > { %4003 = vmatprep.subr.bf16.mxu0 %v6149_v12  ;;  %4044 = vmatprep.subr.bf16.mxu1 %v6152_v13  ;;  %v6230_v12 = vld [vmem:[%s8195_s1 + $0x1048] ss:$16 sps:$4 sm:$0xff]   ;;  %v6235_v13 = vld [vmem:[%s8195_s1 + $0x1064] ss:$16 sps:$4 sm:$0xff]  }
 0x1db   : > { %4004 = vmatpush1.bf16.msra.mxu0 %v6147_v14  ;;  %4045 = vmatpush1.bf16.msra.mxu1 %v6150_v17  ;;  %v6238_v14 = vld [vmem:[%s8195_s1 + $0x106c] ss:$16 sps:$4 sm:$0xff]   ;;  %v6233_v17 = vld [vmem:[%s8195_s1 + $0x1060] ss:$16 sps:$4 sm:$0xff]  }
 0x1dc   : > { %4005 = vmatprep.subr.bf16.mxu0 %v6155_v19  ;;  %4046 = vmatprep.subr.bf16.mxu1 %v6158_v21  ;;  %v6236_v19 = vld [vmem:[%s8195_s1 + $0x1068] ss:$16 sps:$4 sm:$0xff]   ;;  %v6241_v21 = vld [vmem:[%s8195_s1 + $0x1084] ss:$16 sps:$4 sm:$0xff]  }
 0x1df   : > { %4006 = vmatpush1.bf16.msra.mxu0 %v6153_v22  ;;  %4047 = vmatpush1.bf16.msra.mxu1 %v6156_v29  ;;  %v6244_v22 = vld [vmem:[%s8195_s1 + $0x108c] ss:$16 sps:$4 sm:$0xff]   ;;  %v6239_v29 = vld [vmem:[%s8195_s1 + $0x1080] ss:$16 sps:$4 sm:$0xff]  }
 0x1e0   : > { %4007 = vmatprep.subr.bf16.mxu0 %v6161_v20  ;;  %4048 = vmatprep.subr.bf16.mxu1 %v6164_v23  ;;  %v6242_v20 = vld [vmem:[%s8195_s1 + $0x1088] ss:$16 sps:$4 sm:$0xff]   ;;  %v6247_v23 = vld [vmem:[%s8195_s1 + $0x10a4] ss:$16 sps:$4 sm:$0xff]  }
 0x1e3   : > { %4008 = vmatpush1.bf16.msra.mxu0 %v6159_v24  ;;  %4049 = vmatpush1.bf16.msra.mxu1 %v6162_v25  ;;  %v6250_v24 = vld [vmem:[%s8195_s1 + $0x10ac] ss:$16 sps:$4 sm:$0xff]   ;;  %v6245_v25 = vld [vmem:[%s8195_s1 + $0x10a0] ss:$16 sps:$4 sm:$0xff]  }
 0x1e4   : > { %4009 = vmatprep.subr.bf16.mxu0 %v6167_v26  ;;  %4050 = vmatprep.subr.bf16.mxu1 %v6170_v27  ;;  %v6248_v26 = vld [vmem:[%s8195_s1 + $0x10a8] ss:$16 sps:$4 sm:$0xff]   ;;  %v6253_v27 = vld [vmem:[%s8195_s1 + $0x10c4] ss:$16 sps:$4 sm:$0xff]  }
 0x1e7   : > { %4010 = vmatpush1.bf16.msra.mxu0 %v6165_v28  ;;  %4051 = vmatpush1.bf16.msra.mxu1 %v6168_v30  ;;  %v6256_v28 = vld [vmem:[%s8195_s1 + $0x10cc] ss:$16 sps:$4 sm:$0xff]   ;;  %v6251_v30 = vld [vmem:[%s8195_s1 + $0x10c0] ss:$16 sps:$4 sm:$0xff]  }
 0x1e8   : > { %4011 = vmatprep.subr.bf16.mxu0 %v6173_v16  ;;  %4052 = vmatprep.subr.bf16.mxu1 %v6176_v31  ;;  %v6254_v16 = vld [vmem:[%s8195_s1 + $0x10c8] ss:$16 sps:$4 sm:$0xff]   ;;  %v6259_v31 = vld [vmem:[%s8195_s1 + $0x10e4] ss:$16 sps:$4 sm:$0xff]  }
 0x1eb   : > { %4012 = vmatpush1.bf16.msra.mxu0 %v6171_v32  ;;  %4053 = vmatpush1.bf16.msra.mxu1 %v6174_v33  ;;  %v6262_v32 = vld [vmem:[%s8195_s1 + $0x10ec] ss:$16 sps:$4 sm:$0xff]   ;;  %v6257_v33 = vld [vmem:[%s8195_s1 + $0x10e0] ss:$16 sps:$4 sm:$0xff]  }
 0x1ec   : > { %4013 = vmatprep.subr.bf16.mxu0 %v6179_v34  ;;  %4054 = vmatprep.subr.bf16.mxu1 %v6182_v35  ;;  %v6260_v34 = vld [vmem:[%s8195_s1 + $0x10e8] ss:$16 sps:$4 sm:$0xff]   ;;  %v6265_v35 = vld [vmem:[%s8195_s1 + $0x1104] ss:$16 sps:$4 sm:$0xff]  }
 0x1ef   : > { %4014 = vmatpush1.bf16.msra.mxu0 %v6177_v18  ;;  %4055 = vmatpush1.bf16.msra.mxu1 %v6180_v37  ;;  %v6268_v18 = vld [vmem:[%s8195_s1 + $0x110c] ss:$16 sps:$4 sm:$0xff]   ;;  %v6263_v37 = vld [vmem:[%s8195_s1 + $0x1100] ss:$16 sps:$4 sm:$0xff]  }
 0x1f0   : > { %4015 = vmatprep.subr.bf16.mxu0 %v6185_v38  ;;  %4056 = vmatprep.subr.bf16.mxu1 %v6188_v39  ;;  %v6266_v38 = vld [vmem:[%s8195_s1 + $0x1108] ss:$16 sps:$4 sm:$0xff]   ;;  %v6271_v39 = vld [vmem:[%s8195_s1 + $0x1124] ss:$16 sps:$4 sm:$0xff]  }
 0x1f3   : > { %4016 = vmatpush1.bf16.msra.mxu0 %v6183_v41  ;;  %4057 = vmatpush1.bf16.msra.mxu1 %v6186_v42  ;;  %v6274_v41 = vld [vmem:[%s8195_s1 + $0x112c] ss:$16 sps:$4 sm:$0xff]   ;;  %v6269_v42 = vld [vmem:[%s8195_s1 + $0x1120] ss:$16 sps:$4 sm:$0xff]  }
 0x1f4   : > { %4017 = vmatprep.subr.bf16.mxu0 %v6191_v43  ;;  %4058 = vmatprep.subr.bf16.mxu1 %v6194_v44  ;;  %v6272_v43 = vld [vmem:[%s8195_s1 + $0x1128] ss:$16 sps:$4 sm:$0xff]   ;;  %v6277_v44 = vld [vmem:[%s8195_s1 + $0x1144] ss:$16 sps:$4 sm:$0xff]  }
 0x1f7   : > { %4018 = vmatpush1.bf16.msra.mxu0 %v6189_v45  ;;  %4059 = vmatpush1.bf16.msra.mxu1 %v6192_v47  ;;  %v6280_v45 = vld [vmem:[%s8195_s1 + $0x114c] ss:$16 sps:$4 sm:$0xff]   ;;  %v6275_v47 = vld [vmem:[%s8195_s1 + $0x1140] ss:$16 sps:$4 sm:$0xff]  }
 0x1f8   : > { %4019 = vmatprep.subr.bf16.mxu0 %v6197_v48  ;;  %4060 = vmatprep.subr.bf16.mxu1 %v6200_v36  ;;  %v6278_v48 = vld [vmem:[%s8195_s1 + $0x1148] ss:$16 sps:$4 sm:$0xff]   ;;  %v6283_v36 = vld [vmem:[%s8195_s1 + $0x1164] ss:$16 sps:$4 sm:$0xff]  }
 0x1fb   : > { %4020 = vmatpush1.bf16.msra.mxu0 %v6195_v50  ;;  %4061 = vmatpush1.bf16.msra.mxu1 %v6198_v51  ;;  %v6281_v50 = vld [vmem:[%s8195_s1 + $0x1160] ss:$16 sps:$4 sm:$0xff]   ;;  %v6284_v51 = vld [vmem:[%s8195_s1 + $0x1168] ss:$16 sps:$4 sm:$0xff]  }
 0x1fc   : > { %4021 = vmatprep.subr.bf16.mxu0 %v6203_v52  ;;  %4062 = vmatprep.subr.bf16.mxu1 %v6206_v49  ;;  %v6289_v52 = vld [vmem:[%s8195_s1 + $0x1184] ss:$16 sps:$4 sm:$0xff]   ;;  %v6292_v49 = vld [vmem:[%s8195_s1 + $0x118c] ss:$16 sps:$4 sm:$0xff]  }
 0x1ff   : > { %4022 = vmatpush1.bf16.msra.mxu0 %v6201_v54  ;;  %4063 = vmatpush1.bf16.msra.mxu1 %v6204_v55  ;;  %v6290_v54 = vld [vmem:[%s8195_s1 + $0x1188] ss:$16 sps:$4 sm:$0xff]   ;;  %v6295_v55 = vld [vmem:[%s8195_s1 + $0x11a4] ss:$16 sps:$4 sm:$0xff]  }
 0x200   : > { %4023 = vmatprep.subr.bf16.mxu0 %v6209_v56  ;;  %4064 = vmatprep.subr.bf16.mxu1 %v6212_v57  ;;  %v6298_v56 = vld [vmem:[%s8195_s1 + $0x11ac] ss:$16 sps:$4 sm:$0xff]   ;;  %v6293_v57 = vld [vmem:[%s8195_s1 + $0x11a0] ss:$16 sps:$4 sm:$0xff]  }
 0x203   : > { %4024 = vmatpush1.bf16.msra.mxu0 %v6207_v61  ;;  %4065 = vmatpush1.bf16.msra.mxu1 %v6210_v62  ;;  %v6304_v61 = vld [vmem:[%s8195_s1 + $0x11cc] ss:$16 sps:$4 sm:$0xff]   ;;  %v6299_v62 = vld [vmem:[%s8195_s1 + $0x11c0] ss:$16 sps:$4 sm:$0xff]  }
 0x204   : > { %4473 = vmatprep.subr.bf16.mxu0 %v6217_v63  ;;  %4514 = vmatprep.subr.bf16.mxu1 %v6220_v0  ;;  %v6302_v63 = vld [vmem:[%s8195_s1 + $0x11c8] ss:$16 sps:$4 sm:$0xff]   ;;  %v6307_v0 = vld [vmem:[%s8195_s1 + $0x11e4] ss:$16 sps:$4 sm:$0xff]  }
 0x206   : > { %4026 = vmatmul.mubr.bf16.vlgmr.msra.gmra.mrb[0].mxu0 %v3663_v2  ;;  %4067 = vmatmul.mubr.bf16.vlgmr.msra.gmra.mrb[0].mxu1 %v3663_v2  ;;  %v5281_v2 = vcombine.low %v7960_v60, %v7735_v40 }
 0x207   : > { %4474 = vmatpush1.bf16.msra.mxu0 %v6215_v3  ;;  %4515 = vmatpush1.bf16.msra.mxu1 %v6218_v4  ;;  %v6305_v3 = vld [vmem:[%s8195_s1 + $0x11e0] ss:$16 sps:$4 sm:$0xff]   ;;  %v6308_v4 = vld [vmem:[%s8195_s1 + $0x11e8] ss:$16 sps:$4 sm:$0xff]  }
 0x208   : > { %4475 = vmatprep.subr.bf16.mxu0 %v6223_v46  ;;  %4516 = vmatprep.subr.bf16.mxu1 %v6226_v5  ;;  %v4149_v46 = vrot.slane %v5281_v2, 1  ;;  %v173_v5 = vlaneseq }
 0x209   : > { %4505 = vmatprep.mubr.bf16.mxu0 %v4150_v6  ;;  %4546 = vmatprep.mubr.bf16.mxu1 %v4150_v6 }
 0x20a   : > { %v174_v6 = vshrl.u32 %v173_v5, 7 }
 0x20b   : > { %4476 = vmatpush1.bf16.msra.mxu0 %v6221_v7  ;;  %4517 = vmatpush1.bf16.msra.mxu1 %v6224_v8  ;;  %v171_v7 = vld [vmem:[%s8196_s2] sm:$0xf] }
 0x20c   : > { %4477 = vmatprep.subr.bf16.mxu0 %v6229_v9  ;;  %4518 = vmatprep.subr.bf16.mxu1 %v6232_v10  ;;  %v175_v40 = vsub.s32 0, %v174_v6  ;;  %v183_v60 = vsub.s32 2, %v174_v6  ;;  %v179_v8 = vsub.s32 1, %v174_v6  ;;  %v187_v9 = vsub.s32 3, %v174_v6 }
 0x20d   : > { %v4565_v10 = vand.u32 3, %v174_v6 }
 0x20f   : > { %4478 = vmatpush1.bf16.msra.mxu0 %v6227_v11  ;;  %4519 = vmatpush1.bf16.msra.mxu1 %v6230_v12  ;;  %v176_v11 = vrot.slane %v171_v7, %v175_v40  ;;  %v184_v12 = vrot.slane %v171_v7, %v183_v60  ;;  %vm8167_vm0 = vcmp.lt.s32.totalorder %v4565_v10, 2 }
 0x210   : > { %4479 = vmatprep.subr.bf16.mxu0 %v6235_v13  ;;  %4520 = vmatprep.subr.bf16.mxu1 %v6238_v14  ;;  %v180_v13 = vrot.slane %v171_v7, %v179_v8  ;;  %v188_v14 = vrot.slane %v171_v7, %v187_v9 }
 0x213   : > { %4480 = vmatpush1.bf16.msra.mxu0 %v6233_v17  ;;  %4521 = vmatpush1.bf16.msra.mxu1 %v6236_v19 }
 0x214   : > { %4481 = vmatprep.subr.bf16.mxu0 %v6241_v21  ;;  %4522 = vmatprep.subr.bf16.mxu1 %v6244_v22 }
 0x217   : > { %4482 = vmatpush1.bf16.msra.mxu0 %v6239_v29  ;;  %4523 = vmatpush1.bf16.msra.mxu1 %v6242_v20 }
 0x218   : > { %4483 = vmatprep.subr.bf16.mxu0 %v6247_v23  ;;  %4524 = vmatprep.subr.bf16.mxu1 %v6250_v24 }
 0x21b   : > { %4484 = vmatpush1.bf16.msra.mxu0 %v6245_v25  ;;  %4525 = vmatpush1.bf16.msra.mxu1 %v6248_v26 }
 0x21c   : > { %4485 = vmatprep.subr.bf16.mxu0 %v6253_v27  ;;  %4526 = vmatprep.subr.bf16.mxu1 %v6256_v28 }
 0x21f   : > { %4486 = vmatpush1.bf16.msra.mxu0 %v6251_v30  ;;  %4527 = vmatpush1.bf16.msra.mxu1 %v6254_v16 }
 0x220   : > { %4487 = vmatprep.subr.bf16.mxu0 %v6259_v31  ;;  %4528 = vmatprep.subr.bf16.mxu1 %v6262_v32 }
 0x223   : > { %4488 = vmatpush1.bf16.msra.mxu0 %v6257_v33  ;;  %4529 = vmatpush1.bf16.msra.mxu1 %v6260_v34 }
 0x224   : > { %4489 = vmatprep.subr.bf16.mxu0 %v6265_v35  ;;  %4530 = vmatprep.subr.bf16.mxu1 %v6268_v18 }
 0x227   : > { %4490 = vmatpush1.bf16.msra.mxu0 %v6263_v37  ;;  %4531 = vmatpush1.bf16.msra.mxu1 %v6266_v38 }
 0x228   : > { %4491 = vmatprep.subr.bf16.mxu0 %v6271_v39  ;;  %4532 = vmatprep.subr.bf16.mxu1 %v6274_v41 }
 0x22b   : > { %4492 = vmatpush1.bf16.msra.mxu0 %v6269_v42  ;;  %4533 = vmatpush1.bf16.msra.mxu1 %v6272_v43 }
 0x22c   : > { %4493 = vmatprep.subr.bf16.mxu0 %v6277_v44  ;;  %4534 = vmatprep.subr.bf16.mxu1 %v6280_v45 }
 0x22f   : > { %4494 = vmatpush1.bf16.msra.mxu0 %v6275_v47  ;;  %4535 = vmatpush1.bf16.msra.mxu1 %v6278_v48 }
 0x230   : > { %4495 = vmatprep.subr.bf16.mxu0 %v6283_v36  ;;  %4536 = vmatprep.subr.bf16.mxu1 %v6286_v15 }
 0x233   : > { %4496 = vmatpush1.bf16.msra.mxu0 %v6281_v50  ;;  %4537 = vmatpush1.bf16.msra.mxu1 %v6284_v51 }
 0x234   : > { %4497 = vmatprep.subr.bf16.mxu0 %v6289_v52  ;;  %4538 = vmatprep.subr.bf16.mxu1 %v6292_v49 }
 0x237   : > { %4498 = vmatpush1.bf16.msra.mxu0 %v6287_v53  ;;  %4539 = vmatpush1.bf16.msra.mxu1 %v6290_v54 }
 0x238   : > { %4499 = vmatprep.subr.bf16.mxu0 %v6295_v55  ;;  %4540 = vmatprep.subr.bf16.mxu1 %v6298_v56 }
 0x23b   : > { %4500 = vmatpush1.bf16.msra.mxu0 %v6293_v57  ;;  %4541 = vmatpush1.bf16.msra.mxu1 %v6296_v58 }
 0x23c   : > { %4501 = vmatprep.subr.bf16.mxu0 %v6301_v59  ;;  %4542 = vmatprep.subr.bf16.mxu1 %v6304_v61 }
 0x23f   : > { %4502 = vmatpush1.bf16.msra.mxu0 %v6299_v62  ;;  %4543 = vmatpush1.bf16.msra.mxu1 %v6302_v63 }
 0x240   : > { %4503 = vmatprep.subr.bf16.mxu0 %v6307_v0  ;;  %4544 = vmatprep.subr.bf16.mxu1 %v6310_v1 }
 0x243   : > { %4504 = vmatpush1.bf16.msra.mxu0 %v6305_v3  ;;  %4545 = vmatpush1.bf16.msra.mxu1 %v6308_v4 }
 0x246   : > { %4506 = vmatmul.mubr.bf16.vlgmr.msra.gmra.mrb[0].mxu0 %v4149_v46  ;;  %4547 = vmatmul.mubr.bf16.vlgmr.msra.gmra.mrb[0].mxu1 %v4149_v46 }
 0x319   : > { %v4507_v17 = vpop.f32.mrb[0].mxu0  ;;  %v4548_v21 = vpop.f32.mrb[0].mxu1 }
 0x31a   : > { %v5354_v22 = vadd.f32 %v4507_v17, %v176_v11  ;;  %v5356_v29 = vadd.f32 %v4548_v21, %v184_v12  ;;  %v4509_v20 = vpop.f32.mrb[1].mxu0  ;;  %v4550_v23 = vpop.f32.mrb[1].mxu1 }
 0x31b   : > { %v5355_v24 = vadd.f32 %v4509_v20, %v180_v13  ;;  %v5357_v25 = vadd.f32 %v4550_v23, %v188_v14  ;;  %v4511_v26 = vpop.f32.mrb[2].mxu0  ;;  %v4552_v27 = vpop.f32.mrb[2].mxu1 }
 0x31c   : > { %v4576_v28 = vsel %vm8167_vm0, %v5354_v22, 0.0  ;;  %v4578_v30 = vsel %vm8167_vm0, %v5356_v29, 0.0  ;;  %v4512_v16 = vpop.f32.mrb[3].mxu0  ;;  %v4553_v31 = vpop.f32.mrb[3].mxu1 }
 0x31d   : > { %v4580_v32 = vrot.slane %v4576_v28, 4  ;;  %v4592_v33 = vrot.slane %v4578_v30, 4  ;;  %v4577_v34 = vsel %vm8167_vm0, %v5355_v24, 0.0  ;;  %v4579_v35 = vsel %vm8167_vm0, %v5357_v25, 0.0 }
 0x31e   : > { %v4586_v18 = vrot.slane %v4577_v34, 4  ;;  %v4598_v37 = vrot.slane %v4579_v35, 4 }
 0x31f   : > { %v4581_v38 = vadd.f32 %v4580_v32, %v4576_v28  ;;  %v4593_v39 = vadd.f32 %v4592_v33, %v4578_v30 }
 0x320   : > { %v4587_v41 = vadd.f32 %v4586_v18, %v4577_v34  ;;  %v4599_v42 = vadd.f32 %v4598_v37, %v4579_v35 }
 0x321   : > { %v4582_v43 = vrot.slane %v4581_v38, 2  ;;  %v4594_v44 = vrot.slane %v4593_v39, 2 }
 0x322   : > { %v4588_v45 = vrot.slane %v4587_v41, 2  ;;  %v4600_v47 = vrot.slane %v4599_v42, 2 }
 0x323   : > { %v4583_v48 = vadd.f32 %v4582_v43, %v4581_v38  ;;  %v4595_v36 = vadd.f32 %v4594_v44, %v4593_v39 }
 0x324   : > { %v4589_v15 = vadd.f32 %v4588_v45, %v4587_v41  ;;  %v4601_v50 = vadd.f32 %v4600_v47, %v4599_v42 }
 0x325   : > { %v4584_v51 = vrot.slane %v4583_v48, 1  ;;  %v4596_v52 = vrot.slane %v4595_v36, 1 }
 0x326   : > { %v4590_v49 = vrot.slane %v4589_v15, 1  ;;  %v4602_v53 = vrot.slane %v4601_v50, 1 }
 0x327   : > { %v4585_v54 = vadd.f32 %v4584_v51, %v4583_v48  ;;  %v4597_v55 = vadd.f32 %v4596_v52, %v4595_v36 }
 0x328   : > { %v4591_v56 = vadd.f32 %v4590_v49, %v4589_v15  ;;  %v4603_v57 = vadd.f32 %v4602_v53, %v4601_v50 }
 0x329   : > { %v4604_v58 = vmul.f32 0.25, %v4585_v54  ;;  %v4606_v59 = vmul.f32 0.25, %v4597_v55 }
 0x32a   : > { %v4605_v61 = vmul.f32 0.25, %v4591_v56  ;;  %v4607_v62 = vmul.f32 0.25, %v4603_v57 }
 0x32b   : > { %v4608_v63 = vsub.f32 %v5354_v22, %v4604_v58  ;;  %v4610_v0 = vsub.f32 %v5356_v29, %v4606_v59 }
 0x32c   : > { %v4609_v1 = vsub.f32 %v5355_v24, %v4605_v61  ;;  %v4611_v2 = vsub.f32 %v5357_v25, %v4607_v62 }
 0x32d   : > { %v4612_v3 = vmul.f32 %v4608_v63, %v4608_v63  ;;  %v4614_v4 = vmul.f32 %v4610_v0, %v4610_v0 }
 0x32e   : > { %v4613_v46 = vmul.f32 %v4609_v1, %v4609_v1  ;;  %v4615_v5 = vmul.f32 %v4611_v2, %v4611_v2 }
 0x32f   : > { %v4616_v6 = vsel %vm8167_vm0, %v4612_v3, 0.0  ;;  %v4618_v40 = vsel %vm8167_vm0, %v4614_v4, 0.0 }
 0x330   : > { %v4620_v60 = vrot.slane %v4616_v6, 4  ;;  %v4632_v7 = vrot.slane %v4618_v40, 4  ;;  %v4617_v8 = vsel %vm8167_vm0, %v4613_v46, 0.0  ;;  %v4619_v9 = vsel %vm8167_vm0, %v4615_v5, 0.0 }
 0x331   : > { %v4626_v10 = vrot.slane %v4617_v8, 4  ;;  %v4638_v11 = vrot.slane %v4619_v9, 4 }
 0x332   : > { %v4621_v12 = vadd.f32 %v4620_v60, %v4616_v6  ;;  %v4633_v13 = vadd.f32 %v4632_v7, %v4618_v40 }
 0x333   : > { %v4627_v14 = vadd.f32 %v4626_v10, %v4617_v8  ;;  %v4639_v17 = vadd.f32 %v4638_v11, %v4619_v9 }
 0x334   : > { %v4622_v21 = vrot.slane %v4621_v12, 2  ;;  %v4634_v22 = vrot.slane %v4633_v13, 2 }
 0x335   : > { %v4628_v29 = vrot.slane %v4627_v14, 2  ;;  %v4640_v20 = vrot.slane %v4639_v17, 2 }
 0x336   : > { %v4623_v23 = vadd.f32 %v4622_v21, %v4621_v12  ;;  %v4635_v24 = vadd.f32 %v4634_v22, %v4633_v13 }
 0x337   : > { %v4629_v25 = vadd.f32 %v4628_v29, %v4627_v14  ;;  %v4641_v26 = vadd.f32 %v4640_v20, %v4639_v17 }
 0x338   : > { %v4624_v27 = vrot.slane %v4623_v23, 1  ;;  %v4636_v28 = vrot.slane %v4635_v24, 1 }
 0x339   : > { %v4630_v30 = vrot.slane %v4629_v25, 1  ;;  %v4642_v16 = vrot.slane %v4641_v26, 1 }
 0x33a   : > { %v4625_v19 = vadd.f32 %v4624_v27, %v4623_v23  ;;  %v4637_v31 = vadd.f32 %v4636_v28, %v4635_v24 }
 0x33b   : > { %v4631_v32 = vadd.f32 %v4630_v30, %v4629_v25  ;;  %v4643_v33 = vadd.f32 %v4642_v16, %v4641_v26 }
 0x33c   : > { %v4644_v34 = vmul.f32 0.25, %v4625_v19  ;;  %v4646_v35 = vmul.f32 0.25, %v4637_v31 }
 0x33d   : > { %v4645_v18 = vmul.f32 0.25, %v4631_v32  ;;  %v4647_v37 = vmul.f32 0.25, %v4643_v33 }
 0x33e   : > { %v4648_v38 = vadd.f32 1e-05, %v4644_v34  ;;  %v4650_v39 = vadd.f32 1e-05, %v4646_v35 }
 0x33f   : > { %v4649_v41 = vadd.f32 1e-05, %v4645_v18  ;;  %v4651_v42 = vadd.f32 1e-05, %v4647_v37 }
 0x340   : > { %6313 = vrsqrt.f32 %v4648_v38 }
 0x341   : > { %6315 = vrsqrt.f32 %v4650_v39 }
 0x342   : > { %6317 = vrsqrt.f32 %v4649_v41 }
 0x343   : > { %6319 = vrsqrt.f32 %v4651_v42 }
 0x34a   : > { %v6314_v43 = vpop.eup %6313 }
 0x34b   : > { %v6316_v44 = vpop.eup %6315  ;;  %v4656_v45 = vmul.f32 %v6314_v43, %v4608_v63 }
 0x34c   : > { %v6318_v47 = vpop.eup %6317  ;;  %v4658_v48 = vmul.f32 %v6316_v44, %v4610_v0 }
 0x34d   : > { %v6320_v36 = vpop.eup %6319  ;;  %vm4660_vm1 = vcmp.ge.f32.partialorder %v4656_v45, 0.0  ;;  %v4664_v15 = vmul.f32 0.2, %v4656_v45  ;;  %v4657_v50 = vmul.f32 %v6318_v47, %v4609_v1 }
 0x34e   : > { %vm4662_vm2 = vcmp.ge.f32.partialorder %v4658_v48, 0.0  ;;  %v4666_v51 = vmul.f32 0.2, %v4658_v48  ;;  %v4659_v52 = vmul.f32 %v6320_v36, %v4611_v2 }
 0x34f   : > { %v4668_v49 = vsel %vm4660_vm1, %v4656_v45, %v4664_v15  ;;  %vm4661_vm3 = vcmp.ge.f32.partialorder %v4657_v50, 0.0  ;;  %v4665_v53 = vmul.f32 0.2, %v4657_v50 }
 0x350   : > { %v4670_v54 = vsel %vm4662_vm2, %v4658_v48, %v4666_v51  ;;  %vm4663_vm4 = vcmp.ge.f32.partialorder %v4659_v52, 0.0  ;;  %v4667_v55 = vmul.f32 0.2, %v4659_v52 }
 0x351   : > { %v4669_v56 = vsel %vm4661_vm3, %v4657_v50, %v4665_v53 }
 0x352   : > { %v5352_v57 = vpack.c.bf16 %v4669_v56, %v4668_v49  ;;  %v4671_v58 = vsel %vm4663_vm4, %v4659_v52, %v4667_v55 }
 0x353   : > { %v5353_v59 = vpack.c.bf16 %v4671_v58, %v4670_v54 }
 0x354   : > { %4688 = vst [vmem:[%s170_s11] sm:$0xff] %v5352_v57 }
 0x355   : > { %4689 = vst [vmem:[%s170_s11 + $0x8] sm:$0xff] %v5353_v59 }
 0x356 PF: > { %s13_s12 = sadd.s32 1, %s6328_s12  }
 0x357   : > { %p10_p4 = scmp.ge.s32.totalorder %s13_s12, 4  }
 0x359   :  { %12 = sbr.rel (!%p10_p4) target bundleno = 1 (0x1), region = 62 }

// kernel: ce_discriminator_forward.9
= control target key start
LH: loop header
LB: loop body
LE: loop exit
PB: predicated region body
PF: predicated region fallthrough
CT: control target
= control target key end

     0   :  { %s4633_s14 = smov 0   ;;  %s5627_s0 = inlined_call_operand.vmem [shape: bf16[2,20,512], index: 0, kind: input, shape index: {}]   ;;  %s5628_s1 = inlined_call_operand.vmem [shape: bf16[4608,1], index: 1, kind: input, shape index: {}]   ;;  %s5629_s2 = inlined_call_operand.<no memory space> [shape: f32[1,1], index: 2, kind: input, shape index: {}]   ;;  %s5630_s3 = inlined_call_operand.vmem [shape: f32[2,8,1], index: 3, kind: output, shape index: {}]  }
   0x1   :  { %v8_v0 = vstv %s5629_s2 }
   0x2   :  { %9 = vst [vmem:[#allocation2] sm:$0x1] %v8_v0 }
   0x3 LB: > { %s3539_s15 = sadd.s32 4294967295, %s4608_s14   ;;  %p3543_p0 = scmp.ge.s32.totalorder %s4608_s14, 1  ;;  %s4608_s14 = sphi %s4633_s14, %s15_s14  }
   0x4   : > { %p139_p1 = scmp.lt.s32.totalorder %s4608_s14, 3 }
   0x6   : > { %p140_p2 = pnand %p3543_p0, %p139_p1 }
   0x7   : > { %v4278_v1 = vld [vmem:[%s5628_s1 + $0x40] sm:$0xff] (!%p140_p2)   ;;  %v4282_v5 = vld [vmem:[%s5628_s1 + $0x48] sm:$0xff] (!%p140_p2)   ;;  %v4286_v9 = vld [vmem:[%s5628_s1 + $0x50] sm:$0xff] (!%p140_p2)   ;;  %p162_p3 = scmp.lt.s32.totalorder (!%p140_p2), %s3539_s15, 1  ;;  %vm3484_vm0 = vcmask (!%p140_p2), 7168  }
   0x8   : > { %143 = sbr.rel (%p140_p2) target bundleno = 518 (0x206), region = 32  ;;  %v4279_v2 = vld [vmem:[%s5628_s1 + $0xc0] sm:$0xff] (!%p140_p2)   ;;  %3873 = vmatprep.subr.bf16.mxu0 (!%p140_p2), %v4278_v1  ;;  %v4283_v6 = vld [vmem:[%s5628_s1 + $0xc8] sm:$0xff] (!%p140_p2)   ;;  %v4287_v10 = vld [vmem:[%s5628_s1 + $0xd0] sm:$0xff] (!%p140_p2)  }
   0x9   : > { %v4280_v3 = vld [vmem:[%s5628_s1] sm:$0xff] (!%p140_p2)   ;;  %3895 = vmatprep.subr.bf16.mxu1 (!%p140_p2), %v4279_v2  ;;  %v4284_v7 = vld [vmem:[%s5628_s1 + $0x8] sm:$0xff] (!%p140_p2)   ;;  %v4288_v11 = vld [vmem:[%s5628_s1 + $0x10] sm:$0xff] (!%p140_p2)  }
   0xa   : > { %v4281_v4 = vld [vmem:[%s5628_s1 + $0x80] sm:$0xff] (!%p140_p2)   ;;  %3874 = vmatpush3.bf16.msra.mxu0 (!%p140_p2), %v4280_v3  ;;  %v4285_v8 = vld [vmem:[%s5628_s1 + $0x88] sm:$0xff] (!%p140_p2)   ;;  %v4289_v12 = vld [vmem:[%s5628_s1 + $0x90] sm:$0xff] (!%p140_p2)  }
   0xb   : > { %3896 = vmatpush3.bf16.msra.mxu1 (!%p140_p2), %v4281_v4  ;;  %3875 = vmatprep.subr.bf16.mxu0 (!%p140_p2), %v4282_v5  ;;  %v4290_v13 = vld [vmem:[%s5628_s1 + $0x58] sm:$0xff] (!%p140_p2)   ;;  %v4294_v17 = vld [vmem:[%s5628_s1 + $0x60] sm:$0xff] (!%p140_p2)   ;;  %v4298_v21 = vld [vmem:[%s5628_s1 + $0x68] sm:$0xff] (!%p140_p2)  }
   0xc   : > { %3897 = vmatprep.subr.bf16.mxu1 (!%p140_p2), %v4283_v6  ;;  %v4291_v14 = vld [vmem:[%s5628_s1 + $0xd8] sm:$0xff] (!%p140_p2)   ;;  %v4295_v18 = vld [vmem:[%s5628_s1 + $0xe0] sm:$0xff] (!%p140_p2)   ;;  %v4299_v22 = vld [vmem:[%s5628_s1 + $0xe8] sm:$0xff] (!%p140_p2)  }
   0xd   : > { %v4292_v15 = vld [vmem:[%s5628_s1 + $0x18] sm:$0xff] (!%p140_p2)   ;;  %v4296_v19 = vld [vmem:[%s5628_s1 + $0x20] sm:$0xff] (!%p140_p2)   ;;  %v4300_v23 = vld [vmem:[%s5628_s1 + $0x28] sm:$0xff] (!%p140_p2)  }
   0xe   : > { %3876 = vmatpush3.bf16.msra.mxu0 (!%p140_p2), %v4284_v7  ;;  %v4293_v16 = vld [vmem:[%s5628_s1 + $0x98] sm:$0xff] (!%p140_p2)   ;;  %v4297_v20 = vld [vmem:[%s5628_s1 + $0xa0] sm:$0xff] (!%p140_p2)   ;;  %v4301_v24 = vld [vmem:[%s5628_s1 + $0xa8] sm:$0xff] (!%p140_p2)  }
   0xf   : > { %3898 = vmatpush3.bf16.msra.mxu1 %v4285_v8  ;;  %3877 = vmatprep.subr.bf16.mxu0 %v4286_v9  ;;  %s5632_s15 = smov (!%p162_p3, %s3539_s15), 1  ;;  %v4302_v25 = vld [vmem:[%s5628_s1 + $0x70] sm:$0xff]   ;;  %v4306_v29 = vld [vmem:[%s5628_s1 + $0x78] sm:$0xff]   ;;  %v4314_v39 = vld [vmem:[%s5628_s1 + $0x140] sm:$0xff]  }
  0x10   : > { %3899 = vmatprep.subr.bf16.mxu1 %v4287_v10  ;;  %v4303_v26 = vld [vmem:[%s5628_s1 + $0xf0] sm:$0xff]   ;;  %s4269_s16 = smul.u32 48, %s5632_s15  ;;  %v4307_v30 = vld [vmem:[%s5628_s1 + $0xf8] sm:$0xff]   ;;  %v4315_v40 = vld [vmem:[%s5628_s1 + $0x1c0] sm:$0xff]  }
  0x11   : > { %v4304_v27 = vld [vmem:[%s5628_s1 + $0x30] sm:$0xff]   ;;  %v4308_v31 = vld [vmem:[%s5628_s1 + $0x38] sm:$0xff]   ;;  %v4316_v41 = vld [vmem:[%s5628_s1 + $0x100] sm:$0xff]  }
  0x12   : > { %3878 = vmatpush3.bf16.msra.mxu0 %v4288_v11  ;;  %v4305_v28 = vld [vmem:[%s5628_s1 + $0xb0] sm:$0xff]   ;;  %s4741_s26 = scalar_lea.vmem %s5627_s0, %s4269_s16  ;;  %v4309_v32 = vld [vmem:[%s5628_s1 + $0xb8] sm:$0xff]   ;;  %v4317_v42 = vld [vmem:[%s5628_s1 + $0x180] sm:$0xff]  }
  0x13   : > { %3900 = vmatpush3.bf16.msra.mxu1 %v4289_v12  ;;  %3879 = vmatprep.subr.bf16.mxu0 %v4290_v13  ;;  %v4750_v33 = vld [vmem:[%s4741_s26] sm:$0xff]  ;;  %v4753_v34 = vld [vmem:[%s4741_s26 + $0x8] sm:$0xff]  ;;  %v4322_v47 = vld [vmem:[%s5628_s1 + $0x150] sm:$0xff]  }
  0x14   : > { %3901 = vmatprep.subr.bf16.mxu1 %v4291_v14  ;;  %v3547_v35 = vcombine.low %v4750_v33, %v4750_v33  ;;  %v3548_v36 = vcombine.high %v4750_v33, %v4750_v33  ;;  %v3549_v37 = vcombine.low %v4753_v34, %v4753_v34  ;;  %v3550_v38 = vcombine.high %v4753_v34, %v4753_v34  ;;  %v4318_v43 = vld [vmem:[%s5628_s1 + $0x148] sm:$0xff]   ;;  %v4323_v48 = vld [vmem:[%s5628_s1 + $0x1d0] sm:$0xff]   ;;  %v4326_v51 = vld [vmem:[%s5628_s1 + $0x158] sm:$0xff]  }
  0x15   : > { %v4319_v44 = vld [vmem:[%s5628_s1 + $0x1c8] sm:$0xff]   ;;  %v4324_v49 = vld [vmem:[%s5628_s1 + $0x110] sm:$0xff]   ;;  %v4327_v52 = vld [vmem:[%s5628_s1 + $0x1d8] sm:$0xff]  }
  0x16   : > { %3880 = vmatpush3.bf16.msra.mxu0 %v4292_v15  ;;  %483 = vmatprep.mubr.bf16.mxu0 %v3548_v36  ;;  %v4320_v45 = vld [vmem:[%s5628_s1 + $0x108] sm:$0xff]   ;;  %v4325_v50 = vld [vmem:[%s5628_s1 + $0x190] sm:$0xff]   ;;  %v4328_v53 = vld [vmem:[%s5628_s1 + $0x118] sm:$0xff]  }
  0x17   : > { %3902 = vmatpush3.bf16.msra.mxu1 %v4293_v16  ;;  %3881 = vmatprep.subr.bf16.mxu0 %v4294_v17  ;;  %v4321_v46 = vld [vmem:[%s5628_s1 + $0x188] sm:$0xff]   ;;  %v4329_v54 = vld [vmem:[%s5628_s1 + $0x198] sm:$0xff]   ;;  %v4330_v55 = vld [vmem:[%s5628_s1 + $0x160] sm:$0xff]  }
  0x18   : > { %3903 = vmatprep.subr.bf16.mxu1 %v4295_v18  ;;  %523 = vmatprep.mubr.bf16.mxu1 %v3550_v38  ;;  %v4331_v56 = vld [vmem:[%s5628_s1 + $0x1e0] sm:$0xff]   ;;  %v4334_v59 = vld [vmem:[%s5628_s1 + $0x168] sm:$0xff]   ;;  %v4338_v63 = vld [vmem:[%s5628_s1 + $0x170] sm:$0xff]  }
  0x19   : > { %v4332_v57 = vld [vmem:[%s5628_s1 + $0x120] sm:$0xff]   ;;  %v4335_v60 = vld [vmem:[%s5628_s1 + $0x1e8] sm:$0xff]   ;;  %v4339_v0 = vld [vmem:[%s5628_s1 + $0x1f0] sm:$0xff]  }
  0x1a   : > { %3882 = vmatpush3.bf16.msra.mxu0 %v4296_v19  ;;  %v4333_v58 = vld [vmem:[%s5628_s1 + $0x1a0] sm:$0xff]   ;;  %v4336_v61 = vld [vmem:[%s5628_s1 + $0x128] sm:$0xff]   ;;  %v4340_v1 = vld [vmem:[%s5628_s1 + $0x130] sm:$0xff]  }
  0x1b   : > { %3904 = vmatpush3.bf16.msra.mxu1 %v4297_v20  ;;  %3883 = vmatprep.subr.bf16.mxu0 %v4298_v21  ;;  %v4337_v62 = vld [vmem:[%s5628_s1 + $0x1a8] sm:$0xff]   ;;  %v4341_v2 = vld [vmem:[%s5628_s1 + $0x1b0] sm:$0xff]   ;;  %v4342_v3 = vld [vmem:[%s5628_s1 + $0x178] sm:$0xff]  }
  0x1c   : > { %3905 = vmatprep.subr.bf16.mxu1 %v4299_v22  ;;  %v4343_v4 = vld [vmem:[%s5628_s1 + $0x1f8] sm:$0xff]   ;;  %v4860_v7 = vld [vmem:[%s4741_s26 + $0x10] sm:$0x11]  ;;  %v4350_v13 = vld [vmem:[%s5628_s1 + $0x240] sm:$0xff]  }
  0x1d   : > { %v4344_v5 = vld [vmem:[%s5628_s1 + $0x138] sm:$0xff]   ;;  %v3583_v8 = vcombine.low %v4750_v33, %v4860_v7  ;;  %v3584_v9 = vcombine.high %v4750_v33, %v4860_v7  ;;  %v4351_v18 = vld [vmem:[%s5628_s1 + $0x2c0] sm:$0xff]   ;;  %v4354_v33 = vld [vmem:[%s5628_s1 + $0x248] sm:$0xff]  }
  0x1e   : > { %3884 = vmatpush3.bf16.msra.mxu0 %v4300_v23  ;;  %v4345_v6 = vld [vmem:[%s5628_s1 + $0x1b8] sm:$0xff]   ;;  %v4357_v36 = vld [vmem:[%s5628_s1 + $0x288] sm:$0xff]   ;;  %v4359_v38 = vld [vmem:[%s5628_s1 + $0x2d0] sm:$0xff]  }
  0x1f   : > { %3906 = vmatpush3.bf16.msra.mxu1 %v4301_v24  ;;  %3885 = vmatprep.subr.bf16.mxu0 %v4302_v25  ;;  %v4867_v10 = vld [vmem:[%s4741_s26 + $0x18] sm:$0x11]  ;;  %v624_v14 = vshrl.u32 %v3584_v9, 16  ;;  %v626_v15 = vshll.u32 %v3584_v9, 16  ;;  %v617_v16 = vshrl.u32 %v3583_v8, 16  ;;  %v619_v17 = vshll.u32 %v3583_v8, 16 }
  0x20   : > { %3907 = vmatprep.subr.bf16.mxu1 %v4303_v26  ;;  %v3585_v11 = vcombine.low %v4753_v34, %v4867_v10  ;;  %v3586_v12 = vcombine.high %v4753_v34, %v4867_v10  ;;  %v4355_v34 = vld [vmem:[%s5628_s1 + $0x2c8] sm:$0xff]   ;;  %v4388_v8 = vld [vmem:[%s5628_s1 + $0x300] sm:$0xff]  }
  0x21   : > { %v628_v23 = vrot.slane %v626_v15, 1  ;;  %v621_v24 = vrot.slane %v619_v17, 1  ;;  %v4394_v15 = vld [vmem:[%s5628_s1 + $0x350] sm:$0xff]  }
  0x22   : > { %3886 = vmatpush3.bf16.msra.mxu0 %v4304_v27  ;;  %v638_v19 = vshrl.u32 %v3586_v12, 16  ;;  %v640_v20 = vshll.u32 %v3586_v12, 16  ;;  %v631_v21 = vshrl.u32 %v3585_v11, 16  ;;  %v633_v22 = vshll.u32 %v3585_v11, 16  ;;  %v4352_v27 = vld [vmem:[%s5628_s1 + $0x200] sm:$0xff]   ;;  %v4390_v11 = vld [vmem:[%s5628_s1 + $0x348] sm:$0xff]  }
  0x23   : > { %3908 = vmatpush3.bf16.msra.mxu1 %v4305_v28  ;;  %3887 = vmatprep.subr.bf16.mxu0 %v4306_v29  ;;  %v4353_v28 = vld [vmem:[%s5628_s1 + $0x280] sm:$0xff]   ;;  %v629_v29 = vor.u32 %v628_v23, %v624_v14  ;;  %v4391_v12 = vld [vmem:[%s5628_s1 + $0x3c8] sm:$0xff]   ;;  %v4396_v17 = vld [vmem:[%s5628_s1 + $0x310] sm:$0xff]  }
  0x24   : > { %3909 = vmatprep.subr.bf16.mxu1 %v4307_v30  ;;  %v642_v25 = vrot.slane %v640_v20, 1  ;;  %v635_v26 = vrot.slane %v633_v22, 1  ;;  %v622_v30 = vor.u32 %v621_v24, %v617_v16  ;;  %v4393_v14 = vld [vmem:[%s5628_s1 + $0x388] sm:$0xff]   ;;  %v4395_v16 = vld [vmem:[%s5628_s1 + $0x3d0] sm:$0xff]   ;;  %v4399_v20 = vld [vmem:[%s5628_s1 + $0x3d8] sm:$0xff]  }
  0x25   : > { %v4401_v22 = vld [vmem:[%s5628_s1 + $0x398] sm:$0xff]   ;;  %v4402_v23 = vld [vmem:[%s5628_s1 + $0x360] sm:$0xff]  }
  0x26   : > { %3888 = vmatpush3.bf16.msra.mxu0 %v4308_v31  ;;  %v643_v31 = vor.u32 %v642_v25, %v638_v19  ;;  %v4398_v19 = vld [vmem:[%s5628_s1 + $0x358] sm:$0xff]   ;;  %v4403_v24 = vld [vmem:[%s5628_s1 + $0x3e0] sm:$0xff]  }
  0x27   : > { %3910 = vmatpush3.bf16.msra.mxu1 %v4309_v32  ;;  %3917 = vmatprep.subr.bf16.mxu0 %v4314_v39  ;;  %v636_v32 = vor.u32 %v635_v26, %v631_v21  ;;  %v4360_v39 = vld [vmem:[%s5628_s1 + $0x210] sm:$0xff]   ;;  %v4400_v21 = vld [vmem:[%s5628_s1 + $0x318] sm:$0xff]   ;;  %v4404_v25 = vld [vmem:[%s5628_s1 + $0x320] sm:$0xff]  }
  0x28   : > { %3939 = vmatprep.subr.bf16.mxu1 %v4315_v40  ;;  %v4361_v40 = vld [vmem:[%s5628_s1 + $0x290] sm:$0xff]   ;;  %v4405_v26 = vld [vmem:[%s5628_s1 + $0x3a0] sm:$0xff]  }
  0x29   : > { %484 = vmatmul.mubr.bf16.vlgmr.msra.gmra.mrb[0].mxu0 %v3547_v35  ;;  %v4356_v35 = vld [vmem:[%s5628_s1 + $0x208] sm:$0xff]  }
  0x2a   : > { %524 = vmatmul.mubr.bf16.vlgmr.msra.gmra.mrb[0].mxu1 %v3549_v37  ;;  %3918 = vmatpush3.bf16.msra.mxu0 %v4316_v41  ;;  %v4358_v37 = vld [vmem:[%s5628_s1 + $0x250] sm:$0xff]   ;;  %v4362_v41 = vld [vmem:[%s5628_s1 + $0x258] sm:$0xff]  }
  0x2b   : > { %3940 = vmatpush3.bf16.msra.mxu1 %v4317_v42  ;;  %3919 = vmatprep.subr.bf16.mxu0 %v4318_v43  ;;  %v4363_v42 = vld [vmem:[%s5628_s1 + $0x2d8] sm:$0xff]  }
  0x2c   : > { %3941 = vmatprep.subr.bf16.mxu1 %v4319_v44  ;;  %872 = vmatprep.mubr.bf16.mxu0 %v629_v29  ;;  %v4364_v43 = vld [vmem:[%s5628_s1 + $0x218] sm:$0xff]   ;;  %v4408_v29 = vld [vmem:[%s5628_s1 + $0x328] sm:$0xff]  }
  0x2d   : > { %912 = vmatprep.mubr.bf16.mxu1 %v643_v31  ;;  %v4365_v44 = vld [vmem:[%s5628_s1 + $0x298] sm:$0xff]   ;;  %v4410_v31 = vld [vmem:[%s5628_s1 + $0x370] sm:$0xff]  }
  0x2e   : > { %3920 = vmatpush3.bf16.msra.mxu0 %v4320_v45  ;;  %v4366_v45 = vld [vmem:[%s5628_s1 + $0x260] sm:$0xff]  }
  0x2f   : > { %3942 = vmatpush3.bf16.msra.mxu1 %v4321_v46  ;;  %3921 = vmatprep.subr.bf16.mxu0 %v4322_v47  ;;  %v4367_v46 = vld [vmem:[%s5628_s1 + $0x2e0] sm:$0xff]  }
  0x30   : > { %3943 = vmatprep.subr.bf16.mxu1 %v4323_v48  ;;  %v4368_v47 = vld [vmem:[%s5628_s1 + $0x220] sm:$0xff]  }
  0x31   : > { %v4369_v48 = vld [vmem:[%s5628_s1 + $0x2a0] sm:$0xff]  }
  0x32   : > { %3922 = vmatpush3.bf16.msra.mxu0 %v4324_v49  ;;  %v4370_v49 = vld [vmem:[%s5628_s1 + $0x268] sm:$0xff]  }
  0x33   : > { %3944 = vmatpush3.bf16.msra.mxu1 %v4325_v50  ;;  %3923 = vmatprep.subr.bf16.mxu0 %v4326_v51  ;;  %v4371_v50 = vld [vmem:[%s5628_s1 + $0x2e8] sm:$0xff]  }
  0x34   : > { %3945 = vmatprep.subr.bf16.mxu1 %v4327_v52  ;;  %v4372_v51 = vld [vmem:[%s5628_s1 + $0x228] sm:$0xff]  }
  0x35   : > { %v4373_v52 = vld [vmem:[%s5628_s1 + $0x2a8] sm:$0xff]  }
  0x36   : > { %3924 = vmatpush3.bf16.msra.mxu0 %v4328_v53  ;;  %v4374_v53 = vld [vmem:[%s5628_s1 + $0x270] sm:$0xff]  }
  0x37   : > { %3946 = vmatpush3.bf16.msra.mxu1 %v4329_v54  ;;  %3925 = vmatprep.subr.bf16.mxu0 %v4330_v55  ;;  %v4375_v54 = vld [vmem:[%s5628_s1 + $0x2f0] sm:$0xff]  }
  0x38   : > { %3947 = vmatprep.subr.bf16.mxu1 %v4331_v56  ;;  %v4376_v55 = vld [vmem:[%s5628_s1 + $0x230] sm:$0xff]  }
  0x39   : > { %v4377_v56 = vld [vmem:[%s5628_s1 + $0x2b0] sm:$0xff]  }
  0x3a   : > { %3926 = vmatpush3.bf16.msra.mxu0 %v4332_v57  ;;  %v4378_v57 = vld [vmem:[%s5628_s1 + $0x278] sm:$0xff]  }
  0x3b   : > { %3948 = vmatpush3.bf16.msra.mxu1 %v4333_v58  ;;  %3927 = vmatprep.subr.bf16.mxu0 %v4334_v59  ;;  %v4379_v58 = vld [vmem:[%s5628_s1 + $0x2f8] sm:$0xff]  }
  0x3c   : > { %3949 = vmatprep.subr.bf16.mxu1 %v4335_v60  ;;  %v4380_v59 = vld [vmem:[%s5628_s1 + $0x238] sm:$0xff]   ;;  %v921_v60 = vld [vmem:[%s4741_s26] sm:$0xee] }
  0x3e   : > { %3928 = vmatpush3.bf16.msra.mxu0 %v4336_v61  ;;  %v3619_v61 = vcombine.low %v921_v60, %v4860_v7 }
  0x3f   : > { %3950 = vmatpush3.bf16.msra.mxu1 %v4337_v62  ;;  %3929 = vmatprep.subr.bf16.mxu0 %v4338_v63  ;;  %v3620_v62 = vcombine.high %v921_v60, %v4860_v7  ;;  %v922_v63 = vld [vmem:[%s4741_s26 + $0x8] sm:$0xee]  ;;  %v4431_v60 = vld [vmem:[%s5628_s1 + $0x4d0] sm:$0xff]  }
  0x40   : > { %3951 = vmatprep.subr.bf16.mxu1 %v4339_v0  ;;  %v4381_v0 = vld [vmem:[%s5628_s1 + $0x2b8] sm:$0xff]  }
  0x42   : > { %3930 = vmatpush3.bf16.msra.mxu0 %v4340_v1  ;;  %v3621_v1 = vcombine.low %v922_v63, %v4867_v10 }
  0x43   : > { %3952 = vmatpush3.bf16.msra.mxu1 %v4341_v2  ;;  %3931 = vmatprep.subr.bf16.mxu0 %v4342_v3  ;;  %v3622_v2 = vcombine.high %v922_v63, %v4867_v10  ;;  %v997_v3 = vrot.slane %v3619_v61, 1  ;;  %v4389_v10 = vld [vmem:[%s5628_s1 + $0x380] sm:$0xff]   ;;  %v4432_v61 = vld [vmem:[%s5628_s1 + $0x410] sm:$0xff]   ;;  %v4434_v63 = vld [vmem:[%s5628_s1 + $0x458] sm:$0xff]  }
  0x44   : > { %3953 = vmatprep.subr.bf16.mxu1 %v4343_v4  ;;  %v998_v4 = vrot.slane %v3620_v62, 1  ;;  %v999_v9 = vrot.slane %v3621_v1, 1  ;;  %v4433_v62 = vld [vmem:[%s5628_s1 + $0x490] sm:$0xff]   ;;  %v4436_v1 = vld [vmem:[%s5628_s1 + $0x418] sm:$0xff]  }
  0x45   : > { %v1000_v7 = vrot.slane %v3622_v2, 1  ;;  %v4437_v2 = vld [vmem:[%s5628_s1 + $0x498] sm:$0xff]  }
  0x46   : > { %3932 = vmatpush3.bf16.msra.mxu0 %v4344_v5  ;;  %v4386_v5 = vld [vmem:[%s5628_s1 + $0x340] sm:$0xff]  }
  0x47   : > { %3954 = vmatpush3.bf16.msra.mxu1 %v4345_v6  ;;  %3961 = vmatprep.subr.bf16.mxu0 %v4350_v13  ;;  %v4387_v6 = vld [vmem:[%s5628_s1 + $0x3c0] sm:$0xff]   ;;  %v4392_v13 = vld [vmem:[%s5628_s1 + $0x308] sm:$0xff]  }
  0x48   : > { %3983 = vmatprep.subr.bf16.mxu1 %v4351_v18  ;;  %v4397_v18 = vld [vmem:[%s5628_s1 + $0x390] sm:$0xff]  }
  0x49   : > { %873 = vmatmul.mubr.bf16.vlgmr.msra.gmra.mrb[4].mxu0 %v622_v30  ;;  %v4409_v30 = vld [vmem:[%s5628_s1 + $0x3a8] sm:$0xff]  }
  0x4a   : > { %913 = vmatmul.mubr.bf16.vlgmr.msra.gmra.mrb[4].mxu1 %v636_v32  ;;  %3962 = vmatpush3.bf16.msra.mxu0 %v4352_v27  ;;  %v4406_v27 = vld [vmem:[%s5628_s1 + $0x368] sm:$0xff]   ;;  %v4411_v32 = vld [vmem:[%s5628_s1 + $0x3f0] sm:$0xff]  }
  0x4b   : > { %3984 = vmatpush3.bf16.msra.mxu1 %v4353_v28  ;;  %3963 = vmatprep.subr.bf16.mxu0 %v4354_v33  ;;  %v4407_v28 = vld [vmem:[%s5628_s1 + $0x3e8] sm:$0xff]   ;;  %v4412_v33 = vld [vmem:[%s5628_s1 + $0x330] sm:$0xff]  }
  0x4c   : > { %3985 = vmatprep.subr.bf16.mxu1 %v4355_v34  ;;  %1229 = vmatprep.mubr.bf16.mxu0 %v998_v4  ;;  %v4413_v34 = vld [vmem:[%s5628_s1 + $0x3b0] sm:$0xff]   ;;  %v4439_v4 = vld [vmem:[%s5628_s1 + $0x4e0] sm:$0xff]  }
  0x4d   : > { %1269 = vmatprep.mubr.bf16.mxu1 %v1000_v7  ;;  %v4442_v7 = vld [vmem:[%s5628_s1 + $0x468] sm:$0xff]  }
  0x4e   : > { %3964 = vmatpush3.bf16.msra.mxu0 %v4356_v35  ;;  %v4414_v35 = vld [vmem:[%s5628_s1 + $0x378] sm:$0xff]  }
  0x4f   : > { %3986 = vmatpush3.bf16.msra.mxu1 %v4357_v36  ;;  %3965 = vmatprep.subr.bf16.mxu0 %v4358_v37  ;;  %v4415_v36 = vld [vmem:[%s5628_s1 + $0x3f8] sm:$0xff]  }
  0x50   : > { %3987 = vmatprep.subr.bf16.mxu1 %v4359_v38  ;;  %v4416_v37 = vld [vmem:[%s5628_s1 + $0x338] sm:$0xff]  }
  0x51   : > { %v4417_v38 = vld [vmem:[%s5628_s1 + $0x3b8] sm:$0xff]  }
  0x52   : > { %3966 = vmatpush3.bf16.msra.mxu0 %v4360_v39  ;;  %v5072_v39 = vld [vmem:[%s4741_s26] sm:$0xcc] }
  0x53   : > { %3988 = vmatpush3.bf16.msra.mxu1 %v4361_v40  ;;  %3967 = vmatprep.subr.bf16.mxu0 %v4362_v41  ;;  %v1280_v40 = vld [vmem:[%s4741_s26 + $0x10] sm:$0x33]  ;;  %v5076_v41 = vld [vmem:[%s4741_s26 + $0x8] sm:$0xcc] }
  0x54   : > { %3989 = vmatprep.subr.bf16.mxu1 %v4363_v42  ;;  %v1281_v42 = vld [vmem:[%s4741_s26 + $0x18] sm:$0x33] }
  0x56   : > { %3968 = vmatpush3.bf16.msra.mxu0 %v4364_v43  ;;  %v3655_v43 = vcombine.low %v5072_v39, %v1280_v40 }
  0x57   : > { %3990 = vmatpush3.bf16.msra.mxu1 %v4365_v44  ;;  %3969 = vmatprep.subr.bf16.mxu0 %v4366_v45  ;;  %v3656_v44 = vcombine.high %v5072_v39, %v1280_v40  ;;  %v3657_v45 = vcombine.low %v5076_v41, %v1281_v42 }
  0x58   : > { %3991 = vmatprep.subr.bf16.mxu1 %v4367_v46  ;;  %v3658_v46 = vcombine.high %v5076_v41, %v1281_v42 }
  0x5a   : > { %3970 = vmatpush3.bf16.msra.mxu0 %v4368_v47  ;;  %v4422_v47 = vld [vmem:[%s5628_s1 + $0x440] sm:$0xff]  }
  0x5b   : > { %3992 = vmatpush3.bf16.msra.mxu1 %v4369_v48  ;;  %3971 = vmatprep.subr.bf16.mxu0 %v4370_v49  ;;  %v4423_v48 = vld [vmem:[%s5628_s1 + $0x4c0] sm:$0xff]   ;;  %v1362_v49 = vrot.slane %v3655_v43, 2 }
  0x5c   : > { %3993 = vmatprep.subr.bf16.mxu1 %v4371_v50  ;;  %v1363_v50 = vrot.slane %v3656_v44, 2 }
  0x5e   : > { %3972 = vmatpush3.bf16.msra.mxu0 %v4372_v51  ;;  %v1364_v51 = vrot.slane %v3657_v45, 2 }
  0x5f   : > { %3994 = vmatpush3.bf16.msra.mxu1 %v4373_v52  ;;  %3973 = vmatprep.subr.bf16.mxu0 %v4374_v53  ;;  %v1365_v52 = vrot.slane %v3658_v46, 2  ;;  %v4424_v53 = vld [vmem:[%s5628_s1 + $0x400] sm:$0xff]  }
  0x60   : > { %3995 = vmatprep.subr.bf16.mxu1 %v4375_v54  ;;  %v4425_v54 = vld [vmem:[%s5628_s1 + $0x480] sm:$0xff]  }
  0x61   : > { %v4461_v46 = vld [vmem:[%s5628_s1 + $0x580] sm:$0xff]  }
  0x62   : > { %3974 = vmatpush3.bf16.msra.mxu0 %v4376_v55  ;;  %v4426_v55 = vld [vmem:[%s5628_s1 + $0x448] sm:$0xff]  }
  0x63   : > { %3996 = vmatpush3.bf16.msra.mxu1 %v4377_v56  ;;  %3975 = vmatprep.subr.bf16.mxu0 %v4378_v57  ;;  %v4427_v56 = vld [vmem:[%s5628_s1 + $0x4c8] sm:$0xff]  }
  0x64   : > { %3997 = vmatprep.subr.bf16.mxu1 %v4379_v58  ;;  %v4428_v57 = vld [vmem:[%s5628_s1 + $0x408] sm:$0xff]  }
  0x65   : > { %v4429_v58 = vld [vmem:[%s5628_s1 + $0x488] sm:$0xff]  }
  0x66   : > { %3976 = vmatpush3.bf16.msra.mxu0 %v4380_v59  ;;  %v4430_v59 = vld [vmem:[%s5628_s1 + $0x450] sm:$0xff]  }
  0x67   : > { %3998 = vmatpush3.bf16.msra.mxu1 %v4381_v0  ;;  %4005 = vmatprep.subr.bf16.mxu0 %v4386_v5  ;;  %v4435_v0 = vld [vmem:[%s5628_s1 + $0x4d8] sm:$0xff]   ;;  %v4440_v5 = vld [vmem:[%s5628_s1 + $0x420] sm:$0xff]  }
  0x68   : > { %4027 = vmatprep.subr.bf16.mxu1 %v4387_v6  ;;  %v4441_v6 = vld [vmem:[%s5628_s1 + $0x4a0] sm:$0xff]  }
  0x69   : > { %1230 = vmatmul.mubr.bf16.vlgmr.msra.gmra.mrb[8].mxu0 %v997_v3  ;;  %v4438_v3 = vld [vmem:[%s5628_s1 + $0x460] sm:$0xff]  }
  0x6a   : > { %1270 = vmatmul.mubr.bf16.vlgmr.msra.gmra.mrb[8].mxu1 %v999_v9  ;;  %4006 = vmatpush3.bf16.msra.mxu0 %v4388_v8  ;;  %v4443_v8 = vld [vmem:[%s5628_s1 + $0x4e8] sm:$0xff]  }
  0x6b   : > { %4028 = vmatpush3.bf16.msra.mxu1 %v4389_v10  ;;  %4007 = vmatprep.subr.bf16.mxu0 %v4390_v11  ;;  %v4444_v9 = vld [vmem:[%s5628_s1 + $0x428] sm:$0xff]   ;;  %v4446_v11 = vld [vmem:[%s5628_s1 + $0x470] sm:$0xff]  }
  0x6c   : > { %4029 = vmatprep.subr.bf16.mxu1 %v4391_v12  ;;  %1594 = vmatprep.mubr.bf16.mxu0 %v1363_v50  ;;  %v4445_v10 = vld [vmem:[%s5628_s1 + $0x4a8] sm:$0xff]   ;;  %v4447_v12 = vld [vmem:[%s5628_s1 + $0x4f0] sm:$0xff]  }
  0x6d   : > { %1634 = vmatprep.mubr.bf16.mxu1 %v1365_v52  ;;  %v4463_v50 = vld [vmem:[%s5628_s1 + $0x5c8] sm:$0xff]  }
  0x6e   : > { %4008 = vmatpush3.bf16.msra.mxu0 %v4392_v13  ;;  %v4448_v13 = vld [vmem:[%s5628_s1 + $0x430] sm:$0xff]   ;;  %v4465_v52 = vld [vmem:[%s5628_s1 + $0x588] sm:$0xff]  }
  0x6f   : > { %4030 = vmatpush3.bf16.msra.mxu1 %v4393_v14  ;;  %4009 = vmatprep.subr.bf16.mxu0 %v4394_v15  ;;  %v4449_v14 = vld [vmem:[%s5628_s1 + $0x4b0] sm:$0xff]   ;;  %v4450_v15 = vld [vmem:[%s5628_s1 + $0x478] sm:$0xff]  }
  0x70   : > { %4031 = vmatprep.subr.bf16.mxu1 %v4395_v16  ;;  %v4451_v16 = vld [vmem:[%s5628_s1 + $0x4f8] sm:$0xff]  }
  0x72   : > { %4010 = vmatpush3.bf16.msra.mxu0 %v4396_v17  ;;  %v4452_v17 = vld [vmem:[%s5628_s1 + $0x438] sm:$0xff]  }
  0x73   : > { %4032 = vmatpush3.bf16.msra.mxu1 %v4397_v18  ;;  %4011 = vmatprep.subr.bf16.mxu0 %v4398_v19  ;;  %v4453_v18 = vld [vmem:[%s5628_s1 + $0x4b8] sm:$0xff]   ;;  %v5180_v19 = vld [vmem:[%s4741_s26 + $0x10] sm:$0x77] }
  0x74   : > { %4033 = vmatprep.subr.bf16.mxu1 %v4399_v20  ;;  %v3692_v20 = vcombine.high %v5072_v39, %v5180_v19 }
  0x76   : > { %4012 = vmatpush3.bf16.msra.mxu0 %v4400_v21  ;;  %v5185_v21 = vld [vmem:[%s4741_s26 + $0x18] sm:$0x77] }
  0x77   : > { %4034 = vmatpush3.bf16.msra.mxu1 %v4401_v22  ;;  %4013 = vmatprep.subr.bf16.mxu0 %v4402_v23  ;;  %v3691_v22 = vcombine.low %v5072_v39, %v5180_v19  ;;  %v3694_v23 = vcombine.high %v5076_v41, %v5185_v21  ;;  %v4460_v39 = vld [vmem:[%s5628_s1 + $0x500] sm:$0xff]  }
  0x78   : > { %4035 = vmatprep.subr.bf16.mxu1 %v4403_v24  ;;  %v3693_v24 = vcombine.low %v5076_v41, %v5185_v21 }
  0x7a   : > { %4014 = vmatpush3.bf16.msra.mxu0 %v4404_v25  ;;  %v4458_v25 = vld [vmem:[%s5628_s1 + $0x540] sm:$0xff]  }
  0x7b   : > { %4036 = vmatpush3.bf16.msra.mxu1 %v4405_v26  ;;  %4015 = vmatprep.subr.bf16.mxu0 %v4406_v27  ;;  %v1728_v26 = vshrl.u32 %v3692_v20, 16  ;;  %v1731_v27 = vshll.u32 %v3692_v20, 16  ;;  %v4494_v20 = vld [vmem:[%s5628_s1 + $0x640] sm:$0xff]  }
  0x7c   : > { %4037 = vmatprep.subr.bf16.mxu1 %v4407_v28  ;;  %v1720_v28 = vshrl.u32 %v3691_v22, 16 }
  0x7e   : > { %4016 = vmatpush3.bf16.msra.mxu0 %v4408_v29  ;;  %v1723_v29 = vshll.u32 %v3691_v22, 16 }
  0x7f   : > { %4038 = vmatpush3.bf16.msra.mxu1 %v4409_v30  ;;  %4017 = vmatprep.subr.bf16.mxu0 %v4410_v31  ;;  %v4459_v30 = vld [vmem:[%s5628_s1 + $0x5c0] sm:$0xff]   ;;  %v1744_v31 = vshrl.u32 %v3694_v23, 16 }
  0x80   : > { %4039 = vmatprep.subr.bf16.mxu1 %v4411_v32  ;;  %v1747_v32 = vshll.u32 %v3694_v23, 16 }
  0x81   : > { %v1746_v40 = vrot.slane %v1744_v31, 2  ;;  %v4502_v31 = vld [vmem:[%s5628_s1 + $0x650] sm:$0xff]  }
  0x82   : > { %4018 = vmatpush3.bf16.msra.mxu0 %v4412_v33  ;;  %v1736_v33 = vshrl.u32 %v3693_v24, 16  ;;  %v1749_v41 = vrot.slane %v1747_v32, 3  ;;  %v4503_v32 = vld [vmem:[%s5628_s1 + $0x6d0] sm:$0xff]  }
  0x83   : > { %4040 = vmatpush3.bf16.msra.mxu1 %v4413_v34  ;;  %4019 = vmatprep.subr.bf16.mxu0 %v4414_v35  ;;  %v1739_v34 = vshll.u32 %v3693_v24, 16  ;;  %v1730_v35 = vrot.slane %v1728_v26, 2  ;;  %v4495_v24 = vld [vmem:[%s5628_s1 + $0x6c0] sm:$0xff]  }
  0x84   : > { %4041 = vmatprep.subr.bf16.mxu1 %v4415_v36  ;;  %v1733_v36 = vrot.slane %v1731_v27, 3  ;;  %v1738_v42 = vrot.slane %v1736_v33, 2  ;;  %v4498_v27 = vld [vmem:[%s5628_s1 + $0x648] sm:$0xff]   ;;  %v4504_v33 = vld [vmem:[%s5628_s1 + $0x610] sm:$0xff]  }
  0x85   : > { %v1741_v43 = vrot.slane %v1739_v34, 3  ;;  %v4505_v34 = vld [vmem:[%s5628_s1 + $0x690] sm:$0xff]  }
  0x86   : > { %4020 = vmatpush3.bf16.msra.mxu0 %v4416_v37  ;;  %v1722_v37 = vrot.slane %v1720_v28, 2  ;;  %v1734_v44 = vor.u32 %v1733_v36, %v1730_v35  ;;  %v4499_v28 = vld [vmem:[%s5628_s1 + $0x6c8] sm:$0xff]   ;;  %v4506_v35 = vld [vmem:[%s5628_s1 + $0x658] sm:$0xff]  }
  0x87   : > { %4042 = vmatpush3.bf16.msra.mxu1 %v4417_v38  ;;  %4049 = vmatprep.subr.bf16.mxu0 %v4422_v47  ;;  %v1725_v38 = vrot.slane %v1723_v29, 3  ;;  %v1750_v47 = vor.u32 %v1749_v41, %v1746_v40  ;;  %v4500_v29 = vld [vmem:[%s5628_s1 + $0x608] sm:$0xff]   ;;  %v4507_v36 = vld [vmem:[%s5628_s1 + $0x6d8] sm:$0xff]   ;;  %v4511_v40 = vld [vmem:[%s5628_s1 + $0x6e0] sm:$0xff]  }
  0x88   : > { %4071 = vmatprep.subr.bf16.mxu1 %v4423_v48  ;;  %v1742_v48 = vor.u32 %v1741_v43, %v1738_v42  ;;  %v4512_v41 = vld [vmem:[%s5628_s1 + $0x620] sm:$0xff]   ;;  %v4514_v43 = vld [vmem:[%s5628_s1 + $0x668] sm:$0xff]  }
  0x89   : > { %1595 = vmatmul.mubr.bf16.vlgmr.msra.gmra.mrb[12].mxu0 %v1362_v49  ;;  %v1726_v45 = vor.u32 %v1725_v38, %v1722_v37  ;;  %v4462_v49 = vld [vmem:[%s5628_s1 + $0x548] sm:$0xff]   ;;  %v4508_v37 = vld [vmem:[%s5628_s1 + $0x618] sm:$0xff]   ;;  %v4513_v42 = vld [vmem:[%s5628_s1 + $0x6a0] sm:$0xff]  }
  0x8a   : > { %1635 = vmatmul.mubr.bf16.vlgmr.msra.gmra.mrb[12].mxu1 %v1364_v51  ;;  %4050 = vmatpush3.bf16.msra.mxu0 %v4424_v53  ;;  %v4464_v51 = vld [vmem:[%s5628_s1 + $0x508] sm:$0xff]   ;;  %v4466_v53 = vld [vmem:[%s5628_s1 + $0x550] sm:$0xff]   ;;  %v4509_v38 = vld [vmem:[%s5628_s1 + $0x698] sm:$0xff]  }
  0x8b   : > { %4072 = vmatpush3.bf16.msra.mxu1 %v4425_v54  ;;  %4051 = vmatprep.subr.bf16.mxu0 %v4426_v55  ;;  %v4467_v54 = vld [vmem:[%s5628_s1 + $0x5d0] sm:$0xff]  }
  0x8c   : > { %4073 = vmatprep.subr.bf16.mxu1 %v4427_v56  ;;  %1979 = vmatprep.mubr.bf16.mxu0 %v1734_v44  ;;  %v4468_v55 = vld [vmem:[%s5628_s1 + $0x510] sm:$0xff]   ;;  %v4515_v44 = vld [vmem:[%s5628_s1 + $0x6e8] sm:$0xff]  }
  0x8d   : > { %2019 = vmatprep.mubr.bf16.mxu1 %v1750_v47  ;;  %v4469_v56 = vld [vmem:[%s5628_s1 + $0x590] sm:$0xff]  }
  0x8e   : > { %4052 = vmatpush3.bf16.msra.mxu0 %v4428_v57  ;;  %v4470_v57 = vld [vmem:[%s5628_s1 + $0x558] sm:$0xff]   ;;  %v4518_v47 = vld [vmem:[%s5628_s1 + $0x670] sm:$0xff]  }
  0x8f   : > { %4074 = vmatpush3.bf16.msra.mxu1 %v4429_v58  ;;  %4053 = vmatprep.subr.bf16.mxu0 %v4430_v59  ;;  %v4471_v58 = vld [vmem:[%s5628_s1 + $0x5d8] sm:$0xff]  }
  0x90   : > { %4075 = vmatprep.subr.bf16.mxu1 %v4431_v60  ;;  %v4472_v59 = vld [vmem:[%s5628_s1 + $0x518] sm:$0xff]  }
  0x91   : > { %v4473_v60 = vld [vmem:[%s5628_s1 + $0x598] sm:$0xff]  }
  0x92   : > { %4054 = vmatpush3.bf16.msra.mxu0 %v4432_v61  ;;  %v4474_v61 = vld [vmem:[%s5628_s1 + $0x560] sm:$0xff]  }
  0x93   : > { %4076 = vmatpush3.bf16.msra.mxu1 %v4433_v62  ;;  %4055 = vmatprep.subr.bf16.mxu0 %v4434_v63  ;;  %v4475_v62 = vld [vmem:[%s5628_s1 + $0x5e0] sm:$0xff]  }
  0x94   : > { %4077 = vmatprep.subr.bf16.mxu1 %v4435_v0  ;;  %v4476_v63 = vld [vmem:[%s5628_s1 + $0x520] sm:$0xff]  }
  0x95   : > { %v4477_v0 = vld [vmem:[%s5628_s1 + $0x5a0] sm:$0xff]  }
  0x96   : > { %4056 = vmatpush3.bf16.msra.mxu0 %v4436_v1  ;;  %v4478_v1 = vld [vmem:[%s5628_s1 + $0x568] sm:$0xff]  }
  0x97   : > { %4078 = vmatpush3.bf16.msra.mxu1 %v4437_v2  ;;  %4057 = vmatprep.subr.bf16.mxu0 %v4438_v3  ;;  %v4479_v2 = vld [vmem:[%s5628_s1 + $0x5e8] sm:$0xff]  }
  0x98   : > { %4079 = vmatprep.subr.bf16.mxu1 %v4439_v4  ;;  %v4480_v3 = vld [vmem:[%s5628_s1 + $0x528] sm:$0xff]  }
  0x99   : > { %v4481_v4 = vld [vmem:[%s5628_s1 + $0x5a8] sm:$0xff]  }
  0x9a   : > { %4058 = vmatpush3.bf16.msra.mxu0 %v4440_v5  ;;  %v4482_v5 = vld [vmem:[%s5628_s1 + $0x570] sm:$0xff]  }
  0x9b   : > { %4080 = vmatpush3.bf16.msra.mxu1 %v4441_v6  ;;  %4059 = vmatprep.subr.bf16.mxu0 %v4442_v7  ;;  %v4483_v6 = vld [vmem:[%s5628_s1 + $0x5f0] sm:$0xff]  }
  0x9c   : > { %4081 = vmatprep.subr.bf16.mxu1 %v4443_v8  ;;  %v4484_v7 = vld [vmem:[%s5628_s1 + $0x530] sm:$0xff]  }
  0x9d   : > { %v4485_v8 = vld [vmem:[%s5628_s1 + $0x5b0] sm:$0xff]  }
  0x9e   : > { %4060 = vmatpush3.bf16.msra.mxu0 %v4444_v9  ;;  %v4486_v9 = vld [vmem:[%s5628_s1 + $0x578] sm:$0xff]  }
  0x9f   : > { %4082 = vmatpush3.bf16.msra.mxu1 %v4445_v10  ;;  %4061 = vmatprep.subr.bf16.mxu0 %v4446_v11  ;;  %v4487_v10 = vld [vmem:[%s5628_s1 + $0x5f8] sm:$0xff]  }
  0xa0   : > { %4083 = vmatprep.subr.bf16.mxu1 %v4447_v12  ;;  %v4488_v11 = vld [vmem:[%s5628_s1 + $0x538] sm:$0xff]  }
  0xa1   : > { %v4489_v12 = vld [vmem:[%s5628_s1 + $0x5b8] sm:$0xff]  }
  0xa2   : > { %4062 = vmatpush3.bf16.msra.mxu0 %v4448_v13  ;;  %v2028_v13 = vld [vmem:[%s4741_s26] sm:$0x88] }
  0xa3   : > { %4084 = vmatpush3.bf16.msra.mxu1 %v4449_v14  ;;  %4063 = vmatprep.subr.bf16.mxu0 %v4450_v15  ;;  %v3727_v14 = vcombine.low %v2028_v13, %v5180_v19  ;;  %v3728_v15 = vcombine.high %v2028_v13, %v5180_v19  ;;  %v4496_v19 = vld [vmem:[%s5628_s1 + $0x600] sm:$0xff]   ;;  %v4544_v13 = vld [vmem:[%s5628_s1 + $0x718] sm:$0xff]  }
  0xa4   : > { %4085 = vmatprep.subr.bf16.mxu1 %v4451_v16  ;;  %v2029_v16 = vld [vmem:[%s4741_s26 + $0x8] sm:$0x88] }
  0xa5   : > { %v2104_v22 = vrot.slane %v3727_v14, 3  ;;  %v2105_v23 = vrot.slane %v3728_v15, 3  ;;  %v4545_v15 = vld [vmem:[%s5628_s1 + $0x798] sm:$0xff]  }
  0xa6   : > { %4064 = vmatpush3.bf16.msra.mxu0 %v4452_v17  ;;  %v3729_v17 = vcombine.low %v2029_v16, %v5185_v21 }
  0xa7   : > { %4086 = vmatpush3.bf16.msra.mxu1 %v4453_v18  ;;  %4093 = vmatprep.subr.bf16.mxu0 %v4458_v25  ;;  %v3730_v18 = vcombine.high %v2029_v16, %v5185_v21  ;;  %v4497_v21 = vld [vmem:[%s5628_s1 + $0x680] sm:$0xff]  }
  0xa8   : > { %4115 = vmatprep.subr.bf16.mxu1 %v4459_v30  ;;  %v2106_v25 = vrot.slane %v3729_v17, 3  ;;  %v4501_v30 = vld [vmem:[%s5628_s1 + $0x688] sm:$0xff]  }
  0xa9   : > { %1980 = vmatmul.mubr.bf16.vlgmr.msra.gmra.mrb[16].mxu0 %v1726_v45  ;;  %v2107_v26 = vrot.slane %v3730_v18, 3  ;;  %v4516_v45 = vld [vmem:[%s5628_s1 + $0x628] sm:$0xff]   ;;  %v4546_v18 = vld [vmem:[%s5628_s1 + $0x760] sm:$0xff]  }
  0xaa   : > { %2020 = vmatmul.mubr.bf16.vlgmr.msra.gmra.mrb[16].mxu1 %v1742_v48  ;;  %4094 = vmatpush3.bf16.msra.mxu0 %v4460_v39  ;;  %v4510_v39 = vld [vmem:[%s5628_s1 + $0x660] sm:$0xff]   ;;  %v4519_v48 = vld [vmem:[%s5628_s1 + $0x6f0] sm:$0xff]  }
  0xab   : > { %4116 = vmatpush3.bf16.msra.mxu1 %v4461_v46  ;;  %4095 = vmatprep.subr.bf16.mxu0 %v4462_v49  ;;  %v4517_v46 = vld [vmem:[%s5628_s1 + $0x6a8] sm:$0xff]   ;;  %v4520_v49 = vld [vmem:[%s5628_s1 + $0x630] sm:$0xff]  }
  0xac   : > { %4117 = vmatprep.subr.bf16.mxu1 %v4463_v50  ;;  %2336 = vmatprep.mubr.bf16.mxu0 %v2105_v23  ;;  %v4521_v50 = vld [vmem:[%s5628_s1 + $0x6b0] sm:$0xff]   ;;  %v4547_v23 = vld [vmem:[%s5628_s1 + $0x7e0] sm:$0xff]  }
  0xad   : > { %2376 = vmatprep.mubr.bf16.mxu1 %v2107_v26 }
  0xae   : > { %4096 = vmatpush3.bf16.msra.mxu0 %v4464_v51  ;;  %v4522_v51 = vld [vmem:[%s5628_s1 + $0x678] sm:$0xff]  }
  0xaf   : > { %4118 = vmatpush3.bf16.msra.mxu1 %v4465_v52  ;;  %4097 = vmatprep.subr.bf16.mxu0 %v4466_v53  ;;  %v4523_v52 = vld [vmem:[%s5628_s1 + $0x6f8] sm:$0xff]  }
  0xb0   : > { %4119 = vmatprep.subr.bf16.mxu1 %v4467_v54  ;;  %v4524_v53 = vld [vmem:[%s5628_s1 + $0x638] sm:$0xff]  }
  0xb1   : > { %v4525_v54 = vld [vmem:[%s5628_s1 + $0x6b8] sm:$0xff]  }
  0xb2   : > { %4098 = vmatpush3.bf16.msra.mxu0 %v4468_v55  ;;  %v5392_v55 = vld [vmem:[%s4741_s26 + $0x10] sm:$0xff] }
  0xb3   : > { %4120 = vmatpush3.bf16.msra.mxu1 %v4469_v56  ;;  %4099 = vmatprep.subr.bf16.mxu0 %v4470_v57  ;;  %v3764_v56 = vcombine.high %v5392_v55, %v5392_v55  ;;  %v5397_v57 = vld [vmem:[%s4741_s26 + $0x18] sm:$0xff] }
  0xb4   : > { %4121 = vmatprep.subr.bf16.mxu1 %v4471_v58  ;;  %v3763_v58 = vcombine.low %v5392_v55, %v5392_v55 }
  0xb6   : > { %4100 = vmatpush3.bf16.msra.mxu0 %v4472_v59  ;;  %v3766_v59 = vcombine.high %v5397_v57, %v5397_v57 }
  0xb7   : > { %4122 = vmatpush3.bf16.msra.mxu1 %v4473_v60  ;;  %4101 = vmatprep.subr.bf16.mxu0 %v4474_v61  ;;  %v4530_v60 = vld [vmem:[%s5628_s1 + $0x740] sm:$0xff]   ;;  %v3765_v61 = vcombine.low %v5397_v57, %v5397_v57 }
  0xb8   : > { %4123 = vmatprep.subr.bf16.mxu1 %v4475_v62  ;;  %v4531_v62 = vld [vmem:[%s5628_s1 + $0x7c0] sm:$0xff]  }
  0xba   : > { %4102 = vmatpush3.bf16.msra.mxu0 %v4476_v63  ;;  %v4532_v63 = vld [vmem:[%s5628_s1 + $0x700] sm:$0xff]  }
  0xbb   : > { %4124 = vmatpush3.bf16.msra.mxu1 %v4477_v0  ;;  %4103 = vmatprep.subr.bf16.mxu0 %v4478_v1  ;;  %v4533_v0 = vld [vmem:[%s5628_s1 + $0x780] sm:$0xff]   ;;  %v4534_v1 = vld [vmem:[%s5628_s1 + $0x748] sm:$0xff]  }
  0xbc   : > { %4125 = vmatprep.subr.bf16.mxu1 %v4479_v2  ;;  %v4535_v2 = vld [vmem:[%s5628_s1 + $0x7c8] sm:$0xff]  }
  0xbe   : > { %4104 = vmatpush3.bf16.msra.mxu0 %v4480_v3  ;;  %v4536_v3 = vld [vmem:[%s5628_s1 + $0x708] sm:$0xff]  }
  0xbf   : > { %4126 = vmatpush3.bf16.msra.mxu1 %v4481_v4  ;;  %4105 = vmatprep.subr.bf16.mxu0 %v4482_v5  ;;  %v4537_v4 = vld [vmem:[%s5628_s1 + $0x788] sm:$0xff]   ;;  %v4538_v5 = vld [vmem:[%s5628_s1 + $0x750] sm:$0xff]  }
  0xc0   : > { %4127 = vmatprep.subr.bf16.mxu1 %v4483_v6  ;;  %v4539_v6 = vld [vmem:[%s5628_s1 + $0x7d0] sm:$0xff]  }
  0xc2   : > { %4106 = vmatpush3.bf16.msra.mxu0 %v4484_v7  ;;  %v4540_v7 = vld [vmem:[%s5628_s1 + $0x710] sm:$0xff]  }
  0xc3   : > { %4128 = vmatpush3.bf16.msra.mxu1 %v4485_v8  ;;  %4107 = vmatprep.subr.bf16.mxu0 %v4486_v9  ;;  %v4541_v8 = vld [vmem:[%s5628_s1 + $0x790] sm:$0xff]   ;;  %v4542_v9 = vld [vmem:[%s5628_s1 + $0x758] sm:$0xff]  }
  0xc4   : > { %4129 = vmatprep.subr.bf16.mxu1 %v4487_v10 }
  0xc6   : > { %4108 = vmatpush3.bf16.msra.mxu0 %v4488_v11  ;;  %v4543_v11 = vld [vmem:[%s5628_s1 + $0x7d8] sm:$0xff]  }
  0xc7   : > { %4130 = vmatpush3.bf16.msra.mxu1 %v4489_v12  ;;  %4137 = vmatprep.subr.bf16.mxu0 %v4494_v20 }
  0xc8   : > { %4159 = vmatprep.subr.bf16.mxu1 %v4495_v24 }
  0xc9   : > { %2337 = vmatmul.mubr.bf16.vlgmr.msra.gmra.mrb[20].mxu0 %v2104_v22 }
  0xca   : > { %2377 = vmatmul.mubr.bf16.vlgmr.msra.gmra.mrb[20].mxu1 %v2106_v25  ;;  %4138 = vmatpush3.bf16.msra.mxu0 %v4496_v19  ;;  %v4548_v19 = vld [vmem:[%s5628_s1 + $0x720] sm:$0xff]  }
  0xcb   : > { %4160 = vmatpush3.bf16.msra.mxu1 %v4497_v21  ;;  %4139 = vmatprep.subr.bf16.mxu0 %v4498_v27  ;;  %v4549_v21 = vld [vmem:[%s5628_s1 + $0x7a0] sm:$0xff]  }
  0xcc   : > { %4161 = vmatprep.subr.bf16.mxu1 %v4499_v28  ;;  %2689 = vmatprep.mubr.bf16.mxu0 %v3764_v56  ;;  %v4550_v28 = vld [vmem:[%s5628_s1 + $0x768] sm:$0xff]  }
  0xcd   : > { %2729 = vmatprep.mubr.bf16.mxu1 %v3766_v59 }
  0xce   : > { %4140 = vmatpush3.bf16.msra.mxu0 %v4500_v29  ;;  %v4551_v29 = vld [vmem:[%s5628_s1 + $0x7e8] sm:$0xff]  }
  0xcf   : > { %4162 = vmatpush3.bf16.msra.mxu1 %v4501_v30  ;;  %4141 = vmatprep.subr.bf16.mxu0 %v4502_v31  ;;  %v4552_v30 = vld [vmem:[%s5628_s1 + $0x728] sm:$0xff]  }
  0xd0   : > { %4163 = vmatprep.subr.bf16.mxu1 %v4503_v32  ;;  %v4553_v31 = vld [vmem:[%s5628_s1 + $0x7a8] sm:$0xff]   ;;  %v4554_v32 = vld [vmem:[%s5628_s1 + $0x770] sm:$0xff]  }
  0xd2   : > { %4142 = vmatpush3.bf16.msra.mxu0 %v4504_v33  ;;  %v4555_v33 = vld [vmem:[%s5628_s1 + $0x7f0] sm:$0xff]  }
  0xd3   : > { %4164 = vmatpush3.bf16.msra.mxu1 %v4505_v34  ;;  %4143 = vmatprep.subr.bf16.mxu0 %v4506_v35  ;;  %v4556_v34 = vld [vmem:[%s5628_s1 + $0x730] sm:$0xff]  }
  0xd4   : > { %4165 = vmatprep.subr.bf16.mxu1 %v4507_v36  ;;  %v4557_v35 = vld [vmem:[%s5628_s1 + $0x7b0] sm:$0xff]   ;;  %v4558_v36 = vld [vmem:[%s5628_s1 + $0x778] sm:$0xff]  }
  0xd6   : > { %4144 = vmatpush3.bf16.msra.mxu0 %v4508_v37  ;;  %v4559_v37 = vld [vmem:[%s5628_s1 + $0x7f8] sm:$0xff]  }
  0xd7   : > { %4166 = vmatpush3.bf16.msra.mxu1 %v4509_v38  ;;  %4145 = vmatprep.subr.bf16.mxu0 %v4510_v39  ;;  %v4560_v38 = vld [vmem:[%s5628_s1 + $0x738] sm:$0xff]  }
  0xd8   : > { %4167 = vmatprep.subr.bf16.mxu1 %v4511_v40  ;;  %v4561_v39 = vld [vmem:[%s5628_s1 + $0x7b8] sm:$0xff]   ;;  %v5504_v40 = vld [vmem:[%s4741_s26 + $0x20] sm:$0x11] }
  0xda   : > { %4146 = vmatpush3.bf16.msra.mxu0 %v4512_v41  ;;  %v3799_v41 = vcombine.low %v5392_v55, %v5504_v40 }
  0xdb   : > { %4168 = vmatpush3.bf16.msra.mxu1 %v4513_v42  ;;  %4147 = vmatprep.subr.bf16.mxu0 %v4514_v43  ;;  %v3800_v42 = vcombine.high %v5392_v55, %v5504_v40  ;;  %v5511_v43 = vld [vmem:[%s4741_s26 + $0x28] sm:$0x11] }
  0xdc   : > { %4169 = vmatprep.subr.bf16.mxu1 %v4515_v44  ;;  %v3801_v44 = vcombine.low %v5397_v57, %v5511_v43 }
  0xde   : > { %4148 = vmatpush3.bf16.msra.mxu0 %v4516_v45  ;;  %v3802_v45 = vcombine.high %v5397_v57, %v5511_v43  ;;  %v2839_v55 = vshll.u32 %v3801_v44, 16 }
  0xdf   : > { %4170 = vmatpush3.bf16.msra.mxu1 %v4517_v46  ;;  %4149 = vmatprep.subr.bf16.mxu0 %v4518_v47  ;;  %v4566_v46 = vld [vmem:[%s5628_s1 + $0x840] sm:$0xff]   ;;  %v2830_v47 = vshrl.u32 %v3800_v42, 16 }
  0xe0   : > { %4171 = vmatprep.subr.bf16.mxu1 %v4519_v48  ;;  %v2832_v48 = vshll.u32 %v3800_v42, 16  ;;  %v2841_v59 = vrot.slane %v2839_v55, 1  ;;  %v4595_v42 = vld [vmem:[%s5628_s1 + $0x8f8] sm:$0xff]  }
  0xe2   : > { %4150 = vmatpush3.bf16.msra.mxu0 %v4520_v49  ;;  %v2823_v49 = vshrl.u32 %v3799_v41, 16  ;;  %v2834_v56 = vrot.slane %v2832_v48, 1  ;;  %v3128_v48 = vld [vmem:[%s4741_s26 + $0x18] sm:$0xee] }
  0xe3   : > { %4172 = vmatpush3.bf16.msra.mxu1 %v4521_v50  ;;  %4151 = vmatprep.subr.bf16.mxu0 %v4522_v51  ;;  %v2825_v50 = vshll.u32 %v3799_v41, 16  ;;  %v4567_v51 = vld [vmem:[%s5628_s1 + $0x8c0] sm:$0xff]   ;;  %v4594_v41 = vld [vmem:[%s5628_s1 + $0x878] sm:$0xff]  }
  0xe4   : > { %4173 = vmatprep.subr.bf16.mxu1 %v4523_v52  ;;  %v2844_v52 = vshrl.u32 %v3802_v45, 16 }
  0xe5   : > { %v2827_v57 = vrot.slane %v2825_v50, 1  ;;  %v3837_v50 = vcombine.low %v3128_v48, %v5511_v43 }
  0xe6   : > { %4152 = vmatpush3.bf16.msra.mxu0 %v4524_v53  ;;  %v2846_v53 = vshll.u32 %v3802_v45, 16  ;;  %v4596_v45 = vld [vmem:[%s5628_s1 + $0x838] sm:$0xff]  }
  0xe7   : > { %4174 = vmatpush3.bf16.msra.mxu1 %v4525_v54  ;;  %4181 = vmatprep.subr.bf16.mxu0 %v4530_v60  ;;  %v2837_v54 = vshrl.u32 %v3801_v44, 16  ;;  %v4568_v60 = vld [vmem:[%s5628_s1 + $0x800] sm:$0xff]   ;;  %v3127_v44 = vld [vmem:[%s4741_s26 + $0x10] sm:$0xee]  ;;  %v3205_v55 = vrot.slane %v3837_v50, 1  ;;  %s3545_s26 = sshll.u32 %s5632_s15, 3 }
  0xe8   : > { %4203 = vmatprep.subr.bf16.mxu1 %v4531_v62  ;;  %v2835_v62 = vor.u32 %v2834_v56, %v2830_v47  ;;  %v3836_v47 = vcombine.high %v3127_v44, %v5504_v40  ;;  %s170_s19 = scalar_lea.vmem %s5630_s3, %s3545_s26 }
  0xe9   : > { %2690 = vmatmul.mubr.bf16.vlgmr.msra.gmra.mrb[24].mxu0 %v3763_v58  ;;  %v2848_v58 = vrot.slane %v2846_v53, 1 }
  0xea   : > { %2730 = vmatmul.mubr.bf16.vlgmr.msra.gmra.mrb[24].mxu1 %v3765_v61  ;;  %4182 = vmatpush3.bf16.msra.mxu0 %v4532_v63  ;;  %v4569_v61 = vld [vmem:[%s5628_s1 + $0x880] sm:$0xff]   ;;  %v2828_v63 = vor.u32 %v2827_v57, %v2823_v49  ;;  %v4597_v49 = vld [vmem:[%s5628_s1 + $0x8b8] sm:$0xff]  }
  0xeb   : > { %4204 = vmatpush3.bf16.msra.mxu1 %v4533_v0  ;;  %4183 = vmatprep.subr.bf16.mxu0 %v4534_v1  ;;  %v2849_v0 = vor.u32 %v2848_v58, %v2844_v52  ;;  %v2842_v1 = vor.u32 %v2841_v59, %v2837_v54  ;;  %v3204_v52 = vrot.slane %v3836_v47, 1 }
  0xec   : > { %4205 = vmatprep.subr.bf16.mxu1 %v4535_v2  ;;  %v4570_v2 = vld [vmem:[%s5628_s1 + $0x848] sm:$0xff]   ;;  %3078 = vmatprep.mubr.bf16.mxu0 %v2835_v62 }
  0xed   : > { %3118 = vmatprep.mubr.bf16.mxu1 %v2849_v0 }
  0xee   : > { %4184 = vmatpush3.bf16.msra.mxu0 %v4536_v3  ;;  %v4571_v3 = vld [vmem:[%s5628_s1 + $0x8c8] sm:$0xff]  }
  0xef   : > { %4206 = vmatpush3.bf16.msra.mxu1 %v4537_v4  ;;  %4185 = vmatprep.subr.bf16.mxu0 %v4538_v5  ;;  %v4572_v4 = vld [vmem:[%s5628_s1 + $0x808] sm:$0xff]  }
  0xf0   : > { %4207 = vmatprep.subr.bf16.mxu1 %v4539_v6  ;;  %v4573_v5 = vld [vmem:[%s5628_s1 + $0x888] sm:$0xff]   ;;  %v4574_v6 = vld [vmem:[%s5628_s1 + $0x850] sm:$0xff]  }
  0xf2   : > { %4186 = vmatpush3.bf16.msra.mxu0 %v4540_v7  ;;  %v4575_v7 = vld [vmem:[%s5628_s1 + $0x8d0] sm:$0xff]  }
  0xf3   : > { %4208 = vmatpush3.bf16.msra.mxu1 %v4541_v8  ;;  %4187 = vmatprep.subr.bf16.mxu0 %v4542_v9  ;;  %v4576_v8 = vld [vmem:[%s5628_s1 + $0x810] sm:$0xff]  }
  0xf4   : > { %4209 = vmatprep.subr.bf16.mxu1 %v4543_v11  ;;  %v4577_v9 = vld [vmem:[%s5628_s1 + $0x890] sm:$0xff]   ;;  %v4579_v11 = vld [vmem:[%s5628_s1 + $0x8d8] sm:$0xff]  }
  0xf6   : > { %4188 = vmatpush3.bf16.msra.mxu0 %v4544_v13  ;;  %v4581_v13 = vld [vmem:[%s5628_s1 + $0x898] sm:$0xff]  }
  0xf7   : > { %4210 = vmatpush3.bf16.msra.mxu1 %v4545_v15  ;;  %4189 = vmatprep.subr.bf16.mxu0 %v4546_v18  ;;  %v3546_v15 = vld [vmem:[#allocation2] ss:$0 sm:$0xff] }
  0xf8   : > { %4211 = vmatprep.subr.bf16.mxu1 %v4547_v23  ;;  %v4583_v18 = vld [vmem:[%s5628_s1 + $0x8e0] sm:$0xff]  }
  0xfa   : > { %4190 = vmatpush3.bf16.msra.mxu0 %v4548_v19  ;;  %v4585_v19 = vld [vmem:[%s5628_s1 + $0x8a0] sm:$0xff]  }
  0xfb   : > { %4212 = vmatpush3.bf16.msra.mxu1 %v4549_v21  ;;  %4191 = vmatprep.subr.bf16.mxu0 %v4550_v28 }
  0xfc   : > { %v3889_v10 = vpop.f32.mrb[0].mxu0  ;;  %4213 = vmatprep.subr.bf16.mxu1 %v4551_v29 }
  0xfd   : > { %v3911_v12 = vpop.f32.mrb[0].mxu1  ;;  %v3890_v14 = vpop.f32.mrb[1].mxu0 }
  0xfe   : > { %v3891_v16 = vadd.f32 %v3890_v14, %v3889_v10  ;;  %v3912_v17 = vpop.f32.mrb[1].mxu1  ;;  %v3892_v22 = vpop.f32.mrb[2].mxu0  ;;  %4192 = vmatpush3.bf16.msra.mxu0 %v4552_v30  ;;  %v4578_v10 = vld [vmem:[%s5628_s1 + $0x858] sm:$0xff]  }
  0xff   : > { %v3913_v20 = vadd.f32 %v3912_v17, %v3911_v12  ;;  %v3914_v24 = vpop.f32.mrb[2].mxu1  ;;  %v3893_v26 = vpop.f32.mrb[3].mxu0  ;;  %4214 = vmatpush3.bf16.msra.mxu1 %v4553_v31  ;;  %4193 = vmatprep.subr.bf16.mxu0 %v4554_v32  ;;  %v4580_v12 = vld [vmem:[%s5628_s1 + $0x818] sm:$0xff]   ;;  %v4584_v22 = vld [vmem:[%s5628_s1 + $0x820] sm:$0xff]   ;;  %v4587_v31 = vld [vmem:[%s5628_s1 + $0x8e8] sm:$0xff]  }
 0x100   : > { %v3915_v27 = vpop.f32.mrb[3].mxu1  ;;  %4215 = vmatprep.subr.bf16.mxu1 %v4555_v33  ;;  %v4588_v33 = vld [vmem:[%s5628_s1 + $0x828] sm:$0xff]  }
 0x101   : > { %v5462_v25 = vadd.f32 %v3913_v20, %v3891_v16  ;;  %v4582_v16 = vld [vmem:[%s5628_s1 + $0x860] sm:$0xff]   ;;  %v4586_v27 = vld [vmem:[%s5628_s1 + $0x868] sm:$0xff]  }
 0x102   : > { %4194 = vmatpush3.bf16.msra.mxu0 %v4556_v34 }
 0x103   : > { %4216 = vmatpush3.bf16.msra.mxu1 %v4557_v35  ;;  %4195 = vmatprep.subr.bf16.mxu0 %v4558_v36  ;;  %v531_v29 = vadd.f32 %v3546_v15, %v5462_v25  ;;  %v4589_v36 = vld [vmem:[%s5628_s1 + $0x8a8] sm:$0xff]   ;;  %v4590_v25 = vld [vmem:[%s5628_s1 + $0x870] sm:$0xff]  }
 0x104   : > { %4217 = vmatprep.subr.bf16.mxu1 %v4559_v37  ;;  %v4591_v37 = vld [vmem:[%s5628_s1 + $0x8f0] sm:$0xff]  }
 0x106   : > { %4196 = vmatpush3.bf16.msra.mxu0 %v4560_v38  ;;  %v4592_v38 = vld [vmem:[%s5628_s1 + $0x830] sm:$0xff]  }
 0x107   : > { %4218 = vmatpush3.bf16.msra.mxu1 %v4561_v39  ;;  %4225 = vmatprep.subr.bf16.mxu0 %v4566_v46  ;;  %v4593_v39 = vld [vmem:[%s5628_s1 + $0x8b0] sm:$0xff]   ;;  %v3835_v46 = vcombine.low %v3127_v44, %v5504_v40 }
 0x108   : > { %4247 = vmatprep.subr.bf16.mxu1 %v4567_v51  ;;  %v3838_v51 = vcombine.high %v3128_v48, %v5511_v43 }
 0x109   : > { %3079 = vmatmul.mubr.bf16.vlgmr.msra.gmra.mrb[28].mxu0 %v2828_v63  ;;  %v3203_v53 = vrot.slane %v3835_v46, 1 }
 0x10a   : > { %3119 = vmatmul.mubr.bf16.vlgmr.msra.gmra.mrb[28].mxu1 %v2842_v1  ;;  %4226 = vmatpush3.bf16.msra.mxu0 %v4568_v60  ;;  %v3206_v54 = vrot.slane %v3838_v51, 1 }
 0x10b   : > { %4248 = vmatpush3.bf16.msra.mxu1 %v4569_v61  ;;  %4227 = vmatprep.subr.bf16.mxu0 %v4570_v2 }
 0x10c   : > { %4249 = vmatprep.subr.bf16.mxu1 %v4571_v3  ;;  %3435 = vmatprep.mubr.bf16.mxu0 %v3204_v52 }
 0x10d   : > { %3475 = vmatprep.mubr.bf16.mxu1 %v3206_v54 }
 0x10e   : > { %4228 = vmatpush3.bf16.msra.mxu0 %v4572_v4 }
 0x10f   : > { %4250 = vmatpush3.bf16.msra.mxu1 %v4573_v5  ;;  %4229 = vmatprep.subr.bf16.mxu0 %v4574_v6 }
 0x110   : > { %4251 = vmatprep.subr.bf16.mxu1 %v4575_v7 }
 0x112   : > { %4230 = vmatpush3.bf16.msra.mxu0 %v4576_v8 }
 0x113   : > { %4252 = vmatpush3.bf16.msra.mxu1 %v4577_v9  ;;  %4231 = vmatprep.subr.bf16.mxu0 %v4578_v10 }
 0x114   : > { %4253 = vmatprep.subr.bf16.mxu1 %v4579_v11 }
 0x116   : > { %4232 = vmatpush3.bf16.msra.mxu0 %v4580_v12 }
 0x117   : > { %4254 = vmatpush3.bf16.msra.mxu1 %v4581_v13  ;;  %4233 = vmatprep.subr.bf16.mxu0 %v4582_v16 }
 0x118   : > { %4255 = vmatprep.subr.bf16.mxu1 %v4583_v18 }
 0x11a   : > { %4234 = vmatpush3.bf16.msra.mxu0 %v4584_v22 }
 0x11b   : > { %4256 = vmatpush3.bf16.msra.mxu1 %v4585_v19  ;;  %4235 = vmatprep.subr.bf16.mxu0 %v4586_v27 }
 0x11c   : > { %v3933_v14 = vpop.f32.mrb[4].mxu0  ;;  %4257 = vmatprep.subr.bf16.mxu1 %v4587_v31 }
 0x11d   : > { %v3955_v17 = vpop.f32.mrb[4].mxu1  ;;  %v3934_v20 = vpop.f32.mrb[5].mxu0 }
 0x11e   : > { %v3935_v23 = vadd.f32 %v3934_v20, %v3933_v14  ;;  %v3956_v24 = vpop.f32.mrb[5].mxu1  ;;  %v3936_v21 = vpop.f32.mrb[6].mxu0  ;;  %4236 = vmatpush3.bf16.msra.mxu0 %v4588_v33 }
 0x11f   : > { %v3957_v26 = vadd.f32 %v3956_v24, %v3955_v17  ;;  %v3958_v28 = vpop.f32.mrb[6].mxu1  ;;  %v3937_v32 = vpop.f32.mrb[7].mxu0  ;;  %4258 = vmatpush3.bf16.msra.mxu1 %v4589_v36  ;;  %4237 = vmatprep.subr.bf16.mxu0 %v4590_v25 }
 0x120   : > { %v3959_v34 = vpop.f32.mrb[7].mxu1  ;;  %4259 = vmatprep.subr.bf16.mxu1 %v4591_v37 }
 0x121   : > { %v915_v30 = vadd.f32 %v3957_v26, %v3935_v23 }
 0x122   : > { %4238 = vmatpush3.bf16.msra.mxu0 %v4592_v38 }
 0x123   : > { %v920_v35 = vadd.f32 %v915_v30, %v531_v29  ;;  %4260 = vmatpush3.bf16.msra.mxu1 %v4593_v39  ;;  %4239 = vmatprep.subr.bf16.mxu0 %v4594_v41 }
 0x124   : > { %4261 = vmatprep.subr.bf16.mxu1 %v4595_v42 }
 0x126   : > { %4240 = vmatpush3.bf16.msra.mxu0 %v4596_v45 }
 0x127   : > { %4262 = vmatpush3.bf16.msra.mxu1 %v4597_v49 }
 0x129   : > { %3436 = vmatmul.mubr.bf16.vlgmr.msra.gmra.mrb[32].mxu0 %v3203_v53 }
 0x12a   : > { %3476 = vmatmul.mubr.bf16.vlgmr.msra.gmra.mrb[32].mxu1 %v3205_v55 }
 0x13c   : > { %v3977_v40 = vpop.f32.mrb[8].mxu0 }
 0x13d   : > { %v3999_v56 = vpop.f32.mrb[8].mxu1  ;;  %v3978_v57 = vpop.f32.mrb[9].mxu0 }
 0x13e   : > { %v3979_v58 = vadd.f32 %v3978_v57, %v3977_v40  ;;  %v4000_v59 = vpop.f32.mrb[9].mxu1  ;;  %v3980_v60 = vpop.f32.mrb[10].mxu0 }
 0x13f   : > { %v4001_v61 = vadd.f32 %v4000_v59, %v3999_v56  ;;  %v4002_v62 = vpop.f32.mrb[10].mxu1  ;;  %v3981_v43 = vpop.f32.mrb[11].mxu0 }
 0x140   : > { %v4003_v63 = vpop.f32.mrb[11].mxu1 }
 0x141   : > { %v1272_v0 = vadd.f32 %v4001_v61, %v3979_v58 }
 0x143   : > { %v1277_v1 = vadd.f32 %v1272_v0, %v920_v35 }
 0x15c   : > { %v4021_v2 = vpop.f32.mrb[12].mxu0 }
 0x15d   : > { %v4043_v3 = vpop.f32.mrb[12].mxu1  ;;  %v4022_v4 = vpop.f32.mrb[13].mxu0 }
 0x15e   : > { %v4023_v5 = vadd.f32 %v4022_v4, %v4021_v2  ;;  %v4044_v6 = vpop.f32.mrb[13].mxu1  ;;  %v4024_v7 = vpop.f32.mrb[14].mxu0 }
 0x15f   : > { %v4045_v8 = vadd.f32 %v4044_v6, %v4043_v3  ;;  %v4046_v9 = vpop.f32.mrb[14].mxu1  ;;  %v4025_v10 = vpop.f32.mrb[15].mxu0 }
 0x160   : > { %v4047_v11 = vpop.f32.mrb[15].mxu1 }
 0x161   : > { %v1637_v12 = vadd.f32 %v4045_v8, %v4023_v5 }
 0x163   : > { %v1642_v13 = vadd.f32 %v1637_v12, %v1277_v1 }
 0x17c   : > { %v4065_v14 = vpop.f32.mrb[16].mxu0 }
 0x17d   : > { %v4087_v15 = vpop.f32.mrb[16].mxu1  ;;  %v4066_v16 = vpop.f32.mrb[17].mxu0 }
 0x17e   : > { %v4067_v17 = vadd.f32 %v4066_v16, %v4065_v14  ;;  %v4088_v18 = vpop.f32.mrb[17].mxu1  ;;  %v4068_v20 = vpop.f32.mrb[18].mxu0 }
 0x17f   : > { %v4089_v22 = vadd.f32 %v4088_v18, %v4087_v15  ;;  %v4090_v23 = vpop.f32.mrb[18].mxu1  ;;  %v4069_v24 = vpop.f32.mrb[19].mxu0 }
 0x180   : > { %v4091_v19 = vpop.f32.mrb[19].mxu1 }
 0x181   : > { %v2022_v26 = vadd.f32 %v4089_v22, %v4067_v17 }
 0x183   : > { %v2027_v21 = vadd.f32 %v2022_v26, %v1642_v13 }
 0x19c   : > { %v4109_v27 = vpop.f32.mrb[20].mxu0 }
 0x19d   : > { %v4131_v28 = vpop.f32.mrb[20].mxu1  ;;  %v4110_v29 = vpop.f32.mrb[21].mxu0 }
 0x19e   : > { %v4111_v30 = vadd.f32 %v4110_v29, %v4109_v27  ;;  %v4132_v31 = vpop.f32.mrb[21].mxu1  ;;  %v4112_v32 = vpop.f32.mrb[22].mxu0 }
 0x19f   : > { %v4133_v33 = vadd.f32 %v4132_v31, %v4131_v28  ;;  %v4134_v34 = vpop.f32.mrb[22].mxu1  ;;  %v4113_v35 = vpop.f32.mrb[23].mxu0 }
 0x1a0   : > { %v4135_v36 = vpop.f32.mrb[23].mxu1 }
 0x1a1   : > { %v2379_v25 = vadd.f32 %v4133_v33, %v4111_v30 }
 0x1a3   : > { %v2384_v37 = vadd.f32 %v2379_v25, %v2027_v21 }
 0x1bc   : > { %v4153_v38 = vpop.f32.mrb[24].mxu0 }
 0x1bd   : > { %v4175_v39 = vpop.f32.mrb[24].mxu1  ;;  %v4154_v41 = vpop.f32.mrb[25].mxu0 }
 0x1be   : > { %v4155_v42 = vadd.f32 %v4154_v41, %v4153_v38  ;;  %v4176_v44 = vpop.f32.mrb[25].mxu1  ;;  %v4156_v45 = vpop.f32.mrb[26].mxu0 }
 0x1bf   : > { %v4177_v46 = vadd.f32 %v4176_v44, %v4175_v39  ;;  %v4178_v47 = vpop.f32.mrb[26].mxu1  ;;  %v4157_v48 = vpop.f32.mrb[27].mxu0 }
 0x1c0   : > { %v4179_v49 = vpop.f32.mrb[27].mxu1 }
 0x1c1   : > { %v2732_v50 = vadd.f32 %v4177_v46, %v4155_v42 }
 0x1c3   : > { %v2737_v51 = vadd.f32 %v2732_v50, %v2384_v37 }
 0x1dc   : > { %v4197_v52 = vpop.f32.mrb[28].mxu0 }
 0x1dd   : > { %v4219_v53 = vpop.f32.mrb[28].mxu1  ;;  %v4198_v54 = vpop.f32.mrb[29].mxu0 }
 0x1de   : > { %v4199_v55 = vadd.f32 %v4198_v54, %v4197_v52  ;;  %v4220_v40 = vpop.f32.mrb[29].mxu1  ;;  %v4200_v56 = vpop.f32.mrb[30].mxu0 }
 0x1df   : > { %v4221_v57 = vadd.f32 %v4220_v40, %v4219_v53  ;;  %v4222_v58 = vpop.f32.mrb[30].mxu1  ;;  %v4201_v59 = vpop.f32.mrb[31].mxu0 }
 0x1e0   : > { %v4223_v60 = vpop.f32.mrb[31].mxu1 }
 0x1e1   : > { %v3121_v61 = vadd.f32 %v4221_v57, %v4199_v55 }
 0x1e3   : > { %v3126_v62 = vadd.f32 %v3121_v61, %v2737_v51 }
 0x1fc   : > { %v4241_v43 = vpop.f32.mrb[32].mxu0 }
 0x1fd   : > { %v4263_v63 = vpop.f32.mrb[32].mxu1  ;;  %v4242_v0 = vpop.f32.mrb[33].mxu0 }
 0x1fe   : > { %v4243_v1 = vadd.f32 %v4242_v0, %v4241_v43  ;;  %v4264_v2 = vpop.f32.mrb[33].mxu1  ;;  %v4244_v3 = vpop.f32.mrb[34].mxu0 }
 0x1ff   : > { %v4265_v4 = vadd.f32 %v4264_v2, %v4263_v63  ;;  %v4266_v5 = vpop.f32.mrb[34].mxu1  ;;  %v4245_v6 = vpop.f32.mrb[35].mxu0 }
 0x200   : > { %v4267_v7 = vpop.f32.mrb[35].mxu1 }
 0x201   : > { %v3478_v8 = vadd.f32 %v4265_v4, %v4243_v1 }
 0x203   : > { %v3483_v9 = vadd.f32 %v3478_v8, %v3126_v62 }
 0x205   : > { %3485 = vst.msk [vmem:[%s170_s19] sm:$0xff] %vm3484_vm0, %v3483_v9 }
 0x206 PF: > { %s15_s14 = sadd.s32 1, %s4608_s14  }
 0x207   : > { %p12_p4 = scmp.ge.s32.totalorder %s15_s14, 4  }
 0x209   :  { %14 = sbr.rel (!%p12_p4) target bundleno = 3 (0x3), region = 62 }

</bundles_post_ra>
